<compile_context>
chip_gen: v5e
topology: v5e:2x2
jax: 0.10.0
libtpu: 0.0.40
codegen_flags: <defaults>
</compile_context>

<pallas_src>
import functools

import numpy as np

import jax
import jax.numpy as jnp
from jax.experimental import pallas as pl
from jax.experimental.pallas import tpu as pltpu


# ------------------------------ Pallas kernel ------------------------------ #

def _fused_cnn_kernel(x_ref, m1_ref, b1_ref, m2_ref, b2_ref, l_ref, bl_ref,
                      o_ref, *, B):
    """Fused conv1+pool1+conv2+pool2+linear for a block of B padded images.

    x_ref : (32, B, 32) bf16   padded images, rows = padded-h, lanes = padded-w
    m1_ref: (160, 512)  bf16   conv1 row-Toeplitz weights, K fused over dy
    b1_ref: (1, 512)    f32    conv1 bias (permuted lanes, pads = 0)
    m2_ref: (1280, 512) bf16   conv2 row-Toeplitz weights, K fused over dy
    b2_ref: (1, 512)    f32    conv2 bias (permuted lanes, pads = 0)
    l_ref : (1792, OP)  bf16   linear weights, K fused over the 7 pooled rows
    bl_ref: (1, OP)     f32
    o_ref : (B, OP)     f32
    """
    H1, H2 = 28, 14            # conv1 / conv2 output heights
    KH = 5
    HALF = 256                 # even-w / odd-w half lane width (padded)
    F = 2 * HALF               # conv output lane width (permuted + padded)

    # ---------------- conv1: ONE (28B,160)x(160,512) matmul ----------------- #
    x = x_ref[...]                                              # bf16 (32,B,32)
    lhs1 = jnp.concatenate([x[dy:dy + H1] for dy in range(KH)], axis=-1)
    lhs1 = lhs1.reshape(H1 * B, KH * 32)                        # rows = (h, img)
    acc1 = jnp.dot(lhs1, m1_ref[...], preferred_element_type=jnp.float32)
    acc1 = jnp.maximum(acc1 + b1_ref[...], 0.0)                 # (28B, 512)

    # ---------------- 2x2 max-pool #1 (compact, lane-aligned) --------------- #
    yr = acc1.reshape(H1 // 2, 2, B, F)
    y = jnp.maximum(yr[:, 0], yr[:, 1])                         # H-pool (14,B,512)
    p1 = jnp.maximum(y[..., :HALF], y[..., HALF:]).astype(jnp.bfloat16)
    # p1: (14, B, 256) bf16, lane = w2*16 + c  (lanes [224,256) are zero pad)

    # ---------------- conv2: ONE (14B,1280)x(1280,512) matmul --------------- #
    zrow = jnp.zeros((2, B, HALF), jnp.bfloat16)
    p1p = jnp.concatenate([zrow, p1, zrow], axis=0)             # (18, B, 256)
    lhs2 = jnp.concatenate([p1p[dy:dy + H2] for dy in range(KH)], axis=-1)
    lhs2 = lhs2.reshape(H2 * B, KH * HALF)
    acc2 = jnp.dot(lhs2, m2_ref[...], preferred_element_type=jnp.float32)
    acc2 = jnp.maximum(acc2 + b2_ref[...], 0.0)                 # (14B, 512)

    # ---------------- 2x2 max-pool #2 --------------------------------------- #
    y2r = acc2.reshape(H2 // 2, 2, B, F)
    y2 = jnp.maximum(y2r[:, 0], y2r[:, 1])                      # (7, B, 512)
    p2 = jnp.maximum(y2[..., :HALF], y2[..., HALF:]).astype(jnp.bfloat16)
    # p2: (7, B, 256) bf16, lane = w4*32 + c (lanes [224,256) zero)

    # ---------------- Linear: ONE (B,1792)x(1792,OP) matmul ----------------- #
    feat = jnp.concatenate([p2[h] for h in range(7)], axis=-1)  # (B, 1792)
    out = jnp.dot(feat, l_ref[...], preferred_element_type=jnp.float32)
    o_ref[...] = out + bl_ref[...]


# -------------------- host-side weight repacking (numpy) -------------------- #

def prepare_params(params, *, lane_pad=128):
    """Repack PyTorch-layout weights into permuted, K-fused Toeplitz operands."""
    w1, b1, w2, b2, wl, bl = [np.asarray(p, np.float32) for p in params]
    O = wl.shape[0]
    OP = ((O + lane_pad - 1) // lane_pad) * lane_pad
    K, C1, C2 = 5, 16, 32
    W1, W2 = 28, 14
    WP1 = W1 + 4                 # padded input width (32)
    HALF = 256                   # even/odd half width (224 useful + 32 pad)
    F = 2 * HALF

    # conv1: m1[dy*32 + p, outlane1(wout,co)] = w1[co,0,dy,p-wout]
    # outlane1(w,c) = (w%2)*HALF + (w//2)*C1 + c   (even w first, then odd w)
    m1 = np.zeros((K, WP1, F), np.float32)
    for dy in range(K):
        for dx in range(K):
            for wout in range(W1):
                base = (wout % 2) * HALF + (wout // 2) * C1
                m1[dy, wout + dx, base:base + C1] = w1[:, 0, dy, dx]
    m1 = m1.reshape(K * WP1, F)                                 # (160, 512)

    # conv2 reads compact pooled conv1 lanes (lane = win*C1 + ci, width 256).
    # m2[dy*256 + win*C1 + ci, outlane2(wout,co)] = w2[co,ci,dy,win-wout+2]
    m2 = np.zeros((K, HALF, F), np.float32)
    for dy in range(K):
        for dx in range(K):
            for wout in range(W2):
                win = wout + dx - 2
                if 0 <= win < W2:
                    bo = (wout % 2) * HALF + (wout // 2) * C2
                    bi = win * C1
                    m2[dy, bi:bi + C1, bo:bo + C2] = w2[:, :, dy, dx].T
    m2 = m2.reshape(K * HALF, F)                                # (1280, 512)

    # Linear reads compact pooled conv2 lanes (lane = w4*C2 + c, width 256),
    # 7 h-rows fused along K.  PyTorch flatten order: c*49 + h*7 + w.
    wl4 = wl.reshape(O, C2, 7, 7)
    lm = np.zeros((7, HALF, OP), np.float32)
    for h in range(7):
        for w in range(7):
            lm[h, w * C2:(w + 1) * C2, :O] = wl4[:, :, h, w].T  # (c, o)
    lm = lm.reshape(7 * HALF, OP)                               # (1792, OP)

    b1t = np.zeros((1, F), np.float32)
    for w in range(W1):
        base = (w % 2) * HALF + (w // 2) * C1
        b1t[0, base:base + C1] = b1
    b2t = np.zeros((1, F), np.float32)
    for w in range(W2):
        base = (w % 2) * HALF + (w // 2) * C2
        b2t[0, base:base + C2] = b2
    blt = np.zeros((1, OP), np.float32)
    blt[0, :O] = bl

    return (jnp.asarray(m1, jnp.bfloat16), jnp.asarray(b1t, jnp.float32),
            jnp.asarray(m2, jnp.bfloat16), jnp.asarray(b2t, jnp.float32),
            jnp.asarray(lm, jnp.bfloat16), jnp.asarray(blt, jnp.float32),
            O)


# ------------------------------ Pallas wrapper ------------------------------ #

def cnn_feature_extraction_forward(x, packed, *, block_b=128):
    """x: (batch, bag, 1, 28, 28) -> (batch, bag, output_size)."""
    m1, b1t, m2, b2t, lm, blt, O = packed
    assert x.shape[2:] == (1, 28, 28), x.shape
    batch, bag = x.shape[0], x.shape[1]
    OP = lm.shape[-1]
    N = batch * bag

    B = min(int(block_b), ((N + 7) // 8) * 8)
    B = max(8, (B // 8) * 8)                       # images per grid step
    n_pad = ((N + B - 1) // B) * B
    assert B % 8 == 0 and n_pad % B == 0

    # feed the kernel bf16 directly (it truncates anyway): halves input HBM/DMA
    xi = x.reshape(N, 28, 28).astype(jnp.bfloat16)
    xi = jnp.pad(xi, ((0, n_pad - N), (2, 2), (2, 2)))    # zero-pad batch+spatial
    xt = jnp.transpose(xi, (1, 0, 2))                     # (32, n_pad, 32): (h,img,w)

    flops = 2 * n_pad * (28 * 160 * 512 + 14 * 1280 * 512 + 1792 * OP)
    bytes_accessed = (xt.size * 2 + n_pad * OP * 4
                      + (m1.size + m2.size + lm.size) * 2
                      + (b1t.size + b2t.size + blt.size) * 4)

    kernel = functools.partial(_fused_cnn_kernel, B=B)
    out = pl.pallas_call(
        kernel,
        out_shape=jax.ShapeDtypeStruct((n_pad, OP), jnp.float32),
        grid_spec=pltpu.PrefetchScalarGridSpec(
            num_scalar_prefetch=0,
            grid=(n_pad // B,),
            in_specs=[
                pl.BlockSpec((32, B, 32), lambda n: (0, n, 0)),   # images
                pl.BlockSpec(m1.shape, lambda n: (0, 0)),         # conv1 Toeplitz
                pl.BlockSpec(b1t.shape, lambda n: (0, 0)),
                pl.BlockSpec(m2.shape, lambda n: (0, 0)),         # conv2 Toeplitz
                pl.BlockSpec(b2t.shape, lambda n: (0, 0)),
                pl.BlockSpec(lm.shape, lambda n: (0, 0)),         # linear
                pl.BlockSpec(blt.shape, lambda n: (0, 0)),
            ],
            out_specs=pl.BlockSpec((B, OP), lambda n: (n, 0)),
        ),
        compiler_params=pltpu.CompilerParams(
            dimension_semantics=("parallel",),
            vmem_limit_bytes=64 * 1024 * 1024,   # <= v7x physical; plenty on v5e/v6e
        ),
        cost_estimate=pl.CostEstimate(flops=flops, transcendentals=0,
                                      bytes_accessed=bytes_accessed),
    )(xt, m1, b1t, m2, b2t, lm, blt)
    return out[:N, :O].reshape(batch, bag, O)


# ---------------------------- pure-JAX reference ---------------------------- #

def reference_forward(x, params):
    w1, b1, w2, b2, wl, bl = params
    batch, bag = x.shape[0], x.shape[1]
    xi = x.reshape(batch * bag, *x.shape[2:])

    def conv_block(y, w, b):
        y = jax.lax.conv_general_dilated(
            y, w, window_strides=(1, 1), padding=((2, 2), (2, 2)),
            dimension_numbers=("NCHW", "OIHW", "NCHW"))
        y = jnp.maximum(y + b[None, :, None, None], 0.0)
        y = jax.lax.reduce_window(y, -jnp.inf, jax.lax.max,
                                  (1, 1, 2, 2), (1, 1, 2, 2), "VALID")
        return y

    y = conv_block(xi, w1, b1)
    y = conv_block(y, w2, b2)
    feat = y.reshape(y.shape[0], -1)
    out = feat @ wl.T + bl
    return out.reshape(batch, bag, -1)


# ---------------------------------- main ------------------------------------ #

if __name__ == "__main__":
    output_size = 32  # spatial must be 28x28 (Linear expects 32*7*7)

    key = jax.random.PRNGKey(0)
    k1, k2, k3, k4, k5, k6, kx, kx2 = jax.random.split(key, 8)
    w1 = jax.random.normal(k1, (16, 1, 5, 5), jnp.float32) * 0.1
    b1 = jax.random.normal(k2, (16,), jnp.float32) * 0.1
    w2 = jax.random.normal(k3, (32, 16, 5, 5), jnp.float32) * 0.05
    b2 = jax.random.normal(k4, (32,), jnp.float32) * 0.05
    wl = jax.random.normal(k5, (output_size, 32 * 7 * 7), jnp.float32) * 0.02
    bl = jax.random.normal(k6, (output_size,), jnp.float32) * 0.02
    params = (w1, b1, w2, b2, wl, bl)
    packed = prepare_params(params)

    # --- test 1: tiny batch (single grid step, B clamps to 8) --------------- #
    x = jax.random.normal(kx, (2, 3, 1, 28, 28), jnp.float32)
    out = jax.block_until_ready(cnn_feature_extraction_forward(x, packed))
    assert out.shape == (2, 3, output_size), out.shape
    ref = jax.block_until_ready(reference_forward(x, params))
    # convs + linear use bf16 operands (f32 accumulation) -> 3e-2 tolerance
    assert jnp.allclose(out, ref, atol=3e-2, rtol=3e-2), (
        float(jnp.max(jnp.abs(out - ref))))

    # --- test 2: multi-step grid (N=210 > block_b, batch padding path) ------ #
    x2 = jax.random.normal(kx2, (3, 70, 1, 28, 28), jnp.float32)
    out2 = jax.block_until_ready(cnn_feature_extraction_forward(x2, packed))
    assert out2.shape == (3, 70, output_size), out2.shape
    ref2 = jax.block_until_ready(reference_forward(x2, params))
    assert jnp.allclose(out2, ref2, atol=3e-2, rtol=3e-2), (
        float(jnp.max(jnp.abs(out2 - ref2))))

    print("KERNEL_OK")
</pallas_src>

<mosaic_0001>
module attributes {stable_mosaic.version = 11 : i64} {
  func.func @_fused_cnn_kernel(%arg0: i32, %arg1: memref<32x8x32xbf16, #tpu.memory_space<vmem>>, %arg2: memref<160x512xbf16, #tpu.memory_space<vmem>>, %arg3: memref<1x512xf32, #tpu.memory_space<vmem>>, %arg4: memref<1280x512xbf16, #tpu.memory_space<vmem>>, %arg5: memref<1x512xf32, #tpu.memory_space<vmem>>, %arg6: memref<1792x128xbf16, #tpu.memory_space<vmem>>, %arg7: memref<1x128xf32, #tpu.memory_space<vmem>>, %arg8: memref<8x128xf32, #tpu.memory_space<vmem>>) attributes {dimension_semantics = [#tpu.dimension_semantics<parallel>], iteration_bounds = array<i64: 1>, scalar_prefetch = 0 : i64, scratch_operands = 0 : i64, tpu.core_type = #tpu.core_type<tc>, window_params = [{transform_indices = @transform_0, window_bounds = array<i64: 32, 8, 32>}, {pipeline_mode = #tpu.pipeline_mode<synchronous>, transform_indices = @transform_1, window_bounds = array<i64: 160, 512>}, {pipeline_mode = #tpu.pipeline_mode<synchronous>, transform_indices = @transform_2, window_bounds = array<i64: 1, 512>}, {pipeline_mode = #tpu.pipeline_mode<synchronous>, transform_indices = @transform_3, window_bounds = array<i64: 1280, 512>}, {pipeline_mode = #tpu.pipeline_mode<synchronous>, transform_indices = @transform_4, window_bounds = array<i64: 1, 512>}, {pipeline_mode = #tpu.pipeline_mode<synchronous>, transform_indices = @transform_5, window_bounds = array<i64: 1792, 128>}, {pipeline_mode = #tpu.pipeline_mode<synchronous>, transform_indices = @transform_6, window_bounds = array<i64: 1, 128>}, {transform_indices = @transform_7, window_bounds = array<i64: 8, 128>}]} {
    %c0 = arith.constant 0 : index
    %c0_0 = arith.constant 0 : index
    %c0_1 = arith.constant 0 : index
    %0 = vector.load %arg1[%c0, %c0_0, %c0_1] : memref<32x8x32xbf16, #tpu.memory_space<vmem>>, vector<32x8x32xbf16>
    %1 = vector.extract_strided_slice %0 {offsets = [0, 0, 0], sizes = [28, 8, 32], strides = [1, 1, 1]} : vector<32x8x32xbf16> to vector<28x8x32xbf16>
    %2 = vector.extract_strided_slice %0 {offsets = [1, 0, 0], sizes = [28, 8, 32], strides = [1, 1, 1]} : vector<32x8x32xbf16> to vector<28x8x32xbf16>
    %3 = vector.extract_strided_slice %0 {offsets = [2, 0, 0], sizes = [28, 8, 32], strides = [1, 1, 1]} : vector<32x8x32xbf16> to vector<28x8x32xbf16>
    %4 = vector.extract_strided_slice %0 {offsets = [3, 0, 0], sizes = [28, 8, 32], strides = [1, 1, 1]} : vector<32x8x32xbf16> to vector<28x8x32xbf16>
    %5 = vector.extract_strided_slice %0 {offsets = [4, 0, 0], sizes = [28, 8, 32], strides = [1, 1, 1]} : vector<32x8x32xbf16> to vector<28x8x32xbf16>
    %6 = tpu.concatenate %1, %2, %3, %4, %5 in 2 : vector<28x8x32xbf16>, vector<28x8x32xbf16>, vector<28x8x32xbf16>, vector<28x8x32xbf16>, vector<28x8x32xbf16> -> vector<28x8x160xbf16>
    %7 = vector.shape_cast %6 : vector<28x8x160xbf16> to vector<224x160xbf16>
    %c0_2 = arith.constant 0 : index
    %c0_3 = arith.constant 0 : index
    %8 = vector.load %arg2[%c0_2, %c0_3] : memref<160x512xbf16, #tpu.memory_space<vmem>>, vector<160x512xbf16>
    %cst = arith.constant dense<0.000000e+00> : vector<224x512xf32>
    %9 = tpu.matmul %7, %8, %cst {dimension_numbers = #tpu.dot_dimension_numbers<[1], [0], [0], [1], [0, 0, 1, 1], [], []>} : vector<224x160xbf16>, vector<160x512xbf16>, vector<224x512xf32> -> vector<224x512xf32>
    %c0_4 = arith.constant 0 : index
    %c0_5 = arith.constant 0 : index
    %10 = vector.load %arg3[%c0_4, %c0_5] : memref<1x512xf32, #tpu.memory_space<vmem>>, vector<1x512xf32>
    %11 = vector.broadcast %10 : vector<1x512xf32> to vector<224x512xf32>
    %12 = arith.addf %9, %11 : vector<224x512xf32>
    %cst_6 = arith.constant 0.000000e+00 : f32
    %13 = vector.broadcast %cst_6 : f32 to vector<224x512xf32>
    %14 = arith.maximumf %12, %13 : vector<224x512xf32>
    %15 = vector.shape_cast %14 : vector<224x512xf32> to vector<14x2x8x512xf32>
    %16 = vector.extract_strided_slice %15 {offsets = [0, 0, 0, 0], sizes = [14, 1, 8, 512], strides = [1, 1, 1, 1]} : vector<14x2x8x512xf32> to vector<14x1x8x512xf32>
    %17 = vector.shape_cast %16 : vector<14x1x8x512xf32> to vector<14x8x512xf32>
    %18 = vector.extract_strided_slice %15 {offsets = [0, 1, 0, 0], sizes = [14, 1, 8, 512], strides = [1, 1, 1, 1]} : vector<14x2x8x512xf32> to vector<14x1x8x512xf32>
    %19 = vector.shape_cast %18 : vector<14x1x8x512xf32> to vector<14x8x512xf32>
    %20 = arith.maximumf %17, %19 : vector<14x8x512xf32>
    %21 = vector.extract_strided_slice %20 {offsets = [0, 0, 0], sizes = [14, 8, 256], strides = [1, 1, 1]} : vector<14x8x512xf32> to vector<14x8x256xf32>
    %22 = vector.extract_strided_slice %20 {offsets = [0, 0, 256], sizes = [14, 8, 256], strides = [1, 1, 1]} : vector<14x8x512xf32> to vector<14x8x256xf32>
    %23 = arith.maximumf %21, %22 : vector<14x8x256xf32>
    %24 = arith.truncf %23 : vector<14x8x256xf32> to vector<14x8x256xbf16>
    %cst_7 = arith.constant 0.000000e+00 : bf16
    %25 = vector.broadcast %cst_7 : bf16 to vector<2x8x256xbf16>
    %26 = tpu.concatenate %25, %24, %25 in 0 : vector<2x8x256xbf16>, vector<14x8x256xbf16>, vector<2x8x256xbf16> -> vector<18x8x256xbf16>
    %27 = vector.extract_strided_slice %26 {offsets = [0, 0, 0], sizes = [14, 8, 256], strides = [1, 1, 1]} : vector<18x8x256xbf16> to vector<14x8x256xbf16>
    %28 = vector.extract_strided_slice %26 {offsets = [1, 0, 0], sizes = [14, 8, 256], strides = [1, 1, 1]} : vector<18x8x256xbf16> to vector<14x8x256xbf16>
    %29 = vector.extract_strided_slice %26 {offsets = [2, 0, 0], sizes = [14, 8, 256], strides = [1, 1, 1]} : vector<18x8x256xbf16> to vector<14x8x256xbf16>
    %30 = vector.extract_strided_slice %26 {offsets = [3, 0, 0], sizes = [14, 8, 256], strides = [1, 1, 1]} : vector<18x8x256xbf16> to vector<14x8x256xbf16>
    %31 = vector.extract_strided_slice %26 {offsets = [4, 0, 0], sizes = [14, 8, 256], strides = [1, 1, 1]} : vector<18x8x256xbf16> to vector<14x8x256xbf16>
    %32 = tpu.concatenate %27, %28, %29, %30, %31 in 2 : vector<14x8x256xbf16>, vector<14x8x256xbf16>, vector<14x8x256xbf16>, vector<14x8x256xbf16>, vector<14x8x256xbf16> -> vector<14x8x1280xbf16>
    %33 = vector.shape_cast %32 : vector<14x8x1280xbf16> to vector<112x1280xbf16>
    %c0_8 = arith.constant 0 : index
    %c0_9 = arith.constant 0 : index
    %34 = vector.load %arg4[%c0_8, %c0_9] : memref<1280x512xbf16, #tpu.memory_space<vmem>>, vector<1280x512xbf16>
    %cst_10 = arith.constant dense<0.000000e+00> : vector<112x512xf32>
    %35 = tpu.matmul %33, %34, %cst_10 {dimension_numbers = #tpu.dot_dimension_numbers<[1], [0], [0], [1], [0, 0, 1, 1], [], []>} : vector<112x1280xbf16>, vector<1280x512xbf16>, vector<112x512xf32> -> vector<112x512xf32>
    %c0_11 = arith.constant 0 : index
    %c0_12 = arith.constant 0 : index
    %36 = vector.load %arg5[%c0_11, %c0_12] : memref<1x512xf32, #tpu.memory_space<vmem>>, vector<1x512xf32>
    %37 = vector.broadcast %36 : vector<1x512xf32> to vector<112x512xf32>
    %38 = arith.addf %35, %37 : vector<112x512xf32>
    %cst_13 = arith.constant 0.000000e+00 : f32
    %39 = vector.broadcast %cst_13 : f32 to vector<112x512xf32>
    %40 = arith.maximumf %38, %39 : vector<112x512xf32>
    %41 = vector.shape_cast %40 : vector<112x512xf32> to vector<7x2x8x512xf32>
    %42 = vector.extract_strided_slice %41 {offsets = [0, 0, 0, 0], sizes = [7, 1, 8, 512], strides = [1, 1, 1, 1]} : vector<7x2x8x512xf32> to vector<7x1x8x512xf32>
    %43 = vector.shape_cast %42 : vector<7x1x8x512xf32> to vector<7x8x512xf32>
    %44 = vector.extract_strided_slice %41 {offsets = [0, 1, 0, 0], sizes = [7, 1, 8, 512], strides = [1, 1, 1, 1]} : vector<7x2x8x512xf32> to vector<7x1x8x512xf32>
    %45 = vector.shape_cast %44 : vector<7x1x8x512xf32> to vector<7x8x512xf32>
    %46 = arith.maximumf %43, %45 : vector<7x8x512xf32>
    %47 = vector.extract_strided_slice %46 {offsets = [0, 0, 0], sizes = [7, 8, 256], strides = [1, 1, 1]} : vector<7x8x512xf32> to vector<7x8x256xf32>
    %48 = vector.extract_strided_slice %46 {offsets = [0, 0, 256], sizes = [7, 8, 256], strides = [1, 1, 1]} : vector<7x8x512xf32> to vector<7x8x256xf32>
    %49 = arith.maximumf %47, %48 : vector<7x8x256xf32>
    %50 = arith.truncf %49 : vector<7x8x256xf32> to vector<7x8x256xbf16>
    %51 = vector.extract_strided_slice %50 {offsets = [0, 0, 0], sizes = [1, 8, 256], strides = [1, 1, 1]} : vector<7x8x256xbf16> to vector<1x8x256xbf16>
    %52 = vector.shape_cast %51 : vector<1x8x256xbf16> to vector<8x256xbf16>
    %53 = vector.extract_strided_slice %50 {offsets = [1, 0, 0], sizes = [1, 8, 256], strides = [1, 1, 1]} : vector<7x8x256xbf16> to vector<1x8x256xbf16>
    %54 = vector.shape_cast %53 : vector<1x8x256xbf16> to vector<8x256xbf16>
    %55 = vector.extract_strided_slice %50 {offsets = [2, 0, 0], sizes = [1, 8, 256], strides = [1, 1, 1]} : vector<7x8x256xbf16> to vector<1x8x256xbf16>
    %56 = vector.shape_cast %55 : vector<1x8x256xbf16> to vector<8x256xbf16>
    %57 = vector.extract_strided_slice %50 {offsets = [3, 0, 0], sizes = [1, 8, 256], strides = [1, 1, 1]} : vector<7x8x256xbf16> to vector<1x8x256xbf16>
    %58 = vector.shape_cast %57 : vector<1x8x256xbf16> to vector<8x256xbf16>
    %59 = vector.extract_strided_slice %50 {offsets = [4, 0, 0], sizes = [1, 8, 256], strides = [1, 1, 1]} : vector<7x8x256xbf16> to vector<1x8x256xbf16>
    %60 = vector.shape_cast %59 : vector<1x8x256xbf16> to vector<8x256xbf16>
    %61 = vector.extract_strided_slice %50 {offsets = [5, 0, 0], sizes = [1, 8, 256], strides = [1, 1, 1]} : vector<7x8x256xbf16> to vector<1x8x256xbf16>
    %62 = vector.shape_cast %61 : vector<1x8x256xbf16> to vector<8x256xbf16>
    %63 = vector.extract_strided_slice %50 {offsets = [6, 0, 0], sizes = [1, 8, 256], strides = [1, 1, 1]} : vector<7x8x256xbf16> to vector<1x8x256xbf16>
    %64 = vector.shape_cast %63 : vector<1x8x256xbf16> to vector<8x256xbf16>
    %65 = tpu.concatenate %52, %54, %56, %58, %60, %62, %64 in 1 : vector<8x256xbf16>, vector<8x256xbf16>, vector<8x256xbf16>, vector<8x256xbf16>, vector<8x256xbf16>, vector<8x256xbf16>, vector<8x256xbf16> -> vector<8x1792xbf16>
    %c0_14 = arith.constant 0 : index
    %c0_15 = arith.constant 0 : index
    %66 = vector.load %arg6[%c0_14, %c0_15] : memref<1792x128xbf16, #tpu.memory_space<vmem>>, vector<1792x128xbf16>
    %cst_16 = arith.constant dense<0.000000e+00> : vector<8x128xf32>
    %67 = tpu.matmul %65, %66, %cst_16 {dimension_numbers = #tpu.dot_dimension_numbers<[1], [0], [0], [1], [0, 0, 1, 1], [], []>} : vector<8x1792xbf16>, vector<1792x128xbf16>, vector<8x128xf32> -> vector<8x128xf32>
    %c0_17 = arith.constant 0 : index
    %c0_18 = arith.constant 0 : index
    %68 = vector.load %arg7[%c0_17, %c0_18] : memref<1x128xf32, #tpu.memory_space<vmem>>, vector<1x128xf32>
    %69 = vector.broadcast %68 : vector<1x128xf32> to vector<8x128xf32>
    %70 = arith.addf %67, %69 : vector<8x128xf32>
    %c0_19 = arith.constant 0 : index
    %c0_20 = arith.constant 0 : index
    %71 = vector.load %arg8[%c0_19, %c0_20] : memref<8x128xf32, #tpu.memory_space<vmem>>, vector<8x128xf32>
    tpu.vector_store %arg8[%c0_19, %c0_20], %70 {strides = array<i32>} : memref<8x128xf32, #tpu.memory_space<vmem>>, vector<8x128xf32>,
    return
  }
  func.func @transform_0(%arg0: i32) -> (i32, i32, i32) {
    %c0_i32 = arith.constant 0 : i32
    %c0_i32_0 = arith.constant 0 : i32
    %c0_i32_1 = arith.constant 0 : i32
    return %c0_i32, %arg0, %c0_i32_0 : i32, i32, i32
  }
  func.func @transform_1(%arg0: i32) -> (i32, i32) {
    %c0_i32 = arith.constant 0 : i32
    %c0_i32_0 = arith.constant 0 : i32
    %c0_i32_1 = arith.constant 0 : i32
    return %c0_i32, %c0_i32_0 : i32, i32
  }
  func.func @transform_2(%arg0: i32) -> (i32, i32) {
    %c0_i32 = arith.constant 0 : i32
    %c0_i32_0 = arith.constant 0 : i32
    %c0_i32_1 = arith.constant 0 : i32
    return %c0_i32, %c0_i32_0 : i32, i32
  }
  func.func @transform_3(%arg0: i32) -> (i32, i32) {
    %c0_i32 = arith.constant 0 : i32
    %c0_i32_0 = arith.constant 0 : i32
    %c0_i32_1 = arith.constant 0 : i32
    return %c0_i32, %c0_i32_0 : i32, i32
  }
  func.func @transform_4(%arg0: i32) -> (i32, i32) {
    %c0_i32 = arith.constant 0 : i32
    %c0_i32_0 = arith.constant 0 : i32
    %c0_i32_1 = arith.constant 0 : i32
    return %c0_i32, %c0_i32_0 : i32, i32
  }
  func.func @transform_5(%arg0: i32) -> (i32, i32) {
    %c0_i32 = arith.constant 0 : i32
    %c0_i32_0 = arith.constant 0 : i32
    %c0_i32_1 = arith.constant 0 : i32
    return %c0_i32, %c0_i32_0 : i32, i32
  }
  func.func @transform_6(%arg0: i32) -> (i32, i32) {
    %c0_i32 = arith.constant 0 : i32
    %c0_i32_0 = arith.constant 0 : i32
    %c0_i32_1 = arith.constant 0 : i32
    return %c0_i32, %c0_i32_0 : i32, i32
  }
  func.func @transform_7(%arg0: i32) -> (i32, i32) {
    %c0_i32 = arith.constant 0 : i32
    %c0_i32_0 = arith.constant 0 : i32
    return %arg0, %c0_i32 : i32, i32
  }
}

</mosaic_0001>

<bundles_post_ra>
// kernel: tpu_custom_call.1
= control target key start
LH: loop header
LB: loop body
LE: loop exit
PB: predicated region body
PF: predicated region fallthrough
CT: control target
= control target key end

     0   :  { %12 = vsyncpa [#allocation3], 0  ;;  %s11687_s0 = inlined_call_operand.hbm [shape: bf16[32,8,32], index: 0, kind: input, shape index: {}]   ;;  %s11688_s1 = inlined_call_operand.hbm [shape: bf16[160,512], index: 1, kind: input, shape index: {}]   ;;  %s11689_s2 = inlined_call_operand.hbm [shape: f32[1,512], index: 2, kind: input, shape index: {}]   ;;  %s11690_s3 = inlined_call_operand.hbm [shape: bf16[1280,512], index: 3, kind: input, shape index: {}]   ;;  %s11691_s4 = inlined_call_operand.hbm [shape: f32[1,512], index: 4, kind: input, shape index: {}]   ;;  %s11692_s5 = inlined_call_operand.hbm [shape: bf16[1792,128], index: 5, kind: input, shape index: {}]   ;;  %s11693_s6 = inlined_call_operand.hbm [shape: f32[1,128], index: 6, kind: input, shape index: {}]   ;;  %s11694_s7 = inlined_call_operand.hbm [shape: f32[8,128], index: 7, kind: output, shape index: {}]  }
   0x1   :  { %13 = vsyncpa [#allocation6], 0 }
   0x2   :  { %14 = vsyncpa [#allocation9], 0 }
   0x3   :  { %15 = vsyncpa [#allocation12], 0  ;;  %s34_s26 = sshll.u32 %s11688_s1, 4  ;;  %s35_s26 = int_to_ptr.hbm [resolvable:$true] %s34_s26 }
   0x4   :  { %16 = vsyncpa [#allocation4], 0  ;;  %s9557_s27 = smov [#allocation5]   ;;  %s58_s8 = sshll.u32 %s11690_s3, 4  ;;  %s59_s8 = int_to_ptr.hbm [resolvable:$true] %s58_s8 }
   0x5   :  { %s36_s28 = sshll.u32 %s9557_s27, 4  ;;  %s9558_s9 = smov 256   ;;  %s37_s28 = int_to_ptr.vmem [resolvable:$true] %s36_s28 }
   0x6   :  { %s9559_s10 = smov 16   ;;  %s9560_s11 = smov [#allocation8]  }
   0x7   :  { %42 = dma.hbm_to_vmem [thread:$0]  %s35_s26, 5120, %s37_s28, [#allocation6], %s9558_s9, %s9558_s9, %s9559_s10  }
   0x8   :  { %s60_s12 = sshll.u32 %s9560_s11, 4  ;;  %s82_s1 = sshll.u32 %s11692_s5, 4  ;;  %s61_s12 = int_to_ptr.vmem [resolvable:$true] %s60_s12  ;;  %s83_s1 = int_to_ptr.hbm [resolvable:$true] %s82_s1 }
   0x9   :  { %66 = dma.hbm_to_vmem [thread:$0]  %s59_s8, 40960, %s61_s12, [#allocation9], %s9558_s9, %s9558_s9, %s9559_s10  }
   0xa   :  { %s9561_s15 = smov [#allocation11]   ;;  %s21_s3 = sshll.u32 %s11687_s0, 4  ;;  %s22_s3 = int_to_ptr.hbm [resolvable:$true] %s21_s3 }
   0xb   :  { %s84_s16 = sshll.u32 %s9561_s15, 4  ;;  %s9562_s19 = smov 64   ;;  %s85_s16 = int_to_ptr.vmem [resolvable:$true] %s84_s16 }
   0xc   :  { %s9563_s20 = smov 4   ;;  %s9564_s21 = smov [#allocation2]  }
   0xd   :  { %90 = dma.hbm_to_vmem [thread:$0]  %s83_s1, 14336, %s85_s16, [#allocation12], %s9562_s19, %s9562_s19, %s9563_s20  }
   0xe   :  { %s23_s22 = sshll.u32 %s9564_s21, 4  ;;  %s48_s5 = sshll.u32 %s11689_s2, 4  ;;  %s24_s22 = int_to_ptr.vmem [resolvable:$true] %s23_s22  ;;  %s49_s5 = int_to_ptr.hbm [resolvable:$true] %s48_s5 }
   0xf   :  { %29 = dma.hbm_to_vmem [thread:$0]  %s22_s3, 2048, %s24_s22, [#allocation3], %s9562_s19, %s9562_s19, %s9563_s20  }
  0x10   :  { %s72_s0 = sshll.u32 %s11691_s4, 4  ;;  %s9565_s27 = smov [#allocation7]   ;;  %s73_s0 = int_to_ptr.hbm [resolvable:$true] %s72_s0 }
  0x11   :  { %s50_s28 = sshll.u32 %s9565_s27, 4  ;;  %s9566_s29 = smov [#allocation10]   ;;  %s51_s28 = int_to_ptr.vmem [resolvable:$true] %s50_s28 }
  0x12   :  { %53 = dma.hbm_to_vmem [thread:$0]  %s49_s5, 64, %s51_s28, [#allocation6]  }
  0x13   :  { %s74_s30 = sshll.u32 %s9566_s29, 4  ;;  %s96_s2 = sshll.u32 %s11693_s6, 4  ;;  %s75_s30 = int_to_ptr.vmem [resolvable:$true] %s74_s30  ;;  %s97_s2 = int_to_ptr.hbm [resolvable:$true] %s96_s2 }
  0x14   :  { %77 = dma.hbm_to_vmem [thread:$0]  %s73_s0, 64, %s75_s30, [#allocation9]  }
  0x15   :  { %s9567_s10 = smov [#allocation13]  }
  0x16   :  { %s98_s11 = sshll.u32 %s9567_s10, 4  ;;  %s99_s11 = int_to_ptr.vmem [resolvable:$true] %s98_s11 }
  0x17   :  { %101 = dma.hbm_to_vmem [thread:$0]  %s97_s2, 16, %s99_s11, [#allocation12]  }
  0x18   :  { %9547 = dma.done.wait [#allocation3], 2048  }
  0x19   :  { %9548 = vsyncadd [#allocation3], 4294965248 }
  0x1a   :  { %9549 = dma.done.wait [#allocation6], 5184  }
  0x1b   :  { %9550 = vsyncadd [#allocation6], 4294962112 }
  0x1c   :  { %9551 = dma.done.wait [#allocation9], 41024  }
  0x1d   :  { %9552 = vsyncadd [#allocation9], 4294926272 }
  0x1e   :  { %9553 = dma.done.wait [#allocation12], 14352  }
  0x1f   :  { %9554 = vsyncadd [#allocation12], 4294952944  ;;  %v7053_v0 = vld [vmem:[#allocation5 + $0x120] sm:$0xf]  ;;  %v8889_v1 = vld [vmem:[#allocation5 + $0x12c] sm:$0xf0] }
  0x20   :  { %v8887_v2 = vld [vmem:[#allocation5 + $0x124] sm:$0xf]  ;;  %v7054_v3 = vor.u32 %v8889_v1, %v7053_v0  ;;  %v7055_v4 = vld [vmem:[#allocation5 + $0x130] sm:$0xf0]  ;;  %v9637_v5 = vld [vmem:[#allocation2 + $0x8] sm:$0xf] }
  0x21   :  { %v9639_v6 = vld [vmem:[#allocation2 + $0x4] sm:$0xf]  ;;  %v7058_v7 = vor.u32 %v8887_v2, %v7055_v4  ;;  %v192_v8 = vunpack.c.l.b16 %v9637_v5  ;;  %v7037_v10 = vld [vmem:[#allocation5 + $0x100] sm:$0xf]  ;;  %v8885_v11 = vld [vmem:[#allocation5 + $0x10c] sm:$0xf0] }
  0x22   :  { %v191_v9 = vunpack.c.l.b16 %v9639_v6  ;;  %v8883_v12 = vld [vmem:[#allocation5 + $0x104] sm:$0xf]  ;;  %1097 = vmatpush.bf16.msra.mxu1 %v7054_v3  ;;  %v7038_v13 = vor.u32 %v8885_v11, %v7037_v10  ;;  %v7039_v14 = vld [vmem:[#allocation5 + $0x110] sm:$0xf0]  ;;  %v9643_v15 = vld [vmem:[#allocation2 + $0x10] sm:$0xf] }
  0x23   :  { %v9645_v16 = vld [vmem:[#allocation2 + $0x14] sm:$0xf]  ;;  %1255 = vmatpush.bf16.msra.mxu3 %v7058_v7  ;;  %v220_v17 = vpack.c.b16 %v192_v8, %v192_v8  ;;  %v7042_v19 = vor.u32 %v8883_v12, %v7039_v14  ;;  %v194_v20 = vunpack.c.l.b16 %v9643_v15  ;;  %v9648_v21 = vld [vmem:[#allocation2 + $0xc] sm:$0xf]  ;;  %s9568_s4 = smov 32   ;;  %vm421_vm0 = vcmask 261120  }
  0x24   :  { %v219_v18 = vpack.c.b16 %v191_v9, %v191_v9  ;;  %v195_v22 = vunpack.c.l.b16 %v9645_v16  ;;  %v193_v23 = vunpack.c.l.b16 %v9648_v21  ;;  %s9569_s6 = smov 96   ;;  %v9663_v27 = vld [vmem:[#allocation2 + $0x18] sm:$0xf]  ;;  %v9665_v28 = vld [vmem:[#allocation2 + $0x1c] sm:$0xf]  ;;  %vm506_vm1 = vcmask 523264  }
  0x25   :  { %306 = vrot.lane.b32.xlu1 %v220_v17, %s9562_s19  ;;  %v222_v26 = vpack.c.b16 %v194_v20, %v194_v20  ;;  %v196_v29 = vunpack.c.l.b16 %v9663_v27  ;;  %v197_v30 = vunpack.c.l.b16 %v9665_v28  ;;  %v9681_v34 = vld [vmem:[#allocation2 + $0x20] sm:$0xf]  ;;  %v9683_v35 = vld [vmem:[#allocation2 + $0x24] sm:$0xf]  ;;  %v9699_v41 = vld [vmem:[#allocation2 + $0x28] sm:$0xf] }
  0x26   :  { %247 = vrot.lane.b32.xlu0 %v219_v18, %s9568_s4  ;;  %1098 = vmatpush.bf16.msra.mxu1 %v7038_v13  ;;  %v9654_v24 = vpack.c.b16 %v195_v22, %v194_v20  ;;  %v221_v25 = vpack.c.b16 %v193_v23, %v193_v23  ;;  %v223_v32 = vpack.c.b16 %v195_v22, %v195_v22  ;;  %v198_v36 = vunpack.c.l.b16 %v9681_v34  ;;  %v9701_v42 = vld [vmem:[#allocation2 + $0x2c] sm:$0xf]  ;;  %v9717_v48 = vld [vmem:[#allocation2 + $0x30] sm:$0xf]  ;;  %v9719_v49 = vld [vmem:[#allocation2 + $0x34] sm:$0xf] }
  0x27   :  { %1256 = vmatpush.bf16.msra.mxu3 %v7042_v19  ;;  %v9672_v31 = vpack.c.b16 %v197_v30, %v196_v29  ;;  %v224_v33 = vpack.c.b16 %v196_v29, %v196_v29  ;;  %v199_v37 = vunpack.c.l.b16 %v9683_v35  ;;  %v225_v39 = vpack.c.b16 %v197_v30, %v197_v30  ;;  %v7021_v53 = vld [vmem:[#allocation5 + $0xe0] sm:$0xf]  ;;  %v8881_v54 = vld [vmem:[#allocation5 + $0xec] sm:$0xf0]  ;;  %v8879_v55 = vld [vmem:[#allocation5 + $0xe4] sm:$0xf] }
  0x28   :  { %365 = vrot.lane.b32.xlu2 %v221_v25, %s9569_s6  ;;  %v226_v40 = vpack.c.b16 %v198_v36, %v198_v36  ;;  %v200_v43 = vunpack.c.l.b16 %v9699_v41  ;;  %v201_v44 = vunpack.c.l.b16 %v9701_v42  ;;  %v202_v50 = vunpack.c.l.b16 %v9717_v48  ;;  %v7023_v57 = vld [vmem:[#allocation5 + $0xf0] sm:$0xf0]  ;;  %v7005_v60 = vld [vmem:[#allocation5 + $0xc0] sm:$0xf]  ;;  %v8877_v61 = vld [vmem:[#allocation5 + $0xcc] sm:$0xf0] }
  0x29   :  { %7067 = vmatmul.msk.bf16.vlgmr.msra.gmra.mxu1 %vm421_vm0, %v9654_v24  ;;  %11768 = vst [vmem:[#allocation20_spill] sm:$0xff] %v9672_v31  ;;  %v9690_v38 = vpack.c.b16 %v199_v37, %v198_v36  ;;  %v227_v46 = vpack.c.b16 %v199_v37, %v199_v37  ;;  %v203_v51 = vunpack.c.l.b16 %v9719_v49  ;;  %v7022_v56 = vor.u32 %v8881_v54, %v7021_v53  ;;  %v8875_v62 = vld [vmem:[#allocation5 + $0xc4] sm:$0xf]  ;;  %v7007_v0 = vld [vmem:[#allocation5 + $0xd0] sm:$0xf0]  ;;  %s9571_s12 = smov [#allocation14]  }
  0x2a   :  { %7081 = vmatmul.msk.bf16.vlgmr.msra.gmra.mxu3 %vm421_vm0, %v9654_v24  ;;  %v9708_v45 = vpack.c.b16 %v201_v44, %v200_v43  ;;  %v228_v47 = vpack.c.b16 %v200_v43, %v200_v43  ;;  %v7026_v58 = vor.u32 %v8879_v55, %v7023_v57  ;;  %v229_v59 = vpack.c.b16 %v201_v44, %v201_v44  ;;  %v9733_v2 = vld [vmem:[#allocation2 + $0x38] sm:$0xf]  ;;  %v9735_v3 = vld [vmem:[#allocation2 + $0x3c] sm:$0xf]  ;;  %v6989_v4 = vld [vmem:[#allocation5 + $0xa0] sm:$0xf] }
  0x2b   :  { %11769 = vst [vmem:[#allocation21_spill] sm:$0xff] %v9690_v38  ;;  %v9726_v52 = vpack.c.b16 %v203_v51, %v202_v50  ;;  %1012 = vmatpush.bf16.msra.mxu0 %v7022_v56  ;;  %v7006_v63 = vor.u32 %v8877_v61, %v7005_v60  ;;  %v7010_v1 = vor.u32 %v8875_v62, %v7007_v0  ;;  %v8873_v7 = vld [vmem:[#allocation5 + $0xac] sm:$0xf0]  ;;  %v8871_v8 = vld [vmem:[#allocation5 + $0xa4] sm:$0xf]  ;;  %v204_v20 = vunpack.c.l.b16 %v9733_v2  ;;  %s6892_s13 = sshll.u32 %s9571_s12, 4  ;;  %s6893_s13 = int_to_ptr.vmem [resolvable:$true] %s6892_s13 }
  0x2c   :  { %1170 = vmatpush.bf16.msra.mxu2 %v7026_v58  ;;  %v230_v9 = vpack.c.b16 %v202_v50, %v202_v50  ;;  %v6990_v10 = vor.u32 %v8873_v7, %v6989_v4  ;;  %v6991_v11 = vld [vmem:[#allocation5 + $0xb0] sm:$0xf0]  ;;  %v6973_v12 = vld [vmem:[#allocation5 + $0x80] sm:$0xf]  ;;  %v8869_v13 = vld [vmem:[#allocation5 + $0x8c] sm:$0xf0]  ;;  %v9742_v22 = vunpack.c.l.b16 %v9735_v3  ;;  %v231_v37 = vpack.c.b16 %v203_v51, %v203_v51 }
  0x2d   :  { %308 = vrot.lane.b32.xlu1 %v221_v25, %s9562_s19  ;;  %v6994_v14 = vor.u32 %v8871_v8, %v6991_v11  ;;  %v6975_v18 = vld [vmem:[#allocation5 + $0x90] sm:$0xf0]  ;;  %v6974_v19 = vor.u32 %v8869_v13, %v6973_v12  ;;  %v8865_v29 = vld [vmem:[#allocation5 + $0x6c] sm:$0xf0]  ;;  %v8863_v30 = vld [vmem:[#allocation5 + $0x64] sm:$0xf]  ;;  %v232_v55 = vpack.c.b16 %v204_v20, %v204_v20 }
  0x2e   :  { %249 = vrot.lane.b32.xlu0 %v220_v17, %s9568_s4  ;;  %v8867_v17 = vld [vmem:[#allocation5 + $0x84] sm:$0xf]  ;;  %v6925_v50 = vld [vmem:[#allocation5 + $0x20] sm:$0xf]  ;;  %v8857_v53 = vld [vmem:[#allocation5 + $0x2c] sm:$0xf0] }
  0x2f   :  { %1013 = vmatpush.bf16.msra.mxu0 %v7006_v63  ;;  %v6978_v23 = vor.u32 %v8867_v17, %v6975_v18  ;;  %v8859_v43 = vld [vmem:[#allocation5 + $0x44] sm:$0xf]  ;;  %v9756_v51 = vld [vmem:[#allocation2 + $0x40] sm:$0xf]  ;;  %v6926_v57 = vor.u32 %v8857_v53, %v6925_v50  ;;  %v6927_v58 = vld [vmem:[#allocation5 + $0x30] sm:$0xf0]  ;;  %v233_v18 = vpack.c.b16 %v9742_v22, %v9742_v22 }
  0x30   :  { %367 = vrot.lane.b32.xlu2 %v222_v26, %s9569_s6  ;;  %1171 = vmatpush.bf16.msra.mxu2 %v7010_v1  ;;  %v8855_v54 = vld [vmem:[#allocation5 + $0x24] sm:$0xf]  ;;  %v206_v60 = vunpack.c.l.b16 %v9756_v51  ;;  %v6909_v62 = vld [vmem:[#allocation5] sm:$0xf]  ;;  %v8853_v63 = vld [vmem:[#allocation5 + $0xc] sm:$0xf0] }
  0x31   :  { %v9758_v56 = vld [vmem:[#allocation2 + $0x44] sm:$0xf]  ;;  %v6910_v4 = vor.u32 %v8853_v63, %v6909_v62  ;;  %v6911_v7 = vld [vmem:[#allocation5 + $0x10] sm:$0xf0]  ;;  %v8890_v11 = vld [vmem:[#allocation5 + $0x134] sm:$0xf0] }
  0x32   :  { %v207_v61 = vunpack.c.l.b16 %v9758_v56  ;;  %v8851_v0 = vld [vmem:[#allocation5 + $0x4] sm:$0xf]  ;;  %v8888_v12 = vld [vmem:[#allocation5 + $0x12c] sm:$0xf]  ;;  %vm563_vm2 = vcmask 785408   ;;  %s6894_s15 = sshll.u32 %s11694_s7, 4  ;;  %s6895_s15 = int_to_ptr.hbm [resolvable:$true] %s6894_s15 }
  0x33   :  { %1014 = vmatpush.bf16.msra.mxu0 %v6990_v10  ;;  %v6914_v8 = vor.u32 %v8851_v0, %v6911_v7  ;;  %v7061_v10 = vld [vmem:[#allocation5 + $0x128] sm:$0xf] }
  0x34   :  { %1172 = vmatpush.bf16.msra.mxu2 %v6994_v14  ;;  %v7062_v13 = vor.u32 %v8890_v11, %v7061_v10  ;;  %v7063_v14 = vld [vmem:[#allocation5 + $0x138] sm:$0xf0]  ;;  %v235_v50 = vpack.c.b16 %v207_v61, %v207_v61 }
  0x35   :  { %253 = vrot.lane.b32.xlu1 %v222_v26, %s9568_s4  ;;  %v7066_v17 = vor.u32 %v8888_v12, %v7063_v14  ;;  %v7013_v14 = vld [vmem:[#allocation5 + $0xc8] sm:$0xf] }
  0x36   :  { %251 = vrot.lane.b32.xlu0 %v221_v25, %s9568_s4  ;;  %v9747_v25 = vpack.c.b16 %v9742_v22, %v204_v20  ;;  %1413 = vmatpush.bf16.msrb.mxu3 %v7062_v13  ;;  %v7029_v20 = vld [vmem:[#allocation5 + $0xe8] sm:$0xf]  ;;  %v9780_v22 = vld [vmem:[#allocation2 + $0x4c] sm:$0xf] }
  0x37   :  { %1015 = vmatpush.bf16.msra.mxu0 %v6974_v19 }
  0x38   :  { %310 = vrot.lane.b32.xlu2 %v222_v26, %s9562_s19  ;;  %v6957_v26 = vld [vmem:[#allocation5 + $0x60] sm:$0xf]  ;;  %1173 = vmatpush.bf16.msra.mxu2 %v6978_v23  ;;  %v8882_v23 = vld [vmem:[#allocation5 + $0xf4] sm:$0xf0] }
  0x39   :  { %7068 = vmatmul.msk.bf16.gmra.mxu1 %vm421_vm0, %v9672_v31 }
  0x3a   :  { %7082 = vmatmul.msk.bf16.gmra.mxu3 %vm421_vm0, %v9672_v31 }
  0x3d   :  { %369 = vrot.lane.b32.xlu1 %v223_v32, %s9569_s6 }
  0x3e   :  { %312 = vrot.lane.b32.xlu0 %v223_v32, %s9562_s19 }
  0x40   :  { %371 = vrot.lane.b32.xlu2 %v224_v33, %s9569_s6 }
  0x45   :  { %257 = vrot.lane.b32.xlu1 %v224_v33, %s9568_s4 }
  0x46   :  { %255 = vrot.lane.b32.xlu0 %v223_v32, %s9568_s4  ;;  %v6958_v32 = vor.u32 %v8865_v29, %v6957_v26  ;;  %v8880_v26 = vld [vmem:[#allocation5 + $0xec] sm:$0xf]  ;;  %v7030_v29 = vor.u32 %v8882_v23, %v7029_v20 }
  0x48   :  { %314 = vrot.lane.b32.xlu2 %v224_v33, %s9562_s19  ;;  %v6959_v33 = vld [vmem:[#allocation5 + $0x70] sm:$0xf0]  ;;  %1016 = vmatpush.bf16.msra.mxu0 %v6958_v32 }
  0x49   :  { %7069 = vmatmul.msk.bf16.gmra.mxu1 %vm421_vm0, %v9690_v38  ;;  %v6962_v36 = vor.u32 %v8863_v30, %v6959_v33  ;;  %v7031_v30 = vld [vmem:[#allocation5 + $0xf8] sm:$0xf0]  ;;  %v234_v33 = vpack.c.b16 %v206_v60, %v206_v60 }
  0x4a   :  { %7083 = vmatmul.msk.bf16.gmra.mxu3 %vm421_vm0, %v9690_v38  ;;  %v7034_v32 = vor.u32 %v8880_v26, %v7031_v30  ;;  %1328 = vmatpush.bf16.msrb.mxu1 %v7030_v29  ;;  %v7015_v26 = vld [vmem:[#allocation5 + $0xd8] sm:$0xf0] }
  0x4b   :  { %1174 = vmatpush.bf16.msra.mxu2 %v6962_v36  ;;  %v9778_v36 = vld [vmem:[#allocation2 + $0x48] sm:$0xf] }
  0x4d   :  { %373 = vrot.lane.b32.xlu1 %v225_v39, %s9569_s6 }
  0x4e   :  { %316 = vrot.lane.b32.xlu0 %v225_v39, %s9562_s19 }
  0x50   :  { %375 = vrot.lane.b32.xlu2 %v226_v40, %s9569_s6 }
  0x55   :  { %261 = vrot.lane.b32.xlu1 %v226_v40, %s9568_s4 }
  0x56   :  { %259 = vrot.lane.b32.xlu0 %v225_v39, %s9568_s4  ;;  %v6941_v39 = vld [vmem:[#allocation5 + $0x40] sm:$0xf] }
  0x58   :  { %318 = vrot.lane.b32.xlu2 %v226_v40, %s9562_s19  ;;  %v8861_v40 = vld [vmem:[#allocation5 + $0x4c] sm:$0xf0] }
  0x59   :  { %7070 = vmatmul.msk.bf16.gmra.mxu1 %vm421_vm0, %v9708_v45  ;;  %v6942_v44 = vor.u32 %v8861_v40, %v6941_v39  ;;  %v209_v39 = vunpack.c.l.b16 %v9780_v22 }
  0x5a   :  { %7084 = vmatmul.msk.bf16.gmra.mxu3 %vm421_vm0, %v9708_v45 }
  0x5b   :  { %1017 = vmatpush.bf16.msra.mxu0 %v6942_v44  ;;  %v237_v30 = vpack.c.b16 %v209_v39, %v209_v39 }
  0x5d   :  { %377 = vrot.lane.b32.xlu1 %v227_v46, %s9569_s6 }
  0x5e   :  { %320 = vrot.lane.b32.xlu0 %v227_v46, %s9562_s19 }
  0x5f   :  { %1018 = vmatpush.bf16.msra.mxu0 %v6926_v57 }
  0x60   :  { %379 = vrot.lane.b32.xlu2 %v228_v47, %s9569_s6 }
  0x63   :  { %1019 = vmatpush.bf16.msra.mxu0 %v6910_v4 }
  0x65   :  { %265 = vrot.lane.b32.xlu1 %v228_v47, %s9568_s4 }
  0x66   :  { %263 = vrot.lane.b32.xlu0 %v227_v46, %s9568_s4  ;;  %v6943_v46 = vld [vmem:[#allocation5 + $0x50] sm:$0xf0] }
  0x67   :  { %1486 = vmatpush.bf16.msrb.mxu0 %v7034_v32 }
  0x68   :  { %322 = vrot.lane.b32.xlu2 %v228_v47, %s9562_s19  ;;  %v6946_v47 = vor.u32 %v8859_v43, %v6943_v46 }
  0x69   :  { %7071 = vmatmul.msk.bf16.gmra.mxu1 %vm421_vm0, %v9726_v52 }
  0x6a   :  { %7085 = vmatmul.msk.bf16.gmra.mxu3 %vm421_vm0, %v9726_v52  ;;  %1175 = vmatpush.bf16.msra.mxu2 %v6946_v47  ;;  %v131_v47 = vld [vmem:[#allocation2] sm:$0xf] }
  0x6d   :  { %381 = vrot.lane.b32.xlu1 %v229_v59, %s9569_s6 }
  0x6e   :  { %324 = vrot.lane.b32.xlu0 %v229_v59, %s9562_s19 }
  0x70   :  { %383 = vrot.lane.b32.xlu2 %v230_v9, %s9569_s6 }
  0x75   :  { %269 = vrot.lane.b32.xlu1 %v230_v9, %s9568_s4 }
  0x76   :  { %267 = vrot.lane.b32.xlu0 %v229_v59, %s9568_s4  ;;  %v6930_v59 = vor.u32 %v8855_v54, %v6927_v58  ;;  %v9800_v58 = vld [vmem:[#allocation2 + $0x50] sm:$0xf] }
  0x77   :  { %v210_v4 = vunpack.c.l.b16 %v9800_v58 }
  0x78   :  { %326 = vrot.lane.b32.xlu2 %v230_v9, %s9562_s19  ;;  %1176 = vmatpush.bf16.msra.mxu2 %v6930_v59  ;;  %v9767_v9 = vpack.c.b16 %v207_v61, %v206_v60  ;;  %v9802_v59 = vld [vmem:[#allocation2 + $0x54] sm:$0xf] }
  0x79   :  { %7072 = vmatmul.msk.bf16.gmra.mxu1 %vm421_vm0, %v9747_v25  ;;  %v211_v7 = vunpack.c.l.b16 %v9802_v59 }
  0x7a   :  { %7086 = vmatmul.msk.bf16.gmra.mxu3 %vm421_vm0, %v9747_v25  ;;  %11770 = vst [vmem:[#allocation22_spill] sm:$0xff] %v9767_v9 }
  0x7c   :  { %1177 = vmatpush.bf16.msra.mxu2 %v6914_v8 }
  0x7d   :  { %385 = vrot.lane.b32.xlu1 %v231_v37, %s9569_s6 }
  0x7e   :  { %328 = vrot.lane.b32.xlu0 %v231_v37, %s9562_s19 }
  0x80   :  { %387 = vrot.lane.b32.xlu2 %v232_v55, %s9569_s6  ;;  %1571 = vmatpush.bf16.msrb.mxu2 %v7066_v17  ;;  %v8878_v17 = vld [vmem:[#allocation5 + $0xd4] sm:$0xf0] }
  0x82   :  { %v9763_v1 = vpop.permute.xlu2 %365 }
  0x85   :  { %273 = vrot.lane.b32.xlu1 %v232_v55, %s9568_s4 }
  0x86   :  { %271 = vrot.lane.b32.xlu0 %v231_v37, %s9568_s4  ;;  %v208_v37 = vunpack.c.l.b16 %v9778_v36 }
  0x88   :  { %330 = vrot.lane.b32.xlu2 %v232_v55, %s9562_s19  ;;  %v9789_v43 = vpack.c.b16 %v209_v39, %v208_v37  ;;  %v236_v57 = vpack.c.b16 %v208_v37, %v208_v37  ;;  %v9840_v39 = vld [vmem:[#allocation2 + $0x5c] sm:$0xf] }
  0x89   :  { %7073 = vmatmul.msk.bf16.gmra.mxu1 %vm421_vm0, %v9767_v9 }
  0x8a   :  { %7087 = vmatmul.msk.bf16.gmra.mxu3 %vm421_vm0, %v9767_v9  ;;  %v368_v19 = vpop.permute.xlu2 %367  ;;  %11771 = vst [vmem:[#allocation23_spill] sm:$0xff] %v9789_v43 }
  0x8d   :  { %389 = vrot.lane.b32.xlu1 %v233_v18, %s9569_s6 }
  0x8e   :  { %332 = vrot.lane.b32.xlu0 %v233_v18, %s9562_s19 }
  0x90   :  { %391 = vrot.lane.b32.xlu2 %v234_v33, %s9569_s6 }
  0x92   :  { %v9785_v40 = vpop.permute.xlu2 %310 }
  0x95   :  { %277 = vrot.lane.b32.xlu1 %v234_v33, %s9568_s4 }
  0x96   :  { %275 = vrot.lane.b32.xlu0 %v233_v18, %s9568_s4  ;;  %v8876_v18 = vld [vmem:[#allocation5 + $0xcc] sm:$0xf] }
  0x97   :  { %v307_v44 = vpop.permute.xlu1 %306  ;;  %v7018_v29 = vor.u32 %v8876_v18, %v7015_v26 }
  0x98   :  { %v248_v46 = vpop.permute.xlu0 %247  ;;  %334 = vrot.lane.b32.xlu2 %v234_v33, %s9562_s19 }
  0x99   :  { %7074 = vmatmul.msk.bf16.gmra.mxu1 %vm421_vm0, %v9789_v43  ;;  %v424_v53 = vsel %vm421_vm0, %v131_v47, %v248_v46  ;;  %1487 = vmatpush.bf16.msrb.mxu0 %v7018_v29  ;;  %v238_v46 = vpack.c.b16 %v210_v4, %v210_v4  ;;  %v9838_v47 = vld [vmem:[#allocation2 + $0x58] sm:$0xf]  ;;  %v9879_v29 = vld [vmem:[#allocation2 + $0x60] sm:$0xf] }
  0x9a   :  { %7088 = vmatmul.msk.bf16.gmra.mxu3 %vm421_vm0, %v9789_v43  ;;  %v372_v54 = vpop.permute.xlu2 %371  ;;  %v508_v55 = vsel %vm506_vm1, %v424_v53, %v307_v44 }
  0x9b   :  { %v565_v62 = vsel %vm563_vm2, %v508_v55, %v9763_v1 }
  0x9c   :  { %v649_v11 = vunpack.c.l.b16 %v565_v62 }
  0x9d   :  { %393 = vrot.lane.b32.xlu1 %v235_v50, %s9569_s6 }
  0x9e   :  { %336 = vrot.lane.b32.xlu0 %v235_v50, %s9562_s19 }
  0x9f   :  { %v309_v60 = vpop.permute.xlu1 %308 }
  0xa0   :  { %v250_v61 = vpop.permute.xlu0 %249  ;;  %395 = vrot.lane.b32.xlu2 %v236_v57, %s9569_s6 }
  0xa1   :  { %v427_v63 = vsel %vm421_vm0, %v9639_v6, %v250_v61  ;;  %v9819_v6 = vpack.c.b16 %v211_v7, %v210_v4 }
  0xa2   :  { %v510_v0 = vsel %vm506_vm1, %v427_v63, %v309_v60  ;;  %v9813_v10 = vpop.permute.xlu2 %314  ;;  %v212_v63 = vunpack.c.l.b16 %v9838_v47 }
  0xa3   :  { %v567_v8 = vsel %vm563_vm2, %v510_v0, %v368_v19  ;;  %11772 = vst [vmem:[#allocation24_spill] sm:$0xff] %v9819_v6  ;;  %v7014_v19 = vor.u32 %v8878_v17, %v7013_v14  ;;  %v213_v0 = vunpack.c.l.b16 %v9840_v39  ;;  %v239_v17 = vpack.c.b16 %v211_v7, %v211_v7 }
  0xa4   :  { %v650_v12 = vunpack.c.l.b16 %v567_v8  ;;  %v240_v26 = vpack.c.b16 %v212_v63, %v212_v63 }
  0xa5   :  { %281 = vrot.lane.b32.xlu1 %v236_v57, %s9568_s4  ;;  %1329 = vmatpush.bf16.msrb.mxu1 %v7014_v19 }
  0xa6   :  { %v9815_v13 = vpack.c.b16 %v650_v12, %v649_v11  ;;  %279 = vrot.lane.b32.xlu0 %v235_v50, %s9568_s4  ;;  %v9821_v1 = vpop.f32.mrf.mxu1  ;;  %v9860_v11 = vpack.c.b16 %v213_v0, %v212_v63  ;;  %v8874_v63 = vld [vmem:[#allocation5 + $0xb4] sm:$0xf0] }
  0xa7   :  { %v254_v20 = vpop.permute.xlu1 %253 }
  0xa8   :  { %v252_v23 = vpop.permute.xlu0 %251  ;;  %1020 = vmatmul.bf16.vlgmr.msra.gmra.mxu0 %v9815_v13  ;;  %1178 = vmatmul.bf16.vlgmr.msra.gmra.mxu2 %v9815_v13  ;;  %v433_v50 = vsel %vm421_vm0, %v9648_v21, %v254_v20  ;;  %11774 = vst [vmem:[#allocation26_spill] sm:$0xff] %v9860_v11 }
  0xa9   :  { %338 = vrot.lane.b32.xlu2 %v236_v57, %s9562_s19  ;;  %7075 = vmatmul.msk.bf16.gmra.mxu1 %vm421_vm0, %v9819_v6  ;;  %v430_v33 = vsel %vm421_vm0, %v9637_v5, %v252_v23 }
  0xaa   :  { %7089 = vmatmul.msk.bf16.gmra.mxu3 %vm421_vm0, %v9819_v6  ;;  %v376_v32 = vpop.permute.xlu2 %375  ;;  %v512_v53 = vsel %vm506_vm1, %v430_v33, %v9785_v40 }
  0xad   :  { %v9832_v37 = vpop.f32.mrf.mxu3  ;;  %397 = vrot.lane.b32.xlu1 %v237_v30, %s9569_s6 }
  0xae   :  { %340 = vrot.lane.b32.xlu0 %v237_v30, %s9562_s19  ;;  %v9836_v44 = vpop.f32.mrf.mxu1 }
  0xaf   :  { %v370_v5 = vpop.permute.xlu1 %369 }
  0xb0   :  { %v313_v55 = vpop.permute.xlu0 %312  ;;  %v569_v57 = vsel %vm563_vm2, %v512_v53, %v370_v5 }
  0xb1   :  { %v514_v60 = vsel %vm506_vm1, %v433_v50, %v313_v55  ;;  %399 = vrot.lane.b32.xlu2 %v238_v46, %s9569_s6  ;;  %v651_v61 = vunpack.c.l.b16 %v569_v57  ;;  %v214_v57 = vunpack.c.l.b16 %v9879_v29 }
  0xb2   :  { %v571_v62 = vsel %vm563_vm2, %v514_v60, %v372_v54  ;;  %v9852_v21 = vpop.permute.xlu2 %318 }
  0xb3   :  { %v652_v4 = vunpack.c.l.b16 %v571_v62  ;;  %v6997_v62 = vld [vmem:[#allocation5 + $0xa8] sm:$0xf] }
  0xb5   :  { %v9854_v8 = vpack.c.b16 %v652_v4, %v651_v61  ;;  %v9856_v40 = vpop.f32.mrf.mxu3  ;;  %285 = vrot.lane.b32.xlu1 %v238_v46, %s9568_s4  ;;  %v8872_v4 = vld [vmem:[#allocation5 + $0xac] sm:$0xf] }
  0xb6   :  { %283 = vrot.lane.b32.xlu0 %v237_v30, %s9568_s4  ;;  %v9862_v12 = vpop.f32.mrf.mxu1  ;;  %v9881_v30 = vld [vmem:[#allocation2 + $0x64] sm:$0xf] }
  0xb7   :  { %11773 = vst [vmem:[#allocation25_spill] sm:$0xff] %v9854_v8  ;;  %v258_v54 = vpop.permute.xlu1 %257  ;;  %v9893_v60 = vunpack.c.l.b16 %v9881_v30 }
  0xb8   :  { %v256_v14 = vpop.permute.xlu0 %255  ;;  %1025 = vmatmul.bf16.gmra.mxu0 %v9854_v8  ;;  %1183 = vmatmul.bf16.gmra.mxu2 %v9854_v8  ;;  %v439_v7 = vsel %vm421_vm0, %v9645_v16, %v258_v54 }
  0xb9   :  { %342 = vrot.lane.b32.xlu2 %v238_v46, %s9562_s19  ;;  %7076 = vmatmul.msk.bf16.gmra.mxu1 %vm421_vm0, %v9860_v11  ;;  %v436_v20 = vsel %vm421_vm0, %v9643_v15, %v256_v14  ;;  %v6998_v14 = vor.u32 %v8874_v63, %v6997_v62 }
  0xba   :  { %7090 = vmatmul.msk.bf16.gmra.mxu3 %vm421_vm0, %v9860_v11  ;;  %v380_v18 = vpop.permute.xlu2 %379  ;;  %v516_v33 = vsel %vm506_vm1, %v436_v20, %v9813_v10  ;;  %v6999_v20 = vld [vmem:[#allocation5 + $0xb8] sm:$0xf0]  ;;  %v8870_v11 = vld [vmem:[#allocation5 + $0x94] sm:$0xf0] }
  0xbb   :  { %1330 = vmatpush.bf16.msrb.mxu1 %v6998_v14 }
  0xbd   :  { %v9873_v23 = vpop.f32.mrf.mxu3  ;;  %401 = vrot.lane.b32.xlu1 %v239_v17, %s9569_s6 }
  0xbe   :  { %344 = vrot.lane.b32.xlu0 %v239_v17, %s9562_s19  ;;  %v9877_v19 = vpop.f32.mrf.mxu1 }
  0xbf   :  { %v374_v15 = vpop.permute.xlu1 %373 }
  0xc0   :  { %v317_v46 = vpop.permute.xlu0 %316  ;;  %v573_v50 = vsel %vm563_vm2, %v516_v33, %v374_v15  ;;  %v7002_v33 = vor.u32 %v8872_v4, %v6999_v20 }
  0xc1   :  { %v518_v53 = vsel %vm506_vm1, %v439_v7, %v317_v46  ;;  %403 = vrot.lane.b32.xlu2 %v240_v26, %s9569_s6  ;;  %v653_v5 = vunpack.c.l.b16 %v573_v50 }
  0xc2   :  { %v575_v55 = vsel %vm563_vm2, %v518_v53, %v376_v32  ;;  %v9895_v61 = vpop.permute.xlu2 %322  ;;  %v9904_v32 = vpack.c.b16 %v9893_v60, %v214_v57  ;;  %1488 = vmatpush.bf16.msrb.mxu0 %v7002_v33 }
  0xc3   :  { %v654_v16 = vunpack.c.l.b16 %v575_v55  ;;  %v242_v55 = vpack.c.b16 %v214_v57, %v214_v57 }
  0xc4   :  { %11776 = vst [vmem:[#allocation28_spill] sm:$0xff] %v9904_v32 }
  0xc5   :  { %v9897_v10 = vpack.c.b16 %v654_v16, %v653_v5  ;;  %v9899_v54 = vpop.f32.mrf.mxu3  ;;  %289 = vrot.lane.b32.xlu1 %v240_v26, %s9568_s4  ;;  %v9925_v16 = vld [vmem:[#allocation2 + $0x68] sm:$0xf] }
  0xc6   :  { %287 = vrot.lane.b32.xlu0 %v239_v17, %s9568_s4  ;;  %v9906_v7 = vpop.f32.mrf.mxu1  ;;  %v241_v17 = vpack.c.b16 %v213_v0, %v213_v0  ;;  %11777 = vst [vmem:[#allocation29_spill] sm:$0xff] %v9925_v16  ;;  %v9927_v0 = vld [vmem:[#allocation2 + $0x6c] sm:$0xf] }
  0xc7   :  { %11775 = vst [vmem:[#allocation27_spill] sm:$0xff] %v9897_v10  ;;  %v262_v15 = vpop.permute.xlu1 %261 }
  0xc8   :  { %v260_v46 = vpop.permute.xlu0 %259  ;;  %1030 = vmatmul.bf16.gmra.mxu0 %v9897_v10  ;;  %1188 = vmatmul.bf16.gmra.mxu2 %v9897_v10  ;;  %11778 = vst [vmem:[#allocation30_spill] sm:$0xff] %v9927_v0  ;;  %v445_v62 = vsel %vm421_vm0, %v9665_v28, %v262_v15 }
  0xc9   :  { %346 = vrot.lane.b32.xlu2 %v240_v26, %s9562_s19  ;;  %7077 = vmatmul.msk.bf16.gmra.mxu1 %vm421_vm0, %v9904_v32  ;;  %v442_v53 = vsel %vm421_vm0, %v9663_v27, %v260_v46  ;;  %v216_v46 = vunpack.c.l.b16 %v9925_v16 }
  0xca   :  { %7091 = vmatmul.msk.bf16.gmra.mxu3 %vm421_vm0, %v9904_v32  ;;  %v9915_v50 = vpop.permute.xlu2 %383  ;;  %v520_v63 = vsel %vm506_vm1, %v442_v53, %v9852_v21  ;;  %v9939_v32 = vunpack.c.l.b16 %v9927_v0  ;;  %v6981_v53 = vld [vmem:[#allocation5 + $0x88] sm:$0xf] }
  0xcd   :  { %v9919_v5 = vpop.f32.mrf.mxu3  ;;  %405 = vrot.lane.b32.xlu1 %v241_v17, %s9569_s6 }
  0xce   :  { %348 = vrot.lane.b32.xlu0 %v241_v17, %s9562_s19  ;;  %v9923_v26 = vpop.f32.mrf.mxu1 }
  0xcf   :  { %v378_v27 = vpop.permute.xlu1 %377 }
  0xd0   :  { %v321_v4 = vpop.permute.xlu0 %320  ;;  %v577_v14 = vsel %vm563_vm2, %v520_v63, %v378_v27 }
  0xd1   :  { %v522_v20 = vsel %vm506_vm1, %v445_v62, %v321_v4  ;;  %407 = vrot.lane.b32.xlu2 %v242_v55, %s9569_s6  ;;  %v655_v33 = vunpack.c.l.b16 %v577_v14  ;;  %v6982_v62 = vor.u32 %v8870_v11, %v6981_v53  ;;  %v8862_v53 = vld [vmem:[#allocation5 + $0x54] sm:$0xf0] }
  0xd2   :  { %v579_v57 = vsel %vm563_vm2, %v522_v20, %v380_v18  ;;  %v9941_v15 = vpop.permute.xlu2 %326  ;;  %v9950_v18 = vpack.c.b16 %v9939_v32, %v216_v46  ;;  %v6965_v20 = vld [vmem:[#allocation5 + $0x68] sm:$0xf] }
  0xd3   :  { %v656_v28 = vunpack.c.l.b16 %v579_v57  ;;  %1331 = vmatpush.bf16.msrb.mxu1 %v6982_v62 }
  0xd4   :  { %11779 = vst [vmem:[#allocation31_spill] sm:$0xff] %v9950_v18 }
  0xd5   :  { %v9943_v21 = vpack.c.b16 %v656_v28, %v655_v33  ;;  %v9945_v63 = vpop.f32.mrf.mxu3  ;;  %293 = vrot.lane.b32.xlu1 %v242_v55, %s9568_s4  ;;  %v8866_v33 = vld [vmem:[#allocation5 + $0x74] sm:$0xf0] }
  0xd6   :  { %291 = vrot.lane.b32.xlu0 %v241_v17, %s9568_s4  ;;  %v9952_v27 = vpop.f32.mrf.mxu1  ;;  %v243_v17 = vpack.c.b16 %v9893_v60, %v9893_v60  ;;  %v6966_v11 = vor.u32 %v8866_v33, %v6965_v20  ;;  %v244_v20 = vpack.c.b16 %v216_v46, %v216_v46  ;;  %v8868_v33 = vld [vmem:[#allocation5 + $0x8c] sm:$0xf]  ;;  %v8858_v46 = vld [vmem:[#allocation5 + $0x34] sm:$0xf0] }
  0xd7   :  { %v266_v4 = vpop.permute.xlu1 %265 }
  0xd8   :  { %v264_v14 = vpop.permute.xlu0 %263  ;;  %1035 = vmatmul.bf16.gmra.mxu0 %v9943_v21  ;;  %1193 = vmatmul.bf16.gmra.mxu2 %v9943_v21  ;;  %v451_v43 = vsel %vm421_vm0, %v9683_v35, %v266_v4 }
  0xd9   :  { %350 = vrot.lane.b32.xlu2 %v242_v55, %s9562_s19  ;;  %7078 = vmatmul.msk.bf16.gmra.mxu1 %vm421_vm0, %v9950_v18  ;;  %v448_v28 = vsel %vm421_vm0, %v9681_v34, %v264_v14  ;;  %v6949_v55 = vld [vmem:[#allocation5 + $0x48] sm:$0xf] }
  0xda   :  { %7092 = vmatmul.msk.bf16.gmra.mxu3 %vm421_vm0, %v9950_v18  ;;  %v9963_v57 = vpop.permute.xlu2 %387  ;;  %1332 = vmatpush.bf16.msrb.mxu1 %v6966_v11  ;;  %v6950_v6 = vor.u32 %v8862_v53, %v6949_v55  ;;  %v6983_v18 = vld [vmem:[#allocation5 + $0x98] sm:$0xf0]  ;;  %v524_v34 = vsel %vm506_vm1, %v448_v28, %v9895_v61  ;;  %v6933_v55 = vld [vmem:[#allocation5 + $0x28] sm:$0xf] }
  0xdb   :  { %v6986_v0 = vor.u32 %v8868_v33, %v6983_v18  ;;  %v6934_v35 = vor.u32 %v8858_v46, %v6933_v55  ;;  %v6917_v18 = vld [vmem:[#allocation5 + $0x8] sm:$0xf]  ;;  %v8854_v33 = vld [vmem:[#allocation5 + $0x14] sm:$0xf0] }
  0xdd   :  { %v9967_v62 = vpop.f32.mrf.mxu3  ;;  %409 = vrot.lane.b32.xlu1 %v243_v17, %s9569_s6  ;;  %1489 = vmatpush.bf16.msrb.mxu0 %v6986_v0 }
  0xde   :  { %11780 = vst [vmem:[#allocation32_spill] sm:$0xff] %v9967_v62  ;;  %352 = vrot.lane.b32.xlu0 %v243_v17, %s9562_s19  ;;  %v9971_v60 = vpop.f32.mrf.mxu1  ;;  %1333 = vmatpush.bf16.msrb.mxu1 %v6950_v6  ;;  %v6918_v6 = vor.u32 %v8854_v33, %v6917_v18 }
  0xdf   :  { %v382_v14 = vpop.permute.xlu1 %381 }
  0xe0   :  { %v325_v11 = vpop.permute.xlu0 %324  ;;  %v581_v16 = vsel %vm563_vm2, %v524_v34, %v382_v14 }
  0xe1   :  { %v526_v9 = vsel %vm506_vm1, %v451_v43, %v325_v11  ;;  %411 = vrot.lane.b32.xlu2 %v244_v20, %s9569_s6  ;;  %v657_v53 = vunpack.c.l.b16 %v581_v16  ;;  %v7045_v43 = vld [vmem:[#allocation5 + $0x108] sm:$0xf]  ;;  %v8886_v16 = vld [vmem:[#allocation5 + $0x114] sm:$0xf0] }
  0xe2   :  { %v583_v62 = vsel %vm563_vm2, %v526_v9, %v9915_v50  ;;  %v9982_v61 = vpop.permute.xlu2 %330  ;;  %1334 = vmatpush.bf16.msrb.mxu1 %v6934_v35  ;;  %v9331_v50 = vld [vmem:[#allocation2 + $0x70] sm:$0xff]   ;;  %v7046_v0 = vor.u32 %v8886_v16, %v7045_v43 }
  0xe3   :  { %v658_v4 = vunpack.c.l.b16 %v583_v62  ;;  %v9325_v11 = vunpack.c.l.b16 %v9331_v50 }
  0xe4   :  { %1414 = vmatpush.bf16.msrb.mxu3 %v7046_v0 }
  0xe5   :  { %v9984_v28 = vpack.c.b16 %v658_v4, %v657_v53  ;;  %v9986_v34 = vpop.f32.mrf.mxu3  ;;  %297 = vrot.lane.b32.xlu1 %v244_v20, %s9568_s4  ;;  %v246_v35 = vpack.c.b16 %v9325_v11, %v9325_v11 }
  0xe6   :  { %295 = vrot.lane.b32.xlu0 %v243_v17, %s9568_s4  ;;  %v9990_v9 = vpop.f32.mrf.mxu1  ;;  %1335 = vmatpush.bf16.msrb.mxu1 %v6918_v6  ;;  %v245_v17 = vpack.c.b16 %v9939_v32, %v9939_v32 }
  0xe7   :  { %v270_v62 = vpop.permute.xlu1 %269 }
  0xe8   :  { %v268_v14 = vpop.permute.xlu0 %267  ;;  %1040 = vmatmul.bf16.gmra.mxu0 %v9984_v28  ;;  %1198 = vmatmul.bf16.gmra.mxu2 %v9984_v28  ;;  %v457_v32 = vsel %vm421_vm0, %v9701_v42, %v270_v62 }
  0xe9   :  { %354 = vrot.lane.b32.xlu2 %v244_v20, %s9562_s19  ;;  %7079 = vmatmul.msk.bf16.gmra.mxu1 %vm421_vm0, %v9331_v50  ;;  %v454_v46 = vsel %vm421_vm0, %v9699_v41, %v268_v14 }
  0xea   :  { %7093 = vmatmul.msk.bf16.gmra.mxu3 %vm421_vm0, %v9331_v50  ;;  %v392_v55 = vpop.permute.xlu2 %391  ;;  %v528_v4 = vsel %vm506_vm1, %v454_v46, %v9941_v15  ;;  %v9326_v15 = vunpack.c.h.b16 %v9331_v50  ;;  %v9332_v46 = vld [vmem:[#allocation2 + $0x78] sm:$0xff]  }
  0xed   :  { %v10001_v53 = vpop.f32.mrf.mxu3  ;;  %413 = vrot.lane.b32.xlu1 %v245_v17, %s9569_s6 }
  0xee   :  { %356 = vrot.lane.b32.xlu0 %v245_v17, %s9562_s19  ;;  %v10005_v20 = vpop.f32.mrf.mxu1 }
  0xef   :  { %v386_v18 = vpop.permute.xlu1 %385 }
  0xf0   :  { %v329_v33 = vpop.permute.xlu0 %328  ;;  %v585_v43 = vsel %vm563_vm2, %v528_v4, %v386_v18  ;;  %v7047_v4 = vld [vmem:[#allocation5 + $0x118] sm:$0xf0] }
  0xf1   :  { %v530_v41 = vsel %vm506_vm1, %v457_v32, %v329_v33  ;;  %415 = vrot.lane.b32.xlu2 %v246_v35, %s9569_s6  ;;  %v659_v6 = vunpack.c.l.b16 %v585_v43  ;;  %v8884_v32 = vld [vmem:[#allocation5 + $0x10c] sm:$0xf]  ;;  %v9329_v43 = vunpack.c.l.b16 %v9332_v46 }
  0xf2   :  { %v587_v16 = vsel %vm563_vm2, %v530_v41, %v9963_v57  ;;  %v335_v14 = vpop.permute.xlu2 %334  ;;  %v7050_v57 = vor.u32 %v8884_v32, %v7047_v4  ;;  %v305_v41 = vpack.c.b16 %v9326_v15, %v9326_v15 }
  0xf3   :  { %v660_v0 = vunpack.c.l.b16 %v587_v16 }
  0xf4   :  { %1572 = vmatpush.bf16.msrb.mxu2 %v7050_v57 }
  0xf5   :  { %v10016_v11 = vpack.c.b16 %v660_v0, %v659_v6  ;;  %v10018_v42 = vpop.f32.mrf.mxu3  ;;  %301 = vrot.lane.b32.xlu1 %v246_v35, %s9568_s4  ;;  %v6967_v6 = vld [vmem:[#allocation5 + $0x78] sm:$0xf0] }
  0xf6   :  { %11781 = vst [vmem:[#allocation33_spill] sm:$0xff] %v10018_v42  ;;  %299 = vrot.lane.b32.xlu0 %v245_v17, %s9568_s4  ;;  %v10022_v62 = vpop.f32.mrf.mxu1  ;;  %v8864_v17 = vld [vmem:[#allocation5 + $0x6c] sm:$0xf] }
  0xf7   :  { %11782 = vst [vmem:[#allocation34_spill] sm:$0xff] %v10022_v62  ;;  %v274_v18 = vpop.permute.xlu1 %273  ;;  %v6970_v16 = vor.u32 %v8864_v17, %v6967_v6  ;;  %v364_v62 = vpack.c.b16 %v9329_v43, %v9329_v43 }
  0xf8   :  { %v272_v33 = vpop.permute.xlu0 %271  ;;  %1045 = vmatmul.bf16.gmra.mxu0 %v10016_v11  ;;  %1203 = vmatmul.bf16.gmra.mxu2 %v10016_v11  ;;  %v463_v15 = vsel %vm421_vm0, %v9719_v49, %v274_v18 }
  0xf9   :  { %358 = vrot.lane.b32.xlu2 %v246_v35, %s9562_s19  ;;  %7080 = vmatmul.msk.bf16.gmra.mxu1 %vm421_vm0, %v9332_v46  ;;  %v460_v0 = vsel %vm421_vm0, %v9717_v48, %v272_v33 }
  0xfa   :  { %7094 = vmatmul.msk.bf16.gmra.mxu3 %vm421_vm0, %v9332_v46  ;;  %v396_v50 = vpop.permute.xlu2 %395  ;;  %1490 = vmatpush.bf16.msrb.mxu0 %v6970_v16  ;;  %v532_v46 = vsel %vm506_vm1, %v460_v0, %v9982_v61 }
  0xfd   :  { %v10031_v42 = vpop.f32.mrf.mxu3  ;;  %417 = vrot.lane.b32.xlu1 %v305_v41, %s9569_s6 }
  0xfe   :  { %360 = vrot.lane.b32.xlu0 %v305_v41, %s9562_s19  ;;  %v10035_v35 = vpop.f32.mrf.mxu1 }
  0xff   :  { %v390_v32 = vpop.permute.xlu1 %389 }
 0x100   :  { %v333_v4 = vpop.permute.xlu0 %332  ;;  %v589_v48 = vsel %vm563_vm2, %v532_v46, %v390_v32 }
 0x101   :  { %v534_v33 = vsel %vm506_vm1, %v463_v15, %v333_v4  ;;  %419 = vrot.lane.b32.xlu2 %v364_v62, %s9569_s6  ;;  %v661_v57 = vunpack.c.l.b16 %v589_v48 }
 0x102   :  { %v591_v43 = vsel %vm563_vm2, %v534_v33, %v392_v55 }
 0x103   :  { %v662_v41 = vunpack.c.l.b16 %v591_v43  ;;  %v339_v17 = vpop.permute.xlu2 %338 }
 0x105   :  { %v10045_v6 = vpack.c.b16 %v662_v41, %v661_v57  ;;  %v10047_v16 = vpop.f32.mrf.mxu3 }
 0x106   :  { %v10049_v49 = vpop.f32.mrf.mxu1 }
 0x107   :  { %11783 = vst [vmem:[#allocation35_spill] sm:$0xff] %v10049_v49  ;;  %v278_v61 = vpop.permute.xlu1 %277 }
 0x108   :  { %v276_v18 = vpop.permute.xlu0 %275  ;;  %1050 = vmatmul.bf16.gmra.mxu0 %v10045_v6  ;;  %1208 = vmatmul.bf16.gmra.mxu2 %v10045_v6  ;;  %v469_v46 = vsel %vm421_vm0, %v9735_v3, %v278_v61 }
 0x109   :  { %1336 = vmatmul.bf16.vlgmr.msrb.gmra.mxu1 %v9815_v13  ;;  %v466_v62 = vsel %vm421_vm0, %v9733_v2, %v276_v18 }
 0x10a   :  { %7095 = vmatmul.msk.bf16.vlgmr.msrb.gmra.mxu3 %vm421_vm0, %v9654_v24  ;;  %v536_v32 = vsel %vm506_vm1, %v466_v62, %v335_v14  ;;  %v8860_v14 = vld [vmem:[#allocation5 + $0x4c] sm:$0xf]  ;;  %v6951_v62 = vld [vmem:[#allocation5 + $0x58] sm:$0xf0] }
 0x10b   :  { %v400_v55 = vpop.permute.xlu2 %399 }
 0x10d   :  { %v10058_v0 = vpop.f32.mrf.mxu3 }
 0x10e   :  { %11784 = vst [vmem:[#allocation36_spill] sm:$0xff] %v10058_v0  ;;  %v10060_v15 = vpop.f32.mrf.mxu1 }
 0x10f   :  { %11785 = vst [vmem:[#allocation37_spill] sm:$0xff] %v10060_v15  ;;  %v394_v4 = vpop.permute.xlu1 %393 }
 0x110   :  { %v337_v48 = vpop.permute.xlu0 %336  ;;  %v593_v33 = vsel %vm563_vm2, %v536_v32, %v394_v4 }
 0x111   :  { %v538_v57 = vsel %vm506_vm1, %v469_v46, %v337_v48  ;;  %v663_v43 = vunpack.c.l.b16 %v593_v33 }
 0x112   :  { %v595_v41 = vsel %vm563_vm2, %v538_v57, %v396_v50  ;;  %v6954_v50 = vor.u32 %v8860_v14, %v6951_v62 }
 0x113   :  { %v664_v49 = vunpack.c.l.b16 %v595_v41  ;;  %v343_v18 = vpop.permute.xlu2 %342 }
 0x114   :  { %1491 = vmatpush.bf16.msrb.mxu0 %v6954_v50  ;;  %v10091_v50 = vld [vmem:[#allocation7] sm:$0xf] }
 0x115   :  { %v10068_v2 = vpack.c.b16 %v664_v49, %v663_v43  ;;  %v10070_v0 = vpop.f32.mrf.mxu3 }
 0x116   :  { %v10072_v15 = vpop.f32.mrf.mxu1 }
 0x117   :  { %11786 = vst [vmem:[#allocation38_spill] sm:$0xff] %v10072_v15  ;;  %v282_v3 = vpop.permute.xlu1 %281  ;;  %v10096_v15 = vperm.slane %v10091_v50, 0 }
 0x118   :  { %v280_v61 = vpop.permute.xlu0 %279  ;;  %1055 = vmatmul.bf16.gmra.mxu0 %v10068_v2  ;;  %1213 = vmatmul.bf16.gmra.mxu2 %v10068_v2  ;;  %v475_v48 = vsel %vm421_vm0, %v9758_v56, %v282_v3 }
 0x119   :  { %1341 = vmatmul.bf16.gmra.mxu1 %v9854_v8  ;;  %v472_v49 = vsel %vm421_vm0, %v9756_v51, %v280_v61 }
 0x11a   :  { %7096 = vmatmul.msk.bf16.gmra.mxu3 %vm421_vm0, %v9672_v31  ;;  %v540_v33 = vsel %vm506_vm1, %v472_v49, %v339_v17 }
 0x11b   :  { %v404_v4 = vpop.permute.xlu2 %403 }
 0x11d   :  { %v10081_v46 = vpop.f32.mrf.mxu3 }
 0x11e   :  { %11787 = vst [vmem:[#allocation39_spill] sm:$0xff] %v10081_v46  ;;  %v10083_v32 = vpop.f32.mrf.mxu1 }
 0x11f   :  { %11788 = vst [vmem:[#allocation40_spill] sm:$0xff] %v10083_v32  ;;  %v398_v57 = vpop.permute.xlu1 %397 }
 0x120   :  { %v341_v43 = vpop.permute.xlu0 %340  ;;  %v597_v41 = vsel %vm563_vm2, %v540_v33, %v398_v57  ;;  %v10109_v57 = vperm.slane %v10091_v50, 1 }
 0x121   :  { %v542_v14 = vsel %vm506_vm1, %v475_v48, %v341_v43  ;;  %v665_v62 = vunpack.c.l.b16 %v597_v41 }
 0x122   :  { %v599_v51 = vsel %vm563_vm2, %v542_v14, %v400_v55 }
 0x123   :  { %v666_v61 = vunpack.c.l.b16 %v599_v51  ;;  %v347_v55 = vpop.permute.xlu2 %346 }
 0x125   :  { %v10093_v46 = vpack.c.b16 %v666_v61, %v665_v62  ;;  %v1021_v32 = vpop.f32.mrf.mxu0  ;;  %v10098_v56 = vpop.f32.mrf.mxu3 }
 0x126   :  { %11789 = vst [vmem:[#allocation41_spill] sm:$0xff] %v10098_v56  ;;  %v10100_v17 = vpop.f32.mrf.mxu1  ;;  %v1022_v48 = vadd.f32 %v1021_v32, %v10096_v15 }
 0x127   :  { %11790 = vst [vmem:[#allocation42_spill] sm:$0xff] %v10100_v17  ;;  %v286_v3 = vpop.permute.xlu1 %285 }
 0x128   :  { %v284_v49 = vpop.permute.xlu0 %283  ;;  %1060 = vmatmul.bf16.gmra.mxu0 %v10093_v46  ;;  %1218 = vmatmul.bf16.gmra.mxu2 %v10093_v46  ;;  %v1101_v14 = vadd.f32 %v9821_v1, %v1022_v48  ;;  %v481_v61 = vsel %vm421_vm0, %v9780_v22, %v286_v3 }
 0x129   :  { %1346 = vmatmul.bf16.gmra.mxu1 %v9897_v10  ;;  %v478_v43 = vsel %vm421_vm0, %v9778_v36, %v284_v49 }
 0x12a   :  { %7097 = vmatmul.msk.bf16.gmra.mxu3 %vm421_vm0, %v9690_v38  ;;  %v544_v17 = vsel %vm506_vm1, %v478_v43, %v343_v18  ;;  %v1644_v48 = vmax.f32 %v1101_v14, 0.0 }
 0x12b   :  { %v1179_v33 = vpop.f32.mrf.mxu2  ;;  %v408_v22 = vpop.permute.xlu2 %407 }
 0x12c   :  { %v1180_v38 = vadd.f32 %v1179_v33, %v10109_v57 }
 0x12d   :  { %v1023_v41 = vpop.f32.mrf.mxu0  ;;  %v10115_v51 = vpop.f32.mrf.mxu3 }
 0x12e   :  { %v1024_v62 = vadd.f32 %v1023_v41, %v10096_v15  ;;  %11791 = vst [vmem:[#allocation43_spill] sm:$0xff] %v10115_v51  ;;  %v10117_v32 = vpop.f32.mrf.mxu1  ;;  %v1259_v18 = vadd.f32 %v9832_v37, %v1180_v38  ;;  %v8856_v37 = vld [vmem:[#allocation5 + $0x2c] sm:$0xf] }
 0x12f   :  { %11792 = vst [vmem:[#allocation44_spill] sm:$0xff] %v10117_v32  ;;  %v402_v56 = vpop.permute.xlu1 %401 }
 0x130   :  { %v1103_v10 = vadd.f32 %v9836_v44, %v1024_v62  ;;  %v345_v36 = vpop.permute.xlu0 %344  ;;  %v601_v49 = vsel %vm563_vm2, %v544_v17, %v402_v56  ;;  %v1645_v14 = vmax.f32 %v1259_v18, 0.0 }
 0x131   :  { %v546_v1 = vsel %vm506_vm1, %v481_v61, %v345_v36  ;;  %v667_v51 = vunpack.c.l.b16 %v601_v49 }
 0x132   :  { %v1648_v41 = vmax.f32 %v1103_v10, 0.0  ;;  %v603_v32 = vsel %vm563_vm2, %v546_v1, %v404_v4 }
 0x133   :  { %v668_v31 = vunpack.c.l.b16 %v603_v32  ;;  %v1181_v8 = vpop.f32.mrf.mxu2  ;;  %v351_v49 = vpop.permute.xlu2 %350 }
 0x134   :  { %v10128_v3 = vmax.f32 %v1644_v48, %v1648_v41  ;;  %v1182_v44 = vadd.f32 %v1181_v8, %v10109_v57  ;;  %v6935_v8 = vld [vmem:[#allocation5 + $0x38] sm:$0xf0] }
 0x135   :  { %v10131_v33 = vpack.c.b16 %v668_v31, %v667_v51  ;;  %v1026_v43 = vpop.f32.mrf.mxu0  ;;  %v10134_v17 = vpop.f32.mrf.mxu3  ;;  %v6938_v51 = vor.u32 %v8856_v37, %v6935_v8 }
 0x136   :  { %11793 = vst [vmem:[#allocation45_spill] sm:$0xff] %v10128_v3  ;;  %v1261_v56 = vadd.f32 %v9856_v40, %v1182_v44  ;;  %v10136_v10 = vpop.f32.mrf.mxu1  ;;  %v1027_v31 = vadd.f32 %v1026_v43, %v10096_v15  ;;  %v7605_v3 = vld [vmem:[#allocation8 + $0x3c0] sm:$0xf] }
 0x137   :  { %v290_v62 = vpop.permute.xlu1 %289  ;;  %1492 = vmatpush.bf16.msrb.mxu0 %v6938_v51 }
 0x138   :  { %v1649_v4 = vmax.f32 %v1261_v56, 0.0  ;;  %v288_v32 = vpop.permute.xlu0 %287  ;;  %1065 = vmatmul.bf16.gmra.mxu0 %v10131_v33  ;;  %1223 = vmatmul.bf16.gmra.mxu2 %v10131_v33  ;;  %v1106_v1 = vadd.f32 %v9862_v12, %v1027_v31  ;;  %v487_v44 = vsel %vm421_vm0, %v9802_v59, %v290_v62 }
 0x139   :  { %1351 = vmatmul.bf16.gmra.mxu1 %v9943_v21  ;;  %v484_v61 = vsel %vm421_vm0, %v9800_v58, %v288_v32 }
 0x13a   :  { %v10140_v38 = vmax.f32 %v1645_v14, %v1649_v4  ;;  %7098 = vmatmul.msk.bf16.gmra.mxu3 %vm421_vm0, %v9708_v45  ;;  %v548_v43 = vsel %vm506_vm1, %v484_v61, %v347_v55  ;;  %v1652_v31 = vmax.f32 %v1106_v1, 0.0 }
 0x13b   :  { %v1184_v40 = vpop.f32.mrf.mxu2 }
 0x13c   :  { %11794 = vst [vmem:[#allocation46_spill] sm:$0xff] %v10140_v38  ;;  %v1185_v56 = vadd.f32 %v1184_v40, %v10109_v57 }
 0x13d   :  { %v1028_v36 = vpop.f32.mrf.mxu0  ;;  %v10150_v41 = vpop.f32.mrf.mxu3 }
 0x13e   :  { %v1029_v48 = vadd.f32 %v1028_v36, %v10096_v15  ;;  %v10152_v18 = vpop.f32.mrf.mxu1  ;;  %v1264_v59 = vadd.f32 %v9873_v23, %v1185_v56 }
 0x13f   :  { %v406_v14 = vpop.permute.xlu1 %405 }
 0x140   :  { %v1108_v58 = vadd.f32 %v9877_v19, %v1029_v48  ;;  %v349_v4 = vpop.permute.xlu0 %348  ;;  %v605_v32 = vsel %vm563_vm2, %v548_v43, %v406_v14  ;;  %v1653_v43 = vmax.f32 %v1264_v59, 0.0 }
 0x141   :  { %v550_v12 = vsel %vm506_vm1, %v487_v44, %v349_v4  ;;  %v669_v8 = vunpack.c.l.b16 %v605_v32  ;;  %v412_v44 = vpop.permute.xlu2 %411 }
 0x142   :  { %v1656_v37 = vmax.f32 %v1108_v58, 0.0  ;;  %v607_v51 = vsel %vm563_vm2, %v550_v12, %v408_v22 }
 0x143   :  { %v670_v36 = vunpack.c.l.b16 %v607_v51  ;;  %v1186_v38 = vpop.f32.mrf.mxu2 }
 0x144   :  { %v10163_v55 = vmax.f32 %v1652_v31, %v1656_v37  ;;  %v1187_v62 = vadd.f32 %v1186_v38, %v10109_v57 }
 0x145   :  { %v10166_v19 = vpack.c.b16 %v670_v36, %v669_v8  ;;  %v1031_v40 = vpop.f32.mrf.mxu0  ;;  %v10169_v48 = vpop.f32.mrf.mxu3 }
 0x146   :  { %v1266_v61 = vadd.f32 %v9899_v54, %v1187_v62  ;;  %v10171_v1 = vpop.f32.mrf.mxu1  ;;  %v1032_v38 = vadd.f32 %v1031_v40, %v10096_v15 }
 0x147   :  { %v294_v58 = vpop.permute.xlu1 %293 }
 0x148   :  { %v1657_v22 = vmax.f32 %v1266_v61, 0.0  ;;  %v292_v14 = vpop.permute.xlu0 %291  ;;  %1070 = vmatmul.bf16.gmra.mxu0 %v10166_v19  ;;  %1228 = vmatmul.bf16.gmra.mxu2 %v10166_v19  ;;  %v1111_v32 = vadd.f32 %v9906_v7, %v1032_v38  ;;  %v493_v8 = vsel %vm421_vm0, %v9840_v39, %v294_v58 }
 0x149   :  { %1356 = vmatmul.bf16.gmra.mxu1 %v9984_v28  ;;  %v490_v56 = vsel %vm421_vm0, %v9838_v47, %v292_v14  ;;  %v355_v61 = vpop.permute.xlu2 %354 }
 0x14a   :  { %v10175_v23 = vmax.f32 %v1653_v43, %v1657_v22  ;;  %7099 = vmatmul.msk.bf16.gmra.mxu3 %vm421_vm0, %v9726_v52  ;;  %v552_v51 = vsel %vm506_vm1, %v490_v56, %v351_v49  ;;  %v1660_v43 = vmax.f32 %v1111_v32, 0.0  ;;  %v6919_v56 = vld [vmem:[#allocation5 + $0x18] sm:$0xf0] }
 0x14b   :  { %v1189_v54 = vpop.f32.mrf.mxu2 }
 0x14c   :  { %11795 = vst [vmem:[#allocation47_spill] sm:$0xff] %v10175_v23  ;;  %v1190_v36 = vadd.f32 %v1189_v54, %v10109_v57  ;;  %v8852_v54 = vld [vmem:[#allocation5 + $0xc] sm:$0xf] }
 0x14d   :  { %v1033_v4 = vpop.f32.mrf.mxu0  ;;  %v10185_v31 = vpop.f32.mrf.mxu3 }
 0x14e   :  { %v1034_v12 = vadd.f32 %v1033_v4, %v10096_v15  ;;  %v10187_v37 = vpop.f32.mrf.mxu1  ;;  %v1269_v49 = vadd.f32 %v9919_v5, %v1190_v36 }
 0x14f   :  { %v410_v62 = vpop.permute.xlu1 %409 }
 0x150   :  { %v1113_v59 = vadd.f32 %v9923_v26, %v1034_v12  ;;  %v353_v47 = vpop.permute.xlu0 %352  ;;  %v609_v40 = vsel %vm563_vm2, %v552_v51, %v410_v62 }
 0x151   :  { %v554_v7 = vsel %vm506_vm1, %v493_v8, %v353_v47  ;;  %v671_v14 = vunpack.c.l.b16 %v609_v40  ;;  %v6922_v8 = vor.u32 %v8852_v54, %v6919_v56 }
 0x152   :  { %v1664_v22 = vmax.f32 %v1113_v59, 0.0  ;;  %v611_v38 = vsel %vm563_vm2, %v554_v7, %v412_v44  ;;  %v1661_v44 = vmax.f32 %v1269_v49, 0.0 }
 0x153   :  { %v672_v4 = vunpack.c.l.b16 %v611_v38  ;;  %v1191_v39 = vpop.f32.mrf.mxu2  ;;  %1493 = vmatpush.bf16.msrb.mxu0 %v6922_v8 }
 0x154   :  { %v10198_v58 = vmax.f32 %v1660_v43, %v1664_v22  ;;  %v1192_v26 = vadd.f32 %v1191_v39, %v10109_v57  ;;  %v416_v43 = vpop.permute.xlu2 %415 }
 0x155   :  { %v10201_v12 = vpack.c.b16 %v672_v4, %v671_v14  ;;  %v1036_v51 = vpop.f32.mrf.mxu0  ;;  %v10204_v59 = vpop.f32.mrf.mxu3 }
 0x156   :  { %v1271_v32 = vadd.f32 %v9945_v63, %v1192_v26  ;;  %v10206_v62 = vpop.f32.mrf.mxu1  ;;  %v1037_v7 = vadd.f32 %v1036_v51, %v10096_v15 }
 0x157   :  { %v298_v5 = vpop.permute.xlu1 %297 }
 0x158   :  { %v1665_v47 = vmax.f32 %v1271_v32, 0.0  ;;  %v296_v36 = vpop.permute.xlu0 %295  ;;  %1075 = vmatmul.bf16.gmra.mxu0 %v10201_v12  ;;  %1233 = vmatmul.bf16.gmra.mxu2 %v10201_v12  ;;  %v1116_v38 = vadd.f32 %v9952_v27, %v1037_v7  ;;  %v499_v26 = vsel %vm421_vm0, %v9881_v30, %v298_v5  ;;  %v11797_v30 = vld [vmem:[#allocation32_spill] sm:$0xff] }
 0x159   :  { %1361 = vmatmul.bf16.gmra.mxu1 %v10016_v11  ;;  %v496_v22 = vsel %vm421_vm0, %v9879_v29, %v296_v36 }
 0x15a   :  { %v10210_v40 = vmax.f32 %v1661_v44, %v1665_v47  ;;  %7100 = vmatmul.msk.bf16.gmra.mxu3 %vm421_vm0, %v9747_v25  ;;  %v556_v54 = vsel %vm506_vm1, %v496_v22, %v355_v61  ;;  %v1668_v44 = vmax.f32 %v1116_v38, 0.0 }
 0x15b   :  { %v1194_v63 = vpop.f32.mrf.mxu2 }
 0x15c   :  { %11796 = vst [vmem:[#allocation48_spill] sm:$0xff] %v10210_v40  ;;  %v1195_v56 = vadd.f32 %v1194_v63, %v10109_v57 }
 0x15d   :  { %v1038_v14 = vpop.f32.mrf.mxu0  ;;  %v10220_v39 = vpop.f32.mrf.mxu3 }
 0x15e   :  { %v1039_v4 = vadd.f32 %v1038_v14, %v10096_v15  ;;  %v10222_v49 = vpop.f32.mrf.mxu1  ;;  %v1274_v5 = vadd.f32 %v11797_v30, %v1195_v56 }
 0x15f   :  { %v414_v8 = vpop.permute.xlu1 %413 }
 0x160   :  { %v1118_v51 = vadd.f32 %v9971_v60, %v1039_v4  ;;  %v357_v29 = vpop.permute.xlu0 %356  ;;  %v613_v32 = vsel %vm563_vm2, %v556_v54, %v414_v8  ;;  %v359_v4 = vpop.permute.xlu2 %358 }
 0x161   :  { %v558_v27 = vsel %vm506_vm1, %v499_v26, %v357_v29  ;;  %v673_v36 = vunpack.c.l.b16 %v613_v32 }
 0x162   :  { %v1672_v47 = vmax.f32 %v1118_v51, 0.0  ;;  %v615_v7 = vsel %vm563_vm2, %v558_v27, %v416_v43  ;;  %v1669_v51 = vmax.f32 %v1274_v5, 0.0  ;;  %v11801_v27 = vld [vmem:[#allocation29_spill] sm:$0xff] }
 0x163   :  { %v674_v14 = vunpack.c.l.b16 %v615_v7  ;;  %v1196_v40 = vpop.f32.mrf.mxu2 }
 0x164   :  { %v10233_v61 = vmax.f32 %v1668_v44, %v1672_v47  ;;  %v1197_v63 = vadd.f32 %v1196_v40, %v10109_v57 }
 0x165   :  { %v10236_v60 = vpack.c.b16 %v674_v14, %v673_v36  ;;  %v1041_v22 = vpop.f32.mrf.mxu0  ;;  %v10239_v26 = vpop.f32.mrf.mxu3 }
 0x166   :  { %11798 = vst [vmem:[#allocation32_spill] sm:$0xff] %v10233_v61  ;;  %v1276_v54 = vadd.f32 %v9986_v34, %v1197_v63  ;;  %v10241_v38 = vpop.f32.mrf.mxu1  ;;  %v1042_v40 = vadd.f32 %v1041_v22, %v10096_v15  ;;  %v11800_v34 = vld [vmem:[#allocation22_spill] sm:$0xff] }
 0x167   :  { %v302_v8 = vpop.permute.xlu1 %301  ;;  %v11804_v63 = vld [vmem:[#allocation30_spill] sm:$0xff] }
 0x168   :  { %v1673_v43 = vmax.f32 %v1276_v54, 0.0  ;;  %v300_v29 = vpop.permute.xlu0 %299  ;;  %1080 = vmatmul.bf16.gmra.mxu0 %v10236_v60  ;;  %1238 = vmatmul.bf16.gmra.mxu2 %v10236_v60  ;;  %v1121_v36 = vadd.f32 %v9990_v9, %v1042_v40  ;;  %v420_v5 = vpop.permute.xlu2 %419  ;;  %v505_v22 = vsel %vm421_vm0, %v11804_v63, %v302_v8 }
 0x169   :  { %1366 = vmatmul.bf16.gmra.mxu1 %v10045_v6  ;;  %v502_v44 = vsel %vm421_vm0, %v11801_v27, %v300_v29 }
 0x16a   :  { %v10245_v56 = vmax.f32 %v1669_v51, %v1673_v43  ;;  %7101 = vmatmul.msk.bf16.gmra.mxu3 %vm421_vm0, %v11800_v34  ;;  %v560_v54 = vsel %vm506_vm1, %v502_v44, %v359_v4 }
 0x16b   :  { %v1199_v32 = vpop.f32.mrf.mxu2 }
 0x16c   :  { %11799 = vst [vmem:[#allocation49_spill] sm:$0xff] %v10245_v56  ;;  %v1200_v51 = vadd.f32 %v1199_v32, %v10109_v57 }
 0x16d   :  { %v1043_v47 = vpop.f32.mrf.mxu0  ;;  %v10255_v14 = vpop.f32.mrf.mxu3 }
 0x16e   :  { %v1044_v7 = vadd.f32 %v1043_v47, %v10096_v15  ;;  %11802 = vst [vmem:[#allocation22_spill] sm:$0xff] %v10255_v14  ;;  %v10257_v30 = vpop.f32.mrf.mxu1  ;;  %v1676_v47 = vmax.f32 %v1121_v36, 0.0  ;;  %v1279_v8 = vadd.f32 %v10001_v53, %v1200_v51 }
 0x16f   :  { %11803 = vst [vmem:[#allocation29_spill] sm:$0xff] %v10257_v30  ;;  %v418_v29 = vpop.permute.xlu1 %417 }
 0x170   :  { %v1123_v43 = vadd.f32 %v10005_v20, %v1044_v7  ;;  %v361_v27 = vpop.permute.xlu0 %360  ;;  %v617_v9 = vsel %vm563_vm2, %v560_v54, %v418_v29  ;;  %v11806_v7 = vld [vmem:[#allocation33_spill] sm:$0xff] }
 0x171   :  { %v562_v40 = vsel %vm506_vm1, %v505_v22, %v361_v27  ;;  %v675_v61 = vunpack.c.l.b16 %v617_v9  ;;  %v1677_v22 = vmax.f32 %v1279_v8, 0.0 }
 0x172   :  { %v1680_v56 = vmax.f32 %v1123_v43, 0.0  ;;  %v619_v23 = vsel %vm563_vm2, %v562_v40, %v420_v5 }
 0x173   :  { %v676_v14 = vunpack.c.l.b16 %v619_v23  ;;  %v1201_v30 = vpop.f32.mrf.mxu2 }
 0x174   :  { %v10268_v4 = vmax.f32 %v1676_v47, %v1680_v56  ;;  %v1202_v32 = vadd.f32 %v1201_v30, %v10109_v57  ;;  %v11808_v56 = vld [vmem:[#allocation23_spill] sm:$0xff]  ;;  %v11809_v30 = vld [vmem:[#allocation34_spill] sm:$0xff] }
 0x175   :  { %v10271_v20 = vpack.c.b16 %v676_v14, %v675_v61  ;;  %v1046_v44 = vpop.f32.mrf.mxu0  ;;  %v10274_v54 = vpop.f32.mrf.mxu3 }
 0x176   :  { %11805 = vst [vmem:[#allocation30_spill] sm:$0xff] %v10268_v4  ;;  %v1281_v63 = vadd.f32 %v11806_v7, %v1202_v32  ;;  %v10276_v36 = vpop.f32.mrf.mxu1  ;;  %v1047_v23 = vadd.f32 %v1046_v44, %v10096_v15  ;;  %v7621_v4 = vld [vmem:[#allocation8 + $0x3e0] sm:$0xf] }
 0x178   :  { %v1681_v43 = vmax.f32 %v1281_v63, 0.0  ;;  %1085 = vmatmul.bf16.gmra.mxu0 %v10271_v20  ;;  %1243 = vmatmul.bf16.gmra.mxu2 %v10271_v20  ;;  %v1126_v5 = vadd.f32 %v11809_v30, %v1047_v23  ;;  %v7237_v23 = vld [vmem:[#allocation8 + $0xe0] sm:$0xf] }
 0x179   :  { %1371 = vmatmul.bf16.gmra.mxu1 %v10068_v2 }
 0x17a   :  { %v10280_v53 = vmax.f32 %v1677_v22, %v1681_v43  ;;  %7102 = vmatmul.msk.bf16.gmra.mxu3 %vm421_vm0, %v11808_v56  ;;  %v1684_v47 = vmax.f32 %v1126_v5, 0.0  ;;  %v7365_v22 = vld [vmem:[#allocation8 + $0x1e0] sm:$0xf]  ;;  %v8953_v43 = vld [vmem:[#allocation8 + $0x1ec] sm:$0xf0] }
 0x17b   :  { %v1204_v61 = vpop.f32.mrf.mxu2  ;;  %v7366_v30 = vor.u32 %v8953_v43, %v7365_v22 }
 0x17c   :  { %11807 = vst [vmem:[#allocation33_spill] sm:$0xff] %v10280_v53  ;;  %v1205_v9 = vadd.f32 %v1204_v61, %v10109_v57  ;;  %v8921_v53 = vld [vmem:[#allocation8 + $0xec] sm:$0xf0] }
 0x17d   :  { %v1048_v14 = vpop.f32.mrf.mxu0  ;;  %v10288_v29 = vpop.f32.mrf.mxu3  ;;  %v7238_v5 = vor.u32 %v8921_v53, %v7237_v23  ;;  %3934 = vmatpush.bf16.msra.mxu3 %v7366_v30  ;;  %v11813_v53 = vld [vmem:[#allocation24_spill] sm:$0xff] }
 0x17e   :  { %v1049_v51 = vadd.f32 %v1048_v14, %v10096_v15  ;;  %11810 = vst [vmem:[#allocation23_spill] sm:$0xff] %v10288_v29  ;;  %v10290_v27 = vpop.f32.mrf.mxu1  ;;  %v1284_v44 = vadd.f32 %v10031_v42, %v1205_v9  ;;  %v9017_v29 = vld [vmem:[#allocation8 + $0x3ec] sm:$0xf0] }
 0x17f   :  { %3890 = vmatpush.bf16.msra.mxu1 %v7238_v5 }
 0x180   :  { %v1128_v40 = vadd.f32 %v10035_v35, %v1049_v51  ;;  %v7622_v51 = vor.u32 %v9017_v29, %v7621_v4  ;;  %v1685_v42 = vmax.f32 %v1284_v44, 0.0  ;;  %v11814_v44 = vld [vmem:[#allocation35_spill] sm:$0xff] }
 0x182   :  { %v1688_v8 = vmax.f32 %v1128_v40, 0.0  ;;  %4022 = vmatpush.bf16.msra.mxu2 %v7622_v51 }
 0x183   :  { %v1206_v32 = vpop.f32.mrf.mxu2 }
 0x184   :  { %v10295_v7 = vmax.f32 %v1684_v47, %v1688_v8  ;;  %v1207_v63 = vadd.f32 %v1206_v32, %v10109_v57  ;;  %v10305_v47 = vperm.slane %v10091_v50, 2  ;;  %v7493_v32 = vld [vmem:[#allocation8 + $0x2e0] sm:$0xf] }
 0x185   :  { %v1051_v14 = vpop.f32.mrf.mxu0  ;;  %v10299_v35 = vpop.f32.mrf.mxu3 }
 0x186   :  { %11811 = vst [vmem:[#allocation34_spill] sm:$0xff] %v10295_v7  ;;  %v1286_v61 = vadd.f32 %v10047_v16, %v1207_v63  ;;  %v1337_v40 = vpop.f32.mrf.mxu1  ;;  %v1052_v16 = vadd.f32 %v1051_v14, %v10096_v15 }
 0x188   :  { %v1689_v9 = vmax.f32 %v1286_v61, 0.0  ;;  %1494 = vmatmul.bf16.vlgmr.msrb.gmra.mxu0 %v9815_v13  ;;  %7109 = vmatmul.msk.bf16.vlgmr.msrb.gmra.mxu2 %vm421_vm0, %v9654_v24  ;;  %v1338_v13 = vadd.f32 %v1337_v40, %v10305_v47  ;;  %v8985_v24 = vld [vmem:[#allocation8 + $0x2ec] sm:$0xf0]  ;;  %v1131_v50 = vadd.f32 %v11814_v44, %v1052_v16  ;;  %v11815_v61 = vld [vmem:[#allocation37_spill] sm:$0xff] }
 0x189   :  { %1376 = vmatmul.bf16.gmra.mxu1 %v10093_v46  ;;  %v7494_v43 = vor.u32 %v8985_v24, %v7493_v32  ;;  %v11816_v40 = vld [vmem:[#allocation36_spill] sm:$0xff] }
 0x18a   :  { %v10307_v8 = vmax.f32 %v1685_v42, %v1689_v9  ;;  %7103 = vmatmul.msk.bf16.gmra.mxu3 %vm421_vm0, %v11813_v53  ;;  %v1692_v51 = vmax.f32 %v1131_v50, 0.0  ;;  %v11819_v50 = vld [vmem:[#allocation20_spill] sm:$0xff] }
 0x18b   :  { %v1209_v4 = vpop.f32.mrf.mxu2  ;;  %3978 = vmatpush.bf16.msra.mxu0 %v7494_v43  ;;  %v11818_v43 = vld [vmem:[#allocation25_spill] sm:$0xff] }
 0x18c   :  { %11812 = vst [vmem:[#allocation50_spill] sm:$0xff] %v10307_v8  ;;  %v1210_v14 = vadd.f32 %v1209_v4, %v10109_v57 }
 0x18d   :  { %v1053_v29 = vpop.f32.mrf.mxu0  ;;  %v1416_v22 = vpop.f32.mrf.mxu3 }
 0x18e   :  { %v1054_v63 = vadd.f32 %v1053_v29, %v10096_v15  ;;  %v1417_v23 = vadd.f32 %v1416_v22, %v1338_v13  ;;  %v1339_v30 = vpop.f32.mrf.mxu1  ;;  %v1289_v8 = vadd.f32 %v11816_v40, %v1210_v14 }
 0x18f   :  { %v1340_v29 = vadd.f32 %v1339_v30, %v10305_v47 }
 0x190   :  { %v1133_v5 = vadd.f32 %v11815_v61, %v1054_v63  ;;  %v1693_v22 = vmax.f32 %v1289_v8, 0.0  ;;  %v1646_v14 = vmax.f32 %v1417_v23, 0.0  ;;  %v7349_v23 = vld [vmem:[#allocation8 + $0x1c0] sm:$0xf] }
 0x192   :  { %v1696_v42 = vmax.f32 %v1133_v5, 0.0 }
 0x193   :  { %v1211_v9 = vpop.f32.mrf.mxu2 }
 0x194   :  { %v10319_v7 = vmax.f32 %v1692_v51, %v1696_v42  ;;  %v1212_v16 = vadd.f32 %v1211_v9, %v10109_v57  ;;  %v11822_v42 = vld [vmem:[#allocation26_spill] sm:$0xff] }
 0x195   :  { %v1056_v44 = vpop.f32.mrf.mxu0  ;;  %v1418_v32 = vpop.f32.mrf.mxu3 }
 0x196   :  { %11817 = vst [vmem:[#allocation24_spill] sm:$0xff] %v10319_v7  ;;  %v1291_v13 = vadd.f32 %v10070_v0, %v1212_v16  ;;  %v1419_v24 = vadd.f32 %v1418_v32, %v1340_v29  ;;  %v1342_v4 = vpop.f32.mrf.mxu1  ;;  %v1057_v51 = vadd.f32 %v1056_v44, %v10096_v15  ;;  %v8949_v16 = vld [vmem:[#allocation8 + $0x1cc] sm:$0xf0]  ;;  %v11823_v29 = vld [vmem:[#allocation38_spill] sm:$0xff] }
 0x197   :  { %v1343_v9 = vadd.f32 %v1342_v4, %v10305_v47  ;;  %v11825_v4 = vld [vmem:[#allocation39_spill] sm:$0xff] }
 0x198   :  { %v1697_v63 = vmax.f32 %v1291_v13, 0.0  ;;  %1499 = vmatmul.bf16.gmra.mxu0 %v11818_v43  ;;  %7110 = vmatmul.msk.bf16.gmra.mxu2 %vm421_vm0, %v11819_v50  ;;  %v1650_v61 = vmax.f32 %v1419_v24, 0.0  ;;  %v1136_v13 = vadd.f32 %v11823_v29, %v1057_v51  ;;  %v7350_v24 = vor.u32 %v8949_v16, %v7349_v23  ;;  %v11824_v50 = vld [vmem:[#allocation40_spill] sm:$0xff]  ;;  %v7221_v29 = vld [vmem:[#allocation8 + $0xc0] sm:$0xf] }
 0x199   :  { %1381 = vmatmul.bf16.gmra.mxu1 %v10131_v33 }
 0x19a   :  { %v10327_v5 = vmax.f32 %v1693_v22, %v1697_v63  ;;  %v10331_v30 = vmax.f32 %v1646_v14, %v1650_v61  ;;  %7104 = vmatmul.msk.bf16.gmra.mxu3 %vm421_vm0, %v11822_v42  ;;  %v1700_v61 = vmax.f32 %v1136_v13, 0.0 }
 0x19b   :  { %v1214_v0 = vpop.f32.mrf.mxu2  ;;  %3935 = vmatpush.bf16.msra.mxu3 %v7350_v24  ;;  %v11827_v24 = vld [vmem:[#allocation41_spill] sm:$0xff] }
 0x19c   :  { %11820 = vst [vmem:[#allocation35_spill] sm:$0xff] %v10327_v5  ;;  %v1215_v43 = vadd.f32 %v1214_v0, %v10109_v57  ;;  %v9013_v0 = vld [vmem:[#allocation8 + $0x3cc] sm:$0xf0] }
 0x19d   :  { %11821 = vst [vmem:[#allocation37_spill] sm:$0xff] %v10331_v30  ;;  %v1058_v40 = vpop.f32.mrf.mxu0  ;;  %v1421_v32 = vpop.f32.mrf.mxu3 }
 0x19e   :  { %v1059_v44 = vadd.f32 %v1058_v40, %v10096_v15  ;;  %v1422_v22 = vadd.f32 %v1421_v32, %v1343_v9  ;;  %v1344_v63 = vpop.f32.mrf.mxu1  ;;  %v1294_v7 = vadd.f32 %v11825_v4, %v1215_v43  ;;  %v8917_v40 = vld [vmem:[#allocation8 + $0xcc] sm:$0xf0]  ;;  %v7477_v32 = vld [vmem:[#allocation8 + $0x2c0] sm:$0xf]  ;;  %v11828_v4 = vld [vmem:[#allocation27_spill] sm:$0xff] }
 0x19f   :  { %v1345_v9 = vadd.f32 %v1344_v63, %v10305_v47  ;;  %v7222_v16 = vor.u32 %v8917_v40, %v7221_v29 }
 0x1a0   :  { %v1138_v14 = vadd.f32 %v11824_v50, %v1059_v44  ;;  %v8981_v44 = vld [vmem:[#allocation8 + $0x2cc] sm:$0xf0]  ;;  %v1654_v63 = vmax.f32 %v1422_v22, 0.0 }
 0x1a1   :  { %v7478_v42 = vor.u32 %v8981_v44, %v7477_v32  ;;  %3891 = vmatpush.bf16.msra.mxu1 %v7222_v16 }
 0x1a2   :  { %v1704_v8 = vmax.f32 %v1138_v14, 0.0  ;;  %v7606_v14 = vor.u32 %v9013_v0, %v7605_v3  ;;  %v11831_v0 = vld [vmem:[#allocation42_spill] sm:$0xff] }
 0x1a3   :  { %v1216_v5 = vpop.f32.mrf.mxu2  ;;  %3979 = vmatpush.bf16.msra.mxu0 %v7478_v42 }
 0x1a4   :  { %v10343_v30 = vmax.f32 %v1700_v61, %v1704_v8  ;;  %v1217_v51 = vadd.f32 %v1216_v5, %v10109_v57  ;;  %v1701_v61 = vmax.f32 %v1294_v7, 0.0  ;;  %4023 = vmatpush.bf16.msra.mxu2 %v7606_v14  ;;  %v11830_v7 = vld [vmem:[#allocation28_spill] sm:$0xff] }
 0x1a5   :  { %v1061_v23 = vpop.f32.mrf.mxu0  ;;  %v1423_v50 = vpop.f32.mrf.mxu3 }
 0x1a6   :  { %11826 = vst [vmem:[#allocation36_spill] sm:$0xff] %v10343_v30  ;;  %v1296_v13 = vadd.f32 %v11827_v24, %v1217_v51  ;;  %v1424_v43 = vadd.f32 %v1423_v50, %v1345_v9  ;;  %v1347_v8 = vpop.f32.mrf.mxu1  ;;  %v11829_v30 = vld [vmem:[#allocation21_spill] sm:$0xff]  ;;  %v1062_v51 = vadd.f32 %v1061_v23, %v10096_v15  ;;  %v11832_v50 = vld [vmem:[#allocation44_spill] sm:$0xff] }
 0x1a8   :  { %v1705_v5 = vmax.f32 %v1296_v13, 0.0  ;;  %1504 = vmatmul.bf16.gmra.mxu0 %v11828_v4  ;;  %7111 = vmatmul.msk.bf16.gmra.mxu2 %vm421_vm0, %v11829_v30  ;;  %v1658_v29 = vmax.f32 %v1424_v43, 0.0  ;;  %v1348_v30 = vadd.f32 %v1347_v8, %v10305_v47  ;;  %v1141_v42 = vadd.f32 %v11831_v0, %v1062_v51  ;;  %v11833_v4 = vld [vmem:[#allocation43_spill] sm:$0xff] }
 0x1a9   :  { %1386 = vmatmul.bf16.gmra.mxu1 %v10166_v19 }
 0x1aa   :  { %v10351_v40 = vmax.f32 %v1701_v61, %v1705_v5  ;;  %v10355_v3 = vmax.f32 %v1654_v63, %v1658_v29  ;;  %7105 = vmatmul.msk.bf16.gmra.mxu3 %vm421_vm0, %v11830_v7  ;;  %v1708_v43 = vmax.f32 %v1141_v42, 0.0 }
 0x1ab   :  { %v1219_v9 = vpop.f32.mrf.mxu2 }
 0x1ac   :  { %v1220_v13 = vadd.f32 %v1219_v9, %v10109_v57 }
 0x1ad   :  { %v1063_v22 = vpop.f32.mrf.mxu0  ;;  %v1426_v44 = vpop.f32.mrf.mxu3 }
 0x1ae   :  { %v1064_v32 = vadd.f32 %v1063_v22, %v10096_v15  ;;  %v1427_v23 = vadd.f32 %v1426_v44, %v1348_v30  ;;  %v1349_v24 = vpop.f32.mrf.mxu1  ;;  %v1299_v63 = vadd.f32 %v11833_v4, %v1220_v13 }
 0x1af   :  { %v1350_v51 = vadd.f32 %v1349_v24, %v10305_v47 }
 0x1b0   :  { %v1143_v14 = vadd.f32 %v11832_v50, %v1064_v32  ;;  %v1709_v9 = vmax.f32 %v1299_v63, 0.0  ;;  %v1662_v42 = vmax.f32 %v1427_v23, 0.0  ;;  %v7205_v23 = vld [vmem:[#allocation8 + $0xa0] sm:$0xf] }
 0x1b2   :  { %v1712_v61 = vmax.f32 %v1143_v14, 0.0 }
 0x1b3   :  { %v1221_v5 = vpop.f32.mrf.mxu2 }
 0x1b4   :  { %v10367_v29 = vmax.f32 %v1708_v43, %v1712_v61  ;;  %v1222_v8 = vadd.f32 %v1221_v5, %v10109_v57  ;;  %v11836_v43 = vld [vmem:[#allocation31_spill] sm:$0xff]  ;;  %v7333_v5 = vld [vmem:[#allocation8 + $0x1a0] sm:$0xf] }
 0x1b5   :  { %v1066_v0 = vpop.f32.mrf.mxu0  ;;  %v1428_v30 = vpop.f32.mrf.mxu3 }
 0x1b6   :  { %11834 = vst [vmem:[#allocation25_spill] sm:$0xff] %v10367_v29  ;;  %v1301_v22 = vadd.f32 %v10134_v17, %v1222_v8  ;;  %v1429_v44 = vadd.f32 %v1428_v30, %v1350_v51  ;;  %v10372_v16 = vpop.f32.mrf.mxu1  ;;  %v1067_v24 = vadd.f32 %v1066_v0, %v10096_v15  ;;  %v8913_v0 = vld [vmem:[#allocation8 + $0xac] sm:$0xf0] }
 0x1b7   :  { %v9009_v30 = vld [vmem:[#allocation8 + $0x3ac] sm:$0xf0] }
 0x1b8   :  { %v1713_v32 = vmax.f32 %v1301_v22, 0.0  ;;  %1509 = vmatmul.bf16.gmra.mxu0 %v9943_v21  ;;  %7112 = vmatmul.msk.bf16.gmra.mxu2 %vm421_vm0, %v9708_v45  ;;  %v1666_v13 = vmax.f32 %v1429_v44, 0.0  ;;  %v8945_v45 = vld [vmem:[#allocation8 + $0x1ac] sm:$0xf0]  ;;  %v1146_v4 = vadd.f32 %v10136_v10, %v1067_v24  ;;  %v7589_v22 = vld [vmem:[#allocation8 + $0x3a0] sm:$0xf] }
 0x1b9   :  { %1391 = vmatmul.bf16.gmra.mxu1 %v10201_v12  ;;  %v7334_v51 = vor.u32 %v8945_v45, %v7333_v5  ;;  %v8977_v29 = vld [vmem:[#allocation8 + $0x2ac] sm:$0xf0] }
 0x1ba   :  { %v10377_v50 = vmax.f32 %v1709_v9, %v1713_v32  ;;  %v10381_v17 = vmax.f32 %v1662_v42, %v1666_v13  ;;  %7106 = vmatmul.msk.bf16.gmra.mxu3 %vm421_vm0, %v11836_v43  ;;  %v7206_v9 = vor.u32 %v8913_v0, %v7205_v23  ;;  %v7590_v32 = vor.u32 %v9009_v30, %v7589_v22 }
 0x1bb   :  { %v1224_v14 = vpop.f32.mrf.mxu2  ;;  %3936 = vmatpush.bf16.msra.mxu3 %v7334_v51  ;;  %v1716_v10 = vmax.f32 %v1146_v4, 0.0 }
 0x1bc   :  { %11835 = vst [vmem:[#allocation20_spill] sm:$0xff] %v10377_v50  ;;  %v1225_v42 = vadd.f32 %v1224_v14, %v10109_v57  ;;  %3892 = vmatpush.bf16.msra.mxu1 %v7206_v9  ;;  %4024 = vmatpush.bf16.msra.mxu2 %v7590_v32  ;;  %v7461_v50 = vld [vmem:[#allocation8 + $0x2a0] sm:$0xf] }
 0x1bd   :  { %v1068_v61 = vpop.f32.mrf.mxu0  ;;  %v10389_v8 = vpop.f32.mrf.mxu3  ;;  %v7462_v0 = vor.u32 %v8977_v29, %v7461_v50 }
 0x1be   :  { %v1069_v63 = vadd.f32 %v1068_v61, %v10096_v15  ;;  %v10391_v44 = vpop.f32.mrf.mxu1  ;;  %v1304_v21 = vadd.f32 %v10150_v41, %v1225_v42 }
 0x1bf   :  { %3980 = vmatpush.bf16.msra.mxu0 %v7462_v0 }
 0x1c0   :  { %v1148_v13 = vadd.f32 %v10152_v18, %v1069_v63  ;;  %v1717_v4 = vmax.f32 %v1304_v21, 0.0 }
 0x1c2   :  { %v1720_v24 = vmax.f32 %v1148_v13, 0.0 }
 0x1c3   :  { %v1226_v61 = vpop.f32.mrf.mxu2 }
 0x1c4   :  { %v10396_v5 = vmax.f32 %v1716_v10, %v1720_v24  ;;  %v1227_v45 = vadd.f32 %v1226_v61, %v10109_v57 }
 0x1c5   :  { %v1071_v23 = vpop.f32.mrf.mxu0  ;;  %v10400_v22 = vpop.f32.mrf.mxu3 }
 0x1c6   :  { %11837 = vst [vmem:[#allocation38_spill] sm:$0xff] %v10396_v5  ;;  %v1306_v14 = vadd.f32 %v10169_v48, %v1227_v45  ;;  %v10402_v18 = vpop.f32.mrf.mxu1  ;;  %v1072_v51 = vadd.f32 %v1071_v23, %v10096_v15  ;;  %v10411_v48 = vld [vmem:[#allocation2 + $0x70] sm:$0xff]  }
 0x1c7   :  { %v8941_v23 = vld [vmem:[#allocation8 + $0x18c] sm:$0xf0] }
 0x1c8   :  { %v1721_v63 = vmax.f32 %v1306_v14, 0.0  ;;  %1514 = vmatmul.bf16.gmra.mxu0 %v9984_v28  ;;  %7113 = vmatmul.msk.bf16.gmra.mxu2 %vm421_vm0, %v9726_v52  ;;  %v1151_v21 = vadd.f32 %v10171_v1, %v1072_v51  ;;  %v7317_v1 = vld [vmem:[#allocation8 + $0x180] sm:$0xf] }
 0x1c9   :  { %1396 = vmatmul.bf16.gmra.mxu1 %v10236_v60  ;;  %v7318_v14 = vor.u32 %v8941_v23, %v7317_v1  ;;  %v8973_v1 = vld [vmem:[#allocation8 + $0x28c] sm:$0xf0] }
 0x1ca   :  { %v10407_v41 = vmax.f32 %v1717_v4, %v1721_v63  ;;  %7107 = vmatmul.msk.bf16.gmra.mxu3 %vm421_vm0, %v10411_v48  ;;  %v1724_v42 = vmax.f32 %v1151_v21, 0.0 }
 0x1cb   :  { %v1229_v29 = vpop.f32.mrf.mxu2  ;;  %3937 = vmatpush.bf16.msra.mxu3 %v7318_v14 }
 0x1cc   :  { %11838 = vst [vmem:[#allocation40_spill] sm:$0xff] %v10407_v41  ;;  %v1230_v9 = vadd.f32 %v1229_v29, %v10109_v57 }
 0x1cd   :  { %v1073_v50 = vpop.f32.mrf.mxu0  ;;  %v10417_v30 = vpop.f32.mrf.mxu3 }
 0x1ce   :  { %v1074_v28 = vadd.f32 %v1073_v50, %v10096_v15  ;;  %v10419_v52 = vpop.f32.mrf.mxu1  ;;  %v1309_v24 = vadd.f32 %v10185_v31, %v1230_v9  ;;  %v7189_v9 = vld [vmem:[#allocation8 + $0x80] sm:$0xf] }
 0x1d0   :  { %v1153_v32 = vadd.f32 %v10187_v37, %v1074_v28  ;;  %v1725_v37 = vmax.f32 %v1309_v24, 0.0  ;;  %v9005_v24 = vld [vmem:[#allocation8 + $0x38c] sm:$0xf0] }
 0x1d2   :  { %v1728_v13 = vmax.f32 %v1153_v32, 0.0  ;;  %v8909_v32 = vld [vmem:[#allocation8 + $0x8c] sm:$0xf0] }
 0x1d3   :  { %v1231_v10 = vpop.f32.mrf.mxu2 }
 0x1d4   :  { %v10424_v61 = vmax.f32 %v1724_v42, %v1728_v13  ;;  %v1232_v45 = vadd.f32 %v1231_v10, %v10109_v57  ;;  %v7573_v42 = vld [vmem:[#allocation8 + $0x380] sm:$0xf]  ;;  %v7190_v10 = vor.u32 %v8909_v32, %v7189_v9 }
 0x1d5   :  { %v1076_v0 = vpop.f32.mrf.mxu0  ;;  %v10428_v63 = vpop.f32.mrf.mxu3 }
 0x1d6   :  { %11839 = vst [vmem:[#allocation39_spill] sm:$0xff] %v10424_v61  ;;  %v1311_v4 = vadd.f32 %v10204_v59, %v1232_v45  ;;  %v10430_v51 = vpop.f32.mrf.mxu1  ;;  %v1077_v50 = vadd.f32 %v1076_v0, %v10096_v15  ;;  %v10439_v59 = vld [vmem:[#allocation2 + $0x78] sm:$0xff]   ;;  %v7445_v45 = vld [vmem:[#allocation8 + $0x280] sm:$0xf]  ;;  %v7574_v0 = vor.u32 %v9005_v24, %v7573_v42  ;;  %3893 = vmatpush.bf16.msra.mxu1 %v7190_v10 }
 0x1d7   :  { %v7446_v14 = vor.u32 %v8973_v1, %v7445_v45 }
 0x1d8   :  { %v1729_v29 = vmax.f32 %v1311_v4, 0.0  ;;  %1519 = vmatmul.bf16.gmra.mxu0 %v10016_v11  ;;  %7114 = vmatmul.msk.bf16.gmra.mxu2 %vm421_vm0, %v9747_v25  ;;  %v1156_v11 = vadd.f32 %v10206_v62, %v1077_v50 }
 0x1d9   :  { %1401 = vmatmul.bf16.gmra.mxu1 %v10271_v20  ;;  %4025 = vmatpush.bf16.msra.mxu2 %v7574_v0 }
 0x1da   :  { %v10435_v31 = vmax.f32 %v1725_v37, %v1729_v29  ;;  %7108 = vmatmul.msk.bf16.gmra.mxu3 %vm421_vm0, %v10439_v59  ;;  %3981 = vmatpush.bf16.msra.mxu0 %v7446_v14  ;;  %v1732_v62 = vmax.f32 %v1156_v11, 0.0 }
 0x1db   :  { %v1234_v21 = vpop.f32.mrf.mxu2 }
 0x1dc   :  { %11840 = vst [vmem:[#allocation41_spill] sm:$0xff] %v10435_v31  ;;  %v1235_v4 = vadd.f32 %v1234_v21, %v10109_v57 }
 0x1dd   :  { %v1078_v28 = vpop.f32.mrf.mxu0  ;;  %v10445_v13 = vpop.f32.mrf.mxu3 }
 0x1de   :  { %v1079_v25 = vadd.f32 %v1078_v28, %v10096_v15  ;;  %v10447_v23 = vpop.f32.mrf.mxu1  ;;  %v1314_v28 = vadd.f32 %v10220_v39, %v1235_v4 }
 0x1e0   :  { %v1158_v37 = vadd.f32 %v10222_v49, %v1079_v25  ;;  %v1733_v49 = vmax.f32 %v1314_v28, 0.0  ;;  %v8905_v28 = vld [vmem:[#allocation8 + $0x6c] sm:$0xf0] }
 0x1e2   :  { %v1736_v29 = vmax.f32 %v1158_v37, 0.0 }
 0x1e3   :  { %v1236_v50 = vpop.f32.mrf.mxu2 }
 0x1e4   :  { %v10452_v9 = vmax.f32 %v1732_v62, %v1736_v29  ;;  %v1237_v32 = vadd.f32 %v1236_v50, %v10109_v57  ;;  %v7301_v62 = vld [vmem:[#allocation8 + $0x160] sm:$0xf] }
 0x1e5   :  { %v1081_v31 = vpop.f32.mrf.mxu0  ;;  %v10456_v24 = vpop.f32.mrf.mxu3  ;;  %v7173_v50 = vld [vmem:[#allocation8 + $0x60] sm:$0xf] }
 0x1e6   :  { %11841 = vst [vmem:[#allocation27_spill] sm:$0xff] %v10452_v9  ;;  %v1316_v42 = vadd.f32 %v10239_v26, %v1237_v32  ;;  %v10458_v21 = vpop.f32.mrf.mxu1  ;;  %v1082_v39 = vadd.f32 %v1081_v31, %v10096_v15 }
 0x1e8   :  { %v1737_v25 = vmax.f32 %v1316_v42, 0.0  ;;  %1524 = vmatmul.bf16.gmra.mxu0 %v10045_v6  ;;  %7115 = vmatmul.msk.bf16.gmra.mxu2 %vm421_vm0, %v11800_v34  ;;  %v1161_v1 = vadd.f32 %v10241_v38, %v1082_v39  ;;  %v11843_v6 = vld [vmem:[#allocation29_spill] sm:$0xff]  ;;  %v8937_v34 = vld [vmem:[#allocation8 + $0x16c] sm:$0xf0]  ;;  %v7174_v42 = vor.u32 %v8905_v28, %v7173_v50 }
 0x1e9   :  { %v7302_v29 = vor.u32 %v8937_v34, %v7301_v62  ;;  %v9001_v38 = vld [vmem:[#allocation8 + $0x36c] sm:$0xf0]  ;;  %v7285_v62 = vld [vmem:[#allocation8 + $0x140] sm:$0xf] }
 0x1ea   :  { %v10463_v11 = vmax.f32 %v1733_v49, %v1737_v25  ;;  %v1740_v31 = vmax.f32 %v1161_v1, 0.0  ;;  %v7557_v49 = vld [vmem:[#allocation8 + $0x360] sm:$0xf]  ;;  %3894 = vmatpush.bf16.msra.mxu1 %v7174_v42  ;;  %v8897_v42 = vld [vmem:[#allocation8 + $0x2c] sm:$0xf0] }
 0x1eb   :  { %v1239_v10 = vpop.f32.mrf.mxu2  ;;  %3938 = vmatpush.bf16.msra.mxu3 %v7302_v29  ;;  %v7558_v39 = vor.u32 %v9001_v38, %v7557_v49 }
 0x1ec   :  { %11842 = vst [vmem:[#allocation21_spill] sm:$0xff] %v10463_v11  ;;  %v1240_v4 = vadd.f32 %v1239_v10, %v10109_v57 }
 0x1ed   :  { %v1083_v45 = vpop.f32.mrf.mxu0  ;;  %v10468_v0 = vpop.f32.mrf.mxu3  ;;  %4026 = vmatpush.bf16.msra.mxu2 %v7558_v39  ;;  %v8929_v39 = vld [vmem:[#allocation8 + $0x12c] sm:$0xf0] }
 0x1ee   :  { %v1084_v26 = vadd.f32 %v1083_v45, %v10096_v15  ;;  %v10470_v14 = vpop.f32.mrf.mxu1  ;;  %v11844_v45 = vld [vmem:[#allocation22_spill] sm:$0xff] }
 0x1ef   :  { %v1319_v11 = vadd.f32 %v11844_v45, %v1240_v4 }
 0x1f0   :  { %v1163_v37 = vadd.f32 %v11843_v6, %v1084_v26  ;;  %v7157_v26 = vld [vmem:[#allocation8 + $0x40] sm:$0xf]  ;;  %v8901_v6 = vld [vmem:[#allocation8 + $0x4c] sm:$0xf0] }
 0x1f1   :  { %v7158_v1 = vor.u32 %v8901_v6, %v7157_v26  ;;  %v1741_v4 = vmax.f32 %v1319_v11, 0.0  ;;  %v7125_v11 = vld [vmem:[#allocation8] sm:$0xf]  ;;  %v8893_v6 = vld [vmem:[#allocation8 + $0xc] sm:$0xf0] }
 0x1f2   :  { %v1744_v32 = vmax.f32 %v1163_v37, 0.0  ;;  %v8933_v37 = vld [vmem:[#allocation8 + $0x14c] sm:$0xf0] }
 0x1f3   :  { %v1241_v25 = vpop.f32.mrf.mxu2  ;;  %v7286_v29 = vor.u32 %v8933_v37, %v7285_v62  ;;  %3895 = vmatpush.bf16.msra.mxu1 %v7158_v1  ;;  %v7253_v62 = vld [vmem:[#allocation8 + $0x100] sm:$0xf]  ;;  %v8925_v37 = vld [vmem:[#allocation8 + $0x10c] sm:$0xf0] }
 0x1f4   :  { %v10475_v9 = vmax.f32 %v1740_v31, %v1744_v32  ;;  %v1242_v10 = vadd.f32 %v1241_v25, %v10109_v57  ;;  %v7141_v32 = vld [vmem:[#allocation8 + $0x20] sm:$0xf] }
 0x1f5   :  { %v1086_v34 = vpop.f32.mrf.mxu0  ;;  %v10479_v28 = vpop.f32.mrf.mxu3  ;;  %3939 = vmatpush.bf16.msra.mxu3 %v7286_v29  ;;  %v7142_v38 = vor.u32 %v8897_v42, %v7141_v32  ;;  %v7269_v25 = vld [vmem:[#allocation8 + $0x120] sm:$0xf]  ;;  %v7254_v32 = vor.u32 %v8925_v37, %v7253_v62 }
 0x1f6   :  { %11845 = vst [vmem:[#allocation28_spill] sm:$0xff] %v10475_v9  ;;  %v1321_v50 = vadd.f32 %v10274_v54, %v1242_v10  ;;  %v10481_v49 = vpop.f32.mrf.mxu1  ;;  %v1087_v45 = vadd.f32 %v1086_v34, %v10096_v15  ;;  %v7270_v10 = vor.u32 %v8929_v39, %v7269_v25  ;;  %v9570_v34 = vmov 0  }
 0x1f7   :  { %3896 = vmatpush.bf16.msra.mxu1 %v7142_v38  ;;  %v10493_v42 = vunpack.c.l.b16 %v9570_v34 }
 0x1f8   :  { %v1745_v31 = vmax.f32 %v1321_v50, 0.0  ;;  %1529 = vmatmul.bf16.gmra.mxu0 %v10068_v2  ;;  %7116 = vmatmul.msk.bf16.gmra.mxu2 %vm421_vm0, %v11808_v56  ;;  %v7126_v56 = vor.u32 %v8893_v6, %v7125_v11  ;;  %v1166_v1 = vadd.f32 %v10276_v36, %v1087_v45  ;;  %v11848_v6 = vld [vmem:[#allocation23_spill] sm:$0xff] }
 0x1f9   :  { %3940 = vmatpush.bf16.msra.mxu3 %v7270_v10  ;;  %v10501_v36 = vpack.c.b16 %v10493_v42, %v10493_v42 }
 0x1fa   :  { %v10486_v54 = vmax.f32 %v1741_v4, %v1745_v31  ;;  %v7429_v4 = vld [vmem:[#allocation8 + $0x260] sm:$0xf]  ;;  %v8969_v31 = vld [vmem:[#allocation8 + $0x26c] sm:$0xf0] }
 0x1fb   :  { %v1244_v26 = vpop.f32.mrf.mxu2  ;;  %v7430_v39 = vor.u32 %v8969_v31, %v7429_v4  ;;  %11847 = vst [vmem:[#allocation44_spill] sm:$0xff] %v10501_v36  ;;  %3897 = vmatpush.bf16.msra.mxu1 %v7126_v56 }
 0x1fc   :  { %11846 = vst [vmem:[#allocation42_spill] sm:$0xff] %v10486_v54  ;;  %v1245_v38 = vadd.f32 %v1244_v26, %v10109_v57 }
 0x1fd   :  { %v1088_v2 = vpop.f32.mrf.mxu0  ;;  %v10491_v29 = vpop.f32.mrf.mxu3  ;;  %3982 = vmatpush.bf16.msra.mxu0 %v7430_v39  ;;  %3941 = vmatpush.bf16.msra.mxu3 %v7254_v32  ;;  %v9351_v32 = vld [vmem:[#allocation7] sm:$0xf] }
 0x1fe   :  { %v1089_v50 = vadd.f32 %v1088_v2, %v10096_v15  ;;  %v10495_v25 = vpop.f32.mrf.mxu1  ;;  %v1748_v15 = vmax.f32 %v1166_v1, 0.0  ;;  %v1324_v62 = vadd.f32 %v11848_v6, %v1245_v38  ;;  %3898 = vmatmul.bf16.vlgmr.msra.gmra.mxu1 %v10501_v36  ;;  %v10519_v34 = vperm.slane %v9351_v32, 3 }
 0x200   :  { %v1168_v10 = vadd.f32 %v10290_v27, %v1089_v50  ;;  %3942 = vmatmul.bf16.vlgmr.msra.gmra.mxu3 %v10501_v36  ;;  %v1749_v1 = vmax.f32 %v1324_v62, 0.0  ;;  %v8965_v62 = vld [vmem:[#allocation8 + $0x24c] sm:$0xf0] }
 0x202   :  { %v1752_v45 = vmax.f32 %v1168_v10, 0.0 }
 0x203   :  { %v1246_v11 = vpop.f32.mrf.mxu2 }
 0x204   :  { %v10504_v2 = vmax.f32 %v1748_v15, %v1752_v45  ;;  %v1247_v37 = vadd.f32 %v1246_v11, %v10109_v57  ;;  %v7541_v15 = vld [vmem:[#allocation8 + $0x340] sm:$0xf]  ;;  %v8997_v45 = vld [vmem:[#allocation8 + $0x34c] sm:$0xf0] }
 0x205   :  { %v1495_v26 = vpop.f32.mrf.mxu0  ;;  %v10510_v50 = vpop.f32.mrf.mxu3  ;;  %v7542_v6 = vor.u32 %v8997_v45, %v7541_v15  ;;  %v11852_v45 = vld [vmem:[#allocation45_spill] sm:$0xff] }
 0x206   :  { %v1326_v27 = vadd.f32 %v10299_v35, %v1247_v37  ;;  %v10512_v56 = vpop.f32.mrf.mxu1  ;;  %v1496_v10 = vadd.f32 %v1495_v26, %v10519_v34 }
 0x207   :  { %4027 = vmatpush.bf16.msra.mxu2 %v7542_v6 }
 0x208   :  { %v1753_v4 = vmax.f32 %v1326_v27, 0.0  ;;  %1534 = vmatmul.bf16.gmra.mxu0 %v10093_v46  ;;  %7117 = vmatmul.msk.bf16.gmra.mxu2 %vm421_vm0, %v11813_v53  ;;  %v7413_v53 = vld [vmem:[#allocation8 + $0x240] sm:$0xf] }
 0x209   :  { %v7414_v27 = vor.u32 %v8965_v62, %v7413_v53 }
 0x20a   :  { %v10517_v31 = vmax.f32 %v1749_v1, %v1753_v4 }
 0x20b   :  { %v1574_v57 = vpop.f32.mrf.mxu2  ;;  %3983 = vmatpush.bf16.msra.mxu0 %v7414_v27 }
 0x20c   :  { %11849 = vst [vmem:[#allocation43_spill] sm:$0xff] %v10517_v31  ;;  %v1575_v11 = vadd.f32 %v1574_v57, %v1496_v10  ;;  %v11850_v57 = vld [vmem:[#allocation26_spill] sm:$0xff] }
 0x20d   :  { %v1497_v39 = vpop.f32.mrf.mxu0  ;;  %v10521_v38 = vpop.f32.mrf.mxu3 }
 0x20e   :  { %v10523_v35 = vpop.f32.mrf.mxu1  ;;  %v1498_v46 = vadd.f32 %v1497_v39, %v10519_v34  ;;  %v1647_v32 = vmax.f32 %v1575_v11, 0.0  ;;  %v11851_v39 = vld [vmem:[#allocation46_spill] sm:$0xff] }
 0x213   :  { %v1576_v37 = vpop.f32.mrf.mxu2 }
 0x214   :  { %v1577_v1 = vadd.f32 %v1576_v37, %v1498_v46  ;;  %v11853_v46 = vld [vmem:[#allocation37_spill] sm:$0xff] }
 0x215   :  { %v1500_v4 = vpop.f32.mrf.mxu0  ;;  %v10527_v31 = vpop.f32.mrf.mxu3  ;;  %v11854_v6 = vmax.f32 %v11852_v45, %v11853_v46  ;;  %v11856_v46 = vld [vmem:[#allocation47_spill] sm:$0xff] }
 0x216   :  { %v1651_v36 = vmax.f32 %v1577_v1, 0.0  ;;  %v10529_v54 = vpop.f32.mrf.mxu1 }
 0x218   :  { %v1759_v26 = vmax.f32 %v1647_v32, %v1651_v36  ;;  %1539 = vmatmul.bf16.gmra.mxu0 %v10131_v33  ;;  %7118 = vmatmul.msk.bf16.gmra.mxu2 %vm421_vm0, %v11850_v57  ;;  %v1501_v36 = vadd.f32 %v1500_v4, %v10519_v34 }
 0x21a   :  { %v1813_v10 = vmax.f32 %v11851_v39, %v1759_v26 }
 0x21b   :  { %v1579_v15 = vpop.f32.mrf.mxu2 }
 0x21c   :  { %v10538_v53 = vpack.c.bf16 %v1813_v10, %v11854_v6  ;;  %v1580_v27 = vadd.f32 %v1579_v15, %v1501_v36  ;;  %v11857_v6 = vmax.f32 %v10163_v55, %v10355_v3  ;;  %v7525_v3 = vld [vmem:[#allocation8 + $0x320] sm:$0xf] }
 0x21d   :  { %v1502_v11 = vpop.f32.mrf.mxu0  ;;  %v10540_v62 = vpop.f32.mrf.mxu3 }
 0x21e   :  { %v10542_v37 = vpop.f32.mrf.mxu1  ;;  %v1503_v33 = vadd.f32 %v1502_v11, %v10519_v34  ;;  %v1655_v26 = vmax.f32 %v1580_v27, 0.0  ;;  %v11717_v27 = vunpack.c.l.b16 %v10538_v53 }
 0x223   :  { %v1581_v1 = vpop.f32.mrf.mxu2 }
 0x224   :  { %v1582_v32 = vadd.f32 %v1581_v1, %v1503_v33  ;;  %v11718_v33 = vunpack.c.h.b16 %v10538_v53 }
 0x225   :  { %v1505_v57 = vpop.f32.mrf.mxu0  ;;  %v10546_v9 = vpop.f32.mrf.mxu3 }
 0x226   :  { %v1659_v39 = vmax.f32 %v1582_v32, 0.0  ;;  %v10548_v45 = vpop.f32.mrf.mxu1  ;;  %v1506_v55 = vadd.f32 %v1505_v57, %v10519_v34 }
 0x227   :  { %11855 = vst [vmem:[#allocation31_spill] sm:$0xff] %v10548_v45 }
 0x228   :  { %v1763_v10 = vmax.f32 %v1655_v26, %v1659_v39  ;;  %1544 = vmatmul.bf16.gmra.mxu0 %v10166_v19  ;;  %7119 = vmatmul.msk.bf16.gmra.mxu2 %vm421_vm0, %v11830_v7 }
 0x22a   :  { %v1815_v4 = vmax.f32 %v11856_v46, %v1763_v10  ;;  %v8993_v10 = vld [vmem:[#allocation8 + $0x32c] sm:$0xf0] }
 0x22b   :  { %v1584_v15 = vpop.f32.mrf.mxu2  ;;  %v7526_v46 = vor.u32 %v8993_v10, %v7525_v3 }
 0x22c   :  { %v1841_v11 = vpack.c.bf16 %v1815_v4, %v11857_v6  ;;  %v7397_v4 = vld [vmem:[#allocation8 + $0x220] sm:$0xf]  ;;  %v8961_v6 = vld [vmem:[#allocation8 + $0x22c] sm:$0xf0] }
 0x22d   :  { %v1507_v36 = vpop.f32.mrf.mxu0  ;;  %v10559_v26 = vpop.f32.mrf.mxu3  ;;  %4028 = vmatpush.bf16.msra.mxu2 %v7526_v46 }
 0x22e   :  { %v1870_v1 = vunpack.c.l.b16 %v1841_v11  ;;  %v1871_v32 = vunpack.c.h.b16 %v1841_v11  ;;  %11858 = vst [vmem:[#allocation29_spill] sm:$0xff] %v10559_v26  ;;  %v10561_v19 = vpop.f32.mrf.mxu1  ;;  %v1585_v11 = vadd.f32 %v1584_v15, %v1506_v55  ;;  %v1508_v61 = vadd.f32 %v1507_v36, %v10519_v34  ;;  %v11862_v15 = vld [vmem:[#allocation48_spill] sm:$0xff] }
 0x22f   :  { %v1355_v55 = vadd.f32 %v10391_v44, %v10305_v47 }
 0x230   :  { %v10565_v7 = vpack.c.b16 %v1870_v1, %v11717_v27  ;;  %v10569_v39 = vpack.c.b16 %v1871_v32, %v11718_v33  ;;  %v7398_v27 = vor.u32 %v8961_v6, %v7397_v4  ;;  %v1663_v41 = vmax.f32 %v1585_v11, 0.0 }
 0x232   :  { %11859 = vst [vmem:[#allocation22_spill] sm:$0xff] %v10565_v7  ;;  %3903 = vmatmul.bf16.gmra.mxu1 %v10565_v7  ;;  %3947 = vmatmul.bf16.gmra.mxu3 %v10569_v39 }
 0x233   :  { %11860 = vst [vmem:[#allocation23_spill] sm:$0xff] %v10569_v39  ;;  %v1586_v26 = vpop.f32.mrf.mxu2  ;;  %3984 = vmatpush.bf16.msra.mxu0 %v7398_v27  ;;  %v11863_v27 = vmax.f32 %v10198_v58, %v10381_v17 }
 0x234   :  { %v1587_v45 = vadd.f32 %v1586_v26, %v1508_v61  ;;  %v1434_v26 = vadd.f32 %v10400_v22, %v1355_v55 }
 0x235   :  { %v1510_v33 = vpop.f32.mrf.mxu0  ;;  %v10575_v5 = vpop.f32.mrf.mxu3 }
 0x236   :  { %v1667_v57 = vmax.f32 %v1587_v45, 0.0  ;;  %v10577_v3 = vpop.f32.mrf.mxu1  ;;  %v1511_v58 = vadd.f32 %v1510_v33, %v10519_v34  ;;  %v1674_v17 = vmax.f32 %v1434_v26, 0.0  ;;  %v11867_v26 = vld [vmem:[#allocation32_spill] sm:$0xff] }
 0x237   :  { %11861 = vst [vmem:[#allocation26_spill] sm:$0xff] %v10577_v3 }
 0x238   :  { %v1767_v10 = vmax.f32 %v1663_v41, %v1667_v57  ;;  %1549 = vmatmul.bf16.gmra.mxu0 %v10201_v12  ;;  %7120 = vmatmul.msk.bf16.gmra.mxu2 %vm421_vm0, %v11836_v43  ;;  %v1353_v41 = vadd.f32 %v10372_v16, %v10305_v47  ;;  %v8957_v16 = vld [vmem:[#allocation8 + $0x20c] sm:$0xf0] }
 0x23a   :  { %v1817_v36 = vmax.f32 %v11862_v15, %v1767_v10  ;;  %v1432_v11 = vadd.f32 %v10389_v8, %v1353_v41  ;;  %v7381_v15 = vld [vmem:[#allocation8 + $0x200] sm:$0xf] }
 0x23b   :  { %v1589_v61 = vpop.f32.mrf.mxu2 }
 0x23c   :  { %v1842_v45 = vpack.c.bf16 %v1817_v36, %v11863_v27  ;;  %v1590_v22 = vadd.f32 %v1589_v61, %v1511_v58  ;;  %v7509_v36 = vld [vmem:[#allocation8 + $0x300] sm:$0xf]  ;;  %v7382_v27 = vor.u32 %v8957_v16, %v7381_v15  ;;  %v1670_v39 = vmax.f32 %v1432_v11, 0.0  ;;  %v11868_v11 = vld [vmem:[#allocation49_spill] sm:$0xff] }
 0x23d   :  { %v1512_v46 = vpop.f32.mrf.mxu0  ;;  %v10591_v6 = vpop.f32.mrf.mxu3 }
 0x23e   :  { %v1872_v12 = vunpack.c.l.b16 %v1842_v45  ;;  %v1873_v4 = vunpack.c.h.b16 %v1842_v45  ;;  %11864 = vst [vmem:[#allocation46_spill] sm:$0xff] %v10591_v6  ;;  %v10593_v43 = vpop.f32.mrf.mxu1  ;;  %v1513_v10 = vadd.f32 %v1512_v46, %v10519_v34  ;;  %v8989_v45 = vld [vmem:[#allocation8 + $0x30c] sm:$0xf0]  ;;  %3985 = vmatpush.bf16.msra.mxu0 %v7382_v27 }
 0x23f   :  { %v7510_v6 = vor.u32 %v8989_v45, %v7509_v36 }
 0x240   :  { %v10596_v44 = vpack.c.b16 %v1872_v12, %v1870_v1  ;;  %v10598_v57 = vpack.c.b16 %v1873_v4, %v1871_v32  ;;  %v1770_v1 = vmax.f32 %v1670_v39, %v1674_v17  ;;  %v1671_v32 = vmax.f32 %v1590_v22, 0.0 }
 0x241   :  { %4029 = vmatpush.bf16.msra.mxu2 %v7510_v6  ;;  %v1360_v39 = vadd.f32 %v10419_v52, %v10305_v47  ;;  %v1358_v6 = vadd.f32 %v10402_v18, %v10305_v47 }
 0x242   :  { %11865 = vst [vmem:[#allocation45_spill] sm:$0xff] %v10596_v44  ;;  %v1818_v46 = vmax.f32 %v11867_v26, %v1770_v1 }
 0x243   :  { %11866 = vst [vmem:[#allocation37_spill] sm:$0xff] %v10598_v57  ;;  %v1591_v55 = vpop.f32.mrf.mxu2  ;;  %v1439_v22 = vadd.f32 %v10428_v63, %v1360_v39  ;;  %v1437_v36 = vadd.f32 %v10417_v30, %v1358_v6 }
 0x244   :  { %v1592_v7 = vadd.f32 %v1591_v55, %v1513_v10 }
 0x245   :  { %v1515_v8 = vpop.f32.mrf.mxu0  ;;  %v10602_v3 = vpop.f32.mrf.mxu3  ;;  %v1682_v45 = vmax.f32 %v1439_v22, 0.0  ;;  %v1363_v22 = vadd.f32 %v10430_v51, %v10305_v47  ;;  %v7749_v51 = vld [vmem:[#allocation8 + $0x4e0] sm:$0xf] }
 0x246   :  { %v1675_v41 = vmax.f32 %v1592_v7, 0.0  ;;  %v10604_v33 = vpop.f32.mrf.mxu1  ;;  %v1516_v52 = vadd.f32 %v1515_v8, %v10519_v34  ;;  %v11869_v8 = vld [vmem:[#allocation30_spill] sm:$0xff] }
 0x248   :  { %v1771_v61 = vmax.f32 %v1671_v32, %v1675_v41  ;;  %1554 = vmatmul.bf16.gmra.mxu0 %v10236_v60  ;;  %7121 = vmatmul.msk.bf16.gmra.mxu2 %vm421_vm0, %v10411_v48  ;;  %v1678_v32 = vmax.f32 %v1437_v36, 0.0 }
 0x24a   :  { %v1819_v58 = vmax.f32 %v11868_v11, %v1771_v61  ;;  %v1774_v26 = vmax.f32 %v1678_v32, %v1682_v45 }
 0x24b   :  { %v1594_v10 = vpop.f32.mrf.mxu2 }
 0x24c   :  { %v1843_v7 = vpack.c.bf16 %v1819_v58, %v1818_v46  ;;  %v1595_v1 = vadd.f32 %v1594_v10, %v1516_v52  ;;  %v1820_v58 = vmax.f32 %v11869_v8, %v1774_v26  ;;  %v11870_v10 = vld [vmem:[#allocation33_spill] sm:$0xff]  ;;  %v7877_v26 = vld [vmem:[#allocation8 + $0x5e0] sm:$0xf] }
 0x24d   :  { %v1517_v17 = vpop.f32.mrf.mxu0  ;;  %v10616_v16 = vpop.f32.mrf.mxu3 }
 0x24e   :  { %v1874_v15 = vunpack.c.l.b16 %v1843_v7  ;;  %v1875_v60 = vunpack.c.h.b16 %v1843_v7  ;;  %v10618_v48 = vpop.f32.mrf.mxu1  ;;  %v1518_v18 = vadd.f32 %v1517_v17, %v10519_v34  ;;  %v1679_v30 = vmax.f32 %v1595_v1, 0.0 }
 0x24f   :  { %v1365_v7 = vadd.f32 %v10447_v23, %v10305_v47 }
 0x250   :  { %v10621_v55 = vpack.c.b16 %v1874_v15, %v1872_v12  ;;  %v10623_v27 = vpack.c.b16 %v1875_v60, %v1873_v4 }
 0x251   :  { %v1444_v36 = vadd.f32 %v10456_v24, %v1365_v7 }
 0x252   :  { %3908 = vmatmul.bf16.gmra.mxu1 %v10621_v55  ;;  %3952 = vmatmul.bf16.gmra.mxu3 %v10623_v27 }
 0x253   :  { %v1596_v63 = vpop.f32.mrf.mxu2 }
 0x254   :  { %v1597_v41 = vadd.f32 %v1596_v63, %v1518_v18  ;;  %v1442_v18 = vadd.f32 %v10445_v13, %v1363_v22  ;;  %v9145_v13 = vld [vmem:[#allocation8 + $0x7ec] sm:$0xf0] }
 0x255   :  { %v1520_v61 = vpop.f32.mrf.mxu0  ;;  %v10629_v46 = vpop.f32.mrf.mxu3 }
 0x256   :  { %v1683_v12 = vmax.f32 %v1597_v41, 0.0  ;;  %v1402_v11 = vpop.f32.mrf.mxu1  ;;  %v1521_v23 = vadd.f32 %v1520_v61, %v10519_v34  ;;  %v1686_v7 = vmax.f32 %v1442_v18, 0.0  ;;  %v11875_v18 = vunpack.c.h.b16 %v10538_v53 }
 0x257   :  { %v1403_v52 = vadd.f32 %v1402_v11, %v10305_v47  ;;  %v8133_v11 = vld [vmem:[#allocation8 + $0x7e0] sm:$0xf] }
 0x258   :  { %v1775_v4 = vmax.f32 %v1679_v30, %v1683_v12  ;;  %1559 = vmatmul.bf16.gmra.mxu0 %v10271_v20  ;;  %7122 = vmatmul.msk.bf16.gmra.mxu2 %vm421_vm0, %v10439_v59  ;;  %v9081_v30 = vld [vmem:[#allocation8 + $0x5ec] sm:$0xf0]  ;;  %v1690_v12 = vmax.f32 %v1444_v36, 0.0 }
 0x259   :  { %v7878_v24 = vor.u32 %v9081_v30, %v7877_v26 }
 0x25a   :  { %v1821_v39 = vmax.f32 %v11870_v10, %v1775_v4  ;;  %v9049_v4 = vld [vmem:[#allocation8 + $0x4ec] sm:$0xf0]  ;;  %v1778_v61 = vmax.f32 %v1686_v7, %v1690_v12 }
 0x25b   :  { %v1599_v17 = vpop.f32.mrf.mxu2  ;;  %4110 = vmatpush.bf16.msrb.mxu3 %v7878_v24 }
 0x25c   :  { %v1844_v6 = vpack.c.bf16 %v1821_v39, %v1820_v58  ;;  %v1600_v8 = vadd.f32 %v1599_v17, %v1521_v23  ;;  %v7750_v39 = vor.u32 %v9049_v4, %v7749_v51  ;;  %v11873_v17 = vunpack.c.l.b16 %v10538_v53  ;;  %v11877_v4 = vld [vmem:[#allocation34_spill] sm:$0xff] }
 0x25d   :  { %v1522_v20 = vpop.f32.mrf.mxu0  ;;  %v1481_v59 = vpop.f32.mrf.mxu3  ;;  %v10658_v23 = vpack.c.b16 %v11875_v18, %v10493_v42  ;;  %v1370_v53 = vadd.f32 %v10470_v14, %v10305_v47  ;;  %v8005_v14 = vld [vmem:[#allocation8 + $0x6e0] sm:$0xf] }
 0x25e   :  { %v1876_v45 = vunpack.c.l.b16 %v1844_v6  ;;  %v1877_v1 = vunpack.c.h.b16 %v1844_v6  ;;  %v1482_v63 = vadd.f32 %v1481_v59, %v1403_v52  ;;  %v1523_v58 = vadd.f32 %v1522_v20, %v10519_v34  ;;  %v1404_v10 = vpop.f32.mrf.mxu1  ;;  %4066 = vmatpush.bf16.msrb.mxu1 %v7750_v39  ;;  %v7861_v18 = vld [vmem:[#allocation8 + $0x5c0] sm:$0xf] }
 0x25f   :  { %v1405_v22 = vadd.f32 %v1404_v10, %v10305_v47  ;;  %v1687_v36 = vmax.f32 %v1600_v8, 0.0  ;;  %v10653_v20 = vpack.c.b16 %v11873_v17, %v10493_v42  ;;  %11876 = vst [vmem:[#allocation49_spill] sm:$0xff] %v10658_v23  ;;  %v11878_v8 = vld [vmem:[#allocation50_spill] sm:$0xff]  ;;  %v9113_v17 = vld [vmem:[#allocation8 + $0x6ec] sm:$0xf0] }
 0x260   :  { %v10643_v32 = vpack.c.b16 %v1876_v45, %v1874_v15  ;;  %v10645_v41 = vpack.c.b16 %v1877_v1, %v1875_v60  ;;  %v8134_v60 = vor.u32 %v9145_v13, %v8133_v11  ;;  %v1750_v12 = vmax.f32 %v1482_v63, 0.0 }
 0x261   :  { %11874 = vst [vmem:[#allocation32_spill] sm:$0xff] %v10653_v20  ;;  %v1822_v11 = vmax.f32 %v11877_v4, %v1778_v61  ;;  %v1449_v63 = vadd.f32 %v10479_v28, %v1370_v53 }
 0x262   :  { %11871 = vst [vmem:[#allocation47_spill] sm:$0xff] %v10643_v32  ;;  %4198 = vmatpush.bf16.msrb.mxu2 %v8134_v60  ;;  %v1368_v60 = vadd.f32 %v10458_v21, %v10305_v47  ;;  %v9045_v21 = vld [vmem:[#allocation8 + $0x4cc] sm:$0xf0] }
 0x263   :  { %11872 = vst [vmem:[#allocation48_spill] sm:$0xff] %v10645_v41  ;;  %v1601_v15 = vpop.f32.mrf.mxu2  ;;  %v1698_v4 = vmax.f32 %v1449_v63, 0.0 }
 0x264   :  { %v1602_v6 = vadd.f32 %v1601_v15, %v1523_v58 }
 0x265   :  { %v1525_v52 = vpop.f32.mrf.mxu0  ;;  %v1483_v26 = vpop.f32.mrf.mxu3 }
 0x266   :  { %v1691_v59 = vmax.f32 %v1602_v6, 0.0  ;;  %v1484_v30 = vadd.f32 %v1483_v26, %v1405_v22  ;;  %v1526_v22 = vadd.f32 %v1525_v52, %v10519_v34  ;;  %v8117_v52 = vld [vmem:[#allocation8 + $0x7c0] sm:$0xf] }
 0x268   :  { %v1779_v51 = vmax.f32 %v1687_v36, %v1691_v59  ;;  %3986 = vmatmul.bf16.vlgmr.msra.gmra.mxu0 %v10653_v20  ;;  %4030 = vmatmul.bf16.vlgmr.msra.gmra.mxu2 %v10658_v23  ;;  %v1754_v24 = vmax.f32 %v1484_v30, 0.0  ;;  %v1447_v36 = vadd.f32 %v10468_v0, %v1368_v60  ;;  %v9003_v23 = vld [vmem:[#allocation8 + $0x384] sm:$0xf]  ;;  %v7575_v20 = vld [vmem:[#allocation8 + $0x390] sm:$0xf0] }
 0x26a   :  { %v1823_v58 = vmax.f32 %v11878_v8, %v1779_v51  ;;  %v10664_v10 = vmax.f32 %v1750_v12, %v1754_v24  ;;  %v8006_v51 = vor.u32 %v9113_v17, %v8005_v14  ;;  %v9077_v12 = vld [vmem:[#allocation8 + $0x5cc] sm:$0xf0]  ;;  %v7733_v24 = vld [vmem:[#allocation8 + $0x4c0] sm:$0xf] }
 0x26b   :  { %v1604_v39 = vpop.f32.mrf.mxu2  ;;  %v7862_v0 = vor.u32 %v9077_v12, %v7861_v18  ;;  %v11879_v14 = vld [vmem:[#allocation24_spill] sm:$0xff]  ;;  %v11880_v18 = vld [vmem:[#allocation35_spill] sm:$0xff] }
 0x26c   :  { %v1845_v13 = vpack.c.bf16 %v1823_v58, %v1822_v11  ;;  %v1838_v7 = vmax.f32 %v10504_v2, %v10664_v10  ;;  %v1605_v30 = vadd.f32 %v1604_v39, %v1526_v22  ;;  %4154 = vmatpush.bf16.msrb.mxu0 %v8006_v51  ;;  %v1694_v58 = vmax.f32 %v1447_v36, 0.0 }
 0x26d   :  { %v1527_v15 = vpop.f32.mrf.mxu0  ;;  %4111 = vmatpush.bf16.msrb.mxu3 %v7862_v0  ;;  %v1375_v22 = vadd.f32 %v10495_v25, %v10305_v47 }
 0x26e   :  { %v1878_v6 = vunpack.c.l.b16 %v1845_v13  ;;  %v1879_v61 = vunpack.c.h.b16 %v1845_v13  ;;  %v1528_v28 = vadd.f32 %v1527_v15, %v10519_v34  ;;  %v1782_v13 = vmax.f32 %v1694_v58, %v1698_v4 }
 0x26f   :  { %v1695_v60 = vmax.f32 %v1605_v30, 0.0  ;;  %v1454_v51 = vadd.f32 %v10510_v50, %v1375_v22  ;;  %v1373_v30 = vadd.f32 %v10481_v49, %v10305_v47  ;;  %v7845_v50 = vld [vmem:[#allocation8 + $0x5a0] sm:$0xf] }
 0x270   :  { %v10675_v59 = vpack.c.b16 %v1878_v6, %v1876_v45  ;;  %v10677_v26 = vpack.c.b16 %v1879_v61, %v1877_v1  ;;  %v7734_v45 = vor.u32 %v9045_v21, %v7733_v24  ;;  %v9141_v1 = vld [vmem:[#allocation8 + $0x7cc] sm:$0xf0]  ;;  %v1824_v17 = vmax.f32 %v11879_v14, %v1782_v13  ;;  %v7717_v13 = vld [vmem:[#allocation8 + $0x4a0] sm:$0xf] }
 0x271   :  { %v8118_v8 = vor.u32 %v9141_v1, %v8117_v52  ;;  %v1706_v0 = vmax.f32 %v1454_v51, 0.0  ;;  %v8101_v14 = vld [vmem:[#allocation8 + $0x7a0] sm:$0xf] }
 0x272   :  { %3913 = vmatmul.bf16.gmra.mxu1 %v10675_v59  ;;  %3957 = vmatmul.bf16.gmra.mxu3 %v10677_v26 }
 0x273   :  { %v1606_v11 = vpop.f32.mrf.mxu2  ;;  %4067 = vmatpush.bf16.msrb.mxu1 %v7734_v45  ;;  %4199 = vmatpush.bf16.msrb.mxu2 %v8118_v8  ;;  %v1452_v45 = vadd.f32 %v10491_v29, %v1373_v30  ;;  %v9109_v8 = vld [vmem:[#allocation8 + $0x6cc] sm:$0xf0] }
 0x274   :  { %v1607_v39 = vadd.f32 %v1606_v11, %v1528_v28  ;;  %v7989_v11 = vld [vmem:[#allocation8 + $0x6c0] sm:$0xf]  ;;  %v9137_v29 = vld [vmem:[#allocation8 + $0x7ac] sm:$0xf0] }
 0x275   :  { %v1530_v53 = vpop.f32.mrf.mxu0  ;;  %v7990_v58 = vor.u32 %v9109_v8, %v7989_v11  ;;  %v11883_v8 = vld [vmem:[#allocation36_spill] sm:$0xff] }
 0x276   :  { %v1699_v15 = vmax.f32 %v1607_v39, 0.0  ;;  %v1531_v1 = vadd.f32 %v1530_v53, %v10519_v34  ;;  %v9073_v39 = vld [vmem:[#allocation8 + $0x5ac] sm:$0xf0]  ;;  %v1702_v53 = vmax.f32 %v1452_v45, 0.0 }
 0x277   :  { %4155 = vmatpush.bf16.msrb.mxu0 %v7990_v58 }
 0x278   :  { %v1783_v63 = vmax.f32 %v1695_v60, %v1699_v15  ;;  %3991 = vmatmul.bf16.gmra.mxu0 %v10596_v44  ;;  %4035 = vmatmul.bf16.gmra.mxu2 %v10598_v57  ;;  %v9041_v60 = vld [vmem:[#allocation8 + $0x4ac] sm:$0xf0]  ;;  %v1786_v30 = vmax.f32 %v1702_v53, %v1706_v0  ;;  %v1380_v0 = vadd.f32 %v10523_v35, %v10305_v47  ;;  %v7829_v53 = vld [vmem:[#allocation8 + $0x580] sm:$0xf] }
 0x279   :  { %v7718_v22 = vor.u32 %v9041_v60, %v7717_v13 }
 0x27a   :  { %v1825_v36 = vmax.f32 %v11880_v18, %v1783_v63  ;;  %v7846_v63 = vor.u32 %v9073_v39, %v7845_v50  ;;  %v9105_v18 = vld [vmem:[#allocation8 + $0x6ac] sm:$0xf0]  ;;  %v1826_v50 = vmax.f32 %v11883_v8, %v1786_v30 }
 0x27b   :  { %v1609_v12 = vpop.f32.mrf.mxu2  ;;  %4068 = vmatpush.bf16.msrb.mxu1 %v7718_v22  ;;  %v3899_v13 = vpop.f32.mrf.mxu1  ;;  %v1459_v22 = vadd.f32 %v10527_v31, %v1380_v0  ;;  %v8085_v31 = vld [vmem:[#allocation8 + $0x780] sm:$0xf] }
 0x27c   :  { %v1846_v24 = vpack.c.bf16 %v1825_v36, %v1824_v17  ;;  %v1610_v15 = vadd.f32 %v1609_v12, %v1531_v1  ;;  %v7973_v17 = vld [vmem:[#allocation8 + $0x6a0] sm:$0xf]  ;;  %4112 = vmatpush.bf16.msrb.mxu3 %v7846_v63  ;;  %v1378_v63 = vadd.f32 %v10512_v56, %v10305_v47 }
 0x27d   :  { %v1532_v21 = vpop.f32.mrf.mxu0  ;;  %v7974_v51 = vor.u32 %v9105_v18, %v7973_v17 }
 0x27e   :  { %v1880_v4 = vunpack.c.l.b16 %v1846_v24  ;;  %v1881_v28 = vunpack.c.h.b16 %v1846_v24  ;;  %v1533_v49 = vadd.f32 %v1532_v21, %v10519_v34  ;;  %v1703_v12 = vmax.f32 %v1610_v15, 0.0  ;;  %v2218_v21 = vld [vmem:[#allocation10] sm:$0xf] }
 0x27f   :  { %4156 = vmatpush.bf16.msrb.mxu0 %v7974_v51  ;;  %v10702_v58 = vperm.slane %v2218_v21, 0  ;;  %v7701_v51 = vld [vmem:[#allocation8 + $0x480] sm:$0xf]  ;;  %v1714_v21 = vmax.f32 %v1459_v22, 0.0  ;;  %v11884_v22 = vld [vmem:[#allocation25_spill] sm:$0xff] }
 0x280   :  { %v10692_v52 = vpack.c.b16 %v1880_v4, %v1878_v6  ;;  %v10694_v25 = vpack.c.b16 %v1881_v28, %v1879_v61  ;;  %v8102_v61 = vor.u32 %v9137_v29, %v8101_v14 }
 0x281   :  { %v3900_v15 = vadd.f32 %v3899_v13, %v10702_v58 }
 0x282   :  { %11881 = vst [vmem:[#allocation30_spill] sm:$0xff] %v10692_v52  ;;  %4200 = vmatpush.bf16.msrb.mxu2 %v8102_v61  ;;  %v1457_v61 = vadd.f32 %v10521_v38, %v1378_v63  ;;  %v1385_v63 = vadd.f32 %v10542_v37, %v10305_v47 }
 0x283   :  { %11882 = vst [vmem:[#allocation33_spill] sm:$0xff] %v10694_v25  ;;  %v1611_v6 = vpop.f32.mrf.mxu2 }
 0x284   :  { %v1612_v36 = vadd.f32 %v1611_v6, %v1533_v49  ;;  %v3943_v6 = vpop.f32.mrf.mxu3 }
 0x285   :  { %v1535_v24 = vpop.f32.mrf.mxu0  ;;  %v10716_v35 = vadd.f32 %v3943_v6, %v3900_v15  ;;  %v11885_v6 = vld [vmem:[#allocation20_spill] sm:$0xff] }
 0x286   :  { %v1707_v1 = vmax.f32 %v1612_v36, 0.0  ;;  %v9069_v36 = vld [vmem:[#allocation8 + $0x58c] sm:$0xf0] }
 0x287   :  { %v7830_v56 = vor.u32 %v9069_v36, %v7829_v53  ;;  %v1464_v53 = vadd.f32 %v10546_v9, %v1385_v63  ;;  %v7685_v9 = vld [vmem:[#allocation8 + $0x460] sm:$0xf] }
 0x288   :  { %v1787_v11 = vmax.f32 %v1703_v12, %v1707_v1  ;;  %3996 = vmatmul.bf16.gmra.mxu0 %v10643_v32  ;;  %4040 = vmatmul.bf16.gmra.mxu2 %v10645_v41  ;;  %v9037_v12 = vld [vmem:[#allocation8 + $0x48c] sm:$0xf0] }
 0x289   :  { %v9133_v1 = vld [vmem:[#allocation8 + $0x78c] sm:$0xf0]  ;;  %v7702_v38 = vor.u32 %v9037_v12, %v7701_v51  ;;  %4113 = vmatpush.bf16.msrb.mxu3 %v7830_v56 }
 0x28a   :  { %v1827_v45 = vmax.f32 %v10351_v40, %v1787_v11  ;;  %v1536_v40 = vadd.f32 %v1535_v24, %v10519_v34  ;;  %v9101_v11 = vld [vmem:[#allocation8 + $0x68c] sm:$0xf0] }
 0x28b   :  { %v1614_v39 = vpop.f32.mrf.mxu2  ;;  %4069 = vmatpush.bf16.msrb.mxu1 %v7702_v38 }
 0x28c   :  { %v1847_v60 = vpack.c.bf16 %v1827_v45, %v1826_v50  ;;  %v1615_v30 = vadd.f32 %v1614_v39, %v1536_v40  ;;  %v1710_v45 = vmax.f32 %v1457_v61, 0.0 }
 0x28d   :  { %v1537_v49 = vpop.f32.mrf.mxu0 }
 0x28e   :  { %v1882_v14 = vunpack.c.l.b16 %v1847_v60  ;;  %v1883_v29 = vunpack.c.h.b16 %v1847_v60  ;;  %v1538_v24 = vadd.f32 %v1537_v49, %v10519_v34  ;;  %v1790_v0 = vmax.f32 %v1710_v45, %v1714_v21  ;;  %v9129_v45 = vld [vmem:[#allocation8 + $0x76c] sm:$0xf0] }
 0x28f   :  { %v1711_v60 = vmax.f32 %v1615_v30, 0.0  ;;  %v1383_v30 = vadd.f32 %v10529_v54, %v10305_v47 }
 0x290   :  { %v10712_v17 = vpack.c.b16 %v1882_v14, %v1880_v4  ;;  %v10714_v18 = vpack.c.b16 %v1883_v29, %v1881_v28  ;;  %v8086_v4 = vor.u32 %v9133_v1, %v8085_v31  ;;  %v7957_v28 = vld [vmem:[#allocation8 + $0x680] sm:$0xf]  ;;  %v1828_v40 = vmax.f32 %v11884_v22, %v1790_v0 }
 0x291   :  { %v7958_v50 = vor.u32 %v9101_v11, %v7957_v28  ;;  %v1722_v1 = vmax.f32 %v1464_v53, 0.0  ;;  %v1462_v21 = vadd.f32 %v10540_v62, %v1383_v30  ;;  %v9065_v28 = vld [vmem:[#allocation8 + $0x56c] sm:$0xf0] }
 0x292   :  { %3918 = vmatmul.bf16.gmra.mxu1 %v10712_v17  ;;  %3962 = vmatmul.bf16.gmra.mxu3 %v10714_v18  ;;  %v9097_v62 = vld [vmem:[#allocation8 + $0x66c] sm:$0xf0] }
 0x293   :  { %v1616_v8 = vpop.f32.mrf.mxu2  ;;  %4201 = vmatpush.bf16.msrb.mxu2 %v8086_v4  ;;  %4157 = vmatpush.bf16.msrb.mxu0 %v7958_v50  ;;  %v7813_v4 = vld [vmem:[#allocation8 + $0x560] sm:$0xf]  ;;  %v11889_v30 = vld [vmem:[#allocation40_spill] sm:$0xff] }
 0x294   :  { %v1617_v39 = vadd.f32 %v1616_v8, %v1538_v24  ;;  %v7814_v11 = vor.u32 %v9065_v28, %v7813_v4  ;;  %v9033_v8 = vld [vmem:[#allocation8 + $0x46c] sm:$0xf0]  ;;  %v8069_v50 = vld [vmem:[#allocation8 + $0x760] sm:$0xf] }
 0x295   :  { %v1540_v13 = vpop.f32.mrf.mxu0  ;;  %v7686_v0 = vor.u32 %v9033_v8, %v7685_v9 }
 0x296   :  { %v1715_v15 = vmax.f32 %v1617_v39, 0.0  ;;  %v1541_v38 = vadd.f32 %v1540_v13, %v10519_v34  ;;  %4114 = vmatpush.bf16.msrb.mxu3 %v7814_v11  ;;  %v11890_v11 = vld [vmem:[#allocation31_spill] sm:$0xff] }
 0x297   :  { %4070 = vmatpush.bf16.msrb.mxu1 %v7686_v0  ;;  %v1388_v8 = vadd.f32 %v11890_v11, %v10305_v47 }
 0x298   :  { %v1791_v49 = vmax.f32 %v1711_v60, %v1715_v15  ;;  %4001 = vmatmul.bf16.gmra.mxu0 %v10692_v52  ;;  %4045 = vmatmul.bf16.gmra.mxu2 %v10694_v25  ;;  %v8070_v60 = vor.u32 %v9129_v45, %v8069_v50  ;;  %v7941_v15 = vld [vmem:[#allocation8 + $0x660] sm:$0xf] }
 0x29a   :  { %v1829_v61 = vmax.f32 %v11885_v6, %v1791_v49  ;;  %v1718_v49 = vmax.f32 %v1462_v21, 0.0  ;;  %4202 = vmatpush.bf16.msrb.mxu2 %v8070_v60 }
 0x29b   :  { %v1619_v36 = vpop.f32.mrf.mxu2 }
 0x29c   :  { %v1848_v51 = vpack.c.bf16 %v1829_v61, %v1828_v40  ;;  %v1620_v39 = vadd.f32 %v1619_v36, %v1541_v38  ;;  %v1794_v22 = vmax.f32 %v1718_v49, %v1722_v1  ;;  %v10737_v61 = vpop.f32.mrf.mxu1  ;;  %v1390_v36 = vadd.f32 %v10561_v19, %v10305_v47  ;;  %v10746_v1 = vpop.f32.mrf.mxu3 }
 0x29d   :  { %v1542_v56 = vpop.f32.mrf.mxu0 }
 0x29e   :  { %v1884_v12 = vunpack.c.l.b16 %v1848_v51  ;;  %v1885_v31 = vunpack.c.h.b16 %v1848_v51  ;;  %v1543_v54 = vadd.f32 %v1542_v56, %v10519_v34  ;;  %v1719_v40 = vmax.f32 %v1620_v39, 0.0  ;;  %v11888_v51 = vld [vmem:[#allocation38_spill] sm:$0xff] }
 0x29f   :  { %v1830_v56 = vmax.f32 %v11888_v51, %v1794_v22  ;;  %v1469_v38 = vadd.f32 %v10575_v5, %v1390_v36  ;;  %v9029_v22 = vld [vmem:[#allocation8 + $0x44c] sm:$0xf0]  ;;  %v7925_v36 = vld [vmem:[#allocation8 + $0x640] sm:$0xf] }
 0x2a0   :  { %v10731_v24 = vpack.c.b16 %v1884_v12, %v1882_v14  ;;  %v10733_v37 = vpack.c.b16 %v1885_v31, %v1883_v29  ;;  %v7942_v29 = vor.u32 %v9097_v62, %v7941_v15  ;;  %v7797_v15 = vld [vmem:[#allocation8 + $0x540] sm:$0xf]  ;;  %v9061_v62 = vld [vmem:[#allocation8 + $0x54c] sm:$0xf0] }
 0x2a1   :  { %v1730_v19 = vmax.f32 %v1469_v38, 0.0  ;;  %v7781_v51 = vld [vmem:[#allocation8 + $0x520] sm:$0xf] }
 0x2a2   :  { %11886 = vst [vmem:[#allocation34_spill] sm:$0xff] %v10731_v24  ;;  %4158 = vmatpush.bf16.msrb.mxu0 %v7942_v29 }
 0x2a3   :  { %11887 = vst [vmem:[#allocation50_spill] sm:$0xff] %v10733_v37  ;;  %v1621_v14 = vpop.f32.mrf.mxu2 }
 0x2a4   :  { %v1622_v63 = vadd.f32 %v1621_v14, %v1543_v54  ;;  %v11891_v54 = vld [vmem:[#allocation29_spill] sm:$0xff]  ;;  %v7669_v14 = vld [vmem:[#allocation8 + $0x440] sm:$0xf] }
 0x2a5   :  { %v1545_v13 = vpop.f32.mrf.mxu0  ;;  %v1467_v0 = vadd.f32 %v11891_v54, %v1388_v8 }
 0x2a6   :  { %v1723_v6 = vmax.f32 %v1622_v63, 0.0  ;;  %v1546_v39 = vadd.f32 %v1545_v13, %v10519_v34  ;;  %v7798_v63 = vor.u32 %v9061_v62, %v7797_v15 }
 0x2a7   :  { %v1726_v38 = vmax.f32 %v1467_v0, 0.0 }
 0x2a8   :  { %v1795_v53 = vmax.f32 %v1719_v40, %v1723_v6  ;;  %4006 = vmatmul.bf16.gmra.mxu0 %v10731_v24  ;;  %4050 = vmatmul.bf16.gmra.mxu2 %v10733_v37  ;;  %v8053_v40 = vld [vmem:[#allocation8 + $0x740] sm:$0xf]  ;;  %v9125_v6 = vld [vmem:[#allocation8 + $0x74c] sm:$0xf0] }
 0x2a9   :  { %4115 = vmatpush.bf16.msrb.mxu3 %v7798_v63  ;;  %v1798_v54 = vmax.f32 %v1726_v38, %v1730_v19  ;;  %v7653_v63 = vld [vmem:[#allocation8 + $0x420] sm:$0xf] }
 0x2aa   :  { %v1831_v21 = vmax.f32 %v11889_v30, %v1795_v53  ;;  %v8054_v53 = vor.u32 %v9125_v6, %v8053_v40  ;;  %v9025_v40 = vld [vmem:[#allocation8 + $0x42c] sm:$0xf0]  ;;  %v11892_v6 = vld [vmem:[#allocation39_spill] sm:$0xff] }
 0x2ab   :  { %v1624_v4 = vpop.f32.mrf.mxu2  ;;  %v1832_v0 = vmax.f32 %v11892_v6, %v1798_v54  ;;  %v9121_v6 = vld [vmem:[#allocation8 + $0x72c] sm:$0xf0] }
 0x2ac   :  { %v10748_v28 = vpack.c.bf16 %v1831_v21, %v1830_v56  ;;  %v1625_v29 = vadd.f32 %v1624_v4, %v1546_v39  ;;  %v9057_v21 = vld [vmem:[#allocation8 + $0x52c] sm:$0xf0]  ;;  %4203 = vmatpush.bf16.msrb.mxu2 %v8054_v53  ;;  %v1395_v53 = vadd.f32 %v10593_v43, %v10305_v47 }
 0x2ad   :  { %v1547_v9 = vpop.f32.mrf.mxu0 }
 0x2ae   :  { %v1886_v50 = vunpack.c.l.b16 %v10748_v28  ;;  %v1887_v45 = vunpack.c.h.b16 %v10748_v28  ;;  %v1548_v13 = vadd.f32 %v1547_v9, %v10519_v34  ;;  %v7782_v9 = vor.u32 %v9057_v21, %v7781_v51  ;;  %v9021_v51 = vld [vmem:[#allocation8 + $0x40c] sm:$0xf0] }
 0x2af   :  { %v3904_v49 = vpop.f32.mrf.mxu1  ;;  %v1727_v15 = vmax.f32 %v1625_v29, 0.0  ;;  %v7637_v29 = vld [vmem:[#allocation8 + $0x400] sm:$0xf]  ;;  %v1474_v38 = vadd.f32 %v10602_v3, %v1395_v53 }
 0x2b0   :  { %v10758_v5 = vpack.c.b16 %v1886_v50, %v1884_v12  ;;  %v10762_v60 = vpack.c.b16 %v1887_v45, %v1885_v31  ;;  %v7670_v12 = vor.u32 %v9029_v22, %v7669_v14  ;;  %v9093_v31 = vld [vmem:[#allocation8 + $0x64c] sm:$0xf0]  ;;  %v3905_v4 = vadd.f32 %v3904_v49, %v10702_v58  ;;  %4116 = vmatpush.bf16.msrb.mxu3 %v7782_v9  ;;  %v7909_v3 = vld [vmem:[#allocation8 + $0x620] sm:$0xf] }
 0x2b1   :  { %v7926_v30 = vor.u32 %v9093_v31, %v7925_v36  ;;  %v11893_v36 = vld [vmem:[#allocation41_spill] sm:$0xff]  ;;  %v9053_v9 = vld [vmem:[#allocation8 + $0x50c] sm:$0xf0] }
 0x2b2   :  { %3923 = vmatmul.bf16.gmra.mxu1 %v10758_v5  ;;  %3967 = vmatmul.bf16.gmra.mxu3 %v10762_v60 }
 0x2b3   :  { %v1626_v56 = vpop.f32.mrf.mxu2  ;;  %4071 = vmatpush.bf16.msrb.mxu1 %v7670_v12  ;;  %4159 = vmatpush.bf16.msrb.mxu0 %v7926_v30  ;;  %v11894_v30 = vld [vmem:[#allocation26_spill] sm:$0xff] }
 0x2b4   :  { %v1627_v11 = vadd.f32 %v1626_v56, %v1548_v13  ;;  %v7654_v13 = vor.u32 %v9025_v40, %v7653_v63  ;;  %v7765_v56 = vld [vmem:[#allocation8 + $0x500] sm:$0xf]  ;;  %v1393_v21 = vadd.f32 %v11894_v30, %v10305_v47 }
 0x2b5   :  { %v1550_v8 = vpop.f32.mrf.mxu0  ;;  %v3948_v39 = vpop.f32.mrf.mxu3  ;;  %v7766_v54 = vor.u32 %v9053_v9, %v7765_v56  ;;  %v8037_v40 = vld [vmem:[#allocation8 + $0x720] sm:$0xf] }
 0x2b6   :  { %v1731_v62 = vmax.f32 %v1627_v11, 0.0  ;;  %v10768_v14 = vadd.f32 %v3948_v39, %v3905_v4  ;;  %v7638_v39 = vor.u32 %v9021_v51, %v7637_v29  ;;  %v1551_v63 = vadd.f32 %v1550_v8, %v10519_v34 }
 0x2b7   :  { %4072 = vmatpush.bf16.msrb.mxu1 %v7654_v13  ;;  %4117 = vmatpush.bf16.msrb.mxu3 %v7766_v54  ;;  %v1400_v54 = vadd.f32 %v10618_v48, %v10305_v47 }
 0x2b8   :  { %v1799_v22 = vmax.f32 %v1727_v15, %v1731_v62  ;;  %v11895_v15 = vld [vmem:[#allocation46_spill] sm:$0xff] }
 0x2b9   :  { %v1472_v62 = vadd.f32 %v11895_v15, %v1393_v21  ;;  %v10790_v21 = vpop.f32.mrf.mxu1 }
 0x2ba   :  { %v1833_v49 = vmax.f32 %v11893_v36, %v1799_v22  ;;  %v9089_v36 = vld [vmem:[#allocation8 + $0x62c] sm:$0xf0] }
 0x2bb   :  { %v1629_v12 = vpop.f32.mrf.mxu2  ;;  %4073 = vmatpush.bf16.msrb.mxu1 %v7638_v39  ;;  %v7910_v28 = vor.u32 %v9089_v36, %v7909_v3  ;;  %v7893_v3 = vld [vmem:[#allocation8 + $0x600] sm:$0xf]  ;;  %v1479_v36 = vadd.f32 %v10629_v46, %v1400_v54 }
 0x2bc   :  { %v1850_v31 = vpack.c.bf16 %v1833_v49, %v1832_v0  ;;  %v8038_v0 = vor.u32 %v9121_v6, %v8037_v40  ;;  %v1738_v49 = vmax.f32 %v1474_v38, 0.0  ;;  %v1630_v13 = vadd.f32 %v1629_v12, %v1551_v63  ;;  %v11898_v12 = vld [vmem:[#allocation27_spill] sm:$0xff]  ;;  %v8021_v40 = vld [vmem:[#allocation8 + $0x700] sm:$0xf]  ;;  %v9117_v6 = vld [vmem:[#allocation8 + $0x70c] sm:$0xf0] }
 0x2bd   :  { %v1552_v19 = vpop.f32.mrf.mxu0  ;;  %4160 = vmatpush.bf16.msrb.mxu0 %v7910_v28  ;;  %v8022_v28 = vor.u32 %v9117_v6, %v8021_v40  ;;  %v1746_v46 = vmax.f32 %v1479_v36, 0.0 }
 0x2be   :  { %v1888_v4 = vunpack.c.l.b16 %v1850_v31  ;;  %v1889_v11 = vunpack.c.h.b16 %v1850_v31  ;;  %v1553_v53 = vadd.f32 %v1552_v19, %v10519_v34  ;;  %4204 = vmatpush.bf16.msrb.mxu2 %v8038_v0  ;;  %v1735_v51 = vmax.f32 %v1630_v13, 0.0  ;;  %v11899_v19 = vld [vmem:[#allocation21_spill] sm:$0xff] }
 0x2bf   :  { %v1398_v0 = vadd.f32 %v10604_v33, %v10305_v47 }
 0x2c0   :  { %v10780_v43 = vpack.c.b16 %v1888_v4, %v1886_v50  ;;  %v10784_v22 = vpack.c.b16 %v1889_v11, %v1887_v45  ;;  %v1734_v45 = vmax.f32 %v1472_v62, 0.0  ;;  %v10798_v62 = vpop.f32.mrf.mxu3 }
 0x2c2   :  { %11896 = vst [vmem:[#allocation24_spill] sm:$0xff] %v10780_v43  ;;  %4011 = vmatmul.bf16.gmra.mxu0 %v10780_v43  ;;  %4055 = vmatmul.bf16.gmra.mxu2 %v10784_v22  ;;  %v1802_v29 = vmax.f32 %v1734_v45, %v1738_v49 }
 0x2c3   :  { %11897 = vst [vmem:[#allocation35_spill] sm:$0xff] %v10784_v22  ;;  %v1631_v50 = vpop.f32.mrf.mxu2  ;;  %4205 = vmatpush.bf16.msrb.mxu2 %v8022_v28  ;;  %v7239_v28 = vld [vmem:[#allocation8 + $0xf0] sm:$0xf0] }
 0x2c4   :  { %v1632_v8 = vadd.f32 %v1631_v50, %v1553_v53  ;;  %v1834_v38 = vmax.f32 %v11898_v12, %v1802_v29  ;;  %v9085_v53 = vld [vmem:[#allocation8 + $0x60c] sm:$0xf0]  ;;  %v1477_v50 = vadd.f32 %v10616_v16, %v1398_v0 }
 0x2c5   :  { %v1555_v31 = vpop.f32.mrf.mxu0  ;;  %v7894_v48 = vor.u32 %v9085_v53, %v7893_v3  ;;  %v8919_v53 = vld [vmem:[#allocation8 + $0xe4] sm:$0xf] }
 0x2c6   :  { %v1739_v56 = vmax.f32 %v1632_v8, 0.0  ;;  %v1556_v29 = vadd.f32 %v1555_v31, %v10519_v34  ;;  %v1742_v31 = vmax.f32 %v1477_v50, 0.0  ;;  %v11900_v50 = vld [vmem:[#allocation28_spill] sm:$0xff] }
 0x2c7   :  { %4161 = vmatpush.bf16.msrb.mxu0 %v7894_v48  ;;  %v7242_v48 = vor.u32 %v8919_v53, %v7239_v28  ;;  %v11904_v28 = vld [vmem:[#allocation22_spill] sm:$0xff] }
 0x2c8   :  { %v1803_v30 = vmax.f32 %v1735_v51, %v1739_v56  ;;  %v8389_v51 = vld [vmem:[#allocation8 + $0x9e0] sm:$0xf]  ;;  %v9209_v56 = vld [vmem:[#allocation8 + $0x9ec] sm:$0xf0]  ;;  %v1806_v3 = vmax.f32 %v1742_v31, %v1746_v46 }
 0x2c9   :  { %v8390_v33 = vor.u32 %v9209_v56, %v8389_v51  ;;  %v11901_v56 = vld [vmem:[#allocation42_spill] sm:$0xff] }
 0x2ca   :  { %v1835_v9 = vmax.f32 %v11899_v19, %v1803_v30  ;;  %v1836_v51 = vmax.f32 %v11900_v50, %v1806_v3  ;;  %v8245_v31 = vld [vmem:[#allocation8 + $0x8c0] sm:$0xf]  ;;  %v7223_v50 = vld [vmem:[#allocation8 + $0xd0] sm:$0xf0] }
 0x2cb   :  { %v1634_v39 = vpop.f32.mrf.mxu2  ;;  %4286 = vmatpush.bf16.msra.mxu3 %v8390_v33  ;;  %4330 = vmatpush.bf16.msra.mxu0 %v7242_v48  ;;  %v11905_v48 = vld [vmem:[#allocation23_spill] sm:$0xff] }
 0x2cc   :  { %v10796_v15 = vpack.c.bf16 %v1835_v9, %v1834_v38  ;;  %v1635_v30 = vadd.f32 %v1634_v39, %v1556_v29  ;;  %v8951_v38 = vld [vmem:[#allocation8 + $0x1e4] sm:$0xf] }
 0x2cd   :  { %v1557_v63 = vpop.f32.mrf.mxu0 }
 0x2ce   :  { %v1890_v49 = vunpack.c.l.b16 %v10796_v15  ;;  %v1891_v13 = vunpack.c.h.b16 %v10796_v15  ;;  %v1558_v12 = vadd.f32 %v1557_v63, %v10519_v34  ;;  %v7367_v15 = vld [vmem:[#allocation8 + $0x1f0] sm:$0xf0]  ;;  %v1743_v63 = vmax.f32 %v1635_v30, 0.0 }
 0x2cf   :  { %v3909_v47 = vpop.f32.mrf.mxu1  ;;  %v7370_v39 = vor.u32 %v8951_v38, %v7367_v15  ;;  %v7351_v15 = vld [vmem:[#allocation8 + $0x1d0] sm:$0xf0] }
 0x2d0   :  { %v10806_v45 = vpack.c.b16 %v1890_v49, %v1888_v4  ;;  %v10808_v8 = vpack.c.b16 %v1891_v13, %v1889_v11  ;;  %v8261_v4 = vld [vmem:[#allocation8 + $0x8e0] sm:$0xf]  ;;  %v9177_v11 = vld [vmem:[#allocation8 + $0x8ec] sm:$0xf0]  ;;  %v3910_v19 = vadd.f32 %v3909_v47, %v10702_v58 }
 0x2d1   :  { %v8262_v54 = vor.u32 %v9177_v11, %v8261_v4  ;;  %4374 = vmatpush.bf16.msra.mxu2 %v7370_v39  ;;  %v9205_v4 = vld [vmem:[#allocation8 + $0x9cc] sm:$0xf0] }
 0x2d2   :  { %3928 = vmatmul.bf16.gmra.mxu1 %v10806_v45  ;;  %3972 = vmatmul.bf16.gmra.mxu3 %v10808_v8 }
 0x2d3   :  { %v1636_v16 = vpop.f32.mrf.mxu2  ;;  %4242 = vmatpush.bf16.msra.mxu1 %v8262_v54  ;;  %v8947_v54 = vld [vmem:[#allocation8 + $0x1c4] sm:$0xf] }
 0x2d4   :  { %v1637_v9 = vadd.f32 %v1636_v16, %v1558_v12  ;;  %v8373_v16 = vld [vmem:[#allocation8 + $0x9c0] sm:$0xf] }
 0x2d5   :  { %v1560_v40 = vpop.f32.mrf.mxu0  ;;  %v3953_v6 = vpop.f32.mrf.mxu3  ;;  %v8374_v30 = vor.u32 %v9205_v4, %v8373_v16 }
 0x2d6   :  { %v1747_v0 = vmax.f32 %v1637_v9, 0.0  ;;  %v10815_v36 = vadd.f32 %v3953_v6, %v3910_v19  ;;  %v9173_v19 = vld [vmem:[#allocation8 + $0x8cc] sm:$0xf0]  ;;  %v1561_v3 = vadd.f32 %v1560_v40, %v10519_v34 }
 0x2d7   :  { %4287 = vmatpush.bf16.msra.mxu3 %v8374_v30  ;;  %v8246_v9 = vor.u32 %v9173_v19, %v8245_v31  ;;  %v11906_v30 = vld [vmem:[#allocation43_spill] sm:$0xff] }
 0x2d8   :  { %v1807_v29 = vmax.f32 %v1743_v63, %v1747_v0  ;;  %v7354_v63 = vor.u32 %v8947_v54, %v7351_v15 }
 0x2d9   :  { %4243 = vmatpush.bf16.msra.mxu1 %v8246_v9 }
 0x2da   :  { %v1837_v47 = vmax.f32 %v11901_v56, %v1807_v29  ;;  %4375 = vmatpush.bf16.msra.mxu2 %v7354_v63 }
 0x2db   :  { %v1639_v33 = vpop.f32.mrf.mxu2 }
 0x2dc   :  { %v1852_v12 = vpack.c.bf16 %v1837_v47, %v1836_v51  ;;  %v1640_v0 = vadd.f32 %v1639_v33, %v1561_v3 }
 0x2dd   :  { %v1562_v46 = vpop.f32.mrf.mxu0  ;;  %v10840_v15 = vpop.f32.mrf.mxu3 }
 0x2de   :  { %v1892_v11 = vunpack.c.l.b16 %v1852_v12  ;;  %v1893_v38 = vunpack.c.h.b16 %v1852_v12  ;;  %v1563_v53 = vadd.f32 %v1562_v46, %v10519_v34  ;;  %v1751_v56 = vmax.f32 %v1640_v0, 0.0  ;;  %v8357_v34 = vld [vmem:[#allocation8 + $0x9a0] sm:$0xf]  ;;  %v9201_v12 = vld [vmem:[#allocation8 + $0x9ac] sm:$0xf0]  ;;  %v10830_v46 = vpop.f32.mrf.mxu1 }
 0x2df   :  { %v8358_v16 = vor.u32 %v9201_v12, %v8357_v34  ;;  %v8229_v0 = vld [vmem:[#allocation8 + $0x8a0] sm:$0xf] }
 0x2e0   :  { %v10819_v6 = vpack.c.b16 %v1892_v11, %v1890_v49  ;;  %v10821_v39 = vpack.c.b16 %v1893_v38, %v1891_v13  ;;  %v8915_v13 = vld [vmem:[#allocation8 + $0xc4] sm:$0xf] }
 0x2e1   :  { %v7226_v40 = vor.u32 %v8915_v13, %v7223_v50  ;;  %4288 = vmatpush.bf16.msra.mxu3 %v8358_v16  ;;  %v7335_v13 = vld [vmem:[#allocation8 + $0x1b0] sm:$0xf0]  ;;  %v8341_v16 = vld [vmem:[#allocation8 + $0x980] sm:$0xf] }
 0x2e2   :  { %11902 = vst [vmem:[#allocation36_spill] sm:$0xff] %v10819_v6  ;;  %4016 = vmatmul.bf16.gmra.mxu0 %v10819_v6  ;;  %4060 = vmatmul.bf16.gmra.mxu2 %v10821_v39 }
 0x2e3   :  { %11903 = vst [vmem:[#allocation25_spill] sm:$0xff] %v10821_v39  ;;  %4074 = vmatmul.bf16.vlgmr.msrb.gmra.mxu1 %v11904_v28  ;;  %4118 = vmatmul.bf16.vlgmr.msrb.gmra.mxu3 %v11905_v48  ;;  %v1641_v29 = vpop.f32.mrf.mxu2 }
 0x2e4   :  { %v1642_v49 = vadd.f32 %v1641_v29, %v1563_v53  ;;  %4331 = vmatpush.bf16.msra.mxu0 %v7226_v40  ;;  %v9169_v53 = vld [vmem:[#allocation8 + $0x8ac] sm:$0xf0]  ;;  %v8943_v29 = vld [vmem:[#allocation8 + $0x1a4] sm:$0xf] }
 0x2e5   :  { %v3987_v51 = vpop.f32.mrf.mxu0  ;;  %v8911_v40 = vld [vmem:[#allocation8 + $0xa4] sm:$0xf] }
 0x2e6   :  { %v1755_v47 = vmax.f32 %v1642_v49, 0.0  ;;  %v3988_v33 = vadd.f32 %v3987_v51, %v10716_v35  ;;  %v8230_v49 = vor.u32 %v9169_v53, %v8229_v0  ;;  %v8213_v0 = vld [vmem:[#allocation8 + $0x880] sm:$0xf]  ;;  %v9165_v53 = vld [vmem:[#allocation8 + $0x88c] sm:$0xf0] }
 0x2e8   :  { %v1811_v4 = vmax.f32 %v1751_v56, %v1755_v47  ;;  %4244 = vmatpush.bf16.msra.mxu1 %v8230_v49 }
 0x2ea   :  { %v1839_v31 = vmax.f32 %v11906_v30, %v1811_v4  ;;  %v9197_v4 = vld [vmem:[#allocation8 + $0x98c] sm:$0xf0] }
 0x2eb   :  { %v4031_v19 = vpop.f32.mrf.mxu2  ;;  %v8342_v30 = vor.u32 %v9197_v4, %v8341_v16  ;;  %v8197_v16 = vld [vmem:[#allocation8 + $0x860] sm:$0xf] }
 0x2ec   :  { %v10836_v9 = vpack.c.bf16 %v1839_v31, %v1838_v7  ;;  %v10838_v54 = vadd.f32 %v4031_v19, %v3988_v33  ;;  %v7338_v7 = vor.u32 %v8943_v29, %v7335_v13  ;;  %v8939_v29 = vld [vmem:[#allocation8 + $0x184] sm:$0xf]  ;;  %v8214_v13 = vor.u32 %v9165_v53, %v8213_v0  ;;  %v7303_v0 = vld [vmem:[#allocation8 + $0x170] sm:$0xf0] }
 0x2ed   :  { %v10842_v35 = vpop.f32.mrf.mxu0  ;;  %4289 = vmatpush.bf16.msra.mxu3 %v8342_v30  ;;  %v9161_v30 = vld [vmem:[#allocation8 + $0x86c] sm:$0xf0] }
 0x2ee   :  { %v11724_v3 = vunpack.c.l.b16 %v10836_v9  ;;  %v11723_v63 = vunpack.c.h.b16 %v10836_v9  ;;  %4376 = vmatpush.bf16.msra.mxu2 %v7338_v7  ;;  %v7319_v7 = vld [vmem:[#allocation8 + $0x190] sm:$0xf0]  ;;  %4245 = vmatpush.bf16.msra.mxu1 %v8214_v13  ;;  %v8198_v53 = vor.u32 %v9161_v30, %v8197_v16  ;;  %v8309_v16 = vld [vmem:[#allocation8 + $0x940] sm:$0xf] }
 0x2ef   :  { %v3914_v50 = vpop.f32.mrf.mxu1 }
 0x2f0   :  { %v10848_v2 = vpack.c.b16 %v11724_v3, %v1892_v11  ;;  %v10852_v10 = vpack.c.b16 %v11723_v63, %v1893_v38  ;;  %v7207_v11 = vld [vmem:[#allocation8 + $0xb0] sm:$0xf0]  ;;  %v3915_v56 = vadd.f32 %v3914_v50, %v10702_v58  ;;  %v7322_v50 = vor.u32 %v8939_v29, %v7319_v7  ;;  %v8899_v3 = vld [vmem:[#allocation8 + $0x44] sm:$0xf] }
 0x2f1   :  { %v7210_v38 = vor.u32 %v8911_v40, %v7207_v11  ;;  %v8907_v40 = vld [vmem:[#allocation8 + $0x84] sm:$0xf]  ;;  %v7191_v11 = vld [vmem:[#allocation8 + $0x90] sm:$0xf0] }
 0x2f2   :  { %4162 = vmatmul.bf16.vlgmr.msrb.gmra.mxu0 %v10596_v44  ;;  %4206 = vmatmul.bf16.vlgmr.msrb.gmra.mxu2 %v10598_v57  ;;  %v7287_v63 = vld [vmem:[#allocation8 + $0x150] sm:$0xf0]  ;;  %v3902_v44 = vadd.f32 %v10737_v61, %v10702_v58 }
 0x2f3   :  { %4079 = vmatmul.bf16.gmra.mxu1 %v10621_v55  ;;  %4123 = vmatmul.bf16.gmra.mxu3 %v10623_v27  ;;  %v10858_v51 = vpop.f32.mrf.mxu2 }
 0x2f4   :  { %4332 = vmatpush.bf16.msra.mxu0 %v7210_v38  ;;  %4377 = vmatpush.bf16.msra.mxu2 %v7322_v50 }
 0x2f5   :  { %v3958_v47 = vpop.f32.mrf.mxu3  ;;  %v3992_v33 = vpop.f32.mrf.mxu0  ;;  %4246 = vmatpush.bf16.msra.mxu1 %v8198_v53 }
 0x2f6   :  { %v10861_v34 = vadd.f32 %v3958_v47, %v3915_v56  ;;  %v3993_v12 = vadd.f32 %v3992_v33, %v10768_v14  ;;  %v7194_v14 = vor.u32 %v8907_v40, %v7191_v11  ;;  %v8325_v33 = vld [vmem:[#allocation8 + $0x960] sm:$0xf]  ;;  %v8903_v11 = vld [vmem:[#allocation8 + $0x64] sm:$0xf] }
 0x2f7   :  { %v10875_v13 = vpop.f32.mrf.mxu1 }
 0x2f8   :  { %4333 = vmatpush.bf16.msra.mxu0 %v7194_v14  ;;  %v7175_v14 = vld [vmem:[#allocation8 + $0x70] sm:$0xf0] }
 0x2fb   :  { %v4036_v31 = vpop.f32.mrf.mxu2 }
 0x2fc   :  { %v10864_v19 = vadd.f32 %v4036_v31, %v3993_v12  ;;  %v9193_v12 = vld [vmem:[#allocation8 + $0x96c] sm:$0xf0]  ;;  %v8935_v31 = vld [vmem:[#allocation8 + $0x164] sm:$0xf] }
 0x2fd   :  { %v10866_v49 = vpop.f32.mrf.mxu0  ;;  %v8326_v4 = vor.u32 %v9193_v12, %v8325_v33  ;;  %v7306_v29 = vor.u32 %v8935_v31, %v7303_v0  ;;  %v10879_v40 = vpop.f32.mrf.mxu3 }
 0x2ff   :  { %4290 = vmatpush.bf16.msra.mxu3 %v8326_v4  ;;  %4378 = vmatpush.bf16.msra.mxu2 %v7306_v29  ;;  %v9189_v4 = vld [vmem:[#allocation8 + $0x94c] sm:$0xf0] }
 0x300   :  { %v8310_v0 = vor.u32 %v9189_v4, %v8309_v16  ;;  %v8927_v4 = vld [vmem:[#allocation8 + $0x124] sm:$0xf] }
 0x302   :  { %4167 = vmatmul.bf16.gmra.mxu0 %v10643_v32  ;;  %4211 = vmatmul.bf16.gmra.mxu2 %v10645_v41 }
 0x303   :  { %4084 = vmatmul.bf16.gmra.mxu1 %v10675_v59  ;;  %4128 = vmatmul.bf16.gmra.mxu3 %v10677_v26  ;;  %v10872_v56 = vpop.f32.mrf.mxu2 }
 0x304   :  { %4291 = vmatpush.bf16.msra.mxu3 %v8310_v0 }
 0x305   :  { %v3997_v38 = vpop.f32.mrf.mxu0 }
 0x306   :  { %v3998_v47 = vadd.f32 %v3997_v38, %v10815_v36  ;;  %v7178_v38 = vor.u32 %v8903_v11, %v7175_v14  ;;  %v9157_v11 = vld [vmem:[#allocation8 + $0x84c] sm:$0xf0]  ;;  %v8931_v14 = vld [vmem:[#allocation8 + $0x144] sm:$0xf] }
 0x308   :  { %4334 = vmatpush.bf16.msra.mxu0 %v7178_v38 }
 0x30b   :  { %v4041_v7 = vpop.f32.mrf.mxu2 }
 0x30c   :  { %v10877_v50 = vadd.f32 %v4041_v7, %v3998_v47  ;;  %v8181_v7 = vld [vmem:[#allocation8 + $0x840] sm:$0xf] }
 0x30d   :  { %v10881_v36 = vpop.f32.mrf.mxu0  ;;  %v8182_v38 = vor.u32 %v9157_v11, %v8181_v7  ;;  %v7143_v7 = vld [vmem:[#allocation8 + $0x30] sm:$0xf0] }
 0x30f   :  { %v3919_v33 = vpop.f32.mrf.mxu1  ;;  %4247 = vmatpush.bf16.msra.mxu1 %v8182_v38 }
 0x310   :  { %v3920_v47 = vadd.f32 %v3919_v33, %v10702_v58 }
 0x312   :  { %4172 = vmatmul.bf16.gmra.mxu0 %v10692_v52  ;;  %4216 = vmatmul.bf16.gmra.mxu2 %v10694_v25  ;;  %v7159_v25 = vld [vmem:[#allocation8 + $0x50] sm:$0xf0]  ;;  %v7290_v52 = vor.u32 %v8931_v14, %v7287_v63  ;;  %v8293_v63 = vld [vmem:[#allocation8 + $0x920] sm:$0xf] }
 0x313   :  { %4089 = vmatmul.bf16.gmra.mxu1 %v10712_v17  ;;  %4133 = vmatmul.bf16.gmra.mxu3 %v10714_v18  ;;  %v10887_v12 = vpop.f32.mrf.mxu2  ;;  %v7162_v41 = vor.u32 %v8899_v3, %v7159_v25  ;;  %v9185_v25 = vld [vmem:[#allocation8 + $0x92c] sm:$0xf0] }
 0x314   :  { %4379 = vmatpush.bf16.msra.mxu2 %v7290_v52  ;;  %v8294_v3 = vor.u32 %v9185_v25, %v8293_v63  ;;  %v8165_v52 = vld [vmem:[#allocation8 + $0x820] sm:$0xf]  ;;  %v9149_v25 = vld [vmem:[#allocation8 + $0x80c] sm:$0xf0] }
 0x315   :  { %v3963_v30 = vpop.f32.mrf.mxu3  ;;  %v4002_v31 = vpop.f32.mrf.mxu0  ;;  %4335 = vmatpush.bf16.msra.mxu0 %v7162_v41  ;;  %v9153_v41 = vld [vmem:[#allocation8 + $0x82c] sm:$0xf0] }
 0x316   :  { %v3964_v53 = vadd.f32 %v3963_v30, %v3920_v47  ;;  %v4003_v29 = vadd.f32 %v4002_v31, %v10861_v34  ;;  %4292 = vmatpush.bf16.msra.mxu3 %v8294_v3  ;;  %v8166_v30 = vor.u32 %v9153_v41, %v8165_v52  ;;  %v7271_v31 = vld [vmem:[#allocation8 + $0x130] sm:$0xf0]  ;;  %v8277_v3 = vld [vmem:[#allocation8 + $0x900] sm:$0xf]  ;;  %v9181_v52 = vld [vmem:[#allocation8 + $0x90c] sm:$0xf0] }
 0x317   :  { %v7274_v0 = vor.u32 %v8927_v4, %v7271_v31  ;;  %v10901_v11 = vpop.f32.mrf.mxu1  ;;  %v8278_v41 = vor.u32 %v9181_v52, %v8277_v3  ;;  %v7623_v52 = vld [vmem:[#allocation8 + $0x3f0] sm:$0xf0] }
 0x318   :  { %4248 = vmatpush.bf16.msra.mxu1 %v8166_v30  ;;  %v7255_v30 = vld [vmem:[#allocation8 + $0x110] sm:$0xf0] }
 0x319   :  { %4380 = vmatpush.bf16.msra.mxu2 %v7274_v0 }
 0x31a   :  { %4293 = vmatpush.bf16.msra.mxu3 %v8278_v41 }
 0x31b   :  { %v4046_v32 = vpop.f32.mrf.mxu2 }
 0x31c   :  { %v10891_v33 = vadd.f32 %v4046_v32, %v4003_v29  ;;  %v8895_v29 = vld [vmem:[#allocation8 + $0x24] sm:$0xf] }
 0x31d   :  { %v10893_v16 = vpop.f32.mrf.mxu0  ;;  %v7146_v14 = vor.u32 %v8895_v29, %v7143_v7  ;;  %v10905_v63 = vpop.f32.mrf.mxu3 }
 0x31f   :  { %4336 = vmatpush.bf16.msra.mxu0 %v7146_v14 }
 0x322   :  { %4177 = vmatmul.bf16.gmra.mxu0 %v10731_v24  ;;  %4221 = vmatmul.bf16.gmra.mxu2 %v10733_v37 }
 0x323   :  { %4094 = vmatmul.bf16.gmra.mxu1 %v10758_v5  ;;  %4138 = vmatmul.bf16.gmra.mxu3 %v10762_v60  ;;  %v10899_v34 = vpop.f32.mrf.mxu2 }
 0x325   :  { %v4007_v47 = vpop.f32.mrf.mxu0 }
 0x326   :  { %v4008_v32 = vadd.f32 %v4007_v47, %v3964_v53  ;;  %v8149_v53 = vld [vmem:[#allocation8 + $0x800] sm:$0xf] }
 0x327   :  { %v8150_v47 = vor.u32 %v9149_v25, %v8149_v53  ;;  %v7127_v53 = vld [vmem:[#allocation8 + $0x10] sm:$0xf0] }
 0x329   :  { %4249 = vmatpush.bf16.msra.mxu1 %v8150_v47  ;;  %v9015_v47 = vld [vmem:[#allocation8 + $0x3e4] sm:$0xf] }
 0x32b   :  { %v4051_v38 = vpop.f32.mrf.mxu2 }
 0x32c   :  { %v10903_v37 = vadd.f32 %v4051_v38, %v4008_v32  ;;  %v8923_v32 = vld [vmem:[#allocation8 + $0x104] sm:$0xf] }
 0x32d   :  { %v7258_v0 = vor.u32 %v8923_v32, %v7255_v30  ;;  %v10912_v14 = vpop.f32.mrf.mxu0  ;;  %v8891_v38 = vld [vmem:[#allocation8 + $0x4] sm:$0xf]  ;;  %v7495_v32 = vld [vmem:[#allocation8 + $0x2f0] sm:$0xf0] }
 0x32e   :  { %v7130_v25 = vor.u32 %v8891_v38, %v7127_v53  ;;  %v9079_v30 = vld [vmem:[#allocation8 + $0x5e4] sm:$0xf] }
 0x32f   :  { %v3924_v4 = vpop.f32.mrf.mxu1  ;;  %4381 = vmatpush.bf16.msra.mxu2 %v7258_v0  ;;  %v7879_v0 = vld [vmem:[#allocation8 + $0x5f0] sm:$0xf0] }
 0x330   :  { %v3925_v31 = vadd.f32 %v3924_v4, %v10702_v58  ;;  %4337 = vmatpush.bf16.msra.mxu0 %v7130_v25  ;;  %v8983_v4 = vld [vmem:[#allocation8 + $0x2e4] sm:$0xf]  ;;  %v7882_v38 = vor.u32 %v9079_v30, %v7879_v0  ;;  %v7751_v25 = vld [vmem:[#allocation8 + $0x4f0] sm:$0xf0]  ;;  %v11909_v30 = vunpack.c.h.b16 %v10836_v9 }
 0x331   :  { %v8979_v0 = vld [vmem:[#allocation8 + $0x2c4] sm:$0xf] }
 0x332   :  { %4182 = vmatmul.bf16.gmra.mxu0 %v10780_v43  ;;  %4226 = vmatmul.bf16.gmra.mxu2 %v10784_v22  ;;  %v7626_v22 = vor.u32 %v9015_v47, %v7623_v52  ;;  %v9011_v52 = vld [vmem:[#allocation8 + $0x3c4] sm:$0xf] }
 0x333   :  { %4099 = vmatmul.bf16.gmra.mxu1 %v10806_v45  ;;  %4143 = vmatmul.bf16.gmra.mxu3 %v10808_v8  ;;  %v10914_v3 = vpop.f32.mrf.mxu2 }
 0x334   :  { %4462 = vmatpush.bf16.msrb.mxu3 %v7626_v22  ;;  %4550 = vmatpush.bf16.msrb.mxu2 %v7882_v38  ;;  %v9047_v22 = vld [vmem:[#allocation8 + $0x4e4] sm:$0xf] }
 0x335   :  { %v3968_v29 = vpop.f32.mrf.mxu3  ;;  %v7754_v47 = vor.u32 %v9047_v22, %v7751_v25  ;;  %v9075_v38 = vld [vmem:[#allocation8 + $0x5c4] sm:$0xf]  ;;  %v7863_v22 = vld [vmem:[#allocation8 + $0x5d0] sm:$0xf0] }
 0x336   :  { %v3969_v7 = vadd.f32 %v3968_v29, %v3925_v31  ;;  %v7498_v31 = vor.u32 %v8983_v4, %v7495_v32  ;;  %v11907_v32 = vunpack.c.l.b16 %v10836_v9  ;;  %v7866_v25 = vor.u32 %v9075_v38, %v7863_v22 }
 0x337   :  { %4506 = vmatpush.bf16.msrb.mxu0 %v7754_v47  ;;  %v9043_v47 = vld [vmem:[#allocation8 + $0x4c4] sm:$0xf] }
 0x338   :  { %4418 = vmatpush.bf16.msrb.mxu1 %v7498_v31  ;;  %v10934_v31 = vpack.c.b16 %v10493_v42, %v11909_v30  ;;  %4551 = vmatpush.bf16.msrb.mxu2 %v7866_v25 }
 0x33a   :  { %11910 = vst [vmem:[#allocation38_spill] sm:$0xff] %v10934_v31 }
 0x33f   :  { %v4012_v41 = vpop.f32.mrf.mxu0 }
 0x340   :  { %v4013_v43 = vadd.f32 %v4012_v41, %v3969_v7  ;;  %v10922_v7 = vpop.f32.mrf.mxu1  ;;  %v7607_v41 = vld [vmem:[#allocation8 + $0x3d0] sm:$0xf0] }
 0x342   :  { %4187 = vmatmul.bf16.gmra.mxu0 %v10819_v6  ;;  %4231 = vmatmul.bf16.gmra.mxu2 %v10821_v39  ;;  %v7610_v39 = vor.u32 %v9011_v52, %v7607_v41  ;;  %v10924_v6 = vpop.f32.mrf.mxu3  ;;  %v7735_v52 = vld [vmem:[#allocation8 + $0x4d0] sm:$0xf0] }
 0x343   :  { %4104 = vmatmul.bf16.gmra.mxu1 %v10848_v2  ;;  %4148 = vmatmul.bf16.gmra.mxu3 %v10852_v10 }
 0x344   :  { %4463 = vmatpush.bf16.msrb.mxu3 %v7610_v39 }
 0x345   :  { %v4056_v29 = vpop.f32.mrf.mxu2 }
 0x346   :  { %v10920_v53 = vadd.f32 %v4056_v29, %v4013_v43  ;;  %v10929_v43 = vpack.c.b16 %v10493_v42, %v11907_v32  ;;  %v7479_v29 = vld [vmem:[#allocation8 + $0x2d0] sm:$0xf0]  ;;  %v7738_v42 = vor.u32 %v9043_v47, %v7735_v52  ;;  %v9071_v52 = vld [vmem:[#allocation8 + $0x5a4] sm:$0xf] }
 0x347   :  { %v7482_v39 = vor.u32 %v8979_v0, %v7479_v29  ;;  %v10941_v30 = vpop.f32.mrf.mxu0  ;;  %v9007_v0 = vld [vmem:[#allocation8 + $0x3a4] sm:$0xf]  ;;  %v7591_v29 = vld [vmem:[#allocation8 + $0x3b0] sm:$0xf0] }
 0x348   :  { %11908 = vst [vmem:[#allocation20_spill] sm:$0xff] %v10929_v43  ;;  %4507 = vmatpush.bf16.msrb.mxu0 %v7738_v42  ;;  %v7463_v47 = vld [vmem:[#allocation8 + $0x2b0] sm:$0xf0] }
 0x349   :  { %4419 = vmatpush.bf16.msrb.mxu1 %v7482_v39  ;;  %11911 = vst [vmem:[#allocation40_spill] sm:$0xff] %v10941_v30  ;;  %v8975_v39 = vld [vmem:[#allocation8 + $0x2a4] sm:$0xf]  ;;  %v7578_v30 = vor.u32 %v9003_v23, %v7575_v20 }
 0x34a   :  { %v7466_v42 = vor.u32 %v8975_v39, %v7463_v47  ;;  %v9035_v23 = vld [vmem:[#allocation8 + $0x484] sm:$0xf] }
 0x34d   :  { %v10944_v38 = vpop.f32.mrf.mxu2  ;;  %4420 = vmatpush.bf16.msrb.mxu1 %v7466_v42  ;;  %v7447_v42 = vld [vmem:[#allocation8 + $0x290] sm:$0xf0] }
 0x34e   :  { %11912 = vst [vmem:[#allocation31_spill] sm:$0xff] %v10944_v38  ;;  %v8971_v38 = vld [vmem:[#allocation8 + $0x284] sm:$0xf] }
 0x34f   :  { %v3929_v4 = vpop.f32.mrf.mxu1 }
 0x350   :  { %v3930_v9 = vadd.f32 %v3929_v4, %v10702_v58 }
 0x352   :  { %4192 = vmatmul.bf16.gmra.mxu0 %v10929_v43  ;;  %4236 = vmatmul.bf16.gmra.mxu2 %v10934_v31  ;;  %v7594_v43 = vor.u32 %v9007_v0, %v7591_v29 }
 0x353   :  { %4250 = vmatmul.bf16.vlgmr.msra.gmra.mxu1 %v10621_v55  ;;  %4294 = vmatmul.bf16.vlgmr.msra.gmra.mxu3 %v10623_v27 }
 0x354   :  { %4464 = vmatpush.bf16.msrb.mxu3 %v7594_v43  ;;  %v7719_v43 = vld [vmem:[#allocation8 + $0x4b0] sm:$0xf0] }
 0x355   :  { %v3973_v41 = vpop.f32.mrf.mxu3 }
 0x356   :  { %v3974_v32 = vadd.f32 %v3973_v41, %v3930_v9  ;;  %v7847_v41 = vld [vmem:[#allocation8 + $0x5b0] sm:$0xf0] }
 0x357   :  { %v3931_v31 = vpop.f32.mrf.mxu1  ;;  %v7850_v29 = vor.u32 %v9071_v52, %v7847_v41 }
 0x358   :  { %v3932_v24 = vadd.f32 %v3931_v31, %v10702_v58  ;;  %v11913_v31 = vld [vmem:[#allocation44_spill] sm:$0xff]  ;;  %4465 = vmatpush.bf16.msrb.mxu3 %v7578_v30  ;;  %v3907_v30 = vadd.f32 %v10790_v21, %v10702_v58 }
 0x359   :  { %4552 = vmatpush.bf16.msrb.mxu2 %v7850_v29  ;;  %v9067_v29 = vld [vmem:[#allocation8 + $0x584] sm:$0xf] }
 0x35d   :  { %v3975_v22 = vpop.f32.mrf.mxu3 }
 0x35e   :  { %v3976_v57 = vadd.f32 %v3975_v22, %v3932_v24  ;;  %v9039_v24 = vld [vmem:[#allocation8 + $0x4a4] sm:$0xf]  ;;  %v3946_v22 = vadd.f32 %v10746_v1, %v3902_v44  ;;  %v7450_v1 = vor.u32 %v8971_v38, %v7447_v42 }
 0x35f   :  { %v4017_v4 = vpop.f32.mrf.mxu0  ;;  %v8999_v42 = vld [vmem:[#allocation8 + $0x364] sm:$0xf] }
 0x360   :  { %v4018_v25 = vadd.f32 %v4017_v4, %v3974_v32  ;;  %v4075_v9 = vpop.f32.mrf.mxu1  ;;  %v7722_v32 = vor.u32 %v9039_v24, %v7719_v43  ;;  %v3990_v41 = vadd.f32 %v10842_v35, %v3946_v22  ;;  %v7831_v24 = vld [vmem:[#allocation8 + $0x590] sm:$0xf0]  ;;  %4421 = vmatpush.bf16.msrb.mxu1 %v7450_v1 }
 0x361   :  { %v4076_v0 = vadd.f32 %v4075_v9, %v10838_v54 }
 0x362   :  { %4338 = vmatmul.bf16.vlgmr.msra.gmra.mxu0 %v11913_v31  ;;  %4382 = vmatmul.bf16.vlgmr.msra.gmra.mxu2 %v11913_v31  ;;  %v4034_v44 = vadd.f32 %v10858_v51, %v3990_v41 }
 0x363   :  { %4255 = vmatmul.bf16.gmra.mxu1 %v10675_v59  ;;  %4299 = vmatmul.bf16.gmra.mxu3 %v10677_v26 }
 0x364   :  { %4508 = vmatpush.bf16.msrb.mxu0 %v7722_v32 }
 0x365   :  { %v4061_v4 = vpop.f32.mrf.mxu2 }
 0x366   :  { %v10954_v61 = vadd.f32 %v4061_v4, %v4018_v25  ;;  %v4119_v54 = vpop.f32.mrf.mxu3  ;;  %v7834_v25 = vor.u32 %v9067_v29, %v7831_v24  ;;  %v7559_v29 = vld [vmem:[#allocation8 + $0x370] sm:$0xf0] }
 0x367   :  { %v4120_v39 = vadd.f32 %v4119_v54, %v4076_v0  ;;  %v4019_v47 = vpop.f32.mrf.mxu0  ;;  %v7562_v1 = vor.u32 %v8999_v42, %v7559_v29  ;;  %v7543_v42 = vld [vmem:[#allocation8 + $0x350] sm:$0xf0] }
 0x368   :  { %v4020_v52 = vadd.f32 %v4019_v47, %v3976_v57  ;;  %v4077_v9 = vpop.f32.mrf.mxu1  ;;  %4553 = vmatpush.bf16.msrb.mxu2 %v7834_v25  ;;  %v7703_v47 = vld [vmem:[#allocation8 + $0x490] sm:$0xf0] }
 0x369   :  { %v4078_v43 = vadd.f32 %v4077_v9, %v4034_v44  ;;  %v7706_v51 = vor.u32 %v9035_v23, %v7703_v47  ;;  %4466 = vmatpush.bf16.msrb.mxu3 %v7562_v1 }
 0x36b   :  { %4509 = vmatpush.bf16.msrb.mxu0 %v7706_v51 }
 0x36d   :  { %v4063_v32 = vpop.f32.mrf.mxu2 }
 0x36e   :  { %v10958_v57 = vadd.f32 %v4063_v32, %v4020_v52  ;;  %v4121_v0 = vpop.f32.mrf.mxu3  ;;  %v7431_v32 = vld [vmem:[#allocation8 + $0x270] sm:$0xf0] }
 0x36f   :  { %v4122_v35 = vadd.f32 %v4121_v0, %v4078_v43  ;;  %v4163_v22 = vpop.f32.mrf.mxu0  ;;  %v8967_v43 = vld [vmem:[#allocation8 + $0x264] sm:$0xf] }
 0x370   :  { %v4080_v4 = vpop.f32.mrf.mxu1  ;;  %v4164_v54 = vadd.f32 %v4163_v22, %v4120_v39  ;;  %v9063_v0 = vld [vmem:[#allocation8 + $0x564] sm:$0xf]  ;;  %v7434_v21 = vor.u32 %v8967_v43, %v7431_v32  ;;  %v7815_v22 = vld [vmem:[#allocation8 + $0x570] sm:$0xf0] }
 0x371   :  { %v4081_v20 = vadd.f32 %v4080_v4, %v10864_v19  ;;  %v3951_v19 = vadd.f32 %v10798_v62, %v3907_v30  ;;  %v9031_v30 = vld [vmem:[#allocation8 + $0x464] sm:$0xf] }
 0x372   :  { %4343 = vmatmul.bf16.gmra.mxu0 %v11904_v28  ;;  %4387 = vmatmul.bf16.gmra.mxu2 %v11905_v48 }
 0x373   :  { %4260 = vmatmul.bf16.gmra.mxu1 %v10712_v17  ;;  %4304 = vmatmul.bf16.gmra.mxu3 %v10714_v18  ;;  %v3995_v25 = vadd.f32 %v10866_v49, %v3951_v19  ;;  %v7687_v49 = vld [vmem:[#allocation8 + $0x470] sm:$0xf0] }
 0x374   :  { %4422 = vmatpush.bf16.msrb.mxu1 %v7434_v21  ;;  %v7690_v19 = vor.u32 %v9031_v30, %v7687_v49 }
 0x375   :  { %v4207_v38 = vpop.f32.mrf.mxu2  ;;  %v4039_v4 = vadd.f32 %v10872_v56, %v3995_v25  ;;  %v8995_v56 = vld [vmem:[#allocation8 + $0x344] sm:$0xf] }
 0x376   :  { %v4124_v52 = vpop.f32.mrf.mxu3  ;;  %v10967_v39 = vadd.f32 %v4207_v38, %v4164_v54  ;;  %v7818_v54 = vor.u32 %v9063_v0, %v7815_v22  ;;  %4510 = vmatpush.bf16.msrb.mxu0 %v7690_v19  ;;  %v7546_v29 = vor.u32 %v8995_v56, %v7543_v42  ;;  %v8963_v22 = vld [vmem:[#allocation8 + $0x244] sm:$0xf] }
 0x377   :  { %v4125_v9 = vadd.f32 %v4124_v52, %v4081_v20  ;;  %v4165_v41 = vpop.f32.mrf.mxu0 }
 0x378   :  { %v4082_v24 = vpop.f32.mrf.mxu1  ;;  %v4166_v44 = vadd.f32 %v4165_v41, %v4122_v35  ;;  %4554 = vmatpush.bf16.msrb.mxu2 %v7818_v54  ;;  %4467 = vmatpush.bf16.msrb.mxu3 %v7546_v29  ;;  %v9059_v54 = vld [vmem:[#allocation8 + $0x544] sm:$0xf]  ;;  %v7527_v29 = vld [vmem:[#allocation8 + $0x330] sm:$0xf0] }
 0x379   :  { %v4083_v62 = vadd.f32 %v4082_v24, %v4039_v4  ;;  %v3912_v24 = vadd.f32 %v10830_v46, %v10702_v58  ;;  %v7415_v4 = vld [vmem:[#allocation8 + $0x250] sm:$0xf0] }
 0x37a   :  { %v7671_v46 = vld [vmem:[#allocation8 + $0x450] sm:$0xf0] }
 0x37d   :  { %v4209_v20 = vpop.f32.mrf.mxu2 }
 0x37e   :  { %v4126_v23 = vpop.f32.mrf.mxu3  ;;  %v10972_v47 = vadd.f32 %v4209_v20, %v4166_v44  ;;  %v7799_v20 = vld [vmem:[#allocation8 + $0x550] sm:$0xf0] }
 0x37f   :  { %v4127_v35 = vadd.f32 %v4126_v23, %v4083_v62  ;;  %v4168_v51 = vpop.f32.mrf.mxu0  ;;  %v7418_v62 = vor.u32 %v8963_v22, %v7415_v4  ;;  %v9027_v23 = vld [vmem:[#allocation8 + $0x444] sm:$0xf]  ;;  %v7802_v30 = vor.u32 %v9059_v54, %v7799_v20  ;;  %v7783_v20 = vld [vmem:[#allocation8 + $0x530] sm:$0xf0] }
 0x380   :  { %v4085_v38 = vpop.f32.mrf.mxu1  ;;  %v4169_v52 = vadd.f32 %v4168_v51, %v4125_v9  ;;  %v7674_v49 = vor.u32 %v9027_v23, %v7671_v46  ;;  %v9055_v22 = vld [vmem:[#allocation8 + $0x524] sm:$0xf] }
 0x381   :  { %v4086_v41 = vadd.f32 %v4085_v38, %v10877_v50  ;;  %v3956_v50 = vadd.f32 %v10840_v15, %v3912_v24  ;;  %4423 = vmatpush.bf16.msrb.mxu1 %v7418_v62  ;;  %4555 = vmatpush.bf16.msrb.mxu2 %v7802_v30  ;;  %v7786_v46 = vor.u32 %v9055_v22, %v7783_v20 }
 0x382   :  { %4348 = vmatmul.bf16.gmra.mxu0 %v10621_v55  ;;  %4392 = vmatmul.bf16.gmra.mxu2 %v10623_v27 }
 0x383   :  { %4265 = vmatmul.bf16.gmra.mxu1 %v10758_v5  ;;  %4309 = vmatmul.bf16.gmra.mxu3 %v10762_v60  ;;  %v4000_v21 = vadd.f32 %v10881_v36, %v3956_v50 }
 0x384   :  { %4511 = vmatpush.bf16.msrb.mxu0 %v7674_v49 }
 0x385   :  { %v4212_v44 = vpop.f32.mrf.mxu2  ;;  %v4044_v51 = vadd.f32 %v10887_v12, %v4000_v21  ;;  %v8991_v12 = vld [vmem:[#allocation8 + $0x324] sm:$0xf]  ;;  %v7399_v21 = vld [vmem:[#allocation8 + $0x230] sm:$0xf0]  ;;  %4556 = vmatpush.bf16.msrb.mxu2 %v7786_v46 }
 0x386   :  { %v4129_v9 = vpop.f32.mrf.mxu3  ;;  %v10981_v1 = vadd.f32 %v4212_v44, %v4169_v52  ;;  %v7530_v24 = vor.u32 %v8991_v12, %v7527_v29  ;;  %v3917_v44 = vadd.f32 %v10875_v13, %v10702_v58  ;;  %v9023_v13 = vld [vmem:[#allocation8 + $0x424] sm:$0xf]  ;;  %v7639_v46 = vld [vmem:[#allocation8 + $0x410] sm:$0xf0] }
 0x387   :  { %v4130_v25 = vadd.f32 %v4129_v9, %v4086_v41  ;;  %v4170_v43 = vpop.f32.mrf.mxu0 }
 0x388   :  { %v4087_v32 = vpop.f32.mrf.mxu1  ;;  %v4171_v0 = vadd.f32 %v4170_v43, %v4127_v35  ;;  %4468 = vmatpush.bf16.msrb.mxu3 %v7530_v24 }
 0x389   :  { %v4088_v38 = vadd.f32 %v4087_v32, %v4044_v51  ;;  %v7655_v51 = vld [vmem:[#allocation8 + $0x430] sm:$0xf0] }
 0x38a   :  { %v7658_v30 = vor.u32 %v9023_v13, %v7655_v51 }
 0x38c   :  { %4512 = vmatpush.bf16.msrb.mxu0 %v7658_v30 }
 0x38d   :  { %v4214_v15 = vpop.f32.mrf.mxu2 }
 0x38e   :  { %v4131_v52 = vpop.f32.mrf.mxu3  ;;  %v10986_v35 = vadd.f32 %v4214_v15, %v4171_v0  ;;  %v8959_v0 = vld [vmem:[#allocation8 + $0x224] sm:$0xf] }
 0x38f   :  { %v4132_v36 = vadd.f32 %v4131_v52, %v4088_v38  ;;  %v4173_v19 = vpop.f32.mrf.mxu0  ;;  %v7402_v62 = vor.u32 %v8959_v0, %v7399_v21  ;;  %v8955_v15 = vld [vmem:[#allocation8 + $0x204] sm:$0xf]  ;;  %v7383_v52 = vld [vmem:[#allocation8 + $0x210] sm:$0xf0] }
 0x390   :  { %v4090_v41 = vpop.f32.mrf.mxu1  ;;  %v4174_v56 = vadd.f32 %v4173_v19, %v4130_v25  ;;  %v8987_v19 = vld [vmem:[#allocation8 + $0x304] sm:$0xf] }
 0x391   :  { %v4091_v42 = vadd.f32 %v4090_v41, %v10891_v33  ;;  %v3961_v33 = vadd.f32 %v10879_v40, %v3917_v44  ;;  %4424 = vmatpush.bf16.msrb.mxu1 %v7402_v62 }
 0x392   :  { %4353 = vmatmul.bf16.gmra.mxu0 %v10675_v59  ;;  %4397 = vmatmul.bf16.gmra.mxu2 %v10677_v26 }
 0x393   :  { %4270 = vmatmul.bf16.gmra.mxu1 %v10806_v45  ;;  %4314 = vmatmul.bf16.gmra.mxu3 %v10808_v8  ;;  %v4005_v23 = vadd.f32 %v10893_v16, %v3961_v33 }
 0x395   :  { %v4217_v9 = vpop.f32.mrf.mxu2  ;;  %v4049_v49 = vadd.f32 %v10899_v34, %v4005_v23  ;;  %v9019_v23 = vld [vmem:[#allocation8 + $0x404] sm:$0xf] }
 0x396   :  { %v4134_v50 = vpop.f32.mrf.mxu3  ;;  %v10995_v43 = vadd.f32 %v4217_v9, %v4174_v56  ;;  %v7386_v56 = vor.u32 %v8955_v15, %v7383_v52  ;;  %v9051_v9 = vld [vmem:[#allocation8 + $0x504] sm:$0xf]  ;;  %v7642_v13 = vor.u32 %v9019_v23, %v7639_v46  ;;  %v8135_v52 = vld [vmem:[#allocation8 + $0x7f0] sm:$0xf0] }
 0x397   :  { %v4135_v25 = vadd.f32 %v4134_v50, %v4091_v42  ;;  %v4175_v32 = vpop.f32.mrf.mxu0  ;;  %v7511_v42 = vld [vmem:[#allocation8 + $0x310] sm:$0xf0] }
 0x398   :  { %v4092_v4 = vpop.f32.mrf.mxu1  ;;  %v4176_v54 = vadd.f32 %v4175_v32, %v4132_v36  ;;  %v7514_v29 = vor.u32 %v8987_v19, %v7511_v42  ;;  %4425 = vmatpush.bf16.msrb.mxu1 %v7386_v56  ;;  %v7767_v50 = vld [vmem:[#allocation8 + $0x510] sm:$0xf0]  ;;  %v3922_v32 = vadd.f32 %v10901_v11, %v10702_v58  ;;  %4513 = vmatpush.bf16.msrb.mxu0 %v7642_v13 }
 0x399   :  { %v4093_v40 = vadd.f32 %v4092_v4, %v4049_v49  ;;  %v7770_v33 = vor.u32 %v9051_v9, %v7767_v50  ;;  %v8007_v42 = vld [vmem:[#allocation8 + $0x6f0] sm:$0xf0] }
 0x39a   :  { %4469 = vmatpush.bf16.msrb.mxu3 %v7514_v29  ;;  %v8391_v29 = vld [vmem:[#allocation8 + $0x9f0] sm:$0xf0] }
 0x39b   :  { %4557 = vmatpush.bf16.msrb.mxu2 %v7770_v33 }
 0x39d   :  { %v4219_v38 = vpop.f32.mrf.mxu2 }
 0x39e   :  { %v4136_v41 = vpop.f32.mrf.mxu3  ;;  %v11000_v36 = vadd.f32 %v4219_v38, %v4176_v54 }
 0x39f   :  { %v4137_v16 = vadd.f32 %v4136_v41, %v4093_v40  ;;  %v4178_v12 = vpop.f32.mrf.mxu0 }
 0x3a0   :  { %v4095_v24 = vpop.f32.mrf.mxu1  ;;  %v4179_v44 = vadd.f32 %v4178_v12, %v4135_v25 }
 0x3a1   :  { %v4096_v34 = vadd.f32 %v4095_v24, %v10903_v37  ;;  %v3966_v37 = vadd.f32 %v10905_v63, %v3922_v32  ;;  %v9143_v63 = vld [vmem:[#allocation8 + $0x7e4] sm:$0xf]  ;;  %v3927_v24 = vadd.f32 %v10922_v7, %v10702_v58  ;;  %v8119_v58 = vld [vmem:[#allocation8 + $0x7d0] sm:$0xf0] }
 0x3a2   :  { %4358 = vmatmul.bf16.gmra.mxu0 %v10712_v17  ;;  %4402 = vmatmul.bf16.gmra.mxu2 %v10714_v18  ;;  %v8138_v56 = vor.u32 %v9143_v63, %v8135_v52  ;;  %v11915_v7 = vld [vmem:[#allocation31_spill] sm:$0xff]  ;;  %v11916_v52 = vld [vmem:[#allocation32_spill] sm:$0xff] }
 0x3a3   :  { %4275 = vmatmul.bf16.gmra.mxu1 %v10848_v2  ;;  %4319 = vmatmul.bf16.gmra.mxu3 %v10852_v10  ;;  %v4010_v20 = vadd.f32 %v10912_v14, %v3966_v37  ;;  %v3971_v50 = vadd.f32 %v10924_v6, %v3927_v24  ;;  %v11914_v37 = vld [vmem:[#allocation40_spill] sm:$0xff] }
 0x3a4   :  { %4638 = vmatpush.bf16.msra.mxu3 %v8138_v56  ;;  %v7991_v56 = vld [vmem:[#allocation8 + $0x6d0] sm:$0xf0] }
 0x3a5   :  { %v4222_v0 = vpop.f32.mrf.mxu2  ;;  %v4054_v51 = vadd.f32 %v10914_v3, %v4010_v20  ;;  %v9111_v3 = vld [vmem:[#allocation8 + $0x6e4] sm:$0xf]  ;;  %v8247_v24 = vld [vmem:[#allocation8 + $0x8d0] sm:$0xf0] }
 0x3a6   :  { %v4139_v25 = vpop.f32.mrf.mxu3  ;;  %v11009_v21 = vadd.f32 %v4222_v0, %v4179_v44  ;;  %v8010_v12 = vor.u32 %v9111_v3, %v8007_v42  ;;  %v9203_v3 = vld [vmem:[#allocation8 + $0x9c4] sm:$0xf]  ;;  %v8375_v42 = vld [vmem:[#allocation8 + $0x9d0] sm:$0xf0] }
 0x3a7   :  { %v4140_v22 = vadd.f32 %v4139_v25, %v4096_v34  ;;  %v4180_v4 = vpop.f32.mrf.mxu0 }
 0x3a8   :  { %v4097_v54 = vpop.f32.mrf.mxu1  ;;  %v4181_v62 = vadd.f32 %v4180_v4, %v4137_v16  ;;  %v9207_v16 = vld [vmem:[#allocation8 + $0x9e4] sm:$0xf]  ;;  %4594 = vmatpush.bf16.msra.mxu1 %v8010_v12 }
 0x3a9   :  { %v4098_v11 = vadd.f32 %v4097_v54, %v4054_v51  ;;  %v8394_v34 = vor.u32 %v9207_v16, %v8391_v29  ;;  %v9175_v4 = vld [vmem:[#allocation8 + $0x8e4] sm:$0xf]  ;;  %v8263_v54 = vld [vmem:[#allocation8 + $0x8f0] sm:$0xf0]  ;;  %v8378_v29 = vor.u32 %v9203_v3, %v8375_v42 }
 0x3aa   :  { %v8266_v20 = vor.u32 %v9175_v4, %v8263_v54  ;;  %v9171_v16 = vld [vmem:[#allocation8 + $0x8c4] sm:$0xf] }
 0x3ab   :  { %4726 = vmatpush.bf16.msra.mxu2 %v8394_v34 }
 0x3ac   :  { %4682 = vmatpush.bf16.msra.mxu0 %v8266_v20 }
 0x3ad   :  { %v4224_v30 = vpop.f32.mrf.mxu2 }
 0x3ae   :  { %v4141_v49 = vpop.f32.mrf.mxu3  ;;  %v11014_v40 = vadd.f32 %v4224_v30, %v4181_v62  ;;  %v9139_v62 = vld [vmem:[#allocation8 + $0x7c4] sm:$0xf] }
 0x3af   :  { %v4142_v38 = vadd.f32 %v4141_v49, %v4098_v11  ;;  %v4183_v15 = vpop.f32.mrf.mxu0  ;;  %v8122_v46 = vor.u32 %v9139_v62, %v8119_v58  ;;  %4727 = vmatpush.bf16.msra.mxu2 %v8378_v29 }
 0x3b0   :  { %v4100_v19 = vpop.f32.mrf.mxu1  ;;  %v4184_v41 = vadd.f32 %v4183_v15, %v4140_v22  ;;  %v4015_v22 = vadd.f32 %v11914_v37, %v3971_v50  ;;  %v8103_v37 = vld [vmem:[#allocation8 + $0x7b0] sm:$0xf0] }
 0x3b1   :  { %v4101_v14 = vadd.f32 %v4100_v19, %v10920_v53  ;;  %4639 = vmatpush.bf16.msra.mxu3 %v8122_v46  ;;  %v11917_v19 = vld [vmem:[#allocation49_spill] sm:$0xff] }
 0x3b2   :  { %4363 = vmatmul.bf16.gmra.mxu0 %v10758_v5  ;;  %4407 = vmatmul.bf16.gmra.mxu2 %v10762_v60  ;;  %v4059_v23 = vadd.f32 %v11915_v7, %v4015_v22 }
 0x3b3   :  { %4280 = vmatmul.bf16.gmra.mxu1 %v11913_v31  ;;  %4324 = vmatmul.bf16.gmra.mxu3 %v11913_v31 }
 0x3b5   :  { %v4227_v44 = vpop.f32.mrf.mxu2 }
 0x3b6   :  { %v4144_v53 = vpop.f32.mrf.mxu3  ;;  %v11023_v9 = vadd.f32 %v4227_v44, %v4184_v41  ;;  %v9107_v41 = vld [vmem:[#allocation8 + $0x6c4] sm:$0xf] }
 0x3b7   :  { %v4145_v33 = vadd.f32 %v4144_v53, %v4101_v14  ;;  %v4185_v32 = vpop.f32.mrf.mxu0  ;;  %v7994_v14 = vor.u32 %v9107_v41, %v7991_v56 }
 0x3b8   :  { %v4102_v0 = vpop.f32.mrf.mxu1  ;;  %v4186_v25 = vadd.f32 %v4185_v32, %v4142_v38 }
 0x3b9   :  { %v4103_v13 = vadd.f32 %v4102_v0, %v4059_v23  ;;  %4595 = vmatpush.bf16.msra.mxu1 %v7994_v14 }
 0x3bd   :  { %v4229_v51 = vpop.f32.mrf.mxu2 }
 0x3be   :  { %v4146_v6 = vpop.f32.mrf.mxu3  ;;  %v11028_v11 = vadd.f32 %v4229_v51, %v4186_v25  ;;  %v9135_v25 = vld [vmem:[#allocation8 + $0x7a4] sm:$0xf] }
 0x3bf   :  { %v4147_v30 = vadd.f32 %v4146_v6, %v4103_v13  ;;  %v4188_v49 = vpop.f32.mrf.mxu0  ;;  %v8106_v22 = vor.u32 %v9135_v25, %v8103_v37  ;;  %v11918_v13 = vld [vmem:[#allocation45_spill] sm:$0xff]  ;;  %v9103_v51 = vld [vmem:[#allocation8 + $0x6a4] sm:$0xf] }
 0x3c0   :  { %v4105_v38 = vpop.f32.mrf.mxu1  ;;  %v4189_v15 = vadd.f32 %v4188_v49, %v4145_v33  ;;  %v7975_v6 = vld [vmem:[#allocation8 + $0x6b0] sm:$0xf0] }
 0x3c1   :  { %v4106_v63 = vadd.f32 %v4105_v38, %v10954_v61  ;;  %v8250_v61 = vor.u32 %v9171_v16, %v8247_v24  ;;  %4640 = vmatpush.bf16.msra.mxu3 %v8106_v22  ;;  %v7978_v49 = vor.u32 %v9103_v51, %v7975_v6  ;;  %v8359_v38 = vld [vmem:[#allocation8 + $0x9b0] sm:$0xf0] }
 0x3c2   :  { %4368 = vmatmul.bf16.gmra.mxu0 %v10806_v45  ;;  %4412 = vmatmul.bf16.gmra.mxu2 %v10808_v8  ;;  %v8343_v25 = vld [vmem:[#allocation8 + $0x990] sm:$0xf0] }
 0x3c3   :  { %4426 = vmatmul.bf16.vlgmr.msrb.gmra.mxu1 %v11916_v52  ;;  %4470 = vmatmul.bf16.vlgmr.msrb.gmra.mxu3 %v11917_v19 }
 0x3c4   :  { %4683 = vmatpush.bf16.msra.mxu0 %v8250_v61  ;;  %4596 = vmatpush.bf16.msra.mxu1 %v7978_v49  ;;  %v8087_v61 = vld [vmem:[#allocation8 + $0x790] sm:$0xf0] }
 0x3c5   :  { %v4232_v12 = vpop.f32.mrf.mxu2 }
 0x3c6   :  { %v4149_v44 = vpop.f32.mrf.mxu3  ;;  %v11035_v34 = vadd.f32 %v4232_v12, %v4189_v15  ;;  %v9167_v15 = vld [vmem:[#allocation8 + $0x8a4] sm:$0xf] }
 0x3c7   :  { %v4150_v53 = vadd.f32 %v4149_v44, %v4106_v63  ;;  %v4190_v50 = vpop.f32.mrf.mxu0  ;;  %v8231_v63 = vld [vmem:[#allocation8 + $0x8b0] sm:$0xf0]  ;;  %v9131_v44 = vld [vmem:[#allocation8 + $0x784] sm:$0xf] }
 0x3c8   :  { %v4107_v33 = vpop.f32.mrf.mxu1  ;;  %v4191_v32 = vadd.f32 %v4190_v50, %v4147_v30  ;;  %v9199_v30 = vld [vmem:[#allocation8 + $0x9a4] sm:$0xf]  ;;  %v8234_v14 = vor.u32 %v9167_v15, %v8231_v63  ;;  %v11922_v15 = vld [vmem:[#allocation48_spill] sm:$0xff] }
 0x3c9   :  { %v4108_v0 = vadd.f32 %v4107_v33, %v10958_v57  ;;  %v11919_v57 = vld [vmem:[#allocation37_spill] sm:$0xff]  ;;  %v8362_v56 = vor.u32 %v9199_v30, %v8359_v38  ;;  %v9099_v50 = vld [vmem:[#allocation8 + $0x684] sm:$0xf] }
 0x3ca   :  { %4684 = vmatpush.bf16.msra.mxu0 %v8234_v14  ;;  %v7959_v33 = vld [vmem:[#allocation8 + $0x690] sm:$0xf0]  ;;  %v11921_v38 = vld [vmem:[#allocation47_spill] sm:$0xff] }
 0x3cb   :  { %4728 = vmatpush.bf16.msra.mxu2 %v8362_v56  ;;  %v9163_v63 = vld [vmem:[#allocation8 + $0x884] sm:$0xf] }
 0x3cd   :  { %v4234_v4 = vpop.f32.mrf.mxu2 }
 0x3ce   :  { %v4151_v54 = vpop.f32.mrf.mxu3  ;;  %v11038_v62 = vadd.f32 %v4234_v4, %v4191_v32  ;;  %v9195_v32 = vld [vmem:[#allocation8 + $0x984] sm:$0xf] }
 0x3cf   :  { %v4152_v20 = vadd.f32 %v4151_v54, %v4108_v0  ;;  %v4193_v58 = vpop.f32.mrf.mxu0  ;;  %v7962_v0 = vor.u32 %v9099_v50, %v7959_v33  ;;  %v8346_v37 = vor.u32 %v9195_v32, %v8343_v25  ;;  %v7943_v50 = vld [vmem:[#allocation8 + $0x670] sm:$0xf0]  ;;  %v9191_v33 = vld [vmem:[#allocation8 + $0x964] sm:$0xf] }
 0x3d0   :  { %v4194_v7 = vadd.f32 %v4193_v58, %v4150_v53  ;;  %v4251_v23 = vpop.f32.mrf.mxu1  ;;  %v8090_v53 = vor.u32 %v9131_v44, %v8087_v61  ;;  %v9352_v58 = vld [vmem:[#allocation10] sm:$0xf]  ;;  %v8071_v44 = vld [vmem:[#allocation8 + $0x770] sm:$0xf0] }
 0x3d1   :  { %v4252_v46 = vadd.f32 %v4251_v23, %v10967_v39  ;;  %4597 = vmatpush.bf16.msra.mxu1 %v7962_v0  ;;  %4729 = vmatpush.bf16.msra.mxu2 %v8346_v37  ;;  %v8327_v0 = vld [vmem:[#allocation8 + $0x970] sm:$0xf0] }
 0x3d2   :  { %4514 = vmatmul.bf16.vlgmr.msrb.gmra.mxu0 %v11904_v28  ;;  %4558 = vmatmul.bf16.vlgmr.msrb.gmra.mxu2 %v11905_v48  ;;  %v8330_v37 = vor.u32 %v9191_v33, %v8327_v0  ;;  %v9091_v33 = vld [vmem:[#allocation8 + $0x644] sm:$0xf] }
 0x3d3   :  { %4431 = vmatmul.bf16.gmra.mxu1 %v11918_v13  ;;  %4475 = vmatmul.bf16.gmra.mxu3 %v11919_v57 }
 0x3d4   :  { %4641 = vmatpush.bf16.msra.mxu3 %v8090_v53  ;;  %v9095_v53 = vld [vmem:[#allocation8 + $0x664] sm:$0xf] }
 0x3d5   :  { %v4237_v41 = vpop.f32.mrf.mxu2  ;;  %v7946_v32 = vor.u32 %v9095_v53, %v7943_v50  ;;  %4730 = vmatpush.bf16.msra.mxu2 %v8330_v37  ;;  %v8311_v37 = vld [vmem:[#allocation8 + $0x950] sm:$0xf0] }
 0x3d6   :  { %v11045_v3 = vadd.f32 %v4237_v41, %v4194_v7  ;;  %v4295_v39 = vpop.f32.mrf.mxu3  ;;  %v8215_v41 = vld [vmem:[#allocation8 + $0x890] sm:$0xf0] }
 0x3d7   :  { %v4296_v42 = vadd.f32 %v4295_v39, %v4252_v46  ;;  %v4195_v16 = vpop.f32.mrf.mxu0  ;;  %v8218_v56 = vor.u32 %v9163_v63, %v8215_v41  ;;  %4598 = vmatpush.bf16.msra.mxu1 %v7946_v32  ;;  %v11925_v63 = vld [vmem:[#allocation33_spill] sm:$0xff]  ;;  %v9159_v41 = vld [vmem:[#allocation8 + $0x864] sm:$0xf] }
 0x3d8   :  { %v4196_v12 = vadd.f32 %v4195_v16, %v4152_v20  ;;  %v4253_v29 = vpop.f32.mrf.mxu1  ;;  %v11050_v20 = vperm.slane %v9352_v58, 1  ;;  %v7927_v32 = vld [vmem:[#allocation8 + $0x650] sm:$0xf0] }
 0x3d9   :  { %v4254_v24 = vadd.f32 %v4253_v29, %v10972_v47  ;;  %v5650_v46 = vmax.f32 %v4296_v42, 0.0  ;;  %4685 = vmatpush.bf16.msra.mxu0 %v8218_v56  ;;  %v8199_v56 = vld [vmem:[#allocation8 + $0x870] sm:$0xf0]  ;;  %v7930_v0 = vor.u32 %v9091_v33, %v7927_v32 }
 0x3db   :  { %4599 = vmatpush.bf16.msra.mxu1 %v7930_v0 }
 0x3dd   :  { %v4239_v22 = vpop.f32.mrf.mxu2 }
 0x3de   :  { %v11048_v4 = vadd.f32 %v4239_v22, %v4196_v12  ;;  %v4297_v54 = vpop.f32.mrf.mxu3 }
 0x3df   :  { %v4298_v47 = vadd.f32 %v4297_v54, %v4254_v24  ;;  %v4339_v7 = vpop.f32.mrf.mxu0  ;;  %v9127_v24 = vld [vmem:[#allocation8 + $0x764] sm:$0xf] }
 0x3e0   :  { %v4256_v23 = vpop.f32.mrf.mxu1  ;;  %v4340_v30 = vadd.f32 %v4339_v7, %v11050_v20  ;;  %v8074_v61 = vor.u32 %v9127_v24, %v8071_v44 }
 0x3e1   :  { %v5654_v51 = vmax.f32 %v4298_v47, 0.0  ;;  %v4257_v6 = vadd.f32 %v4256_v23, %v10981_v1 }
 0x3e2   :  { %4519 = vmatmul.bf16.gmra.mxu0 %v10621_v55  ;;  %4563 = vmatmul.bf16.gmra.mxu2 %v10623_v27 }
 0x3e3   :  { %v11056_v49 = vmax.f32 %v5650_v46, %v5654_v51  ;;  %4436 = vmatmul.bf16.gmra.mxu1 %v11921_v38  ;;  %4480 = vmatmul.bf16.gmra.mxu3 %v11922_v15 }
 0x3e4   :  { %4642 = vmatpush.bf16.msra.mxu3 %v8074_v61 }
 0x3e5   :  { %11920 = vst [vmem:[#allocation29_spill] sm:$0xff] %v11056_v49  ;;  %v4383_v14 = vpop.f32.mrf.mxu2  ;;  %v7869_v49 = vld [vmem:[#allocation8 + $0x5c8] sm:$0xf] }
 0x3e6   :  { %v4300_v39 = vpop.f32.mrf.mxu3  ;;  %v11060_v42 = vadd.f32 %v4383_v14, %v4340_v30  ;;  %v11924_v30 = vld [vmem:[#allocation30_spill] sm:$0xff] }
 0x3e7   :  { %v4301_v1 = vadd.f32 %v4300_v39, %v4257_v6  ;;  %v4341_v16 = vpop.f32.mrf.mxu0  ;;  %v9123_v14 = vld [vmem:[#allocation8 + $0x744] sm:$0xf] }
 0x3e8   :  { %v4258_v12 = vpop.f32.mrf.mxu1  ;;  %v4342_v25 = vadd.f32 %v4341_v16, %v11050_v20  ;;  %v8202_v16 = vor.u32 %v9159_v41, %v8199_v56 }
 0x3e9   :  { %v4259_v29 = vadd.f32 %v4258_v12, %v10986_v35  ;;  %v5658_v23 = vmax.f32 %v4301_v1, 0.0  ;;  %v8055_v1 = vld [vmem:[#allocation8 + $0x750] sm:$0xf0] }
 0x3ea   :  { %4686 = vmatpush.bf16.msra.mxu0 %v8202_v16 }
 0x3ed   :  { %v4385_v22 = vpop.f32.mrf.mxu2 }
 0x3ee   :  { %v4302_v54 = vpop.f32.mrf.mxu3  ;;  %v11064_v58 = vadd.f32 %v4385_v22, %v4342_v25  ;;  %v9187_v25 = vld [vmem:[#allocation8 + $0x944] sm:$0xf] }
 0x3ef   :  { %v4303_v47 = vadd.f32 %v4302_v54, %v4259_v29  ;;  %v4344_v35 = vpop.f32.mrf.mxu0  ;;  %v8058_v29 = vor.u32 %v9123_v14, %v8055_v1  ;;  %v9155_v22 = vld [vmem:[#allocation8 + $0x844] sm:$0xf]  ;;  %v8314_v54 = vor.u32 %v9187_v25, %v8311_v37 }
 0x3f0   :  { %v4261_v7 = vpop.f32.mrf.mxu1  ;;  %v4345_v39 = vadd.f32 %v4344_v35, %v11050_v20 }
 0x3f1   :  { %v5662_v46 = vmax.f32 %v4303_v47, 0.0  ;;  %v4262_v51 = vadd.f32 %v4261_v7, %v10995_v43  ;;  %4643 = vmatpush.bf16.msra.mxu3 %v8058_v29  ;;  %v8183_v47 = vld [vmem:[#allocation8 + $0x850] sm:$0xf0]  ;;  %4731 = vmatpush.bf16.msra.mxu2 %v8314_v54  ;;  %v11928_v29 = vld [vmem:[#allocation50_spill] sm:$0xff] }
 0x3f2   :  { %4524 = vmatmul.bf16.gmra.mxu0 %v10675_v59  ;;  %4568 = vmatmul.bf16.gmra.mxu2 %v10677_v26  ;;  %v8186_v7 = vor.u32 %v9155_v22, %v8183_v47  ;;  %v9087_v22 = vld [vmem:[#allocation8 + $0x624] sm:$0xf]  ;;  %v7911_v54 = vld [vmem:[#allocation8 + $0x630] sm:$0xf0] }
 0x3f3   :  { %v11069_v6 = vmax.f32 %v5658_v23, %v5662_v46  ;;  %4441 = vmatmul.bf16.gmra.mxu1 %v11924_v30  ;;  %4485 = vmatmul.bf16.gmra.mxu3 %v11925_v63  ;;  %v7914_v47 = vor.u32 %v9087_v22, %v7911_v54 }
 0x3f4   :  { %4687 = vmatpush.bf16.msra.mxu0 %v8186_v7  ;;  %v8295_v7 = vld [vmem:[#allocation8 + $0x930] sm:$0xf0] }
 0x3f5   :  { %11923 = vst [vmem:[#allocation39_spill] sm:$0xff] %v11069_v6  ;;  %v4388_v12 = vpop.f32.mrf.mxu2  ;;  %4600 = vmatpush.bf16.msra.mxu1 %v7914_v47 }
 0x3f6   :  { %v4305_v43 = vpop.f32.mrf.mxu3  ;;  %v11074_v24 = vadd.f32 %v4388_v12, %v4345_v39  ;;  %v11927_v12 = vld [vmem:[#allocation34_spill] sm:$0xff] }
 0x3f7   :  { %v4306_v44 = vadd.f32 %v4305_v43, %v4262_v51  ;;  %v4346_v61 = vpop.f32.mrf.mxu0  ;;  %v9119_v43 = vld [vmem:[#allocation8 + $0x724] sm:$0xf] }
 0x3f8   :  { %v4263_v53 = vpop.f32.mrf.mxu1  ;;  %v4347_v35 = vadd.f32 %v4346_v61, %v11050_v20  ;;  %v8039_v61 = vld [vmem:[#allocation8 + $0x730] sm:$0xf0] }
 0x3f9   :  { %v4264_v50 = vadd.f32 %v4263_v53, %v11000_v36  ;;  %v5666_v14 = vmax.f32 %v4306_v44, 0.0 }
 0x3fd   :  { %v4390_v23 = vpop.f32.mrf.mxu2 }
 0x3fe   :  { %v4307_v46 = vpop.f32.mrf.mxu3  ;;  %v11078_v51 = vadd.f32 %v4390_v23, %v4347_v35  ;;  %v9183_v35 = vld [vmem:[#allocation8 + $0x924] sm:$0xf] }
 0x3ff   :  { %v4308_v41 = vadd.f32 %v4307_v46, %v4264_v50  ;;  %v4349_v36 = vpop.f32.mrf.mxu0  ;;  %v8042_v50 = vor.u32 %v9119_v43, %v8039_v61  ;;  %v9151_v23 = vld [vmem:[#allocation8 + $0x824] sm:$0xf]  ;;  %v8298_v46 = vor.u32 %v9183_v35, %v8295_v7  ;;  %v11930_v7 = vld [vmem:[#allocation24_spill] sm:$0xff] }
 0x400   :  { %v4266_v56 = vpop.f32.mrf.mxu1  ;;  %v4350_v53 = vadd.f32 %v4349_v36, %v11050_v20  ;;  %v9115_v43 = vld [vmem:[#allocation8 + $0x704] sm:$0xf] }
 0x401   :  { %v5670_v39 = vmax.f32 %v4308_v41, 0.0  ;;  %v4267_v16 = vadd.f32 %v4266_v56, %v11009_v21  ;;  %4644 = vmatpush.bf16.msra.mxu3 %v8042_v50  ;;  %v8167_v41 = vld [vmem:[#allocation8 + $0x830] sm:$0xf0]  ;;  %4732 = vmatpush.bf16.msra.mxu2 %v8298_v46 }
 0x402   :  { %4529 = vmatmul.bf16.gmra.mxu0 %v10712_v17  ;;  %4573 = vmatmul.bf16.gmra.mxu2 %v10714_v18  ;;  %v8170_v56 = vor.u32 %v9151_v23, %v8167_v41  ;;  %v8023_v50 = vld [vmem:[#allocation8 + $0x710] sm:$0xf0]  ;;  %v11931_v23 = vld [vmem:[#allocation35_spill] sm:$0xff] }
 0x403   :  { %v11083_v1 = vmax.f32 %v5666_v14, %v5670_v39  ;;  %4446 = vmatmul.bf16.gmra.mxu1 %v11927_v12  ;;  %4490 = vmatmul.bf16.gmra.mxu3 %v11928_v29  ;;  %v9083_v39 = vld [vmem:[#allocation8 + $0x604] sm:$0xf]  ;;  %v8279_v46 = vld [vmem:[#allocation8 + $0x910] sm:$0xf0] }
 0x404   :  { %4688 = vmatpush.bf16.msra.mxu0 %v8170_v56 }
 0x405   :  { %11926 = vst [vmem:[#allocation41_spill] sm:$0xff] %v11083_v1  ;;  %v4393_v33 = vpop.f32.mrf.mxu2 }
 0x406   :  { %v4310_v44 = vpop.f32.mrf.mxu3  ;;  %v11088_v32 = vadd.f32 %v4393_v33, %v4350_v53 }
 0x407   :  { %v4311_v21 = vadd.f32 %v4310_v44, %v4267_v16  ;;  %v4351_v0 = vpop.f32.mrf.mxu0  ;;  %v7895_v16 = vld [vmem:[#allocation8 + $0x610] sm:$0xf0] }
 0x408   :  { %v4268_v25 = vpop.f32.mrf.mxu1  ;;  %v4352_v36 = vadd.f32 %v4351_v0, %v11050_v20 }
 0x409   :  { %v4269_v37 = vadd.f32 %v4268_v25, %v11014_v40  ;;  %v7898_v40 = vor.u32 %v9083_v39, %v7895_v16  ;;  %v8026_v25 = vor.u32 %v9115_v43, %v8023_v50  ;;  %v5674_v54 = vmax.f32 %v4311_v21, 0.0 }
 0x40b   :  { %4601 = vmatpush.bf16.msra.mxu1 %v7898_v40  ;;  %4645 = vmatpush.bf16.msra.mxu3 %v8026_v25  ;;  %v8151_v40 = vld [vmem:[#allocation8 + $0x810] sm:$0xf0] }
 0x40d   :  { %v4395_v14 = vpop.f32.mrf.mxu2 }
 0x40e   :  { %v4312_v61 = vpop.f32.mrf.mxu3  ;;  %v11092_v53 = vadd.f32 %v4395_v14, %v4352_v36 }
 0x40f   :  { %v4313_v33 = vadd.f32 %v4312_v61, %v4269_v37  ;;  %v4354_v44 = vpop.f32.mrf.mxu0  ;;  %v9179_v37 = vld [vmem:[#allocation8 + $0x904] sm:$0xf] }
 0x410   :  { %v4271_v22 = vpop.f32.mrf.mxu1  ;;  %v4355_v41 = vadd.f32 %v4354_v44, %v11050_v20  ;;  %v8282_v36 = vor.u32 %v9179_v37, %v8279_v46  ;;  %v9147_v61 = vld [vmem:[#allocation8 + $0x804] sm:$0xf] }
 0x411   :  { %v5678_v0 = vmax.f32 %v4313_v33, 0.0  ;;  %v4272_v47 = vadd.f32 %v4271_v22, %v11023_v9  ;;  %v8154_v50 = vor.u32 %v9147_v61, %v8151_v40  ;;  %v7629_v40 = vld [vmem:[#allocation8 + $0x3e8] sm:$0xf] }
 0x412   :  { %4534 = vmatmul.bf16.gmra.mxu0 %v10758_v5  ;;  %4578 = vmatmul.bf16.gmra.mxu2 %v10762_v60 }
 0x413   :  { %v11097_v35 = vmax.f32 %v5674_v54, %v5678_v0  ;;  %4451 = vmatmul.bf16.gmra.mxu1 %v11930_v7  ;;  %4495 = vmatmul.bf16.gmra.mxu3 %v11931_v23 }
 0x414   :  { %4733 = vmatpush.bf16.msra.mxu2 %v8282_v36  ;;  %4689 = vmatpush.bf16.msra.mxu0 %v8154_v50  ;;  %v11933_v36 = vld [vmem:[#allocation36_spill] sm:$0xff]  ;;  %v9018_v50 = vld [vmem:[#allocation8 + $0x3f4] sm:$0xf0] }
 0x415   :  { %11929 = vst [vmem:[#allocation26_spill] sm:$0xff] %v11097_v35  ;;  %v4398_v21 = vpop.f32.mrf.mxu2 }
 0x416   :  { %v4315_v56 = vpop.f32.mrf.mxu3  ;;  %v11102_v14 = vadd.f32 %v4398_v21, %v4355_v41  ;;  %v11934_v21 = vld [vmem:[#allocation25_spill] sm:$0xff] }
 0x417   :  { %v4316_v9 = vadd.f32 %v4315_v56, %v4272_v47  ;;  %v4356_v39 = vpop.f32.mrf.mxu0  ;;  %v7373_v56 = vld [vmem:[#allocation8 + $0x1e8] sm:$0xf] }
 0x418   :  { %v4273_v16 = vpop.f32.mrf.mxu1  ;;  %v4357_v33 = vadd.f32 %v4356_v39, %v11050_v20  ;;  %v8954_v39 = vld [vmem:[#allocation8 + $0x1f4] sm:$0xf0] }
 0x419   :  { %v4274_v43 = vadd.f32 %v4273_v16, %v11028_v11  ;;  %v5682_v46 = vmax.f32 %v4316_v9, 0.0  ;;  %v7245_v16 = vld [vmem:[#allocation8 + $0xe8] sm:$0xf]  ;;  %v7374_v61 = vor.u32 %v8954_v39, %v7373_v56  ;;  %v8922_v9 = vld [vmem:[#allocation8 + $0xf4] sm:$0xf0] }
 0x41a   :  { %v7357_v56 = vld [vmem:[#allocation8 + $0x1c8] sm:$0xf]  ;;  %v8950_v39 = vld [vmem:[#allocation8 + $0x1d4] sm:$0xf0] }
 0x41b   :  { %4814 = vmatpush.bf16.msrb.mxu3 %v7374_v61  ;;  %v7358_v6 = vor.u32 %v8950_v39, %v7357_v56 }
 0x41d   :  { %v4400_v25 = vpop.f32.mrf.mxu2 }
 0x41e   :  { %v4317_v22 = vpop.f32.mrf.mxu3  ;;  %v11106_v44 = vadd.f32 %v4400_v25, %v4357_v33  ;;  %v7246_v33 = vor.u32 %v8922_v9, %v7245_v16  ;;  %v7630_v25 = vor.u32 %v9018_v50, %v7629_v40 }
 0x41f   :  { %v4318_v54 = vadd.f32 %v4317_v22, %v4274_v43  ;;  %v4359_v0 = vpop.f32.mrf.mxu0  ;;  %4815 = vmatpush.bf16.msrb.mxu3 %v7358_v6  ;;  %v9014_v6 = vld [vmem:[#allocation8 + $0x3d4] sm:$0xf0] }
 0x420   :  { %v4276_v37 = vpop.f32.mrf.mxu1  ;;  %v4360_v43 = vadd.f32 %v4359_v0, %v11050_v20  ;;  %4770 = vmatpush.bf16.msrb.mxu1 %v7246_v33  ;;  %4902 = vmatpush.bf16.msrb.mxu2 %v7630_v25  ;;  %v7229_v25 = vld [vmem:[#allocation8 + $0xc8] sm:$0xf] }
 0x421   :  { %v5686_v41 = vmax.f32 %v4318_v54, 0.0  ;;  %v4277_v47 = vadd.f32 %v4276_v37, %v11035_v34 }
 0x422   :  { %4539 = vmatmul.bf16.gmra.mxu0 %v10806_v45  ;;  %4583 = vmatmul.bf16.gmra.mxu2 %v10808_v8 }
 0x423   :  { %v11111_v11 = vmax.f32 %v5682_v46, %v5686_v41  ;;  %4456 = vmatmul.bf16.gmra.mxu1 %v11933_v36  ;;  %4500 = vmatmul.bf16.gmra.mxu3 %v11934_v21  ;;  %v7501_v41 = vld [vmem:[#allocation8 + $0x2e8] sm:$0xf] }
 0x425   :  { %11932 = vst [vmem:[#allocation46_spill] sm:$0xff] %v11111_v11  ;;  %v4403_v34 = vpop.f32.mrf.mxu2  ;;  %v8986_v11 = vld [vmem:[#allocation8 + $0x2f4] sm:$0xf0] }
 0x426   :  { %v4320_v22 = vpop.f32.mrf.mxu3  ;;  %v11116_v54 = vadd.f32 %v4403_v34, %v4360_v43  ;;  %v7502_v1 = vor.u32 %v8986_v11, %v7501_v41  ;;  %v8982_v41 = vld [vmem:[#allocation8 + $0x2d4] sm:$0xf0] }
 0x427   :  { %v4321_v37 = vadd.f32 %v4320_v22, %v4277_v47  ;;  %v4361_v46 = vpop.f32.mrf.mxu0 }
 0x428   :  { %v4278_v35 = vpop.f32.mrf.mxu1  ;;  %4858 = vmatpush.bf16.msrb.mxu0 %v7502_v1  ;;  %v4362_v16 = vadd.f32 %v4361_v46, %v11050_v20 }
 0x429   :  { %v4279_v0 = vadd.f32 %v4278_v35, %v11038_v62  ;;  %v5690_v34 = vmax.f32 %v4321_v37, 0.0  ;;  %v8918_v62 = vld [vmem:[#allocation8 + $0xd4] sm:$0xf0]  ;;  %v7613_v35 = vld [vmem:[#allocation8 + $0x3c8] sm:$0xf] }
 0x42a   :  { %v7230_v1 = vor.u32 %v8918_v62, %v7229_v25  ;;  %v7614_v46 = vor.u32 %v9014_v6, %v7613_v35  ;;  %v7485_v37 = vld [vmem:[#allocation8 + $0x2c8] sm:$0xf] }
 0x42c   :  { %4771 = vmatpush.bf16.msrb.mxu1 %v7230_v1  ;;  %4903 = vmatpush.bf16.msrb.mxu2 %v7614_v46 }
 0x42d   :  { %v4405_v43 = vpop.f32.mrf.mxu2 }
 0x42e   :  { %v4322_v9 = vpop.f32.mrf.mxu3  ;;  %v11120_v61 = vadd.f32 %v4405_v43, %v4362_v16 }
 0x42f   :  { %v4323_v47 = vadd.f32 %v4322_v9, %v4279_v0  ;;  %v4364_v40 = vpop.f32.mrf.mxu0  ;;  %v7486_v0 = vor.u32 %v8982_v41, %v7485_v37  ;;  %v7213_v37 = vld [vmem:[#allocation8 + $0xa8] sm:$0xf]  ;;  %v8914_v41 = vld [vmem:[#allocation8 + $0xb4] sm:$0xf0] }
 0x430   :  { %v4281_v50 = vpop.f32.mrf.mxu1 }
 0x431   :  { %v5694_v33 = vmax.f32 %v4323_v47, 0.0  ;;  %v4282_v11 = vadd.f32 %v4281_v50, %v11045_v3  ;;  %v4365_v3 = vadd.f32 %v4364_v40, %v11050_v20  ;;  %4859 = vmatpush.bf16.msrb.mxu0 %v7486_v0  ;;  %v7214_v0 = vor.u32 %v8914_v41, %v7213_v37 }
 0x432   :  { %4544 = vmatmul.bf16.gmra.mxu0 %v10848_v2  ;;  %4588 = vmatmul.bf16.gmra.mxu2 %v10852_v10 }
 0x433   :  { %v11125_v22 = vmax.f32 %v5690_v34, %v5694_v33  ;;  %4602 = vmatmul.bf16.vlgmr.msra.gmra.mxu1 %v11918_v13  ;;  %4646 = vmatmul.bf16.vlgmr.msra.gmra.mxu3 %v11919_v57  ;;  %v7341_v34 = vld [vmem:[#allocation8 + $0x1a8] sm:$0xf]  ;;  %v8946_v33 = vld [vmem:[#allocation8 + $0x1b4] sm:$0xf0] }
 0x434   :  { %v7342_v25 = vor.u32 %v8946_v33, %v7341_v34  ;;  %v8978_v33 = vld [vmem:[#allocation8 + $0x2b4] sm:$0xf0]  ;;  %4772 = vmatpush.bf16.msrb.mxu1 %v7214_v0 }
 0x435   :  { %11935 = vst [vmem:[#allocation27_spill] sm:$0xff] %v11125_v22  ;;  %v4408_v56 = vpop.f32.mrf.mxu2 }
 0x436   :  { %v4325_v39 = vpop.f32.mrf.mxu3  ;;  %v11130_v16 = vadd.f32 %v4408_v56, %v4365_v3  ;;  %4816 = vmatpush.bf16.msrb.mxu3 %v7342_v25  ;;  %v7597_v3 = vld [vmem:[#allocation8 + $0x3a8] sm:$0xf]  ;;  %v9010_v56 = vld [vmem:[#allocation8 + $0x3b4] sm:$0xf0] }
 0x437   :  { %v4326_v43 = vadd.f32 %v4325_v39, %v4282_v11  ;;  %v4366_v9 = vpop.f32.mrf.mxu0  ;;  %v7598_v34 = vor.u32 %v9010_v56, %v7597_v3  ;;  %v7325_v3 = vld [vmem:[#allocation8 + $0x188] sm:$0xf] }
 0x438   :  { %v4283_v47 = vpop.f32.mrf.mxu1  ;;  %v4367_v62 = vadd.f32 %v4366_v9, %v11050_v20  ;;  %v7197_v56 = vld [vmem:[#allocation8 + $0x88] sm:$0xf] }
 0x439   :  { %v4284_v50 = vadd.f32 %v4283_v47, %v11048_v4  ;;  %v5698_v39 = vmax.f32 %v4326_v43, 0.0  ;;  %4904 = vmatpush.bf16.msrb.mxu2 %v7598_v34 }
 0x43d   :  { %v4410_v40 = vpop.f32.mrf.mxu2 }
 0x43e   :  { %v4327_v1 = vpop.f32.mrf.mxu3  ;;  %v11134_v35 = vadd.f32 %v4410_v40, %v4367_v62 }
 0x43f   :  { %v4328_v6 = vadd.f32 %v4327_v1, %v4284_v50  ;;  %v4369_v46 = vpop.f32.mrf.mxu0  ;;  %v7469_v50 = vld [vmem:[#allocation8 + $0x2a8] sm:$0xf] }
 0x440   :  { %v4427_v11 = vpop.f32.mrf.mxu1  ;;  %v4370_v25 = vadd.f32 %v4369_v46, %v11050_v20  ;;  %v7470_v43 = vor.u32 %v8978_v33, %v7469_v50  ;;  %v9006_v46 = vld [vmem:[#allocation8 + $0x394] sm:$0xf0] }
 0x441   :  { %v5702_v4 = vmax.f32 %v4328_v6, 0.0  ;;  %v4428_v47 = vadd.f32 %v4427_v11, %v11060_v42  ;;  %v8942_v11 = vld [vmem:[#allocation8 + $0x194] sm:$0xf0] }
 0x442   :  { %4690 = vmatmul.bf16.vlgmr.msra.gmra.mxu0 %v10621_v55  ;;  %4734 = vmatmul.bf16.vlgmr.msra.gmra.mxu2 %v10623_v27 }
 0x443   :  { %v11139_v9 = vmax.f32 %v5698_v39, %v5702_v4  ;;  %4607 = vmatmul.bf16.gmra.mxu1 %v11921_v38  ;;  %4651 = vmatmul.bf16.gmra.mxu3 %v11922_v15  ;;  %v7326_v39 = vor.u32 %v8942_v11, %v7325_v3  ;;  %v8910_v4 = vld [vmem:[#allocation8 + $0x94] sm:$0xf0]  ;;  %v7453_v3 = vld [vmem:[#allocation8 + $0x288] sm:$0xf] }
 0x444   :  { %4860 = vmatpush.bf16.msrb.mxu0 %v7470_v43  ;;  %v7198_v0 = vor.u32 %v8910_v4, %v7197_v56  ;;  %v8974_v11 = vld [vmem:[#allocation8 + $0x294] sm:$0xf0] }
 0x445   :  { %11936 = vst [vmem:[#allocation21_spill] sm:$0xff] %v11139_v9  ;;  %v4413_v62 = vpop.f32.mrf.mxu2  ;;  %v7581_v9 = vld [vmem:[#allocation8 + $0x388] sm:$0xf]  ;;  %4817 = vmatpush.bf16.msrb.mxu3 %v7326_v39 }
 0x446   :  { %v11144_v42 = vadd.f32 %v4413_v62, %v4370_v25  ;;  %v4471_v40 = vpop.f32.mrf.mxu3  ;;  %v7582_v34 = vor.u32 %v9006_v46, %v7581_v9  ;;  %4773 = vmatpush.bf16.msrb.mxu1 %v7198_v0  ;;  %v7309_v39 = vld [vmem:[#allocation8 + $0x168] sm:$0xf] }
 0x447   :  { %v4472_v1 = vadd.f32 %v4471_v40, %v4428_v47  ;;  %v4371_v6 = vpop.f32.mrf.mxu0 }
 0x448   :  { %v4429_v37 = vpop.f32.mrf.mxu1  ;;  %v4372_v50 = vadd.f32 %v4371_v6, %v11050_v20  ;;  %4905 = vmatpush.bf16.msrb.mxu2 %v7582_v34  ;;  %v7454_v20 = vor.u32 %v8974_v11, %v7453_v3 }
 0x449   :  { %v4430_v41 = vadd.f32 %v4429_v37, %v11064_v58 }
 0x44a   :  { %4861 = vmatpush.bf16.msrb.mxu0 %v7454_v20 }
 0x44d   :  { %v4415_v33 = vpop.f32.mrf.mxu2 }
 0x44e   :  { %v11148_v47 = vadd.f32 %v4415_v33, %v4372_v50  ;;  %v4473_v25 = vpop.f32.mrf.mxu3  ;;  %v7181_v50 = vld [vmem:[#allocation8 + $0x68] sm:$0xf]  ;;  %v8906_v33 = vld [vmem:[#allocation8 + $0x74] sm:$0xf0] }
 0x44f   :  { %v4474_v43 = vadd.f32 %v4473_v25, %v4430_v41  ;;  %v4515_v58 = vpop.f32.mrf.mxu0  ;;  %v7565_v25 = vld [vmem:[#allocation8 + $0x368] sm:$0xf] }
 0x450   :  { %v4432_v62 = vpop.f32.mrf.mxu1  ;;  %v4516_v40 = vadd.f32 %v4515_v58, %v4472_v1  ;;  %v7182_v58 = vor.u32 %v8906_v33, %v7181_v50 }
 0x451   :  { %v4433_v37 = vadd.f32 %v4432_v62, %v11074_v24  ;;  %v8938_v24 = vld [vmem:[#allocation8 + $0x174] sm:$0xf0] }
 0x452   :  { %4695 = vmatmul.bf16.gmra.mxu0 %v10675_v59  ;;  %4739 = vmatmul.bf16.gmra.mxu2 %v10677_v26  ;;  %v7310_v0 = vor.u32 %v8938_v24, %v7309_v39  ;;  %v9002_v62 = vld [vmem:[#allocation8 + $0x374] sm:$0xf0] }
 0x453   :  { %4612 = vmatmul.bf16.gmra.mxu1 %v11924_v30  ;;  %4656 = vmatmul.bf16.gmra.mxu3 %v11925_v63  ;;  %v7566_v3 = vor.u32 %v9002_v62, %v7565_v25 }
 0x454   :  { %4818 = vmatpush.bf16.msrb.mxu3 %v7310_v0  ;;  %4774 = vmatpush.bf16.msrb.mxu1 %v7182_v58 }
 0x455   :  { %v4559_v9 = vpop.f32.mrf.mxu2  ;;  %4906 = vmatpush.bf16.msrb.mxu2 %v7566_v3  ;;  %v7165_v3 = vld [vmem:[#allocation8 + $0x48] sm:$0xf] }
 0x456   :  { %v4476_v6 = vpop.f32.mrf.mxu3  ;;  %v11155_v41 = vadd.f32 %v4559_v9, %v4516_v40 }
 0x457   :  { %v4477_v56 = vadd.f32 %v4476_v6, %v4433_v37  ;;  %v4517_v1 = vpop.f32.mrf.mxu0  ;;  %v7437_v6 = vld [vmem:[#allocation8 + $0x268] sm:$0xf] }
 0x458   :  { %v4434_v4 = vpop.f32.mrf.mxu1  ;;  %v4518_v46 = vadd.f32 %v4517_v1, %v4474_v43  ;;  %v8970_v43 = vld [vmem:[#allocation8 + $0x274] sm:$0xf0] }
 0x459   :  { %v4435_v34 = vadd.f32 %v4434_v4, %v11078_v51  ;;  %v7438_v51 = vor.u32 %v8970_v43, %v7437_v6  ;;  %v7293_v4 = vld [vmem:[#allocation8 + $0x148] sm:$0xf]  ;;  %v8998_v6 = vld [vmem:[#allocation8 + $0x354] sm:$0xf0] }
 0x45a   :  { %v7421_v43 = vld [vmem:[#allocation8 + $0x248] sm:$0xf] }
 0x45b   :  { %4862 = vmatpush.bf16.msrb.mxu0 %v7438_v51 }
 0x45d   :  { %v4561_v11 = vpop.f32.mrf.mxu2 }
 0x45e   :  { %v4478_v40 = vpop.f32.mrf.mxu3  ;;  %v11158_v37 = vadd.f32 %v4561_v11, %v4518_v46  ;;  %v8934_v46 = vld [vmem:[#allocation8 + $0x154] sm:$0xf0] }
 0x45f   :  { %v4479_v20 = vadd.f32 %v4478_v40, %v4435_v34  ;;  %v4520_v9 = vpop.f32.mrf.mxu0  ;;  %v7294_v0 = vor.u32 %v8934_v46, %v7293_v4  ;;  %v8902_v11 = vld [vmem:[#allocation8 + $0x54] sm:$0xf0]  ;;  %v7549_v40 = vld [vmem:[#allocation8 + $0x348] sm:$0xf] }
 0x460   :  { %v4437_v1 = vpop.f32.mrf.mxu1  ;;  %v4521_v39 = vadd.f32 %v4520_v9, %v4477_v56  ;;  %v7166_v9 = vor.u32 %v8902_v11, %v7165_v3  ;;  %v7550_v51 = vor.u32 %v8998_v6, %v7549_v40  ;;  %v7533_v6 = vld [vmem:[#allocation8 + $0x328] sm:$0xf] }
 0x461   :  { %v4438_v24 = vadd.f32 %v4437_v1, %v11088_v32  ;;  %4819 = vmatpush.bf16.msrb.mxu3 %v7294_v0  ;;  %v8966_v1 = vld [vmem:[#allocation8 + $0x254] sm:$0xf0] }
 0x462   :  { %4700 = vmatmul.bf16.gmra.mxu0 %v10712_v17  ;;  %4744 = vmatmul.bf16.gmra.mxu2 %v10714_v18  ;;  %v7422_v4 = vor.u32 %v8966_v1, %v7421_v43 }
 0x463   :  { %4617 = vmatmul.bf16.gmra.mxu1 %v11927_v12  ;;  %4661 = vmatmul.bf16.gmra.mxu3 %v11928_v29 }
 0x464   :  { %4775 = vmatpush.bf16.msrb.mxu1 %v7166_v9  ;;  %4907 = vmatpush.bf16.msrb.mxu2 %v7550_v51  ;;  %v7149_v9 = vld [vmem:[#allocation8 + $0x28] sm:$0xf] }
 0x465   :  { %v4564_v34 = vpop.f32.mrf.mxu2  ;;  %4863 = vmatpush.bf16.msrb.mxu0 %v7422_v4  ;;  %v8994_v4 = vld [vmem:[#allocation8 + $0x334] sm:$0xf0] }
 0x466   :  { %v4481_v50 = vpop.f32.mrf.mxu3  ;;  %v11165_v33 = vadd.f32 %v4564_v34, %v4521_v39 }
 0x467   :  { %v4482_v56 = vadd.f32 %v4481_v50, %v4438_v24  ;;  %v4522_v25 = vpop.f32.mrf.mxu0 }
 0x468   :  { %v4439_v32 = vpop.f32.mrf.mxu1  ;;  %v4523_v58 = vadd.f32 %v4522_v25, %v4479_v20  ;;  %v7277_v25 = vld [vmem:[#allocation8 + $0x128] sm:$0xf] }
 0x469   :  { %v4440_v62 = vadd.f32 %v4439_v32, %v11092_v53  ;;  %v8930_v32 = vld [vmem:[#allocation8 + $0x134] sm:$0xf0] }
 0x46a   :  { %v7278_v3 = vor.u32 %v8930_v32, %v7277_v25  ;;  %v7133_v32 = vld [vmem:[#allocation8 + $0x8] sm:$0xf] }
 0x46c   :  { %4820 = vmatpush.bf16.msrb.mxu3 %v7278_v3  ;;  %v7261_v3 = vld [vmem:[#allocation8 + $0x108] sm:$0xf] }
 0x46d   :  { %v4566_v46 = vpop.f32.mrf.mxu2 }
 0x46e   :  { %v4483_v39 = vpop.f32.mrf.mxu3  ;;  %v11168_v24 = vadd.f32 %v4566_v46, %v4523_v58 }
 0x46f   :  { %v4484_v0 = vadd.f32 %v4483_v39, %v4440_v62  ;;  %v4525_v20 = vpop.f32.mrf.mxu0  ;;  %v7534_v39 = vor.u32 %v8994_v4, %v7533_v6 }
 0x470   :  { %v4442_v34 = vpop.f32.mrf.mxu1  ;;  %v4526_v53 = vadd.f32 %v4525_v20, %v4482_v56  ;;  %v7405_v20 = vld [vmem:[#allocation8 + $0x228] sm:$0xf] }
 0x471   :  { %v4443_v50 = vadd.f32 %v4442_v34, %v11102_v14  ;;  %v8898_v14 = vld [vmem:[#allocation8 + $0x34] sm:$0xf0]  ;;  %4908 = vmatpush.bf16.msrb.mxu2 %v7534_v39 }
 0x472   :  { %4705 = vmatmul.bf16.gmra.mxu0 %v10758_v5  ;;  %4749 = vmatmul.bf16.gmra.mxu2 %v10762_v60  ;;  %v7150_v51 = vor.u32 %v8898_v14, %v7149_v9  ;;  %v8962_v34 = vld [vmem:[#allocation8 + $0x234] sm:$0xf0] }
 0x473   :  { %4622 = vmatmul.bf16.gmra.mxu1 %v11930_v7  ;;  %4666 = vmatmul.bf16.gmra.mxu3 %v11931_v23  ;;  %v7406_v25 = vor.u32 %v8962_v34, %v7405_v20 }
 0x474   :  { %4776 = vmatpush.bf16.msrb.mxu1 %v7150_v51  ;;  %v8990_v51 = vld [vmem:[#allocation8 + $0x314] sm:$0xf0] }
 0x475   :  { %v4569_v11 = vpop.f32.mrf.mxu2  ;;  %4864 = vmatpush.bf16.msrb.mxu0 %v7406_v25 }
 0x476   :  { %v4486_v58 = vpop.f32.mrf.mxu3  ;;  %v11175_v40 = vadd.f32 %v4569_v11, %v4526_v53 }
 0x477   :  { %v4487_v62 = vadd.f32 %v4486_v58, %v4443_v50  ;;  %v4527_v56 = vpop.f32.mrf.mxu0  ;;  %v8894_v50 = vld [vmem:[#allocation8 + $0x14] sm:$0xf0] }
 0x478   :  { %v4444_v43 = vpop.f32.mrf.mxu1  ;;  %v4528_v1 = vadd.f32 %v4527_v56, %v4484_v0  ;;  %v7134_v22 = vor.u32 %v8894_v50, %v7133_v32  ;;  %v8926_v0 = vld [vmem:[#allocation8 + $0x114] sm:$0xf0] }
 0x479   :  { %v4445_v46 = vadd.f32 %v4444_v43, %v11106_v44  ;;  %v7262_v14 = vor.u32 %v8926_v0, %v7261_v3  ;;  %v8958_v32 = vld [vmem:[#allocation8 + $0x214] sm:$0xf0] }
 0x47a   :  { %4777 = vmatpush.bf16.msrb.mxu1 %v7134_v22 }
 0x47b   :  { %4821 = vmatpush.bf16.msrb.mxu3 %v7262_v14 }
 0x47d   :  { %v4571_v53 = vpop.f32.mrf.mxu2 }
 0x47e   :  { %v4488_v11 = vpop.f32.mrf.mxu3  ;;  %v11178_v58 = vadd.f32 %v4571_v53, %v4528_v1  ;;  %v7517_v1 = vld [vmem:[#allocation8 + $0x308] sm:$0xf] }
 0x47f   :  { %v4489_v56 = vadd.f32 %v4488_v11, %v4445_v46  ;;  %v4530_v9 = vpop.f32.mrf.mxu0  ;;  %v7518_v4 = vor.u32 %v8990_v51, %v7517_v1  ;;  %v7389_v53 = vld [vmem:[#allocation8 + $0x208] sm:$0xf] }
 0x480   :  { %v4447_v44 = vpop.f32.mrf.mxu1  ;;  %v4531_v6 = vadd.f32 %v4530_v9, %v4487_v62  ;;  %v7390_v50 = vor.u32 %v8958_v32, %v7389_v53 }
 0x481   :  { %v4448_v43 = vadd.f32 %v4447_v44, %v11116_v54  ;;  %4909 = vmatpush.bf16.msrb.mxu2 %v7518_v4  ;;  %v7885_v44 = vld [vmem:[#allocation8 + $0x5e8] sm:$0xf] }
 0x482   :  { %4710 = vmatmul.bf16.gmra.mxu0 %v10806_v45  ;;  %4754 = vmatmul.bf16.gmra.mxu2 %v10808_v8 }
 0x483   :  { %4627 = vmatmul.bf16.gmra.mxu1 %v11933_v36  ;;  %4671 = vmatmul.bf16.gmra.mxu3 %v11934_v21 }
 0x484   :  { %4865 = vmatpush.bf16.msrb.mxu0 %v7390_v50 }
 0x485   :  { %v4574_v46 = vpop.f32.mrf.mxu2 }
 0x486   :  { %v4491_v39 = vpop.f32.mrf.mxu3  ;;  %v11185_v20 = vadd.f32 %v4574_v46, %v4531_v6  ;;  %v9082_v6 = vld [vmem:[#allocation8 + $0x5f4] sm:$0xf0]  ;;  %v7757_v46 = vld [vmem:[#allocation8 + $0x4e8] sm:$0xf] }
 0x487   :  { %v4492_v22 = vadd.f32 %v4491_v39, %v4448_v43  ;;  %v4532_v62 = vpop.f32.mrf.mxu0  ;;  %v7886_v43 = vor.u32 %v9082_v6, %v7885_v44  ;;  %v9050_v39 = vld [vmem:[#allocation8 + $0x4f4] sm:$0xf0] }
 0x488   :  { %v4449_v54 = vpop.f32.mrf.mxu1  ;;  %v4533_v34 = vadd.f32 %v4532_v62, %v4489_v56  ;;  %v11938_v56 = vld [vmem:[#allocation38_spill] sm:$0xff]  ;;  %v8141_v62 = vld [vmem:[#allocation8 + $0x7e8] sm:$0xf] }
 0x489   :  { %v4450_v25 = vadd.f32 %v4449_v54, %v11120_v61  ;;  %v11937_v61 = vld [vmem:[#allocation20_spill] sm:$0xff]  ;;  %4990 = vmatpush.bf16.msra.mxu3 %v7886_v43  ;;  %v7758_v54 = vor.u32 %v9050_v39, %v7757_v46  ;;  %v9078_v43 = vld [vmem:[#allocation8 + $0x5d4] sm:$0xf0] }
 0x48a   :  { %v7870_v46 = vor.u32 %v9078_v43, %v7869_v49  ;;  %v9142_v49 = vld [vmem:[#allocation8 + $0x7d4] sm:$0xf0] }
 0x48b   :  { %4946 = vmatpush.bf16.msra.mxu1 %v7758_v54 }
 0x48d   :  { %v4576_v3 = vpop.f32.mrf.mxu2  ;;  %4991 = vmatpush.bf16.msra.mxu3 %v7870_v46 }
 0x48e   :  { %v4493_v11 = vpop.f32.mrf.mxu3  ;;  %v11188_v0 = vadd.f32 %v4576_v3, %v4533_v34  ;;  %v9146_v34 = vld [vmem:[#allocation8 + $0x7f4] sm:$0xf0]  ;;  %v8013_v3 = vld [vmem:[#allocation8 + $0x6e8] sm:$0xf] }
 0x48f   :  { %v4494_v9 = vadd.f32 %v4493_v11, %v4450_v25  ;;  %v4535_v14 = vpop.f32.mrf.mxu0  ;;  %v8142_v53 = vor.u32 %v9146_v34, %v8141_v62  ;;  %v9114_v11 = vld [vmem:[#allocation8 + $0x6f4] sm:$0xf0] }
 0x490   :  { %v4452_v1 = vpop.f32.mrf.mxu1  ;;  %v4536_v51 = vadd.f32 %v4535_v14, %v4492_v22  ;;  %v8014_v6 = vor.u32 %v9114_v11, %v8013_v3  ;;  %v7997_v11 = vld [vmem:[#allocation8 + $0x6c8] sm:$0xf] }
 0x491   :  { %v4453_v4 = vadd.f32 %v4452_v1, %v11130_v16  ;;  %5078 = vmatpush.bf16.msra.mxu2 %v8142_v53 }
 0x492   :  { %4715 = vmatmul.bf16.gmra.mxu0 %v10848_v2  ;;  %4759 = vmatmul.bf16.gmra.mxu2 %v10852_v10 }
 0x493   :  { %4632 = vmatmul.bf16.gmra.mxu1 %v11937_v61  ;;  %4676 = vmatmul.bf16.gmra.mxu3 %v11938_v56 }
 0x494   :  { %5034 = vmatpush.bf16.msra.mxu0 %v8014_v6 }
 0x495   :  { %v4579_v25 = vpop.f32.mrf.mxu2 }
 0x496   :  { %v4496_v22 = vpop.f32.mrf.mxu3  ;;  %v11195_v32 = vadd.f32 %v4579_v25, %v4536_v51 }
 0x497   :  { %v4497_v16 = vadd.f32 %v4496_v22, %v4453_v4  ;;  %v4537_v50 = vpop.f32.mrf.mxu0  ;;  %v7741_v22 = vld [vmem:[#allocation8 + $0x4c8] sm:$0xf] }
 0x498   :  { %v4454_v14 = vpop.f32.mrf.mxu1  ;;  %v4538_v44 = vadd.f32 %v4537_v50, %v4494_v9  ;;  %v9046_v9 = vld [vmem:[#allocation8 + $0x4d4] sm:$0xf0]  ;;  %v8125_v50 = vld [vmem:[#allocation8 + $0x7c8] sm:$0xf] }
 0x499   :  { %v4455_v1 = vadd.f32 %v4454_v14, %v11134_v35  ;;  %v7742_v35 = vor.u32 %v9046_v9, %v7741_v22  ;;  %v8126_v3 = vor.u32 %v9142_v49, %v8125_v50  ;;  %v9110_v14 = vld [vmem:[#allocation8 + $0x6d4] sm:$0xf0] }
 0x49b   :  { %4947 = vmatpush.bf16.msra.mxu1 %v7742_v35  ;;  %5079 = vmatpush.bf16.msra.mxu2 %v8126_v3 }
 0x49d   :  { %v4581_v39 = vpop.f32.mrf.mxu2 }
 0x49e   :  { %v4498_v62 = vpop.f32.mrf.mxu3  ;;  %v11198_v51 = vadd.f32 %v4581_v39, %v4538_v44 }
 0x49f   :  { %v4499_v54 = vadd.f32 %v4498_v62, %v4455_v1  ;;  %v4540_v4 = vpop.f32.mrf.mxu0 }
 0x4a0   :  { %v4457_v34 = vpop.f32.mrf.mxu1  ;;  %v4541_v25 = vadd.f32 %v4540_v4, %v4497_v16  ;;  %v7998_v16 = vor.u32 %v9110_v14, %v7997_v11  ;;  %v7853_v4 = vld [vmem:[#allocation8 + $0x5a8] sm:$0xf] }
 0x4a1   :  { %v4458_v53 = vadd.f32 %v4457_v34, %v11144_v42  ;;  %v9074_v34 = vld [vmem:[#allocation8 + $0x5b4] sm:$0xf0] }
 0x4a2   :  { %4720 = vmatmul.bf16.gmra.mxu0 %v11913_v31  ;;  %4764 = vmatmul.bf16.gmra.mxu2 %v11913_v31  ;;  %v7854_v22 = vor.u32 %v9074_v34, %v7853_v4 }
 0x4a3   :  { %4778 = vmatmul.bf16.vlgmr.msrb.gmra.mxu1 %v11913_v31  ;;  %4822 = vmatmul.bf16.vlgmr.msrb.gmra.mxu3 %v11913_v31 }
 0x4a4   :  { %5035 = vmatpush.bf16.msra.mxu0 %v7998_v16  ;;  %4992 = vmatpush.bf16.msra.mxu3 %v7854_v22 }
 0x4a5   :  { %v4584_v44 = vpop.f32.mrf.mxu2 }
 0x4a6   :  { %v4501_v42 = vpop.f32.mrf.mxu3  ;;  %v11205_v6 = vadd.f32 %v4584_v44, %v4541_v25  ;;  %v9138_v44 = vld [vmem:[#allocation8 + $0x7b4] sm:$0xf0] }
 0x4a7   :  { %v4502_v1 = vadd.f32 %v4501_v42, %v4458_v53  ;;  %v4542_v43 = vpop.f32.mrf.mxu0  ;;  %v8109_v53 = vld [vmem:[#allocation8 + $0x7a8] sm:$0xf] }
 0x4a8   :  { %v4459_v46 = vpop.f32.mrf.mxu1  ;;  %v4543_v39 = vadd.f32 %v4542_v43, %v4499_v54  ;;  %v7725_v54 = vld [vmem:[#allocation8 + $0x4a8] sm:$0xf]  ;;  %v9106_v43 = vld [vmem:[#allocation8 + $0x6b4] sm:$0xf0] }
 0x4a9   :  { %v4460_v62 = vadd.f32 %v4459_v46, %v11148_v47  ;;  %v9042_v47 = vld [vmem:[#allocation8 + $0x4b4] sm:$0xf0]  ;;  %v7981_v42 = vld [vmem:[#allocation8 + $0x6a8] sm:$0xf]  ;;  %v8110_v46 = vor.u32 %v9138_v44, %v8109_v53 }
 0x4aa   :  { %v7726_v16 = vor.u32 %v9042_v47, %v7725_v54  ;;  %v7709_v54 = vld [vmem:[#allocation8 + $0x488] sm:$0xf]  ;;  %v9134_v44 = vld [vmem:[#allocation8 + $0x794] sm:$0xf0] }
 0x4ab   :  { %5080 = vmatpush.bf16.msra.mxu2 %v8110_v46  ;;  %v8093_v53 = vld [vmem:[#allocation8 + $0x788] sm:$0xf] }
 0x4ac   :  { %4948 = vmatpush.bf16.msra.mxu1 %v7726_v16  ;;  %v8094_v16 = vor.u32 %v9134_v44, %v8093_v53 }
 0x4ad   :  { %v4586_v9 = vpop.f32.mrf.mxu2 }
 0x4ae   :  { %v4503_v50 = vpop.f32.mrf.mxu3  ;;  %v11208_v35 = vadd.f32 %v4586_v9, %v4543_v39 }
 0x4af   :  { %v4504_v49 = vadd.f32 %v4503_v50, %v4460_v62  ;;  %v4545_v3 = vpop.f32.mrf.mxu0  ;;  %5081 = vmatpush.bf16.msra.mxu2 %v8094_v16  ;;  %v9034_v16 = vld [vmem:[#allocation8 + $0x474] sm:$0xf0] }
 0x4b0   :  { %v4546_v11 = vadd.f32 %v4545_v3, %v4502_v1  ;;  %v4603_v25 = vpop.f32.mrf.mxu1  ;;  %v7982_v1 = vor.u32 %v9106_v43, %v7981_v42  ;;  %v7837_v3 = vld [vmem:[#allocation8 + $0x588] sm:$0xf] }
 0x4b1   :  { %v4604_v14 = vadd.f32 %v4603_v25, %v11155_v41  ;;  %v9070_v25 = vld [vmem:[#allocation8 + $0x594] sm:$0xf0] }
 0x4b2   :  { %4866 = vmatmul.bf16.vlgmr.msrb.gmra.mxu0 %v11916_v52  ;;  %4910 = vmatmul.bf16.vlgmr.msrb.gmra.mxu2 %v11917_v19  ;;  %v7838_v47 = vor.u32 %v9070_v25, %v7837_v3  ;;  %v9038_v19 = vld [vmem:[#allocation8 + $0x494] sm:$0xf0] }
 0x4b3   :  { %4783 = vmatmul.bf16.gmra.mxu1 %v11904_v28  ;;  %4827 = vmatmul.bf16.gmra.mxu3 %v11905_v48  ;;  %v7710_v42 = vor.u32 %v9038_v19, %v7709_v54  ;;  %v9102_v19 = vld [vmem:[#allocation8 + $0x694] sm:$0xf0] }
 0x4b4   :  { %5036 = vmatpush.bf16.msra.mxu0 %v7982_v1  ;;  %4993 = vmatpush.bf16.msra.mxu3 %v7838_v47  ;;  %v9066_v47 = vld [vmem:[#allocation8 + $0x574] sm:$0xf0] }
 0x4b5   :  { %v4589_v39 = vpop.f32.mrf.mxu2  ;;  %4949 = vmatpush.bf16.msra.mxu1 %v7710_v42  ;;  %v7693_v42 = vld [vmem:[#allocation8 + $0x468] sm:$0xf] }
 0x4b6   :  { %v11215_v41 = vadd.f32 %v4589_v39, %v4546_v11  ;;  %v4647_v62 = vpop.f32.mrf.mxu3 }
 0x4b7   :  { %v4648_v4 = vadd.f32 %v4647_v62, %v4604_v14  ;;  %v4547_v34 = vpop.f32.mrf.mxu0  ;;  %v7965_v62 = vld [vmem:[#allocation8 + $0x688] sm:$0xf] }
 0x4b8   :  { %v4548_v22 = vadd.f32 %v4547_v34, %v4504_v49  ;;  %v4605_v9 = vpop.f32.mrf.mxu1  ;;  %v7966_v34 = vor.u32 %v9102_v19, %v7965_v62 }
 0x4b9   :  { %v4606_v50 = vadd.f32 %v4605_v9, %v11158_v37 }
 0x4ba   :  { %5037 = vmatpush.bf16.msra.mxu0 %v7966_v34 }
 0x4bd   :  { %v4591_v11 = vpop.f32.mrf.mxu2 }
 0x4be   :  { %v11218_v43 = vadd.f32 %v4591_v11, %v4548_v22  ;;  %v4649_v14 = vpop.f32.mrf.mxu3  ;;  %v8077_v11 = vld [vmem:[#allocation8 + $0x768] sm:$0xf] }
 0x4bf   :  { %v4650_v49 = vadd.f32 %v4649_v14, %v4606_v50  ;;  %v4691_v46 = vpop.f32.mrf.mxu0  ;;  %v7694_v14 = vor.u32 %v9034_v16, %v7693_v42 }
 0x4c0   :  { %v4608_v1 = vpop.f32.mrf.mxu1  ;;  %v4692_v37 = vadd.f32 %v4691_v46, %v4648_v4  ;;  %v9130_v46 = vld [vmem:[#allocation8 + $0x774] sm:$0xf0] }
 0x4c1   :  { %v4609_v39 = vadd.f32 %v4608_v1, %v11165_v33  ;;  %v7821_v33 = vld [vmem:[#allocation8 + $0x568] sm:$0xf]  ;;  %v8078_v1 = vor.u32 %v9130_v46, %v8077_v11  ;;  %4950 = vmatpush.bf16.msra.mxu1 %v7694_v14 }
 0x4c2   :  { %4871 = vmatmul.bf16.gmra.mxu0 %v11918_v13  ;;  %4915 = vmatmul.bf16.gmra.mxu2 %v11919_v57  ;;  %v7822_v44 = vor.u32 %v9066_v47, %v7821_v33  ;;  %v7949_v33 = vld [vmem:[#allocation8 + $0x668] sm:$0xf]  ;;  %v9098_v47 = vld [vmem:[#allocation8 + $0x674] sm:$0xf0] }
 0x4c3   :  { %4788 = vmatmul.bf16.gmra.mxu1 %v10621_v55  ;;  %4832 = vmatmul.bf16.gmra.mxu3 %v10623_v27 }
 0x4c4   :  { %4994 = vmatpush.bf16.msra.mxu3 %v7822_v44  ;;  %5082 = vmatpush.bf16.msra.mxu2 %v8078_v1 }
 0x4c5   :  { %v4735_v22 = vpop.f32.mrf.mxu2 }
 0x4c6   :  { %v4652_v9 = vpop.f32.mrf.mxu3  ;;  %v4736_v50 = vadd.f32 %v4735_v22, %v4692_v37 }
 0x4c7   :  { %v4653_v3 = vadd.f32 %v4652_v9, %v4609_v39  ;;  %v4693_v25 = vpop.f32.mrf.mxu0 }
 0x4c8   :  { %v4610_v4 = vpop.f32.mrf.mxu1  ;;  %v4694_v54 = vadd.f32 %v4693_v25, %v4650_v49  ;;  %v5651_v49 = vmax.f32 %v4736_v50, 0.0  ;;  %v9062_v50 = vld [vmem:[#allocation8 + $0x554] sm:$0xf0] }
 0x4c9   :  { %v4611_v53 = vadd.f32 %v4610_v4, %v11168_v24 }
 0x4cd   :  { %v4737_v62 = vpop.f32.mrf.mxu2 }
 0x4ce   :  { %v4654_v37 = vpop.f32.mrf.mxu3  ;;  %v4738_v39 = vadd.f32 %v4737_v62, %v4694_v54  ;;  %v7950_v54 = vor.u32 %v9098_v47, %v7949_v33  ;;  %v7677_v62 = vld [vmem:[#allocation8 + $0x448] sm:$0xf] }
 0x4cf   :  { %v4655_v19 = vadd.f32 %v4654_v37, %v4611_v53  ;;  %v4696_v34 = vpop.f32.mrf.mxu0  ;;  %v7805_v53 = vld [vmem:[#allocation8 + $0x548] sm:$0xf]  ;;  %v9030_v37 = vld [vmem:[#allocation8 + $0x454] sm:$0xf0] }
 0x4d0   :  { %v5655_v22 = vmax.f32 %v4738_v39, 0.0  ;;  %v4613_v9 = vpop.f32.mrf.mxu1  ;;  %v4697_v25 = vadd.f32 %v4696_v34, %v4653_v3  ;;  %v7806_v44 = vor.u32 %v9062_v50, %v7805_v53  ;;  %5038 = vmatpush.bf16.msra.mxu0 %v7950_v54  ;;  %v8061_v39 = vld [vmem:[#allocation8 + $0x748] sm:$0xf]  ;;  %v7678_v34 = vor.u32 %v9030_v37, %v7677_v62 }
 0x4d1   :  { %v4614_v24 = vadd.f32 %v4613_v9, %v11175_v40  ;;  %v9094_v9 = vld [vmem:[#allocation8 + $0x654] sm:$0xf0] }
 0x4d2   :  { %v11227_v4 = vmax.f32 %v5651_v49, %v5655_v22  ;;  %4876 = vmatmul.bf16.gmra.mxu0 %v11921_v38  ;;  %4920 = vmatmul.bf16.gmra.mxu2 %v11922_v15  ;;  %v9126_v49 = vld [vmem:[#allocation8 + $0x754] sm:$0xf0]  ;;  %v7933_v22 = vld [vmem:[#allocation8 + $0x648] sm:$0xf] }
 0x4d3   :  { %4793 = vmatmul.bf16.gmra.mxu1 %v10675_v59  ;;  %4837 = vmatmul.bf16.gmra.mxu3 %v10677_v26  ;;  %v8062_v33 = vor.u32 %v9126_v49, %v8061_v39  ;;  %v7934_v47 = vor.u32 %v9094_v9, %v7933_v22  ;;  %v7661_v49 = vld [vmem:[#allocation8 + $0x428] sm:$0xf]  ;;  %v9026_v22 = vld [vmem:[#allocation8 + $0x434] sm:$0xf0] }
 0x4d4   :  { %11939 = vst [vmem:[#allocation28_spill] sm:$0xff] %v11227_v4  ;;  %4995 = vmatpush.bf16.msra.mxu3 %v7806_v44  ;;  %4951 = vmatpush.bf16.msra.mxu1 %v7678_v34 }
 0x4d5   :  { %v4740_v42 = vpop.f32.mrf.mxu2  ;;  %5083 = vmatpush.bf16.msra.mxu2 %v8062_v33  ;;  %5039 = vmatpush.bf16.msra.mxu0 %v7934_v47  ;;  %v7662_v33 = vor.u32 %v9026_v22, %v7661_v49  ;;  %v8045_v47 = vld [vmem:[#allocation8 + $0x728] sm:$0xf] }
 0x4d6   :  { %v4657_v3 = vpop.f32.mrf.mxu3  ;;  %v4741_v40 = vadd.f32 %v4740_v42, %v4697_v25 }
 0x4d7   :  { %v4658_v16 = vadd.f32 %v4657_v3, %v4614_v24  ;;  %v4698_v11 = vpop.f32.mrf.mxu0 }
 0x4d8   :  { %v4615_v14 = vpop.f32.mrf.mxu1  ;;  %v4699_v46 = vadd.f32 %v4698_v11, %v4655_v19  ;;  %v5659_v19 = vmax.f32 %v4741_v40, 0.0  ;;  %4952 = vmatpush.bf16.msra.mxu1 %v7662_v33 }
 0x4d9   :  { %v4616_v1 = vadd.f32 %v4615_v14, %v11178_v58  ;;  %v7789_v14 = vld [vmem:[#allocation8 + $0x528] sm:$0xf] }
 0x4dd   :  { %v4742_v54 = vpop.f32.mrf.mxu2 }
 0x4de   :  { %v4659_v25 = vpop.f32.mrf.mxu3  ;;  %v4743_v24 = vadd.f32 %v4742_v54, %v4699_v46  ;;  %v9058_v46 = vld [vmem:[#allocation8 + $0x534] sm:$0xf0] }
 0x4df   :  { %v4660_v53 = vadd.f32 %v4659_v25, %v4616_v1  ;;  %v4701_v50 = vpop.f32.mrf.mxu0  ;;  %v7790_v1 = vor.u32 %v9058_v46, %v7789_v14  ;;  %v9122_v54 = vld [vmem:[#allocation8 + $0x734] sm:$0xf0]  ;;  %v7917_v25 = vld [vmem:[#allocation8 + $0x628] sm:$0xf] }
 0x4e0   :  { %v5663_v44 = vmax.f32 %v4743_v24, 0.0  ;;  %v4618_v58 = vpop.f32.mrf.mxu1  ;;  %v4702_v42 = vadd.f32 %v4701_v50, %v4658_v16  ;;  %v8046_v24 = vor.u32 %v9122_v54, %v8045_v47  ;;  %v9090_v50 = vld [vmem:[#allocation8 + $0x634] sm:$0xf0] }
 0x4e1   :  { %v4619_v3 = vadd.f32 %v4618_v58, %v11185_v20  ;;  %4996 = vmatpush.bf16.msra.mxu3 %v7790_v1  ;;  %v7645_v58 = vld [vmem:[#allocation8 + $0x408] sm:$0xf]  ;;  %v9054_v1 = vld [vmem:[#allocation8 + $0x514] sm:$0xf0] }
 0x4e2   :  { %v11235_v11 = vmax.f32 %v5659_v19, %v5663_v44  ;;  %4881 = vmatmul.bf16.gmra.mxu0 %v11924_v30  ;;  %4925 = vmatmul.bf16.gmra.mxu2 %v11925_v63  ;;  %v7918_v19 = vor.u32 %v9090_v50, %v7917_v25 }
 0x4e3   :  { %4798 = vmatmul.bf16.gmra.mxu1 %v10712_v17  ;;  %4842 = vmatmul.bf16.gmra.mxu3 %v10714_v18 }
 0x4e4   :  { %11940 = vst [vmem:[#allocation42_spill] sm:$0xff] %v11235_v11  ;;  %5084 = vmatpush.bf16.msra.mxu2 %v8046_v24  ;;  %5040 = vmatpush.bf16.msra.mxu0 %v7918_v19  ;;  %v7855_v11 = vld [vmem:[#allocation8 + $0x5b8] sm:$0xf0] }
 0x4e5   :  { %v4745_v62 = vpop.f32.mrf.mxu2 }
 0x4e6   :  { %v4662_v40 = vpop.f32.mrf.mxu3  ;;  %v4746_v37 = vadd.f32 %v4745_v62, %v4702_v42  ;;  %v9022_v42 = vld [vmem:[#allocation8 + $0x414] sm:$0xf0] }
 0x4e7   :  { %v4663_v16 = vadd.f32 %v4662_v40, %v4619_v3  ;;  %v4703_v39 = vpop.f32.mrf.mxu0  ;;  %v7773_v3 = vld [vmem:[#allocation8 + $0x508] sm:$0xf]  ;;  %v7646_v46 = vor.u32 %v9022_v42, %v7645_v58  ;;  %v9086_v42 = vld [vmem:[#allocation8 + $0x614] sm:$0xf0] }
 0x4e8   :  { %v4620_v20 = vpop.f32.mrf.mxu1  ;;  %v4704_v34 = vadd.f32 %v4703_v39, %v4660_v53  ;;  %v7774_v40 = vor.u32 %v9054_v1, %v7773_v3  ;;  %v5667_v39 = vmax.f32 %v4746_v37, 0.0  ;;  %v7901_v58 = vld [vmem:[#allocation8 + $0x608] sm:$0xf] }
 0x4e9   :  { %v4621_v9 = vadd.f32 %v4620_v20, %v11188_v0  ;;  %4953 = vmatpush.bf16.msra.mxu1 %v7646_v46  ;;  %v7902_v3 = vor.u32 %v9086_v42, %v7901_v58 }
 0x4ea   :  { %4997 = vmatpush.bf16.msra.mxu3 %v7774_v40 }
 0x4eb   :  { %5041 = vmatpush.bf16.msra.mxu0 %v7902_v3  ;;  %v8920_v3 = vld [vmem:[#allocation8 + $0xec] sm:$0xf] }
 0x4ed   :  { %v4747_v44 = vpop.f32.mrf.mxu2 }
 0x4ee   :  { %v4664_v14 = vpop.f32.mrf.mxu3  ;;  %v4748_v53 = vadd.f32 %v4747_v44, %v4704_v34  ;;  %v8029_v34 = vld [vmem:[#allocation8 + $0x708] sm:$0xf] }
 0x4ef   :  { %v4665_v62 = vadd.f32 %v4664_v14, %v4621_v9  ;;  %v4706_v0 = vpop.f32.mrf.mxu0  ;;  %v9118_v9 = vld [vmem:[#allocation8 + $0x714] sm:$0xf0] }
 0x4f0   :  { %v5671_v20 = vmax.f32 %v4748_v53, 0.0  ;;  %v4623_v49 = vpop.f32.mrf.mxu1  ;;  %v4707_v22 = vadd.f32 %v4706_v0, %v4663_v16  ;;  %v8030_v37 = vor.u32 %v9118_v9, %v8029_v34  ;;  %v8269_v9 = vld [vmem:[#allocation8 + $0x8e8] sm:$0xf] }
 0x4f1   :  { %v4624_v33 = vadd.f32 %v4623_v49, %v11195_v32 }
 0x4f2   :  { %v11243_v47 = vmax.f32 %v5667_v39, %v5671_v20  ;;  %4886 = vmatmul.bf16.gmra.mxu0 %v11927_v12  ;;  %4930 = vmatmul.bf16.gmra.mxu2 %v11928_v29 }
 0x4f3   :  { %4803 = vmatmul.bf16.gmra.mxu1 %v10758_v5  ;;  %4847 = vmatmul.bf16.gmra.mxu3 %v10762_v60 }
 0x4f4   :  { %11941 = vst [vmem:[#allocation22_spill] sm:$0xff] %v11243_v47  ;;  %5085 = vmatpush.bf16.msra.mxu2 %v8030_v37  ;;  %v9178_v37 = vld [vmem:[#allocation8 + $0x8f4] sm:$0xf0]  ;;  %v9076_v47 = vld [vmem:[#allocation8 + $0x5cc] sm:$0xf] }
 0x4f5   :  { %v4750_v54 = vpop.f32.mrf.mxu2 }
 0x4f6   :  { %v4667_v25 = vpop.f32.mrf.mxu3  ;;  %v4751_v16 = vadd.f32 %v4750_v54, %v4707_v22  ;;  %v8952_v54 = vld [vmem:[#allocation8 + $0x1ec] sm:$0xf] }
 0x4f7   :  { %v4668_v24 = vadd.f32 %v4667_v25, %v4624_v33  ;;  %v4708_v32 = vpop.f32.mrf.mxu0  ;;  %v8270_v25 = vor.u32 %v9178_v37, %v8269_v9 }
 0x4f8   :  { %v4625_v50 = vpop.f32.mrf.mxu1  ;;  %v4709_v19 = vadd.f32 %v4708_v32, %v4665_v62  ;;  %v5675_v40 = vmax.f32 %v4751_v16, 0.0  ;;  %v9210_v62 = vld [vmem:[#allocation8 + $0x9f4] sm:$0xf0]  ;;  %v7375_v16 = vld [vmem:[#allocation8 + $0x1f8] sm:$0xf0] }
 0x4f9   :  { %v4626_v44 = vadd.f32 %v4625_v50, %v11198_v51  ;;  %v8397_v51 = vld [vmem:[#allocation8 + $0x9e8] sm:$0xf]  ;;  %5122 = vmatpush.bf16.msrb.mxu1 %v8270_v25 }
 0x4fa   :  { %v8398_v34 = vor.u32 %v9210_v62, %v8397_v51 }
 0x4fc   :  { %5166 = vmatpush.bf16.msrb.mxu3 %v8398_v34 }
 0x4fd   :  { %v4752_v14 = vpop.f32.mrf.mxu2 }
 0x4fe   :  { %v4669_v53 = vpop.f32.mrf.mxu3  ;;  %v4753_v46 = vadd.f32 %v4752_v14, %v4709_v19  ;;  %v7247_v14 = vld [vmem:[#allocation8 + $0xf8] sm:$0xf0] }
 0x4ff   :  { %v4670_v1 = vadd.f32 %v4669_v53, %v4626_v44  ;;  %v4711_v0 = vpop.f32.mrf.mxu0 }
 0x500   :  { %v5679_v39 = vmax.f32 %v4753_v46, 0.0  ;;  %v4628_v20 = vpop.f32.mrf.mxu1  ;;  %v4712_v49 = vadd.f32 %v4711_v0, %v4668_v24  ;;  %v7250_v46 = vor.u32 %v8920_v3, %v7247_v14  ;;  %v8381_v0 = vld [vmem:[#allocation8 + $0x9c8] sm:$0xf] }
 0x501   :  { %v4629_v22 = vadd.f32 %v4628_v20, %v11205_v6  ;;  %v7378_v6 = vor.u32 %v8952_v54, %v7375_v16  ;;  %v9174_v16 = vld [vmem:[#allocation8 + $0x8d4] sm:$0xf0] }
 0x502   :  { %v11251_v33 = vmax.f32 %v5675_v40, %v5679_v39  ;;  %4891 = vmatmul.bf16.gmra.mxu0 %v11930_v7  ;;  %4935 = vmatmul.bf16.gmra.mxu2 %v11931_v23  ;;  %v9206_v40 = vld [vmem:[#allocation8 + $0x9d4] sm:$0xf0] }
 0x503   :  { %4808 = vmatmul.bf16.gmra.mxu1 %v10806_v45  ;;  %4852 = vmatmul.bf16.gmra.mxu3 %v10808_v8  ;;  %v8382_v39 = vor.u32 %v9206_v40, %v8381_v0 }
 0x504   :  { %11942 = vst [vmem:[#allocation23_spill] sm:$0xff] %v11251_v33  ;;  %5254 = vmatpush.bf16.msrb.mxu2 %v7378_v6  ;;  %5210 = vmatpush.bf16.msrb.mxu0 %v7250_v46  ;;  %v9012_v33 = vld [vmem:[#allocation8 + $0x3cc] sm:$0xf] }
 0x505   :  { %v4755_v24 = vpop.f32.mrf.mxu2  ;;  %5167 = vmatpush.bf16.msrb.mxu3 %v8382_v39  ;;  %v8365_v39 = vld [vmem:[#allocation8 + $0x9a8] sm:$0xf] }
 0x506   :  { %v4672_v32 = vpop.f32.mrf.mxu3  ;;  %v4756_v50 = vadd.f32 %v4755_v24, %v4712_v49  ;;  %v8948_v24 = vld [vmem:[#allocation8 + $0x1cc] sm:$0xf] }
 0x507   :  { %v4673_v19 = vadd.f32 %v4672_v32, %v4629_v22  ;;  %v4713_v44 = vpop.f32.mrf.mxu0  ;;  %v7359_v32 = vld [vmem:[#allocation8 + $0x1d8] sm:$0xf0] }
 0x508   :  { %v4630_v58 = vpop.f32.mrf.mxu1  ;;  %v4714_v42 = vadd.f32 %v4713_v44, %v4670_v1  ;;  %v5683_v22 = vmax.f32 %v4756_v50, 0.0  ;;  %v8916_v50 = vld [vmem:[#allocation8 + $0xcc] sm:$0xf]  ;;  %v7231_v44 = vld [vmem:[#allocation8 + $0xd8] sm:$0xf0] }
 0x509   :  { %v4631_v53 = vadd.f32 %v4630_v58, %v11208_v35  ;;  %v8253_v35 = vld [vmem:[#allocation8 + $0x8c8] sm:$0xf]  ;;  %v7234_v58 = vor.u32 %v8916_v50, %v7231_v44  ;;  %v7343_v44 = vld [vmem:[#allocation8 + $0x1b8] sm:$0xf0] }
 0x50a   :  { %v8254_v6 = vor.u32 %v9174_v16, %v8253_v35  ;;  %v8237_v16 = vld [vmem:[#allocation8 + $0x8a8] sm:$0xf] }
 0x50b   :  { %5211 = vmatpush.bf16.msrb.mxu0 %v7234_v58 }
 0x50c   :  { %5123 = vmatpush.bf16.msrb.mxu1 %v8254_v6 }
 0x50d   :  { %v4757_v20 = vpop.f32.mrf.mxu2 }
 0x50e   :  { %v4674_v51 = vpop.f32.mrf.mxu3  ;;  %v4758_v62 = vadd.f32 %v4757_v20, %v4714_v42  ;;  %v9202_v20 = vld [vmem:[#allocation8 + $0x9b4] sm:$0xf0] }
 0x50f   :  { %v4675_v49 = vadd.f32 %v4674_v51, %v4631_v53  ;;  %v4716_v34 = vpop.f32.mrf.mxu0  ;;  %v8366_v51 = vor.u32 %v9202_v20, %v8365_v39 }
 0x510   :  { %v5687_v9 = vmax.f32 %v4758_v62, 0.0  ;;  %v4633_v37 = vpop.f32.mrf.mxu1  ;;  %v4717_v54 = vadd.f32 %v4716_v34, %v4673_v19  ;;  %v7362_v19 = vor.u32 %v8948_v24, %v7359_v32  ;;  %v9170_v24 = vld [vmem:[#allocation8 + $0x8b4] sm:$0xf0] }
 0x511   :  { %v4634_v1 = vadd.f32 %v4633_v37, %v11215_v41  ;;  %5168 = vmatpush.bf16.msrb.mxu3 %v8366_v51 }
 0x512   :  { %v11259_v25 = vmax.f32 %v5683_v22, %v5687_v9  ;;  %4896 = vmatmul.bf16.gmra.mxu0 %v11933_v36  ;;  %4940 = vmatmul.bf16.gmra.mxu2 %v11934_v21  ;;  %v9353_v9 = vld [vmem:[#allocation10] sm:$0xf] }
 0x513   :  { %4954 = vmatmul.bf16.vlgmr.msra.gmra.mxu1 %v11904_v28  ;;  %4998 = vmatmul.bf16.vlgmr.msra.gmra.mxu3 %v11905_v48  ;;  %v11266_v37 = vperm.slane %v9353_v9, 2 }
 0x514   :  { %11943 = vst [vmem:[#allocation43_spill] sm:$0xff] %v11259_v25  ;;  %5255 = vmatpush.bf16.msrb.mxu2 %v7362_v19 }
 0x515   :  { %v4760_v41 = vpop.f32.mrf.mxu2 }
 0x516   :  { %v4677_v42 = vpop.f32.mrf.mxu3  ;;  %v4761_v3 = vadd.f32 %v4760_v41, %v4717_v54 }
 0x517   :  { %v4678_v14 = vadd.f32 %v4677_v42, %v4634_v1  ;;  %v4718_v53 = vpop.f32.mrf.mxu0  ;;  %v8944_v1 = vld [vmem:[#allocation8 + $0x1ac] sm:$0xf] }
 0x518   :  { %v4635_v46 = vpop.f32.mrf.mxu1  ;;  %v4719_v0 = vadd.f32 %v4718_v53, %v4675_v49  ;;  %v5691_v6 = vmax.f32 %v4761_v3, 0.0  ;;  %v7346_v19 = vor.u32 %v8944_v1, %v7343_v44  ;;  %v8912_v42 = vld [vmem:[#allocation8 + $0xac] sm:$0xf]  ;;  %v7215_v3 = vld [vmem:[#allocation8 + $0xb8] sm:$0xf0] }
 0x519   :  { %v4636_v40 = vadd.f32 %v4635_v46, %v11218_v43  ;;  %v8238_v43 = vor.u32 %v9170_v24, %v8237_v16  ;;  %v8940_v16 = vld [vmem:[#allocation8 + $0x18c] sm:$0xf]  ;;  %v7327_v24 = vld [vmem:[#allocation8 + $0x198] sm:$0xf0] }
 0x51a   :  { %5256 = vmatpush.bf16.msrb.mxu2 %v7346_v19 }
 0x51b   :  { %5124 = vmatpush.bf16.msrb.mxu1 %v8238_v43 }
 0x51d   :  { %v4762_v62 = vpop.f32.mrf.mxu2 }
 0x51e   :  { %v4679_v34 = vpop.f32.mrf.mxu3  ;;  %v4763_v22 = vadd.f32 %v4762_v62, %v4719_v0  ;;  %v8349_v62 = vld [vmem:[#allocation8 + $0x988] sm:$0xf] }
 0x51f   :  { %v4680_v35 = vadd.f32 %v4679_v34, %v4636_v40  ;;  %v4721_v54 = vpop.f32.mrf.mxu0  ;;  %v9198_v34 = vld [vmem:[#allocation8 + $0x994] sm:$0xf0] }
 0x520   :  { %v5695_v32 = vmax.f32 %v4763_v22, 0.0  ;;  %v4722_v49 = vadd.f32 %v4721_v54, %v4678_v14  ;;  %v4779_v50 = vpop.f32.mrf.mxu1  ;;  %v7218_v14 = vor.u32 %v8912_v42, %v7215_v3  ;;  %v8221_v22 = vld [vmem:[#allocation8 + $0x888] sm:$0xf]  ;;  %v8350_v9 = vor.u32 %v9198_v34, %v8349_v62  ;;  %v9166_v54 = vld [vmem:[#allocation8 + $0x894] sm:$0xf0] }
 0x521   :  { %v4780_v41 = vadd.f32 %v4779_v50, %v11266_v37 }
 0x522   :  { %v11268_v58 = vmax.f32 %v5691_v6, %v5695_v32  ;;  %5042 = vmatmul.bf16.vlgmr.msra.gmra.mxu0 %v11918_v13  ;;  %5086 = vmatmul.bf16.vlgmr.msra.gmra.mxu2 %v11919_v57  ;;  %v8222_v6 = vor.u32 %v9166_v54, %v8221_v22  ;;  %v7330_v32 = vor.u32 %v8940_v16, %v7327_v24  ;;  %v8333_v22 = vld [vmem:[#allocation8 + $0x968] sm:$0xf] }
 0x523   :  { %4959 = vmatmul.bf16.gmra.mxu1 %v10621_v55  ;;  %5003 = vmatmul.bf16.gmra.mxu3 %v10623_v27 }
 0x524   :  { %11944 = vst [vmem:[#allocation44_spill] sm:$0xff] %v11268_v58  ;;  %5212 = vmatpush.bf16.msrb.mxu0 %v7218_v14  ;;  %5169 = vmatpush.bf16.msrb.mxu3 %v8350_v9  ;;  %v8908_v14 = vld [vmem:[#allocation8 + $0x8c] sm:$0xf]  ;;  %v9194_v9 = vld [vmem:[#allocation8 + $0x974] sm:$0xf0] }
 0x525   :  { %v4765_v53 = vpop.f32.mrf.mxu2  ;;  %5125 = vmatpush.bf16.msrb.mxu1 %v8222_v6  ;;  %5257 = vmatpush.bf16.msrb.mxu2 %v7330_v32  ;;  %v8334_v24 = vor.u32 %v9194_v9, %v8333_v22  ;;  %v9162_v6 = vld [vmem:[#allocation8 + $0x874] sm:$0xf0]  ;;  %v8936_v32 = vld [vmem:[#allocation8 + $0x16c] sm:$0xf] }
 0x526   :  { %v4766_v46 = vadd.f32 %v4765_v53, %v4722_v49  ;;  %v4823_v0 = vpop.f32.mrf.mxu3  ;;  %v7199_v53 = vld [vmem:[#allocation8 + $0x98] sm:$0xf0] }
 0x527   :  { %v4824_v40 = vadd.f32 %v4823_v0, %v4780_v41  ;;  %v4723_v39 = vpop.f32.mrf.mxu0 }
 0x528   :  { %v4724_v20 = vadd.f32 %v4723_v39, %v4680_v35  ;;  %v4781_v51 = vpop.f32.mrf.mxu1  ;;  %v5699_v19 = vmax.f32 %v4766_v46, 0.0  ;;  %v7202_v39 = vor.u32 %v8908_v14, %v7199_v53  ;;  %5170 = vmatpush.bf16.msrb.mxu3 %v8334_v24  ;;  %v8904_v53 = vld [vmem:[#allocation8 + $0x6c] sm:$0xf] }
 0x529   :  { %v4782_v1 = vadd.f32 %v4781_v51, %v11266_v37 }
 0x52a   :  { %5213 = vmatpush.bf16.msrb.mxu0 %v7202_v39 }
 0x52d   :  { %v4767_v50 = vpop.f32.mrf.mxu2 }
 0x52e   :  { %v4768_v49 = vadd.f32 %v4767_v50, %v4724_v20  ;;  %v4825_v43 = vpop.f32.mrf.mxu3 }
 0x52f   :  { %v4826_v44 = vadd.f32 %v4825_v43, %v4782_v1  ;;  %v4867_v35 = vpop.f32.mrf.mxu0  ;;  %v8205_v1 = vld [vmem:[#allocation8 + $0x868] sm:$0xf] }
 0x530   :  { %v5703_v41 = vmax.f32 %v4768_v49, 0.0  ;;  %v4784_v42 = vpop.f32.mrf.mxu1  ;;  %v4868_v3 = vadd.f32 %v4867_v35, %v4824_v40  ;;  %v8206_v50 = vor.u32 %v9162_v6, %v8205_v1  ;;  %v7311_v49 = vld [vmem:[#allocation8 + $0x178] sm:$0xf0] }
 0x531   :  { %v4785_v20 = vadd.f32 %v4784_v42, %v11266_v37  ;;  %v7314_v43 = vor.u32 %v8936_v32, %v7311_v49  ;;  %v9158_v49 = vld [vmem:[#allocation8 + $0x854] sm:$0xf0] }
 0x532   :  { %v11276_v0 = vmax.f32 %v5699_v19, %v5703_v41  ;;  %5047 = vmatmul.bf16.gmra.mxu0 %v11921_v38  ;;  %5091 = vmatmul.bf16.gmra.mxu2 %v11922_v15 }
 0x533   :  { %4964 = vmatmul.bf16.gmra.mxu1 %v10675_v59  ;;  %5008 = vmatmul.bf16.gmra.mxu3 %v10677_v26 }
 0x534   :  { %11945 = vst [vmem:[#allocation40_spill] sm:$0xff] %v11276_v0  ;;  %5126 = vmatpush.bf16.msrb.mxu1 %v8206_v50  ;;  %5258 = vmatpush.bf16.msrb.mxu2 %v7314_v43  ;;  %v8189_v50 = vld [vmem:[#allocation8 + $0x848] sm:$0xf]  ;;  %v8932_v43 = vld [vmem:[#allocation8 + $0x14c] sm:$0xf] }
 0x535   :  { %v4911_v46 = vpop.f32.mrf.mxu2 }
 0x536   :  { %v4828_v51 = vpop.f32.mrf.mxu3  ;;  %v11283_v62 = vadd.f32 %v4911_v46, %v4868_v3 }
 0x537   :  { %v4829_v40 = vadd.f32 %v4828_v51, %v4785_v20  ;;  %v4869_v34 = vpop.f32.mrf.mxu0  ;;  %v8317_v51 = vld [vmem:[#allocation8 + $0x948] sm:$0xf] }
 0x538   :  { %v4786_v54 = vpop.f32.mrf.mxu1  ;;  %v4870_v16 = vadd.f32 %v4869_v34, %v4826_v44  ;;  %v7183_v44 = vld [vmem:[#allocation8 + $0x78] sm:$0xf0]  ;;  %v9190_v34 = vld [vmem:[#allocation8 + $0x954] sm:$0xf0] }
 0x539   :  { %v4787_v35 = vadd.f32 %v4786_v54, %v11266_v37  ;;  %v7186_v46 = vor.u32 %v8904_v53, %v7183_v44  ;;  %v8318_v22 = vor.u32 %v9190_v34, %v8317_v51 }
 0x53b   :  { %5214 = vmatpush.bf16.msrb.mxu0 %v7186_v46  ;;  %5171 = vmatpush.bf16.msrb.mxu3 %v8318_v22 }
 0x53d   :  { %v4913_v19 = vpop.f32.mrf.mxu2 }
 0x53e   :  { %v4830_v41 = vpop.f32.mrf.mxu3  ;;  %v11286_v42 = vadd.f32 %v4913_v19, %v4870_v16  ;;  %v7295_v19 = vld [vmem:[#allocation8 + $0x158] sm:$0xf0] }
 0x53f   :  { %v4831_v3 = vadd.f32 %v4830_v41, %v4787_v35  ;;  %v4872_v14 = vpop.f32.mrf.mxu0  ;;  %v8190_v35 = vor.u32 %v9158_v49, %v8189_v50  ;;  %v8900_v41 = vld [vmem:[#allocation8 + $0x4c] sm:$0xf]  ;;  %v7298_v53 = vor.u32 %v8932_v43, %v7295_v19  ;;  %v9154_v19 = vld [vmem:[#allocation8 + $0x834] sm:$0xf0] }
 0x540   :  { %v4789_v39 = vpop.f32.mrf.mxu1  ;;  %v4873_v20 = vadd.f32 %v4872_v14, %v4829_v40  ;;  %v7167_v14 = vld [vmem:[#allocation8 + $0x58] sm:$0xf0] }
 0x541   :  { %v4790_v9 = vadd.f32 %v4789_v39, %v11266_v37  ;;  %v7170_v44 = vor.u32 %v8900_v41, %v7167_v14  ;;  %5127 = vmatpush.bf16.msrb.mxu1 %v8190_v35  ;;  %5259 = vmatpush.bf16.msrb.mxu2 %v7298_v53  ;;  %v8173_v35 = vld [vmem:[#allocation8 + $0x828] sm:$0xf]  ;;  %v8928_v41 = vld [vmem:[#allocation8 + $0x12c] sm:$0xf] }
 0x542   :  { %5052 = vmatmul.bf16.gmra.mxu0 %v11924_v30  ;;  %5096 = vmatmul.bf16.gmra.mxu2 %v11925_v63 }
 0x543   :  { %4969 = vmatmul.bf16.gmra.mxu1 %v10712_v17  ;;  %5013 = vmatmul.bf16.gmra.mxu3 %v10714_v18 }
 0x544   :  { %5215 = vmatpush.bf16.msrb.mxu0 %v7170_v44  ;;  %v8174_v44 = vor.u32 %v9154_v19, %v8173_v35 }
 0x545   :  { %v4916_v54 = vpop.f32.mrf.mxu2 }
 0x546   :  { %v4833_v16 = vpop.f32.mrf.mxu3  ;;  %v11293_v24 = vadd.f32 %v4916_v54, %v4873_v20  ;;  %v8301_v54 = vld [vmem:[#allocation8 + $0x928] sm:$0xf]  ;;  %5128 = vmatpush.bf16.msrb.mxu1 %v8174_v44 }
 0x547   :  { %v4834_v40 = vadd.f32 %v4833_v16, %v4790_v9  ;;  %v4874_v1 = vpop.f32.mrf.mxu0  ;;  %v9186_v16 = vld [vmem:[#allocation8 + $0x934] sm:$0xf0] }
 0x548   :  { %v4791_v6 = vpop.f32.mrf.mxu1  ;;  %v4875_v32 = vadd.f32 %v4874_v1, %v4831_v3  ;;  %v8302_v1 = vor.u32 %v9186_v16, %v8301_v54  ;;  %v8157_v16 = vld [vmem:[#allocation8 + $0x808] sm:$0xf] }
 0x549   :  { %v4792_v39 = vadd.f32 %v4791_v6, %v11266_v37 }
 0x54a   :  { %5172 = vmatpush.bf16.msrb.mxu3 %v8302_v1  ;;  %v9150_v1 = vld [vmem:[#allocation8 + $0x814] sm:$0xf0] }
 0x54b   :  { %v8158_v0 = vor.u32 %v9150_v1, %v8157_v16  ;;  %v8892_v16 = vld [vmem:[#allocation8 + $0xc] sm:$0xf]  ;;  %v7135_v1 = vld [vmem:[#allocation8 + $0x18] sm:$0xf0] }
 0x54d   :  { %v4918_v46 = vpop.f32.mrf.mxu2  ;;  %5129 = vmatpush.bf16.msrb.mxu1 %v8158_v0 }
 0x54e   :  { %v4835_v20 = vpop.f32.mrf.mxu3  ;;  %v11296_v51 = vadd.f32 %v4918_v46, %v4875_v32 }
 0x54f   :  { %v4836_v34 = vadd.f32 %v4835_v20, %v4792_v39  ;;  %v4877_v3 = vpop.f32.mrf.mxu0  ;;  %v7279_v39 = vld [vmem:[#allocation8 + $0x138] sm:$0xf0]  ;;  %v8896_v20 = vld [vmem:[#allocation8 + $0x2c] sm:$0xf] }
 0x550   :  { %v4794_v22 = vpop.f32.mrf.mxu1  ;;  %v4878_v9 = vadd.f32 %v4877_v3, %v4834_v40  ;;  %v7282_v46 = vor.u32 %v8928_v41, %v7279_v39  ;;  %v7151_v3 = vld [vmem:[#allocation8 + $0x38] sm:$0xf0] }
 0x551   :  { %v4795_v6 = vadd.f32 %v4794_v22, %v11266_v37  ;;  %v7154_v54 = vor.u32 %v8896_v20, %v7151_v3 }
 0x552   :  { %5057 = vmatmul.bf16.gmra.mxu0 %v11927_v12  ;;  %5101 = vmatmul.bf16.gmra.mxu2 %v11928_v29 }
 0x553   :  { %4974 = vmatmul.bf16.gmra.mxu1 %v10758_v5  ;;  %5018 = vmatmul.bf16.gmra.mxu3 %v10762_v60 }
 0x554   :  { %5260 = vmatpush.bf16.msrb.mxu2 %v7282_v46  ;;  %5216 = vmatpush.bf16.msrb.mxu0 %v7154_v54 }
 0x555   :  { %v4921_v50 = vpop.f32.mrf.mxu2 }
 0x556   :  { %v4838_v32 = vpop.f32.mrf.mxu3  ;;  %v11303_v49 = vadd.f32 %v4921_v50, %v4878_v9 }
 0x557   :  { %v4839_v43 = vadd.f32 %v4838_v32, %v4795_v6  ;;  %v4879_v40 = vpop.f32.mrf.mxu0  ;;  %v8285_v6 = vld [vmem:[#allocation8 + $0x908] sm:$0xf] }
 0x558   :  { %v4796_v14 = vpop.f32.mrf.mxu1  ;;  %v4880_v53 = vadd.f32 %v4879_v40, %v4836_v34  ;;  %v9182_v34 = vld [vmem:[#allocation8 + $0x914] sm:$0xf0] }
 0x559   :  { %v4797_v22 = vadd.f32 %v4796_v14, %v11266_v37  ;;  %v8286_v19 = vor.u32 %v9182_v34, %v8285_v6  ;;  %v8924_v14 = vld [vmem:[#allocation8 + $0x10c] sm:$0xf]  ;;  %v7138_v6 = vor.u32 %v8892_v16, %v7135_v1 }
 0x55b   :  { %5173 = vmatpush.bf16.msrb.mxu3 %v8286_v19  ;;  %5217 = vmatpush.bf16.msrb.mxu0 %v7138_v6 }
 0x55d   :  { %v4923_v9 = vpop.f32.mrf.mxu2 }
 0x55e   :  { %v4840_v50 = vpop.f32.mrf.mxu3  ;;  %v11306_v32 = vadd.f32 %v4923_v9, %v4880_v53  ;;  %v7263_v53 = vld [vmem:[#allocation8 + $0x118] sm:$0xf0] }
 0x55f   :  { %v4841_v40 = vadd.f32 %v4840_v50, %v4797_v22  ;;  %v4882_v35 = vpop.f32.mrf.mxu0  ;;  %v7266_v44 = vor.u32 %v8924_v14, %v7263_v53  ;;  %v9016_v53 = vld [vmem:[#allocation8 + $0x3ec] sm:$0xf] }
 0x560   :  { %v4799_v41 = vpop.f32.mrf.mxu1  ;;  %v4883_v39 = vadd.f32 %v4882_v35, %v4839_v43 }
 0x561   :  { %v4800_v46 = vadd.f32 %v4799_v41, %v11266_v37  ;;  %5261 = vmatpush.bf16.msrb.mxu2 %v7266_v44 }
 0x562   :  { %5062 = vmatmul.bf16.gmra.mxu0 %v11930_v7  ;;  %5106 = vmatmul.bf16.gmra.mxu2 %v11931_v23 }
 0x563   :  { %4979 = vmatmul.bf16.gmra.mxu1 %v10806_v45  ;;  %5023 = vmatmul.bf16.gmra.mxu3 %v10808_v8 }
 0x565   :  { %v4926_v20 = vpop.f32.mrf.mxu2 }
 0x566   :  { %v4843_v3 = vpop.f32.mrf.mxu3  ;;  %v11313_v54 = vadd.f32 %v4926_v20, %v4883_v39  ;;  %v7631_v39 = vld [vmem:[#allocation8 + $0x3f8] sm:$0xf0] }
 0x567   :  { %v4844_v0 = vadd.f32 %v4843_v3, %v4800_v46  ;;  %v4884_v43 = vpop.f32.mrf.mxu0  ;;  %v7634_v46 = vor.u32 %v9016_v53, %v7631_v39  ;;  %v7503_v3 = vld [vmem:[#allocation8 + $0x2f8] sm:$0xf0] }
 0x568   :  { %v4801_v22 = vpop.f32.mrf.mxu1  ;;  %v4885_v9 = vadd.f32 %v4884_v43, %v4841_v40  ;;  %v8984_v40 = vld [vmem:[#allocation8 + $0x2ec] sm:$0xf]  ;;  %v7759_v53 = vld [vmem:[#allocation8 + $0x4f8] sm:$0xf0] }
 0x569   :  { %v4802_v50 = vadd.f32 %v4801_v22, %v11266_v37  ;;  %v9080_v43 = vld [vmem:[#allocation8 + $0x5ec] sm:$0xf]  ;;  %5342 = vmatpush.bf16.msra.mxu3 %v7634_v46  ;;  %v7506_v22 = vor.u32 %v8984_v40, %v7503_v3  ;;  %v7615_v46 = vld [vmem:[#allocation8 + $0x3d8] sm:$0xf0] }
 0x56a   :  { %v7618_v40 = vor.u32 %v9012_v33, %v7615_v46  ;;  %v7871_v33 = vld [vmem:[#allocation8 + $0x5d8] sm:$0xf0] }
 0x56b   :  { %5298 = vmatpush.bf16.msra.mxu1 %v7506_v22 }
 0x56d   :  { %v4928_v34 = vpop.f32.mrf.mxu2  ;;  %5343 = vmatpush.bf16.msra.mxu3 %v7618_v40 }
 0x56e   :  { %v4845_v35 = vpop.f32.mrf.mxu3  ;;  %v11316_v19 = vadd.f32 %v4928_v34, %v4885_v9  ;;  %v7887_v9 = vld [vmem:[#allocation8 + $0x5f8] sm:$0xf0] }
 0x56f   :  { %v4846_v41 = vadd.f32 %v4845_v35, %v4802_v50  ;;  %v4887_v14 = vpop.f32.mrf.mxu0  ;;  %v7890_v6 = vor.u32 %v9080_v43, %v7887_v9 }
 0x570   :  { %v4804_v20 = vpop.f32.mrf.mxu1  ;;  %v4888_v44 = vadd.f32 %v4887_v14, %v4844_v0  ;;  %v9048_v14 = vld [vmem:[#allocation8 + $0x4ec] sm:$0xf] }
 0x571   :  { %v4805_v16 = vadd.f32 %v4804_v20, %v11266_v37  ;;  %5430 = vmatpush.bf16.msra.mxu2 %v7890_v6  ;;  %v7762_v25 = vor.u32 %v9048_v14, %v7759_v53  ;;  %v8980_v6 = vld [vmem:[#allocation8 + $0x2cc] sm:$0xf] }
 0x572   :  { %5067 = vmatmul.bf16.gmra.mxu0 %v11933_v36  ;;  %5111 = vmatmul.bf16.gmra.mxu2 %v11934_v21 }
 0x573   :  { %4984 = vmatmul.bf16.gmra.mxu1 %v10848_v2  ;;  %5028 = vmatmul.bf16.gmra.mxu3 %v10852_v10 }
 0x574   :  { %5386 = vmatpush.bf16.msra.mxu0 %v7762_v25 }
 0x575   :  { %v4931_v1 = vpop.f32.mrf.mxu2 }
 0x576   :  { %v4848_v0 = vpop.f32.mrf.mxu3  ;;  %v11323_v50 = vadd.f32 %v4931_v1, %v4888_v44 }
 0x577   :  { %v4849_v34 = vadd.f32 %v4848_v0, %v4805_v16  ;;  %v4889_v35 = vpop.f32.mrf.mxu0  ;;  %v7487_v0 = vld [vmem:[#allocation8 + $0x2d8] sm:$0xf0] }
 0x578   :  { %v4806_v39 = vpop.f32.mrf.mxu1  ;;  %v4890_v58 = vadd.f32 %v4889_v35, %v4846_v41  ;;  %v7490_v25 = vor.u32 %v8980_v6, %v7487_v0  ;;  %v7874_v41 = vor.u32 %v9076_v47, %v7871_v33  ;;  %v7743_v35 = vld [vmem:[#allocation8 + $0x4d8] sm:$0xf0] }
 0x579   :  { %v4807_v20 = vadd.f32 %v4806_v39, %v11266_v37  ;;  %v7599_v6 = vld [vmem:[#allocation8 + $0x3b8] sm:$0xf0] }
 0x57a   :  { %5299 = vmatpush.bf16.msra.mxu1 %v7490_v25  ;;  %5431 = vmatpush.bf16.msra.mxu2 %v7874_v41 }
 0x57d   :  { %v4933_v3 = vpop.f32.mrf.mxu2 }
 0x57e   :  { %v4850_v43 = vpop.f32.mrf.mxu3  ;;  %v11326_v44 = vadd.f32 %v4933_v3, %v4890_v58  ;;  %v9044_v58 = vld [vmem:[#allocation8 + $0x4cc] sm:$0xf] }
 0x57f   :  { %v4851_v22 = vadd.f32 %v4850_v43, %v4807_v20  ;;  %v4892_v9 = vpop.f32.mrf.mxu0  ;;  %v7746_v14 = vor.u32 %v9044_v58, %v7743_v35  ;;  %v8976_v35 = vld [vmem:[#allocation8 + $0x2ac] sm:$0xf] }
 0x580   :  { %v4809_v16 = vpop.f32.mrf.mxu1  ;;  %v4893_v1 = vadd.f32 %v4892_v9, %v4849_v34  ;;  %v9008_v9 = vld [vmem:[#allocation8 + $0x3ac] sm:$0xf] }
 0x581   :  { %v4810_v34 = vadd.f32 %v4809_v16, %v11266_v37  ;;  %5387 = vmatpush.bf16.msra.mxu0 %v7746_v14  ;;  %v7602_v0 = vor.u32 %v9008_v9, %v7599_v6 }
 0x582   :  { %5072 = vmatmul.bf16.gmra.mxu0 %v11937_v61  ;;  %5116 = vmatmul.bf16.gmra.mxu2 %v11938_v56 }
 0x583   :  { %5130 = vmatmul.bf16.vlgmr.msrb.gmra.mxu1 %v10621_v55  ;;  %5174 = vmatmul.bf16.vlgmr.msrb.gmra.mxu3 %v10623_v27 }
 0x584   :  { %5344 = vmatpush.bf16.msra.mxu3 %v7602_v0 }
 0x585   :  { %v4936_v53 = vpop.f32.mrf.mxu2 }
 0x586   :  { %v4853_v39 = vpop.f32.mrf.mxu3  ;;  %v11333_v46 = vadd.f32 %v4936_v53, %v4893_v1  ;;  %v7471_v1 = vld [vmem:[#allocation8 + $0x2b8] sm:$0xf0]  ;;  %v9072_v53 = vld [vmem:[#allocation8 + $0x5ac] sm:$0xf] }
 0x587   :  { %v4854_v40 = vadd.f32 %v4853_v39, %v4810_v34  ;;  %v4894_v20 = vpop.f32.mrf.mxu0  ;;  %v7474_v39 = vor.u32 %v8976_v35, %v7471_v1  ;;  %v8972_v35 = vld [vmem:[#allocation8 + $0x28c] sm:$0xf] }
 0x588   :  { %v4811_v3 = vpop.f32.mrf.mxu1  ;;  %v4895_v43 = vadd.f32 %v4894_v20, %v4851_v22  ;;  %v7858_v20 = vor.u32 %v9072_v53, %v7855_v11  ;;  %v7455_v53 = vld [vmem:[#allocation8 + $0x298] sm:$0xf0] }
 0x589   :  { %v4812_v47 = vadd.f32 %v4811_v3, %v11266_v37  ;;  %v9040_v37 = vld [vmem:[#allocation8 + $0x4ac] sm:$0xf]  ;;  %v7727_v3 = vld [vmem:[#allocation8 + $0x4b8] sm:$0xf0]  ;;  %5300 = vmatpush.bf16.msra.mxu1 %v7474_v39 }
 0x58a   :  { %5432 = vmatpush.bf16.msra.mxu2 %v7858_v20  ;;  %v7839_v39 = vld [vmem:[#allocation8 + $0x598] sm:$0xf0]  ;;  %v7458_v20 = vor.u32 %v8972_v35, %v7455_v53 }
 0x58d   :  { %v4938_v25 = vpop.f32.mrf.mxu2  ;;  %5301 = vmatpush.bf16.msra.mxu1 %v7458_v20 }
 0x58e   :  { %v4855_v33 = vpop.f32.mrf.mxu3  ;;  %v11336_v58 = vadd.f32 %v4938_v25, %v4895_v43  ;;  %v7730_v43 = vor.u32 %v9040_v37, %v7727_v3 }
 0x58f   :  { %v4856_v16 = vadd.f32 %v4855_v33, %v4812_v47  ;;  %v4897_v41 = vpop.f32.mrf.mxu0  ;;  %v9004_v33 = vld [vmem:[#allocation8 + $0x38c] sm:$0xf] }
 0x590   :  { %v4898_v14 = vadd.f32 %v4897_v41, %v4854_v40  ;;  %v4955_v34 = vpop.f32.mrf.mxu1  ;;  %5388 = vmatpush.bf16.msra.mxu0 %v7730_v43  ;;  %v7583_v41 = vld [vmem:[#allocation8 + $0x398] sm:$0xf0] }
 0x591   :  { %v4956_v22 = vadd.f32 %v4955_v34, %v11283_v62  ;;  %v7586_v1 = vor.u32 %v9004_v33, %v7583_v41  ;;  %v9068_v34 = vld [vmem:[#allocation8 + $0x58c] sm:$0xf] }
 0x592   :  { %5218 = vmatmul.bf16.vlgmr.msrb.gmra.mxu0 %v11913_v31  ;;  %5262 = vmatmul.bf16.vlgmr.msrb.gmra.mxu2 %v11913_v31  ;;  %v7842_v37 = vor.u32 %v9068_v34, %v7839_v39 }
 0x593   :  { %5135 = vmatmul.bf16.gmra.mxu1 %v10675_v59  ;;  %5179 = vmatmul.bf16.gmra.mxu3 %v10677_v26 }
 0x594   :  { %5345 = vmatpush.bf16.msra.mxu3 %v7586_v1  ;;  %5433 = vmatpush.bf16.msra.mxu2 %v7842_v37  ;;  %v9000_v1 = vld [vmem:[#allocation8 + $0x36c] sm:$0xf] }
 0x595   :  { %v4941_v40 = vpop.f32.mrf.mxu2  ;;  %v8968_v37 = vld [vmem:[#allocation8 + $0x26c] sm:$0xf] }
 0x596   :  { %v11343_v9 = vadd.f32 %v4941_v40, %v4898_v14  ;;  %v4999_v6 = vpop.f32.mrf.mxu3 }
 0x597   :  { %v5000_v62 = vadd.f32 %v4999_v6, %v4956_v22  ;;  %v4899_v11 = vpop.f32.mrf.mxu0 }
 0x598   :  { %v4900_v0 = vadd.f32 %v4899_v11, %v4856_v16  ;;  %v4957_v47 = vpop.f32.mrf.mxu1  ;;  %v9036_v11 = vld [vmem:[#allocation8 + $0x48c] sm:$0xf] }
 0x599   :  { %v4958_v25 = vadd.f32 %v4957_v47, %v11286_v42  ;;  %v7711_v47 = vld [vmem:[#allocation8 + $0x498] sm:$0xf0] }
 0x59a   :  { %v7714_v33 = vor.u32 %v9036_v11, %v7711_v47 }
 0x59c   :  { %5389 = vmatpush.bf16.msra.mxu0 %v7714_v33 }
 0x59d   :  { %v4943_v14 = vpop.f32.mrf.mxu2 }
 0x59e   :  { %v11346_v3 = vadd.f32 %v4943_v14, %v4900_v0  ;;  %v5001_v22 = vpop.f32.mrf.mxu3  ;;  %v7439_v14 = vld [vmem:[#allocation8 + $0x278] sm:$0xf0] }
 0x59f   :  { %v5002_v16 = vadd.f32 %v5001_v22, %v4958_v25  ;;  %v5043_v43 = vpop.f32.mrf.mxu0  ;;  %v9064_v22 = vld [vmem:[#allocation8 + $0x56c] sm:$0xf] }
 0x5a0   :  { %v4960_v40 = vpop.f32.mrf.mxu1  ;;  %v5044_v42 = vadd.f32 %v5043_v43, %v5000_v62  ;;  %v7442_v43 = vor.u32 %v8968_v37, %v7439_v14 }
 0x5a1   :  { %v4961_v6 = vadd.f32 %v4960_v40, %v11293_v24  ;;  %v7567_v24 = vld [vmem:[#allocation8 + $0x378] sm:$0xf0] }
 0x5a2   :  { %5223 = vmatmul.bf16.gmra.mxu0 %v11904_v28  ;;  %5267 = vmatmul.bf16.gmra.mxu2 %v11905_v48  ;;  %v7570_v39 = vor.u32 %v9000_v1, %v7567_v24  ;;  %v7823_v40 = vld [vmem:[#allocation8 + $0x578] sm:$0xf0] }
 0x5a3   :  { %5140 = vmatmul.bf16.gmra.mxu1 %v10712_v17  ;;  %5184 = vmatmul.bf16.gmra.mxu3 %v10714_v18  ;;  %v7826_v11 = vor.u32 %v9064_v22, %v7823_v40 }
 0x5a4   :  { %5346 = vmatpush.bf16.msra.mxu3 %v7570_v39  ;;  %5302 = vmatpush.bf16.msra.mxu1 %v7442_v43 }
 0x5a5   :  { %v5087_v0 = vpop.f32.mrf.mxu2  ;;  %5434 = vmatpush.bf16.msra.mxu2 %v7826_v11  ;;  %v8964_v11 = vld [vmem:[#allocation8 + $0x24c] sm:$0xf] }
 0x5a6   :  { %v5004_v41 = vpop.f32.mrf.mxu3  ;;  %v11353_v25 = vadd.f32 %v5087_v0, %v5044_v42 }
 0x5a7   :  { %v5005_v35 = vadd.f32 %v5004_v41, %v4961_v6  ;;  %v5045_v62 = vpop.f32.mrf.mxu0  ;;  %v9032_v41 = vld [vmem:[#allocation8 + $0x46c] sm:$0xf] }
 0x5a8   :  { %v4962_v53 = vpop.f32.mrf.mxu1  ;;  %v5046_v34 = vadd.f32 %v5045_v62, %v5002_v16  ;;  %v7695_v16 = vld [vmem:[#allocation8 + $0x478] sm:$0xf0] }
 0x5a9   :  { %v4963_v20 = vadd.f32 %v4962_v53, %v11296_v51  ;;  %v7698_v51 = vor.u32 %v9032_v41, %v7695_v16  ;;  %v8996_v53 = vld [vmem:[#allocation8 + $0x34c] sm:$0xf]  ;;  %v7807_v41 = vld [vmem:[#allocation8 + $0x558] sm:$0xf0] }
 0x5aa   :  { %v9028_v16 = vld [vmem:[#allocation8 + $0x44c] sm:$0xf] }
 0x5ab   :  { %5390 = vmatpush.bf16.msra.mxu0 %v7698_v51 }
 0x5ad   :  { %v5089_v47 = vpop.f32.mrf.mxu2 }
 0x5ae   :  { %v5006_v42 = vpop.f32.mrf.mxu3  ;;  %v11356_v6 = vadd.f32 %v5089_v47, %v5046_v34  ;;  %v7551_v34 = vld [vmem:[#allocation8 + $0x358] sm:$0xf0] }
 0x5af   :  { %v5007_v33 = vadd.f32 %v5006_v42, %v4963_v20  ;;  %v5048_v0 = vpop.f32.mrf.mxu0  ;;  %v7554_v39 = vor.u32 %v8996_v53, %v7551_v34  ;;  %v7423_v47 = vld [vmem:[#allocation8 + $0x258] sm:$0xf0]  ;;  %v9060_v42 = vld [vmem:[#allocation8 + $0x54c] sm:$0xf] }
 0x5b0   :  { %v4965_v62 = vpop.f32.mrf.mxu1  ;;  %v5049_v1 = vadd.f32 %v5048_v0, %v5005_v35  ;;  %v7426_v0 = vor.u32 %v8964_v11, %v7423_v47  ;;  %v7810_v51 = vor.u32 %v9060_v42, %v7807_v41  ;;  %v9056_v41 = vld [vmem:[#allocation8 + $0x52c] sm:$0xf] }
 0x5b1   :  { %v4966_v24 = vadd.f32 %v4965_v62, %v11303_v49  ;;  %5347 = vmatpush.bf16.msra.mxu3 %v7554_v39  ;;  %v7679_v62 = vld [vmem:[#allocation8 + $0x458] sm:$0xf0] }
 0x5b2   :  { %5228 = vmatmul.bf16.gmra.mxu0 %v10621_v55  ;;  %5272 = vmatmul.bf16.gmra.mxu2 %v10623_v27  ;;  %v7682_v53 = vor.u32 %v9028_v16, %v7679_v62 }
 0x5b3   :  { %5145 = vmatmul.bf16.gmra.mxu1 %v10758_v5  ;;  %5189 = vmatmul.bf16.gmra.mxu3 %v10762_v60 }
 0x5b4   :  { %5303 = vmatpush.bf16.msra.mxu1 %v7426_v0  ;;  %5435 = vmatpush.bf16.msra.mxu2 %v7810_v51  ;;  %v8960_v0 = vld [vmem:[#allocation8 + $0x22c] sm:$0xf] }
 0x5b5   :  { %v5092_v20 = vpop.f32.mrf.mxu2  ;;  %5391 = vmatpush.bf16.msra.mxu0 %v7682_v53  ;;  %v7791_v53 = vld [vmem:[#allocation8 + $0x538] sm:$0xf0] }
 0x5b6   :  { %v5009_v37 = vpop.f32.mrf.mxu3  ;;  %v11363_v14 = vadd.f32 %v5092_v20, %v5049_v1 }
 0x5b7   :  { %v5010_v35 = vadd.f32 %v5009_v37, %v4966_v24  ;;  %v5050_v22 = vpop.f32.mrf.mxu0 }
 0x5b8   :  { %v4967_v49 = vpop.f32.mrf.mxu1  ;;  %v5051_v43 = vadd.f32 %v5050_v22, %v5007_v33  ;;  %v8992_v22 = vld [vmem:[#allocation8 + $0x32c] sm:$0xf] }
 0x5b9   :  { %v4968_v40 = vadd.f32 %v4967_v49, %v11306_v32  ;;  %v7535_v49 = vld [vmem:[#allocation8 + $0x338] sm:$0xf0] }
 0x5ba   :  { %v7538_v11 = vor.u32 %v8992_v22, %v7535_v49  ;;  %v8956_v49 = vld [vmem:[#allocation8 + $0x20c] sm:$0xf] }
 0x5bc   :  { %5348 = vmatpush.bf16.msra.mxu3 %v7538_v11  ;;  %v8988_v11 = vld [vmem:[#allocation8 + $0x30c] sm:$0xf] }
 0x5bd   :  { %v5094_v34 = vpop.f32.mrf.mxu2 }
 0x5be   :  { %v5011_v1 = vpop.f32.mrf.mxu3  ;;  %v11366_v24 = vadd.f32 %v5094_v34, %v5051_v43 }
 0x5bf   :  { %v5012_v39 = vadd.f32 %v5011_v1, %v4968_v40  ;;  %v5053_v33 = vpop.f32.mrf.mxu0  ;;  %v7794_v1 = vor.u32 %v9056_v41, %v7791_v53 }
 0x5c0   :  { %v4970_v20 = vpop.f32.mrf.mxu1  ;;  %v5054_v32 = vadd.f32 %v5053_v33, %v5010_v35  ;;  %v9024_v33 = vld [vmem:[#allocation8 + $0x42c] sm:$0xf] }
 0x5c1   :  { %v4971_v37 = vadd.f32 %v4970_v20, %v11313_v54  ;;  %v7407_v54 = vld [vmem:[#allocation8 + $0x238] sm:$0xf0]  ;;  %5436 = vmatpush.bf16.msra.mxu2 %v7794_v1 }
 0x5c2   :  { %5233 = vmatmul.bf16.gmra.mxu0 %v10675_v59  ;;  %5277 = vmatmul.bf16.gmra.mxu2 %v10677_v26  ;;  %v7410_v51 = vor.u32 %v8960_v0, %v7407_v54  ;;  %v7663_v20 = vld [vmem:[#allocation8 + $0x438] sm:$0xf0] }
 0x5c3   :  { %5150 = vmatmul.bf16.gmra.mxu1 %v10806_v45  ;;  %5194 = vmatmul.bf16.gmra.mxu3 %v10808_v8  ;;  %v7666_v22 = vor.u32 %v9024_v33, %v7663_v20 }
 0x5c4   :  { %5304 = vmatpush.bf16.msra.mxu1 %v7410_v51  ;;  %v7775_v51 = vld [vmem:[#allocation8 + $0x518] sm:$0xf0] }
 0x5c5   :  { %v5097_v47 = vpop.f32.mrf.mxu2  ;;  %5392 = vmatpush.bf16.msra.mxu0 %v7666_v22 }
 0x5c6   :  { %v5014_v43 = vpop.f32.mrf.mxu3  ;;  %v11373_v42 = vadd.f32 %v5097_v47, %v5054_v32 }
 0x5c7   :  { %v5015_v40 = vadd.f32 %v5014_v43, %v4971_v37  ;;  %v5055_v35 = vpop.f32.mrf.mxu0  ;;  %v7391_v37 = vld [vmem:[#allocation8 + $0x218] sm:$0xf0] }
 0x5c8   :  { %v4972_v16 = vpop.f32.mrf.mxu1  ;;  %v5056_v62 = vadd.f32 %v5055_v35, %v5012_v39  ;;  %v7394_v4 = vor.u32 %v8956_v49, %v7391_v37  ;;  %v7519_v39 = vld [vmem:[#allocation8 + $0x318] sm:$0xf0] }
 0x5c9   :  { %v4973_v34 = vadd.f32 %v4972_v16, %v11316_v19  ;;  %v7522_v54 = vor.u32 %v8988_v11, %v7519_v39  ;;  %v7647_v49 = vld [vmem:[#allocation8 + $0x418] sm:$0xf0] }
 0x5ca   :  { %5305 = vmatpush.bf16.msra.mxu1 %v7394_v4 }
 0x5cb   :  { %5349 = vmatpush.bf16.msra.mxu3 %v7522_v54 }
 0x5cd   :  { %v5099_v32 = vpop.f32.mrf.mxu2 }
 0x5ce   :  { %v5016_v47 = vpop.f32.mrf.mxu3  ;;  %v11376_v43 = vadd.f32 %v5099_v32, %v5056_v62  ;;  %v9052_v62 = vld [vmem:[#allocation8 + $0x50c] sm:$0xf] }
 0x5cf   :  { %v5017_v35 = vadd.f32 %v5016_v47, %v4973_v34  ;;  %v5058_v0 = vpop.f32.mrf.mxu0  ;;  %v7778_v53 = vor.u32 %v9052_v62, %v7775_v51  ;;  %v9020_v32 = vld [vmem:[#allocation8 + $0x40c] sm:$0xf] }
 0x5d0   :  { %v4975_v19 = vpop.f32.mrf.mxu1  ;;  %v5059_v41 = vadd.f32 %v5058_v0, %v5015_v40  ;;  %v7650_v37 = vor.u32 %v9020_v32, %v7647_v49 }
 0x5d1   :  { %v4976_v16 = vadd.f32 %v4975_v19, %v11323_v50  ;;  %5437 = vmatpush.bf16.msra.mxu2 %v7778_v53  ;;  %v9144_v19 = vld [vmem:[#allocation8 + $0x7ec] sm:$0xf] }
 0x5d2   :  { %5238 = vmatmul.bf16.gmra.mxu0 %v10712_v17  ;;  %5282 = vmatmul.bf16.gmra.mxu2 %v10714_v18 }
 0x5d3   :  { %5155 = vmatmul.bf16.gmra.mxu1 %v10848_v2  ;;  %5199 = vmatmul.bf16.gmra.mxu3 %v10852_v10 }
 0x5d4   :  { %5393 = vmatpush.bf16.msra.mxu0 %v7650_v37 }
 0x5d5   :  { %v5102_v34 = vpop.f32.mrf.mxu2 }
 0x5d6   :  { %v5019_v1 = vpop.f32.mrf.mxu3  ;;  %v11383_v33 = vadd.f32 %v5102_v34, %v5059_v41  ;;  %v8143_v41 = vld [vmem:[#allocation8 + $0x7f8] sm:$0xf0]  ;;  %v9208_v34 = vld [vmem:[#allocation8 + $0x9ec] sm:$0xf] }
 0x5d7   :  { %v5020_v4 = vadd.f32 %v5019_v1, %v4976_v16  ;;  %v5060_v40 = vpop.f32.mrf.mxu0  ;;  %v8146_v16 = vor.u32 %v9144_v19, %v8143_v41  ;;  %v9140_v19 = vld [vmem:[#allocation8 + $0x7cc] sm:$0xf] }
 0x5d8   :  { %v4977_v50 = vpop.f32.mrf.mxu1  ;;  %v5061_v20 = vadd.f32 %v5060_v40, %v5017_v35  ;;  %v8015_v35 = vld [vmem:[#allocation8 + $0x6f8] sm:$0xf0] }
 0x5d9   :  { %v4978_v22 = vadd.f32 %v4977_v50, %v11326_v44  ;;  %v9112_v44 = vld [vmem:[#allocation8 + $0x6ec] sm:$0xf]  ;;  %5518 = vmatpush.bf16.msrb.mxu3 %v8146_v16  ;;  %v8399_v40 = vld [vmem:[#allocation8 + $0x9f8] sm:$0xf0] }
 0x5da   :  { %v8018_v1 = vor.u32 %v9112_v44, %v8015_v35 }
 0x5dc   :  { %5474 = vmatpush.bf16.msrb.mxu1 %v8018_v1 }
 0x5dd   :  { %v5104_v11 = vpop.f32.mrf.mxu2 }
 0x5de   :  { %v5021_v47 = vpop.f32.mrf.mxu3  ;;  %v11386_v39 = vadd.f32 %v5104_v11, %v5061_v20  ;;  %v8402_v20 = vor.u32 %v9208_v34, %v8399_v40 }
 0x5df   :  { %v5022_v0 = vadd.f32 %v5021_v47, %v4978_v22  ;;  %v5063_v54 = vpop.f32.mrf.mxu0  ;;  %v9176_v47 = vld [vmem:[#allocation8 + $0x8ec] sm:$0xf] }
 0x5e0   :  { %v4980_v62 = vpop.f32.mrf.mxu1  ;;  %v5064_v51 = vadd.f32 %v5063_v54, %v5020_v4  ;;  %5606 = vmatpush.bf16.msrb.mxu2 %v8402_v20  ;;  %v8271_v54 = vld [vmem:[#allocation8 + $0x8f8] sm:$0xf0]  ;;  %v9108_v20 = vld [vmem:[#allocation8 + $0x6cc] sm:$0xf] }
 0x5e1   :  { %v4981_v53 = vadd.f32 %v4980_v62, %v11333_v46  ;;  %v8274_v41 = vor.u32 %v9176_v47, %v8271_v54  ;;  %v8127_v62 = vld [vmem:[#allocation8 + $0x7d8] sm:$0xf0] }
 0x5e2   :  { %5243 = vmatmul.bf16.gmra.mxu0 %v10758_v5  ;;  %5287 = vmatmul.bf16.gmra.mxu2 %v10762_v60  ;;  %v8130_v16 = vor.u32 %v9140_v19, %v8127_v62  ;;  %v8383_v47 = vld [vmem:[#allocation8 + $0x9d8] sm:$0xf0] }
 0x5e3   :  { %5160 = vmatmul.bf16.gmra.mxu1 %v11913_v31  ;;  %5204 = vmatmul.bf16.gmra.mxu3 %v11913_v31  ;;  %v8255_v54 = vld [vmem:[#allocation8 + $0x8d8] sm:$0xf0] }
 0x5e4   :  { %5562 = vmatpush.bf16.msrb.mxu0 %v8274_v41  ;;  %5519 = vmatpush.bf16.msrb.mxu3 %v8130_v16 }
 0x5e5   :  { %v5107_v50 = vpop.f32.mrf.mxu2 }
 0x5e6   :  { %v5024_v4 = vpop.f32.mrf.mxu3  ;;  %v11393_v22 = vadd.f32 %v5107_v50, %v5064_v51 }
 0x5e7   :  { %v5025_v46 = vadd.f32 %v5024_v4, %v4981_v53  ;;  %v5065_v32 = vpop.f32.mrf.mxu0  ;;  %v7999_v4 = vld [vmem:[#allocation8 + $0x6d8] sm:$0xf0] }
 0x5e8   :  { %v4982_v49 = vpop.f32.mrf.mxu1  ;;  %v5066_v37 = vadd.f32 %v5065_v32, %v5022_v0  ;;  %v9204_v32 = vld [vmem:[#allocation8 + $0x9cc] sm:$0xf] }
 0x5e9   :  { %v4983_v11 = vadd.f32 %v4982_v49, %v11336_v58  ;;  %v11946_v58 = vld [vmem:[#allocation49_spill] sm:$0xff]  ;;  %v8386_v41 = vor.u32 %v9204_v32, %v8383_v47  ;;  %v9200_v47 = vld [vmem:[#allocation8 + $0x9ac] sm:$0xf] }
 0x5eb   :  { %5607 = vmatpush.bf16.msrb.mxu2 %v8386_v41  ;;  %v9168_v41 = vld [vmem:[#allocation8 + $0x8ac] sm:$0xf] }
 0x5ed   :  { %v5109_v44 = vpop.f32.mrf.mxu2 }
 0x5ee   :  { %v5026_v35 = vpop.f32.mrf.mxu3  ;;  %v11396_v51 = vadd.f32 %v5109_v44, %v5066_v37 }
 0x5ef   :  { %v5027_v34 = vadd.f32 %v5026_v35, %v4983_v11  ;;  %v5068_v53 = vpop.f32.mrf.mxu0  ;;  %v8002_v11 = vor.u32 %v9108_v20, %v7999_v4  ;;  %v9136_v35 = vld [vmem:[#allocation8 + $0x7ac] sm:$0xf] }
 0x5f0   :  { %v4985_v1 = vpop.f32.mrf.mxu1  ;;  %v5069_v40 = vadd.f32 %v5068_v53, %v5025_v46  ;;  %v9172_v46 = vld [vmem:[#allocation8 + $0x8cc] sm:$0xf]  ;;  %v8111_v53 = vld [vmem:[#allocation8 + $0x7b8] sm:$0xf0] }
 0x5f1   :  { %v4986_v0 = vadd.f32 %v4985_v1, %v11343_v9  ;;  %v8258_v62 = vor.u32 %v9172_v46, %v8255_v54  ;;  %5475 = vmatpush.bf16.msrb.mxu1 %v8002_v11  ;;  %v8114_v1 = vor.u32 %v9136_v35, %v8111_v53  ;;  %v7983_v11 = vld [vmem:[#allocation8 + $0x6b8] sm:$0xf0]  ;;  %v9132_v53 = vld [vmem:[#allocation8 + $0x78c] sm:$0xf] }
 0x5f2   :  { %5248 = vmatmul.bf16.gmra.mxu0 %v10806_v45  ;;  %5292 = vmatmul.bf16.gmra.mxu2 %v10808_v8 }
 0x5f3   :  { %5306 = vmatmul.bf16.vlgmr.msra.gmra.mxu1 %v11916_v52  ;;  %5350 = vmatmul.bf16.vlgmr.msra.gmra.mxu3 %v11946_v58 }
 0x5f4   :  { %5563 = vmatpush.bf16.msrb.mxu0 %v8258_v62  ;;  %5520 = vmatpush.bf16.msrb.mxu3 %v8114_v1  ;;  %v8239_v62 = vld [vmem:[#allocation8 + $0x8b8] sm:$0xf0] }
 0x5f5   :  { %v5112_v50 = vpop.f32.mrf.mxu2  ;;  %v8095_v1 = vld [vmem:[#allocation8 + $0x798] sm:$0xf0] }
 0x5f6   :  { %v5029_v49 = vpop.f32.mrf.mxu3  ;;  %v11403_v37 = vadd.f32 %v5112_v50, %v5069_v40 }
 0x5f7   :  { %v5030_v9 = vadd.f32 %v5029_v49, %v4986_v0  ;;  %v5070_v19 = vpop.f32.mrf.mxu0 }
 0x5f8   :  { %v4987_v16 = vpop.f32.mrf.mxu1  ;;  %v5071_v44 = vadd.f32 %v5070_v19, %v5027_v34  ;;  %v9104_v34 = vld [vmem:[#allocation8 + $0x6ac] sm:$0xf] }
 0x5f9   :  { %v4988_v52 = vadd.f32 %v4987_v16, %v11346_v3  ;;  %v7986_v19 = vor.u32 %v9104_v34, %v7983_v11 }
 0x5fb   :  { %5476 = vmatpush.bf16.msrb.mxu1 %v7986_v19 }
 0x5fd   :  { %v5114_v40 = vpop.f32.mrf.mxu2 }
 0x5fe   :  { %v5031_v58 = vpop.f32.mrf.mxu3  ;;  %v11406_v50 = vadd.f32 %v5114_v40, %v5071_v44  ;;  %v8242_v44 = vor.u32 %v9168_v41, %v8239_v62  ;;  %v8098_v40 = vor.u32 %v9132_v53, %v8095_v1  ;;  %v8223_v53 = vld [vmem:[#allocation8 + $0x898] sm:$0xf0] }
 0x5ff   :  { %v5032_v20 = vadd.f32 %v5031_v58, %v4988_v52  ;;  %v5073_v0 = vpop.f32.mrf.mxu0  ;;  %v9100_v58 = vld [vmem:[#allocation8 + $0x68c] sm:$0xf] }
 0x600   :  { %v5074_v4 = vadd.f32 %v5073_v0, %v5030_v9  ;;  %v5131_v32 = vpop.f32.mrf.mxu1  ;;  %v8367_v9 = vld [vmem:[#allocation8 + $0x9b8] sm:$0xf0]  ;;  %5564 = vmatpush.bf16.msrb.mxu0 %v8242_v44  ;;  %5521 = vmatpush.bf16.msrb.mxu3 %v8098_v40 }
 0x601   :  { %v5132_v49 = vadd.f32 %v5131_v32, %v11353_v25  ;;  %v7967_v0 = vld [vmem:[#allocation8 + $0x698] sm:$0xf0] }
 0x602   :  { %5394 = vmatmul.bf16.vlgmr.msra.gmra.mxu0 %v11904_v28  ;;  %5438 = vmatmul.bf16.vlgmr.msra.gmra.mxu2 %v11905_v48  ;;  %v8370_v28 = vor.u32 %v9200_v47, %v8367_v9  ;;  %v7970_v32 = vor.u32 %v9100_v58, %v7967_v0  ;;  %v9354_v47 = vld [vmem:[#allocation10] sm:$0xf] }
 0x603   :  { %5311 = vmatmul.bf16.gmra.mxu1 %v11918_v13  ;;  %5355 = vmatmul.bf16.gmra.mxu3 %v11919_v57 }
 0x604   :  { %5608 = vmatpush.bf16.msrb.mxu2 %v8370_v28  ;;  %5477 = vmatpush.bf16.msrb.mxu1 %v7970_v32 }
 0x605   :  { %v5117_v3 = vpop.f32.mrf.mxu2 }
 0x606   :  { %v11413_v46 = vadd.f32 %v5117_v3, %v5074_v4  ;;  %v5175_v54 = vpop.f32.mrf.mxu3  ;;  %v9196_v4 = vld [vmem:[#allocation8 + $0x98c] sm:$0xf]  ;;  %v8351_v3 = vld [vmem:[#allocation8 + $0x998] sm:$0xf0] }
 0x607   :  { %v5176_v25 = vadd.f32 %v5175_v54, %v5132_v49  ;;  %v5075_v16 = vpop.f32.mrf.mxu0  ;;  %v8354_v49 = vor.u32 %v9196_v4, %v8351_v3  ;;  %v11418_v54 = vperm.slane %v9354_v47, 3  ;;  %v9128_v3 = vld [vmem:[#allocation8 + $0x76c] sm:$0xf]  ;;  %v7951_v47 = vld [vmem:[#allocation8 + $0x678] sm:$0xf0] }
 0x608   :  { %v5076_v48 = vadd.f32 %v5075_v16, %v5032_v20  ;;  %v5133_v52 = vpop.f32.mrf.mxu1 }
 0x609   :  { %v5134_v35 = vadd.f32 %v5133_v52, %v11356_v6  ;;  %5609 = vmatpush.bf16.msrb.mxu2 %v8354_v49  ;;  %v5652_v41 = vmax.f32 %v5176_v25, 0.0  ;;  %v9164_v25 = vld [vmem:[#allocation8 + $0x88c] sm:$0xf]  ;;  %v8079_v49 = vld [vmem:[#allocation8 + $0x778] sm:$0xf0] }
 0x60a   :  { %v8226_v40 = vor.u32 %v9164_v25, %v8223_v53  ;;  %v9156_v52 = vld [vmem:[#allocation8 + $0x84c] sm:$0xf] }
 0x60c   :  { %5565 = vmatpush.bf16.msrb.mxu0 %v8226_v40 }
 0x60d   :  { %v5119_v34 = vpop.f32.mrf.mxu2 }
 0x60e   :  { %v11416_v11 = vadd.f32 %v5119_v34, %v5076_v48  ;;  %v5177_v20 = vpop.f32.mrf.mxu3  ;;  %v11947_v48 = vld [vmem:[#allocation29_spill] sm:$0xff]  ;;  %v8082_v34 = vor.u32 %v9128_v3, %v8079_v49 }
 0x60f   :  { %v5178_v6 = vadd.f32 %v5177_v20, %v5134_v35  ;;  %v5219_v19 = vpop.f32.mrf.mxu0  ;;  %v9096_v20 = vld [vmem:[#allocation8 + $0x66c] sm:$0xf]  ;;  %v8319_v49 = vld [vmem:[#allocation8 + $0x958] sm:$0xf0] }
 0x610   :  { %v5136_v9 = vpop.f32.mrf.mxu1  ;;  %v5220_v28 = vadd.f32 %v5219_v19, %v11418_v54  ;;  %v7954_v19 = vor.u32 %v9096_v20, %v7951_v47  ;;  %5522 = vmatpush.bf16.msrb.mxu3 %v8082_v34  ;;  %v8207_v20 = vld [vmem:[#allocation8 + $0x878] sm:$0xf0]  ;;  %v9124_v47 = vld [vmem:[#allocation8 + $0x74c] sm:$0xf] }
 0x611   :  { %v5656_v62 = vmax.f32 %v5178_v6, 0.0  ;;  %v5137_v16 = vadd.f32 %v5136_v9, %v11363_v14  ;;  %v9192_v6 = vld [vmem:[#allocation8 + $0x96c] sm:$0xf]  ;;  %v8335_v9 = vld [vmem:[#allocation8 + $0x978] sm:$0xf0] }
 0x612   :  { %5399 = vmatmul.bf16.gmra.mxu0 %v10621_v55  ;;  %5443 = vmatmul.bf16.gmra.mxu2 %v10623_v27 }
 0x613   :  { %v11424_v44 = vmax.f32 %v5652_v41, %v5656_v62  ;;  %5316 = vmatmul.bf16.gmra.mxu1 %v11921_v38  ;;  %5360 = vmatmul.bf16.gmra.mxu3 %v11922_v15  ;;  %v8338_v62 = vor.u32 %v9192_v6, %v8335_v9  ;;  %v8063_v9 = vld [vmem:[#allocation8 + $0x758] sm:$0xf0] }
 0x614   :  { %5478 = vmatpush.bf16.msrb.mxu1 %v7954_v19 }
 0x615   :  { %v5263_v35 = vpop.f32.mrf.mxu2  ;;  %5610 = vmatpush.bf16.msrb.mxu2 %v8338_v62 }
 0x616   :  { %v5180_v1 = vpop.f32.mrf.mxu3  ;;  %v11430_v14 = vadd.f32 %v5263_v35, %v5220_v28 }
 0x617   :  { %v5181_v58 = vadd.f32 %v5180_v1, %v5137_v16  ;;  %v5221_v0 = vpop.f32.mrf.mxu0 }
 0x618   :  { %v5138_v4 = vpop.f32.mrf.mxu1  ;;  %v5222_v41 = vadd.f32 %v5221_v0, %v11418_v54 }
 0x619   :  { %v5139_v32 = vadd.f32 %v5138_v4, %v11366_v24  ;;  %v5660_v1 = vmax.f32 %v5181_v58, 0.0  ;;  %v9160_v58 = vld [vmem:[#allocation8 + $0x86c] sm:$0xf] }
 0x61a   :  { %v8210_v19 = vor.u32 %v9160_v58, %v8207_v20 }
 0x61c   :  { %5566 = vmatpush.bf16.msrb.mxu0 %v8210_v19 }
 0x61d   :  { %v5265_v28 = vpop.f32.mrf.mxu2 }
 0x61e   :  { %v5182_v16 = vpop.f32.mrf.mxu3  ;;  %v11434_v35 = vadd.f32 %v5265_v28, %v5222_v41  ;;  %v8066_v28 = vor.u32 %v9124_v47, %v8063_v9 }
 0x61f   :  { %v5183_v25 = vadd.f32 %v5182_v16, %v5139_v32  ;;  %v5224_v24 = vpop.f32.mrf.mxu0  ;;  %v8191_v32 = vld [vmem:[#allocation8 + $0x858] sm:$0xf0] }
 0x620   :  { %v5141_v53 = vpop.f32.mrf.mxu1  ;;  %v5225_v3 = vadd.f32 %v5224_v24, %v11418_v54  ;;  %5523 = vmatpush.bf16.msrb.mxu3 %v8066_v28  ;;  %v9092_v24 = vld [vmem:[#allocation8 + $0x64c] sm:$0xf] }
 0x621   :  { %v5664_v40 = vmax.f32 %v5183_v25, 0.0  ;;  %v5142_v4 = vadd.f32 %v5141_v53, %v11373_v42  ;;  %v7935_v53 = vld [vmem:[#allocation8 + $0x658] sm:$0xf0] }
 0x622   :  { %5404 = vmatmul.bf16.gmra.mxu0 %v10675_v59  ;;  %5448 = vmatmul.bf16.gmra.mxu2 %v10677_v26 }
 0x623   :  { %v11439_v0 = vmax.f32 %v5660_v1, %v5664_v40  ;;  %5321 = vmatmul.bf16.gmra.mxu1 %v11924_v30  ;;  %5365 = vmatmul.bf16.gmra.mxu3 %v11925_v63  ;;  %v7938_v1 = vor.u32 %v9092_v24, %v7935_v53  ;;  %v9188_v40 = vld [vmem:[#allocation8 + $0x94c] sm:$0xf] }
 0x625   :  { %11948 = vst [vmem:[#allocation31_spill] sm:$0xff] %v11439_v0  ;;  %v5268_v34 = vpop.f32.mrf.mxu2  ;;  %v8322_v0 = vor.u32 %v9188_v40, %v8319_v49  ;;  %5479 = vmatpush.bf16.msrb.mxu1 %v7938_v1 }
 0x626   :  { %v5185_v42 = vpop.f32.mrf.mxu3  ;;  %v11446_v6 = vadd.f32 %v5268_v34, %v5225_v3  ;;  %v8194_v34 = vor.u32 %v9156_v52, %v8191_v32 }
 0x627   :  { %v5186_v41 = vadd.f32 %v5185_v42, %v5142_v4  ;;  %v5226_v62 = vpop.f32.mrf.mxu0  ;;  %5611 = vmatpush.bf16.msrb.mxu2 %v8322_v0  ;;  %v11951_v0 = vld [vmem:[#allocation41_spill] sm:$0xff] }
 0x628   :  { %v5143_v16 = vpop.f32.mrf.mxu1  ;;  %v5227_v3 = vadd.f32 %v5226_v62, %v11418_v54  ;;  %5567 = vmatpush.bf16.msrb.mxu0 %v8194_v34  ;;  %v9088_v34 = vld [vmem:[#allocation8 + $0x62c] sm:$0xf] }
 0x629   :  { %v5144_v25 = vadd.f32 %v5143_v16, %v11376_v43  ;;  %v5668_v19 = vmax.f32 %v5186_v41, 0.0  ;;  %v9120_v41 = vld [vmem:[#allocation8 + $0x72c] sm:$0xf]  ;;  %v8047_v16 = vld [vmem:[#allocation8 + $0x738] sm:$0xf0] }
 0x62a   :  { %v8050_v24 = vor.u32 %v9120_v41, %v8047_v16  ;;  %v7903_v41 = vld [vmem:[#allocation8 + $0x618] sm:$0xf0]  ;;  %v9116_v16 = vld [vmem:[#allocation8 + $0x70c] sm:$0xf] }
 0x62c   :  { %5524 = vmatpush.bf16.msrb.mxu3 %v8050_v24 }
 0x62d   :  { %v5270_v4 = vpop.f32.mrf.mxu2 }
 0x62e   :  { %v5187_v58 = vpop.f32.mrf.mxu3  ;;  %v11450_v20 = vadd.f32 %v5270_v4, %v5227_v3  ;;  %v7919_v4 = vld [vmem:[#allocation8 + $0x638] sm:$0xf0] }
 0x62f   :  { %v5188_v43 = vadd.f32 %v5187_v58, %v5144_v25  ;;  %v5229_v47 = vpop.f32.mrf.mxu0  ;;  %v7922_v58 = vor.u32 %v9088_v34, %v7919_v4 }
 0x630   :  { %v5146_v42 = vpop.f32.mrf.mxu1  ;;  %v5230_v52 = vadd.f32 %v5229_v47, %v11418_v54  ;;  %v8303_v47 = vld [vmem:[#allocation8 + $0x938] sm:$0xf0] }
 0x631   :  { %v5672_v9 = vmax.f32 %v5188_v43, 0.0  ;;  %v5147_v28 = vadd.f32 %v5146_v42, %v11383_v33  ;;  %v9184_v43 = vld [vmem:[#allocation8 + $0x92c] sm:$0xf]  ;;  %5480 = vmatpush.bf16.msrb.mxu1 %v7922_v58 }
 0x632   :  { %5409 = vmatmul.bf16.gmra.mxu0 %v10712_v17  ;;  %5453 = vmatmul.bf16.gmra.mxu2 %v10714_v18  ;;  %v9152_v42 = vld [vmem:[#allocation8 + $0x82c] sm:$0xf] }
 0x633   :  { %v11455_v49 = vmax.f32 %v5668_v19, %v5672_v9  ;;  %5326 = vmatmul.bf16.gmra.mxu1 %v11927_v12  ;;  %5370 = vmatmul.bf16.gmra.mxu3 %v11928_v29  ;;  %v8306_v19 = vor.u32 %v9184_v43, %v8303_v47  ;;  %v8175_v9 = vld [vmem:[#allocation8 + $0x838] sm:$0xf0] }
 0x635   :  { %11950 = vst [vmem:[#allocation32_spill] sm:$0xff] %v11455_v49  ;;  %v5273_v62 = vpop.f32.mrf.mxu2  ;;  %5612 = vmatpush.bf16.msrb.mxu2 %v8306_v19 }
 0x636   :  { %v5190_v25 = vpop.f32.mrf.mxu3  ;;  %v11462_v33 = vadd.f32 %v5273_v62, %v5230_v52  ;;  %v8178_v52 = vor.u32 %v9152_v42, %v8175_v9  ;;  %v9180_v9 = vld [vmem:[#allocation8 + $0x90c] sm:$0xf] }
 0x637   :  { %v5191_v53 = vadd.f32 %v5190_v25, %v5147_v28  ;;  %v5231_v1 = vpop.f32.mrf.mxu0  ;;  %v9084_v28 = vld [vmem:[#allocation8 + $0x60c] sm:$0xf] }
 0x638   :  { %v5148_v40 = vpop.f32.mrf.mxu1  ;;  %v5232_v32 = vadd.f32 %v5231_v1, %v11418_v54  ;;  %5568 = vmatpush.bf16.msrb.mxu0 %v8178_v52  ;;  %v8287_v52 = vld [vmem:[#allocation8 + $0x918] sm:$0xf0] }
 0x639   :  { %v5149_v3 = vadd.f32 %v5148_v40, %v11386_v39  ;;  %v7906_v39 = vor.u32 %v9084_v28, %v7903_v41  ;;  %v8031_v40 = vld [vmem:[#allocation8 + $0x718] sm:$0xf0]  ;;  %v5676_v47 = vmax.f32 %v5191_v53, 0.0 }
 0x63a   :  { %v8034_v49 = vor.u32 %v9116_v16, %v8031_v40  ;;  %v8159_v40 = vld [vmem:[#allocation8 + $0x818] sm:$0xf0] }
 0x63b   :  { %5481 = vmatpush.bf16.msrb.mxu1 %v7906_v39  ;;  %v9148_v39 = vld [vmem:[#allocation8 + $0x80c] sm:$0xf] }
 0x63c   :  { %5525 = vmatpush.bf16.msrb.mxu3 %v8034_v49 }
 0x63d   :  { %v5275_v62 = vpop.f32.mrf.mxu2 }
 0x63e   :  { %v5192_v25 = vpop.f32.mrf.mxu3  ;;  %v11466_v24 = vadd.f32 %v5275_v62, %v5232_v32  ;;  %v8290_v62 = vor.u32 %v9180_v9, %v8287_v52 }
 0x63f   :  { %v5193_v34 = vadd.f32 %v5192_v25, %v5149_v3  ;;  %v5234_v4 = vpop.f32.mrf.mxu0  ;;  %v11952_v3 = vld [vmem:[#allocation26_spill] sm:$0xff] }
 0x640   :  { %v5151_v43 = vpop.f32.mrf.mxu1  ;;  %v5235_v32 = vadd.f32 %v5234_v4, %v11418_v54  ;;  %5613 = vmatpush.bf16.msrb.mxu2 %v8290_v62  ;;  %v11954_v62 = vld [vmem:[#allocation46_spill] sm:$0xff] }
 0x641   :  { %v5680_v1 = vmax.f32 %v5193_v34, 0.0  ;;  %v5152_v58 = vadd.f32 %v5151_v43, %v11393_v22  ;;  %v8162_v34 = vor.u32 %v9148_v39, %v8159_v40 }
 0x642   :  { %5414 = vmatmul.bf16.gmra.mxu0 %v10758_v5  ;;  %5458 = vmatmul.bf16.gmra.mxu2 %v10762_v60 }
 0x643   :  { %v11471_v42 = vmax.f32 %v5676_v47, %v5680_v1  ;;  %5331 = vmatmul.bf16.gmra.mxu1 %v11930_v7  ;;  %5375 = vmatmul.bf16.gmra.mxu3 %v11931_v23 }
 0x644   :  { %5569 = vmatpush.bf16.msrb.mxu0 %v8162_v34 }
 0x645   :  { %v5278_v53 = vpop.f32.mrf.mxu2 }
 0x646   :  { %v5195_v22 = vpop.f32.mrf.mxu3  ;;  %v11478_v49 = vadd.f32 %v5278_v53, %v5235_v32 }
 0x647   :  { %v5196_v28 = vadd.f32 %v5195_v22, %v5152_v58  ;;  %v5236_v41 = vpop.f32.mrf.mxu0 }
 0x648   :  { %v5153_v16 = vpop.f32.mrf.mxu1  ;;  %v5237_v4 = vadd.f32 %v5236_v41, %v11418_v54 }
 0x649   :  { %v5154_v25 = vadd.f32 %v5153_v16, %v11396_v51  ;;  %v5684_v9 = vmax.f32 %v5196_v28, 0.0 }
 0x64d   :  { %v5280_v43 = vpop.f32.mrf.mxu2 }
 0x64e   :  { %v5197_v47 = vpop.f32.mrf.mxu3  ;;  %v11482_v1 = vadd.f32 %v5280_v43, %v5237_v4 }
 0x64f   :  { %v5198_v19 = vadd.f32 %v5197_v47, %v5154_v25  ;;  %v5239_v32 = vpop.f32.mrf.mxu0 }
 0x650   :  { %v5156_v53 = vpop.f32.mrf.mxu1  ;;  %v5240_v22 = vadd.f32 %v5239_v32, %v11418_v54 }
 0x651   :  { %v5688_v58 = vmax.f32 %v5198_v19, 0.0  ;;  %v5157_v52 = vadd.f32 %v5156_v53, %v11403_v37 }
 0x652   :  { %5419 = vmatmul.bf16.gmra.mxu0 %v10806_v45  ;;  %5463 = vmatmul.bf16.gmra.mxu2 %v10808_v8 }
 0x653   :  { %v11487_v51 = vmax.f32 %v5684_v9, %v5688_v58  ;;  %5336 = vmatmul.bf16.gmra.mxu1 %v11933_v36  ;;  %5380 = vmatmul.bf16.gmra.mxu3 %v11934_v21 }
 0x655   :  { %11953 = vst [vmem:[#allocation45_spill] sm:$0xff] %v11487_v51  ;;  %v5283_v16 = vpop.f32.mrf.mxu2 }
 0x656   :  { %v5200_v28 = vpop.f32.mrf.mxu3  ;;  %v11494_v19 = vadd.f32 %v5283_v16, %v5240_v22  ;;  %v11955_v22 = vld [vmem:[#allocation27_spill] sm:$0xff] }
 0x657   :  { %v5201_v37 = vadd.f32 %v5200_v28, %v5157_v52  ;;  %v5241_v25 = vpop.f32.mrf.mxu0 }
 0x658   :  { %v5158_v39 = vpop.f32.mrf.mxu1  ;;  %v5242_v34 = vadd.f32 %v5241_v25, %v11418_v54 }
 0x659   :  { %v5159_v40 = vadd.f32 %v5158_v39, %v11406_v50  ;;  %v5692_v58 = vmax.f32 %v5201_v37, 0.0 }
 0x65d   :  { %v5285_v4 = vpop.f32.mrf.mxu2 }
 0x65e   :  { %v5202_v43 = vpop.f32.mrf.mxu3  ;;  %v11498_v47 = vadd.f32 %v5285_v4, %v5242_v34 }
 0x65f   :  { %v5203_v53 = vadd.f32 %v5202_v43, %v5159_v40  ;;  %v5244_v32 = vpop.f32.mrf.mxu0 }
 0x660   :  { %v5161_v9 = vpop.f32.mrf.mxu1  ;;  %v5245_v50 = vadd.f32 %v5244_v32, %v11418_v54 }
 0x661   :  { %v5696_v41 = vmax.f32 %v5203_v53, 0.0  ;;  %v5162_v51 = vadd.f32 %v5161_v9, %v11413_v46 }
 0x662   :  { %5424 = vmatmul.bf16.gmra.mxu0 %v10848_v2  ;;  %5468 = vmatmul.bf16.gmra.mxu2 %v10852_v10 }
 0x663   :  { %v11503_v52 = vmax.f32 %v5692_v58, %v5696_v41  ;;  %5482 = vmatmul.bf16.vlgmr.msrb.gmra.mxu1 %v11918_v13  ;;  %5526 = vmatmul.bf16.vlgmr.msrb.gmra.mxu3 %v11919_v57 }
 0x665   :  { %v5288_v28 = vpop.f32.mrf.mxu2 }
 0x666   :  { %v5205_v37 = vpop.f32.mrf.mxu3  ;;  %v11510_v25 = vadd.f32 %v5288_v28, %v5245_v50  ;;  %v11956_v50 = vld [vmem:[#allocation21_spill] sm:$0xff] }
 0x667   :  { %v5206_v46 = vadd.f32 %v5205_v37, %v5162_v51  ;;  %v5246_v39 = vpop.f32.mrf.mxu0 }
 0x668   :  { %v5163_v40 = vpop.f32.mrf.mxu1  ;;  %v5247_v41 = vadd.f32 %v5246_v39, %v11418_v54 }
 0x669   :  { %v5164_v34 = vadd.f32 %v5163_v40, %v11416_v11  ;;  %v5700_v9 = vmax.f32 %v5206_v46, 0.0 }
 0x66d   :  { %v5290_v4 = vpop.f32.mrf.mxu2 }
 0x66e   :  { %v5207_v13 = vpop.f32.mrf.mxu3  ;;  %v11514_v43 = vadd.f32 %v5290_v4, %v5247_v41 }
 0x66f   :  { %v5208_v57 = vadd.f32 %v5207_v13, %v5164_v34  ;;  %v5249_v53 = vpop.f32.mrf.mxu0 }
 0x670   :  { %v5307_v32 = vpop.f32.mrf.mxu1  ;;  %v5250_v11 = vadd.f32 %v5249_v53, %v11418_v54 }
 0x671   :  { %v5704_v58 = vmax.f32 %v5208_v57, 0.0  ;;  %v5308_v16 = vadd.f32 %v5307_v32, %v11430_v14 }
 0x672   :  { %5570 = vmatmul.bf16.vlgmr.msrb.gmra.mxu0 %v10621_v55  ;;  %5614 = vmatmul.bf16.vlgmr.msrb.gmra.mxu2 %v10623_v27 }
 0x673   :  { %v11519_v51 = vmax.f32 %v5700_v9, %v5704_v58  ;;  %5487 = vmatmul.bf16.gmra.mxu1 %v11921_v38  ;;  %5531 = vmatmul.bf16.gmra.mxu3 %v11922_v15 }
 0x675   :  { %v5746_v28 = vmax.f32 %v11956_v50, %v11519_v51  ;;  %v5293_v37 = vpop.f32.mrf.mxu2 }
 0x676   :  { %v11526_v46 = vadd.f32 %v5293_v37, %v5250_v11  ;;  %v5351_v39 = vpop.f32.mrf.mxu3 }
 0x677   :  { %v5352_v14 = vadd.f32 %v5351_v39, %v5308_v16  ;;  %v5251_v40 = vpop.f32.mrf.mxu0 }
 0x678   :  { %v5309_v55 = vpop.f32.mrf.mxu1  ;;  %v5252_v34 = vadd.f32 %v5251_v40, %v11418_v54 }
 0x679   :  { %v5310_v27 = vadd.f32 %v5309_v55, %v11434_v35 }
 0x67d   :  { %v5295_v41 = vpop.f32.mrf.mxu2 }
 0x67e   :  { %v11530_v38 = vadd.f32 %v5295_v41, %v5252_v34  ;;  %v5353_v15 = vpop.f32.mrf.mxu3 }
 0x67f   :  { %v5354_v4 = vadd.f32 %v5353_v15, %v5310_v27  ;;  %v5395_v13 = vpop.f32.mrf.mxu0 }
 0x680   :  { %v5312_v57 = vpop.f32.mrf.mxu1  ;;  %v5396_v53 = vadd.f32 %v5395_v13, %v5352_v14 }
 0x681   :  { %v5313_v32 = vadd.f32 %v5312_v57, %v11446_v6 }
 0x682   :  { %5575 = vmatmul.bf16.gmra.mxu0 %v10675_v59  ;;  %5619 = vmatmul.bf16.gmra.mxu2 %v10677_v26 }
 0x683   :  { %5492 = vmatmul.bf16.gmra.mxu1 %v11924_v30  ;;  %5536 = vmatmul.bf16.gmra.mxu3 %v11925_v63 }
 0x685   :  { %v5439_v35 = vpop.f32.mrf.mxu2 }
 0x686   :  { %v5356_v54 = vpop.f32.mrf.mxu3  ;;  %v11537_v16 = vadd.f32 %v5439_v35, %v5396_v53 }
 0x687   :  { %v5357_v9 = vadd.f32 %v5356_v54, %v5313_v32  ;;  %v5397_v58 = vpop.f32.mrf.mxu0 }
 0x688   :  { %v5314_v11 = vpop.f32.mrf.mxu1  ;;  %v5398_v37 = vadd.f32 %v5397_v58, %v5354_v4 }
 0x689   :  { %v5315_v39 = vadd.f32 %v5314_v11, %v11450_v20 }
 0x68d   :  { %v5441_v14 = vpop.f32.mrf.mxu2 }
 0x68e   :  { %v5358_v6 = vpop.f32.mrf.mxu3  ;;  %v11540_v40 = vadd.f32 %v5441_v14, %v5398_v37  ;;  %v9226_v37 = vld [vmem:[#allocation11 + $0x78] sm:$0xff] }
 0x68f   :  { %v5359_v59 = vadd.f32 %v5358_v6, %v5315_v39  ;;  %v5400_v26 = vpop.f32.mrf.mxu0  ;;  %6717 = vmatpush.bf16.msra.mxu3 %v9226_v37  ;;  %v9218_v14 = vld [vmem:[#allocation11 + $0x38] sm:$0xff] }
 0x690   :  { %v5317_v55 = vpop.f32.mrf.mxu1  ;;  %v5401_v30 = vadd.f32 %v5400_v26, %v5357_v9  ;;  %6704 = vmatpush.bf16.msra.mxu1 %v9218_v14 }
 0x691   :  { %v5318_v63 = vadd.f32 %v5317_v55, %v11462_v33 }
 0x692   :  { %5580 = vmatmul.bf16.gmra.mxu0 %v10712_v17  ;;  %5624 = vmatmul.bf16.gmra.mxu2 %v10714_v18 }
 0x693   :  { %5497 = vmatmul.bf16.gmra.mxu1 %v11927_v12  ;;  %5541 = vmatmul.bf16.gmra.mxu3 %v11928_v29 }
 0x695   :  { %v5444_v27 = vpop.f32.mrf.mxu2 }
 0x696   :  { %v5361_v20 = vpop.f32.mrf.mxu3  ;;  %v11547_v34 = vadd.f32 %v5444_v27, %v5401_v30  ;;  %v9242_v27 = vld [vmem:[#allocation11 + $0xf8] sm:$0xff] }
 0x697   :  { %v5362_v41 = vadd.f32 %v5361_v20, %v5318_v63  ;;  %v5402_v15 = vpop.f32.mrf.mxu0  ;;  %6743 = vmatpush.bf16.msra.mxu2 %v9242_v27 }
 0x698   :  { %v11549_v4 = vpop.f32.mrf.mxu1  ;;  %v5403_v13 = vadd.f32 %v5402_v15, %v5359_v59  ;;  %v9217_v15 = vld [vmem:[#allocation11 + $0x30] sm:$0xff] }
 0x699   :  { %6705 = vmatpush.bf16.msra.mxu1 %v9217_v15  ;;  %v9232_v15 = vld [vmem:[#allocation11 + $0xa8] sm:$0xff] }
 0x69d   :  { %v5446_v57 = vpop.f32.mrf.mxu2 }
 0x69e   :  { %v11551_v53 = vpop.f32.mrf.mxu3  ;;  %v11553_v33 = vadd.f32 %v5446_v57, %v5403_v13  ;;  %v9234_v13 = vld [vmem:[#allocation11 + $0xb8] sm:$0xff] }
 0x69f   :  { %v5405_v17 = vpop.f32.mrf.mxu0  ;;  %6730 = vmatpush.bf16.msra.mxu0 %v9234_v13 }
 0x6a0   :  { %v5322_v18 = vpop.f32.mrf.mxu1  ;;  %v5406_v32 = vadd.f32 %v5405_v17, %v5362_v41 }
 0x6a1   :  { %v5323_v12 = vadd.f32 %v5322_v18, %v11478_v49 }
 0x6a2   :  { %5585 = vmatmul.bf16.gmra.mxu0 %v10758_v5  ;;  %5629 = vmatmul.bf16.gmra.mxu2 %v10762_v60 }
 0x6a3   :  { %5502 = vmatmul.bf16.gmra.mxu1 %v11930_v7  ;;  %5546 = vmatmul.bf16.gmra.mxu3 %v11931_v23 }
 0x6a5   :  { %v5449_v29 = vpop.f32.mrf.mxu2 }
 0x6a6   :  { %v5366_v35 = vpop.f32.mrf.mxu3  ;;  %v11560_v54 = vadd.f32 %v5449_v29, %v5406_v32  ;;  %v9224_v29 = vld [vmem:[#allocation11 + $0x68] sm:$0xff] }
 0x6a7   :  { %v5367_v9 = vadd.f32 %v5366_v35, %v5323_v12  ;;  %v11562_v58 = vpop.f32.mrf.mxu0  ;;  %v9241_v35 = vld [vmem:[#allocation11 + $0xf0] sm:$0xff] }
 0x6a8   :  { %v11564_v11 = vpop.f32.mrf.mxu1  ;;  %6744 = vmatpush.bf16.msra.mxu2 %v9241_v35 }
 0x6ad   :  { %v11566_v49 = vpop.f32.mrf.mxu2 }
 0x6ae   :  { %v11568_v5 = vpop.f32.mrf.mxu3 }
 0x6af   :  { %v5410_v60 = vpop.f32.mrf.mxu0 }
 0x6b0   :  { %v5327_v39 = vpop.f32.mrf.mxu1  ;;  %v5411_v7 = vadd.f32 %v5410_v60, %v5367_v9  ;;  %v9216_v9 = vld [vmem:[#allocation11 + $0x28] sm:$0xff] }
 0x6b1   :  { %v5328_v23 = vadd.f32 %v5327_v39, %v11494_v19  ;;  %v9225_v19 = vld [vmem:[#allocation11 + $0x70] sm:$0xff]  ;;  %6706 = vmatpush.bf16.msra.mxu1 %v9216_v9  ;;  %v9220_v9 = vld [vmem:[#allocation11 + $0x48] sm:$0xff] }
 0x6b2   :  { %5590 = vmatmul.bf16.gmra.mxu0 %v10806_v45  ;;  %5634 = vmatmul.bf16.gmra.mxu2 %v10808_v8 }
 0x6b3   :  { %5507 = vmatmul.bf16.gmra.mxu1 %v11933_v36  ;;  %5551 = vmatmul.bf16.gmra.mxu3 %v11934_v21 }
 0x6b4   :  { %6718 = vmatpush.bf16.msra.mxu3 %v9225_v19 }
 0x6b5   :  { %v5454_v6 = vpop.f32.mrf.mxu2 }
 0x6b6   :  { %v5371_v59 = vpop.f32.mrf.mxu3  ;;  %v11575_v26 = vadd.f32 %v5454_v6, %v5411_v7 }
 0x6b7   :  { %v5372_v55 = vadd.f32 %v5371_v59, %v5328_v23  ;;  %v11577_v30 = vpop.f32.mrf.mxu0 }
 0x6b8   :  { %v11579_v63 = vpop.f32.mrf.mxu1  ;;  %6719 = vmatpush.bf16.msra.mxu3 %v9224_v29 }
 0x6bd   :  { %v11581_v45 = vpop.f32.mrf.mxu2 }
 0x6be   :  { %v11583_v8 = vpop.f32.mrf.mxu3 }
 0x6bf   :  { %v5415_v36 = vpop.f32.mrf.mxu0 }
 0x6c0   :  { %v5332_v21 = vpop.f32.mrf.mxu1  ;;  %v5416_v20 = vadd.f32 %v5415_v36, %v5372_v55 }
 0x6c1   :  { %v5333_v41 = vadd.f32 %v5332_v21, %v11510_v25  ;;  %v9223_v21 = vld [vmem:[#allocation11 + $0x60] sm:$0xff] }
 0x6c2   :  { %5595 = vmatmul.bf16.gmra.mxu0 %v10848_v2  ;;  %5639 = vmatmul.bf16.gmra.mxu2 %v10852_v10 }
 0x6c3   :  { %5512 = vmatmul.bf16.gmra.mxu1 %v11937_v61  ;;  %5556 = vmatmul.bf16.gmra.mxu3 %v11938_v56  ;;  %v9233_v56 = vld [vmem:[#allocation11 + $0xb0] sm:$0xff] }
 0x6c4   :  { %6731 = vmatpush.bf16.msra.mxu0 %v9233_v56  ;;  %6720 = vmatpush.bf16.msra.mxu3 %v9223_v21  ;;  %v9250_v21 = vld [vmem:[#allocation11 + $0x138] sm:$0xff] }
 0x6c5   :  { %v5459_v57 = vpop.f32.mrf.mxu2 }
 0x6c6   :  { %v5376_v17 = vpop.f32.mrf.mxu3  ;;  %v11590_v18 = vadd.f32 %v5459_v57, %v5416_v20  ;;  %v9215_v20 = vld [vmem:[#allocation11 + $0x20] sm:$0xff] }
 0x6c7   :  { %v5377_v32 = vadd.f32 %v5376_v17, %v5333_v41  ;;  %v11592_v12 = vpop.f32.mrf.mxu0  ;;  %v9240_v41 = vld [vmem:[#allocation11 + $0xe8] sm:$0xff]  ;;  %6707 = vmatpush.bf16.msra.mxu1 %v9215_v20 }
 0x6c8   :  { %v5334_v25 = vpop.f32.mrf.mxu1  ;;  %6745 = vmatpush.bf16.msra.mxu2 %v9240_v41  ;;  %6732 = vmatpush.bf16.msra.mxu0 %v9232_v15 }
 0x6c9   :  { %v5335_v7 = vadd.f32 %v5334_v25, %v11514_v43  ;;  %v9222_v43 = vld [vmem:[#allocation11 + $0x58] sm:$0xff] }
 0x6ca   :  { %6721 = vmatpush.bf16.msra.mxu3 %v9222_v43 }
 0x6cd   :  { %v11594_v2 = vpop.f32.mrf.mxu2 }
 0x6ce   :  { %v5378_v10 = vpop.f32.mrf.mxu3 }
 0x6cf   :  { %v5420_v61 = vpop.f32.mrf.mxu0  ;;  %v5379_v14 = vadd.f32 %v5378_v10, %v5335_v7  ;;  %v9213_v10 = vld [vmem:[#allocation11 + $0x10] sm:$0xff] }
 0x6d0   :  { %v5337_v37 = vpop.f32.mrf.mxu1  ;;  %v5421_v60 = vadd.f32 %v5420_v61, %v5377_v32  ;;  %v9212_v61 = vld [vmem:[#allocation11 + $0x8] sm:$0xff] }
 0x6d1   :  { %v5338_v39 = vadd.f32 %v5337_v37, %v11526_v46 }
 0x6d2   :  { %5600 = vmatmul.bf16.gmra.mxu0 %v11913_v31  ;;  %5644 = vmatmul.bf16.gmra.mxu2 %v11913_v31  ;;  %v9214_v31 = vld [vmem:[#allocation11 + $0x18] sm:$0xff] }
 0x6d3   :  { %6708 = vmatpush.bf16.msra.mxu1 %v9214_v31 }
 0x6d5   :  { %v5464_v23 = vpop.f32.mrf.mxu2 }
 0x6d6   :  { %v5381_v6 = vpop.f32.mrf.mxu3  ;;  %v11600_v59 = vadd.f32 %v5464_v23, %v5421_v60 }
 0x6d7   :  { %v5382_v55 = vadd.f32 %v5381_v6, %v5338_v39  ;;  %v5422_v19 = vpop.f32.mrf.mxu0  ;;  %6709 = vmatpush.bf16.msra.mxu1 %v9213_v10  ;;  %v9211_v6 = vld [vmem:[#allocation11] sm:$0xff]  ;;  %v9236_v10 = vld [vmem:[#allocation11 + $0xc8] sm:$0xff] }
 0x6d8   :  { %v5339_v27 = vpop.f32.mrf.mxu1  ;;  %v5423_v36 = vadd.f32 %v5422_v19, %v5379_v14  ;;  %v9239_v14 = vld [vmem:[#allocation11 + $0xe0] sm:$0xff] }
 0x6d9   :  { %v5340_v46 = vadd.f32 %v5339_v27, %v11530_v38  ;;  %v9221_v38 = vld [vmem:[#allocation11 + $0x50] sm:$0xff]  ;;  %v9219_v19 = vld [vmem:[#allocation11 + $0x40] sm:$0xff]  ;;  %6746 = vmatpush.bf16.msra.mxu2 %v9239_v14  ;;  %v9230_v27 = vld [vmem:[#allocation11 + $0x98] sm:$0xff] }
 0x6da   :  { %6722 = vmatpush.bf16.msra.mxu3 %v9221_v38  ;;  %v9248_v38 = vld [vmem:[#allocation11 + $0x128] sm:$0xff] }
 0x6db   :  { %6710 = vmatpush.bf16.msra.mxu1 %v9212_v61 }
 0x6dd   :  { %v5466_v13 = vpop.f32.mrf.mxu2 }
 0x6de   :  { %v5383_v57 = vpop.f32.mrf.mxu3  ;;  %v11603_v17 = vadd.f32 %v5466_v13, %v5423_v36  ;;  %6723 = vmatpush.bf16.msra.mxu3 %v9220_v9  ;;  %v9238_v36 = vld [vmem:[#allocation11 + $0xd8] sm:$0xff]  ;;  %v9229_v13 = vld [vmem:[#allocation11 + $0x90] sm:$0xff]  ;;  %v9256_v9 = vld [vmem:[#allocation11 + $0x168] sm:$0xff] }
 0x6df   :  { %v5384_v32 = vadd.f32 %v5383_v57, %v5340_v46  ;;  %v5425_v25 = vpop.f32.mrf.mxu0  ;;  %6711 = vmatpush.bf16.msra.mxu1 %v9211_v6  ;;  %v9258_v46 = vld [vmem:[#allocation11 + $0x178] sm:$0xff]  ;;  %6747 = vmatpush.bf16.msra.mxu2 %v9238_v36  ;;  %v9237_v57 = vld [vmem:[#allocation11 + $0xd0] sm:$0xff]  ;;  %v9247_v36 = vld [vmem:[#allocation11 + $0x120] sm:$0xff] }
 0x6e0   :  { %v5426_v29 = vadd.f32 %v5425_v25, %v5382_v55  ;;  %v5483_v35 = vpop.f32.mrf.mxu1  ;;  %v9231_v55 = vld [vmem:[#allocation11 + $0xa0] sm:$0xff]  ;;  %v9257_v25 = vld [vmem:[#allocation11 + $0x170] sm:$0xff] }
 0x6e1   :  { %6733 = vmatpush.bf16.msra.mxu0 %v9231_v55  ;;  %v9227_v55 = vld [vmem:[#allocation11 + $0x80] sm:$0xff] }
 0x6e2   :  { %6724 = vmatpush.bf16.msra.mxu3 %v9219_v19 }
 0x6e3   :  { %6756 = vmatpush.bf16.msrb.mxu1 %v9250_v21  ;;  %6748 = vmatpush.bf16.msra.mxu2 %v9237_v57  ;;  %v9255_v21 = vld [vmem:[#allocation11 + $0x160] sm:$0xff]  ;;  %v9254_v57 = vld [vmem:[#allocation11 + $0x158] sm:$0xff] }
 0x6e5   :  { %v5469_v56 = vpop.f32.mrf.mxu2  ;;  %6734 = vmatpush.bf16.msra.mxu0 %v9230_v27  ;;  %v9235_v27 = vld [vmem:[#allocation11 + $0xc0] sm:$0xff] }
 0x6e6   :  { %v11605_v37 = vadd.f32 %v5469_v56, %v5426_v29  ;;  %v5527_v60 = vpop.f32.mrf.mxu3  ;;  %6769 = vmatpush.bf16.msrb.mxu3 %v9258_v46  ;;  %v9228_v29 = vld [vmem:[#allocation11 + $0x88] sm:$0xff]  ;;  %v5484_v56 = vadd.f32 %v5483_v35, %v11537_v16 }
 0x6e7   :  { %v5427_v39 = vpop.f32.mrf.mxu0  ;;  %6749 = vmatpush.bf16.msra.mxu2 %v9236_v10 }
 0x6e8   :  { %v5428_v7 = vadd.f32 %v5427_v39, %v5384_v32  ;;  %v5485_v23 = vpop.f32.mrf.mxu1  ;;  %v9249_v32 = vld [vmem:[#allocation11 + $0x130] sm:$0xff]  ;;  %v5528_v14 = vadd.f32 %v5527_v60, %v5484_v56  ;;  %v9274_v60 = vld [vmem:[#allocation11 + $0x1f8] sm:$0xff] }
 0x6e9   :  { %6757 = vmatpush.bf16.msrb.mxu1 %v9249_v32  ;;  %6735 = vmatpush.bf16.msra.mxu0 %v9229_v13  ;;  %v5486_v6 = vadd.f32 %v5485_v23, %v11540_v40  ;;  %v9246_v13 = vld [vmem:[#allocation11 + $0x118] sm:$0xff]  ;;  %v9273_v56 = vld [vmem:[#allocation11 + $0x1f0] sm:$0xff] }
 0x6ea   :  { %6770 = vmatpush.bf16.msrb.mxu3 %v9257_v25  ;;  %v9266_v32 = vld [vmem:[#allocation11 + $0x1b8] sm:$0xff] }
 0x6eb   :  { %6750 = vmatpush.bf16.msra.mxu2 %v9235_v27  ;;  %v9252_v27 = vld [vmem:[#allocation11 + $0x148] sm:$0xff] }
 0x6ed   :  { %v5471_v20 = vpop.f32.mrf.mxu2  ;;  %6758 = vmatpush.bf16.msrb.mxu1 %v9248_v38  ;;  %6736 = vmatpush.bf16.msra.mxu0 %v9228_v29  ;;  %v9245_v38 = vld [vmem:[#allocation11 + $0x110] sm:$0xff] }
 0x6ee   :  { %v11607_v41 = vadd.f32 %v5471_v20, %v5428_v7  ;;  %v5529_v15 = vpop.f32.mrf.mxu3  ;;  %6771 = vmatpush.bf16.msrb.mxu3 %v9256_v9  ;;  %v9253_v9 = vld [vmem:[#allocation11 + $0x150] sm:$0xff] }
 0x6ef   :  { %v5571_v31 = vpop.f32.mrf.mxu0  ;;  %v5530_v20 = vadd.f32 %v5529_v15, %v5486_v6  ;;  %6795 = vmatpush.bf16.msrb.mxu2 %v9274_v60 }
 0x6f0   :  { %v11609_v43 = vpop.f32.mrf.mxu1  ;;  %v5572_v46 = vadd.f32 %v5571_v31, %v5528_v14  ;;  %v11957_v14 = vld [vmem:[#allocation28_spill] sm:$0xff] }
 0x6f1   :  { %6759 = vmatpush.bf16.msrb.mxu1 %v9247_v36  ;;  %6737 = vmatpush.bf16.msra.mxu0 %v9227_v55  ;;  %v9244_v55 = vld [vmem:[#allocation11 + $0x108] sm:$0xff] }
 0x6f2   :  { %6772 = vmatpush.bf16.msrb.mxu3 %v9255_v21  ;;  %v9264_v36 = vld [vmem:[#allocation11 + $0x1a8] sm:$0xff] }
 0x6f3   :  { %6796 = vmatpush.bf16.msrb.mxu2 %v9273_v56  ;;  %v9270_v56 = vld [vmem:[#allocation11 + $0x1d8] sm:$0xff] }
 0x6f5   :  { %v5615_v61 = vpop.f32.mrf.mxu2  ;;  %6760 = vmatpush.bf16.msrb.mxu1 %v9246_v13  ;;  %6782 = vmatpush.bf16.msrb.mxu0 %v9266_v32 }
 0x6f6   :  { %v5532_v39 = vpop.f32.mrf.mxu3  ;;  %v5616_v16 = vadd.f32 %v5615_v61, %v5572_v46  ;;  %6773 = vmatpush.bf16.msrb.mxu3 %v9254_v57  ;;  %v9265_v61 = vld [vmem:[#allocation11 + $0x1b0] sm:$0xff]  ;;  %v5489_v46 = vadd.f32 %v11609_v43, %v11547_v34  ;;  %v9263_v34 = vld [vmem:[#allocation11 + $0x1a0] sm:$0xff] }
 0x6f7   :  { %v5573_v7 = vpop.f32.mrf.mxu0 }
 0x6f8   :  { %v5490_v19 = vpop.f32.mrf.mxu1  ;;  %v5574_v35 = vadd.f32 %v5573_v7, %v5530_v20  ;;  %v5653_v15 = vmax.f32 %v5616_v16, 0.0  ;;  %v9272_v20 = vld [vmem:[#allocation11 + $0x1e8] sm:$0xff]  ;;  %v11958_v16 = vmax.f32 %v11947_v48, %v11424_v44 }
 0x6f9   :  { %6761 = vmatpush.bf16.msrb.mxu1 %v9245_v38  ;;  %6783 = vmatpush.bf16.msrb.mxu0 %v9265_v61  ;;  %v5491_v57 = vadd.f32 %v5490_v19, %v11553_v33  ;;  %v9251_v38 = vld [vmem:[#allocation11 + $0x140] sm:$0xff] }
 0x6fa   :  { %6774 = vmatpush.bf16.msrb.mxu3 %v9253_v9  ;;  %6797 = vmatpush.bf16.msrb.mxu2 %v9272_v20  ;;  %v9271_v9 = vld [vmem:[#allocation11 + $0x1e0] sm:$0xff] }
 0x6fd   :  { %v5617_v25 = vpop.f32.mrf.mxu2  ;;  %6762 = vmatpush.bf16.msrb.mxu1 %v9244_v55  ;;  %6784 = vmatpush.bf16.msrb.mxu0 %v9264_v36 }
 0x6fe   :  { %v5534_v29 = vpop.f32.mrf.mxu3  ;;  %v5618_v40 = vadd.f32 %v5617_v25, %v5574_v35  ;;  %6775 = vmatpush.bf16.msrb.mxu3 %v9252_v27  ;;  %v5533_v25 = vadd.f32 %v5532_v39, %v5489_v46  ;;  %6798 = vmatpush.bf16.msrb.mxu2 %v9271_v9  ;;  %v9262_v39 = vld [vmem:[#allocation11 + $0x198] sm:$0xff]  ;;  %v9261_v46 = vld [vmem:[#allocation11 + $0x190] sm:$0xff]  ;;  %v9288_v9 = vld [vmem:[#allocation11 + $0x268] sm:$0xff] }
 0x6ff   :  { %v5576_v23 = vpop.f32.mrf.mxu0  ;;  %v5535_v43 = vadd.f32 %v5534_v29, %v5491_v57  ;;  %v5320_v29 = vadd.f32 %v11549_v4, %v11466_v24  ;;  %v11959_v24 = vld [vmem:[#allocation42_spill] sm:$0xff] }
 0x700   :  { %v5657_v31 = vmax.f32 %v5618_v40, 0.0  ;;  %v11613_v10 = vpop.f32.mrf.mxu1  ;;  %v5577_v61 = vadd.f32 %v5576_v23, %v5533_v25 }
 0x701   :  { %6785 = vmatpush.bf16.msrb.mxu0 %v9263_v34  ;;  %v5364_v57 = vadd.f32 %v11551_v53, %v5320_v29  ;;  %v5494_v53 = vadd.f32 %v11613_v10, %v11560_v54  ;;  %v9287_v29 = vld [vmem:[#allocation11 + $0x260] sm:$0xff] }
 0x702   :  { %v5709_v7 = vmax.f32 %v5653_v15, %v5657_v31  ;;  %v9243_v31 = vld [vmem:[#allocation11 + $0x100] sm:$0xff]  ;;  %6776 = vmatpush.bf16.msrb.mxu3 %v9251_v38  ;;  %6799 = vmatpush.bf16.msrb.mxu2 %v9270_v56  ;;  %v9280_v38 = vld [vmem:[#allocation11 + $0x228] sm:$0xff] }
 0x703   :  { %6763 = vmatpush.bf16.msrb.mxu1 %v9243_v31  ;;  %v9268_v31 = vld [vmem:[#allocation11 + $0x1c8] sm:$0xff] }
 0x704   :  { %v5735_v6 = vmax.f32 %v11957_v14, %v5709_v7  ;;  %v9282_v7 = vld [vmem:[#allocation11 + $0x238] sm:$0xff] }
 0x705   :  { %v5620_v21 = vpop.f32.mrf.mxu2  ;;  %6786 = vmatpush.bf16.msrb.mxu0 %v9262_v39 }
 0x706   :  { %v5748_v35 = vpack.c.bf16 %v5735_v6, %v11958_v16  ;;  %v11621_v13 = vpop.f32.mrf.mxu3  ;;  %v5621_v33 = vadd.f32 %v5620_v21, %v5577_v61  ;;  %v9290_v6 = vld [vmem:[#allocation11 + $0x278] sm:$0xff]  ;;  %v9269_v16 = vld [vmem:[#allocation11 + $0x1d0] sm:$0xff] }
 0x707   :  { %v5578_v32 = vpop.f32.mrf.mxu0  ;;  %6800 = vmatpush.bf16.msrb.mxu2 %v9269_v16  ;;  %v5538_v56 = vadd.f32 %v11621_v13, %v5494_v53  ;;  %v9278_v13 = vld [vmem:[#allocation11 + $0x218] sm:$0xff] }
 0x708   :  { %v5756_v60 = vunpack.c.l.b16 %v5748_v35  ;;  %v5757_v40 = vunpack.c.h.b16 %v5748_v35  ;;  %v5495_v15 = vpop.f32.mrf.mxu1  ;;  %v5579_v19 = vadd.f32 %v5578_v32, %v5535_v43  ;;  %v5661_v36 = vmax.f32 %v5621_v33, 0.0  ;;  %v9281_v35 = vld [vmem:[#allocation11 + $0x230] sm:$0xff] }
 0x709   :  { %v9289_v32 = vld [vmem:[#allocation11 + $0x270] sm:$0xff]  ;;  %6787 = vmatpush.bf16.msrb.mxu0 %v9261_v46 }
 0x70a   :  { %v5758_v44 = vpack.c.b16 %v5756_v60, %v5756_v60  ;;  %v5759_v48 = vpack.c.b16 %v5757_v40, %v5757_v40  ;;  %v5408_v60 = vadd.f32 %v11562_v58, %v5364_v57  ;;  %v9260_v40 = vld [vmem:[#allocation11 + $0x188] sm:$0xff]  ;;  %v9298_v57 = vld [vmem:[#allocation11 + $0x2b8] sm:$0xff] }
 0x70b   :  { %6801 = vmatpush.bf16.msrb.mxu2 %v9268_v31  ;;  %v9277_v31 = vld [vmem:[#allocation11 + $0x210] sm:$0xff] }
 0x70c   :  { %6712 = vmatmul.bf16.vlgmr.msra.gmra.mxu1 %v5758_v44  ;;  %6725 = vmatmul.bf16.vlgmr.msra.gmra.mxu3 %v5759_v48  ;;  %v5452_v34 = vadd.f32 %v11566_v49, %v5408_v60  ;;  %v11960_v44 = vld [vmem:[#allocation39_spill] sm:$0xff] }
 0x70d   :  { %v5622_v14 = vpop.f32.mrf.mxu2  ;;  %6808 = vmatpush.bf16.msra.mxu1 %v9282_v7  ;;  %6821 = vmatpush.bf16.msra.mxu3 %v9290_v6  ;;  %v11961_v48 = vld [vmem:[#allocation31_spill] sm:$0xff] }
 0x70e   :  { %v5539_v55 = vpop.f32.mrf.mxu3  ;;  %v5623_v27 = vadd.f32 %v5622_v14, %v5579_v19  ;;  %v11962_v61 = vmax.f32 %v11960_v44, %v11961_v48  ;;  %6788 = vmatpush.bf16.msrb.mxu0 %v9260_v40  ;;  %v5496_v58 = vadd.f32 %v5495_v15, %v5452_v34  ;;  %v9259_v14 = vld [vmem:[#allocation11 + $0x180] sm:$0xff]  ;;  %v9297_v34 = vld [vmem:[#allocation11 + $0x2b0] sm:$0xff] }
 0x70f   :  { %v5581_v23 = vpop.f32.mrf.mxu0  ;;  %v9267_v6 = vld [vmem:[#allocation11 + $0x1c0] sm:$0xff] }
 0x710   :  { %v5665_v21 = vmax.f32 %v5623_v27, 0.0  ;;  %v11626_v20 = vpop.f32.mrf.mxu1  ;;  %v9279_v27 = vld [vmem:[#allocation11 + $0x220] sm:$0xff]  ;;  %v5540_v54 = vadd.f32 %v5539_v55, %v5496_v58  ;;  %v5582_v46 = vadd.f32 %v5581_v23, %v5538_v56  ;;  %6802 = vmatpush.bf16.msrb.mxu2 %v9267_v6  ;;  %v5325_v23 = vadd.f32 %v11564_v11, %v11482_v1  ;;  %v9296_v58 = vld [vmem:[#allocation11 + $0x2a8] sm:$0xff] }
 0x711   :  { %6809 = vmatpush.bf16.msra.mxu1 %v9281_v35  ;;  %6822 = vmatpush.bf16.msra.mxu3 %v9289_v32  ;;  %v9286_v35 = vld [vmem:[#allocation11 + $0x258] sm:$0xff] }
 0x712   :  { %v5713_v25 = vmax.f32 %v5661_v36, %v5665_v21  ;;  %6789 = vmatpush.bf16.msrb.mxu0 %v9259_v14  ;;  %v11963_v1 = vld [vmem:[#allocation22_spill] sm:$0xff] }
 0x714   :  { %v5737_v4 = vmax.f32 %v11959_v24, %v5713_v25  ;;  %v9306_v25 = vld [vmem:[#allocation11 + $0x2f8] sm:$0xff] }
 0x715   :  { %v5625_v43 = vpop.f32.mrf.mxu2  ;;  %6810 = vmatpush.bf16.msra.mxu1 %v9280_v38  ;;  %6823 = vmatpush.bf16.msra.mxu3 %v9288_v9  ;;  %v9285_v38 = vld [vmem:[#allocation11 + $0x250] sm:$0xff] }
 0x716   :  { %v5749_v33 = vpack.c.bf16 %v5737_v4, %v11962_v61  ;;  %v11637_v19 = vpop.f32.mrf.mxu3  ;;  %v5626_v15 = vadd.f32 %v5625_v43, %v5582_v46  ;;  %v5369_v43 = vadd.f32 %v11568_v5, %v5325_v23  ;;  %v9305_v9 = vld [vmem:[#allocation11 + $0x2f0] sm:$0xff]  ;;  %v9276_v61 = vld [vmem:[#allocation11 + $0x208] sm:$0xff]  ;;  %v5499_v5 = vadd.f32 %v11626_v20, %v11575_v26  ;;  %v9283_v46 = vld [vmem:[#allocation11 + $0x240] sm:$0xff] }
 0x717   :  { %v5583_v39 = vpop.f32.mrf.mxu0  ;;  %v9303_v20 = vld [vmem:[#allocation11 + $0x2e0] sm:$0xff]  ;;  %v9322_v23 = vld [vmem:[#allocation11 + $0x378] sm:$0xff] }
 0x718   :  { %v5763_v49 = vunpack.c.l.b16 %v5749_v33  ;;  %v5764_v7 = vunpack.c.h.b16 %v5749_v33  ;;  %v5500_v10 = vpop.f32.mrf.mxu1  ;;  %v5584_v16 = vadd.f32 %v5583_v39, %v5540_v54  ;;  %v5669_v4 = vmax.f32 %v5626_v15, 0.0  ;;  %v9284_v33 = vld [vmem:[#allocation11 + $0x248] sm:$0xff]  ;;  %v9295_v15 = vld [vmem:[#allocation11 + $0x2a0] sm:$0xff] }
 0x719   :  { %6811 = vmatpush.bf16.msra.mxu1 %v9279_v27  ;;  %6824 = vmatpush.bf16.msra.mxu3 %v9287_v29  ;;  %v5413_v44 = vadd.f32 %v11577_v30, %v5369_v43  ;;  %v5543_v29 = vadd.f32 %v11637_v19, %v5499_v5  ;;  %v9302_v19 = vld [vmem:[#allocation11 + $0x2d8] sm:$0xff]  ;;  %v9301_v43 = vld [vmem:[#allocation11 + $0x2d0] sm:$0xff]  ;;  %v11967_v5 = vmax.f32 %v11952_v3, %v11471_v42 }
 0x71a   :  { %v5765_v36 = vpack.c.b16 %v5763_v49, %v5763_v49  ;;  %v5766_v21 = vpack.c.b16 %v5764_v7, %v5764_v7  ;;  %v9304_v49 = vld [vmem:[#allocation11 + $0x2e8] sm:$0xff] }
 0x71b   :  { %v5457_v39 = vadd.f32 %v11581_v45, %v5413_v44  ;;  %v11964_v7 = vld [vmem:[#allocation32_spill] sm:$0xff] }
 0x71c   :  { %6738 = vmatmul.bf16.vlgmr.msra.gmra.mxu0 %v5765_v36  ;;  %6751 = vmatmul.bf16.vlgmr.msra.gmra.mxu2 %v5766_v21  ;;  %v11965_v14 = vmax.f32 %v11951_v0, %v11964_v7  ;;  %v9275_v21 = vld [vmem:[#allocation11 + $0x200] sm:$0xff]  ;;  %v9321_v44 = vld [vmem:[#allocation11 + $0x370] sm:$0xff] }
 0x71d   :  { %v5627_v32 = vpop.f32.mrf.mxu2  ;;  %6812 = vmatpush.bf16.msra.mxu1 %v9278_v13  ;;  %6834 = vmatpush.bf16.msra.mxu0 %v9298_v57  ;;  %v5501_v27 = vadd.f32 %v5500_v10, %v5457_v39  ;;  %v9294_v57 = vld [vmem:[#allocation11 + $0x298] sm:$0xff] }
 0x71e   :  { %v5544_v60 = vpop.f32.mrf.mxu3  ;;  %v5628_v55 = vadd.f32 %v5627_v32, %v5584_v16  ;;  %6825 = vmatpush.bf16.msra.mxu3 %v9286_v35  ;;  %6847 = vmatpush.bf16.msra.mxu2 %v9306_v25  ;;  %v9314_v32 = vld [vmem:[#allocation11 + $0x338] sm:$0xff] }
 0x71f   :  { %v5586_v24 = vpop.f32.mrf.mxu0  ;;  %v5545_v26 = vadd.f32 %v5544_v60, %v5501_v27  ;;  %v5330_v60 = vadd.f32 %v11579_v63, %v11498_v47  ;;  %v11966_v47 = vld [vmem:[#allocation23_spill] sm:$0xff] }
 0x720   :  { %v5673_v40 = vmax.f32 %v5628_v55, 0.0  ;;  %v11644_v48 = vpop.f32.mrf.mxu1  ;;  %v5587_v13 = vadd.f32 %v5586_v24, %v5543_v29  ;;  %v9291_v29 = vld [vmem:[#allocation11 + $0x280] sm:$0xff] }
 0x721   :  { %6813 = vmatpush.bf16.msra.mxu1 %v9277_v31  ;;  %6835 = vmatpush.bf16.msra.mxu0 %v9297_v34  ;;  %v9293_v34 = vld [vmem:[#allocation11 + $0x290] sm:$0xff] }
 0x722   :  { %v5717_v53 = vmax.f32 %v5669_v4, %v5673_v40  ;;  %6826 = vmatpush.bf16.msra.mxu3 %v9285_v38  ;;  %6848 = vmatpush.bf16.msra.mxu2 %v9305_v9  ;;  %v9313_v9 = vld [vmem:[#allocation11 + $0x330] sm:$0xff] }
 0x724   :  { %v5739_v11 = vmax.f32 %v11963_v1, %v5717_v53  ;;  %v5374_v53 = vadd.f32 %v11583_v8, %v5330_v60  ;;  %v5504_v8 = vadd.f32 %v11644_v48, %v11590_v18  ;;  %v9319_v48 = vld [vmem:[#allocation11 + $0x360] sm:$0xff]  ;;  %v9308_v60 = vld [vmem:[#allocation11 + $0x308] sm:$0xff] }
 0x725   :  { %v5630_v56 = vpop.f32.mrf.mxu2  ;;  %6814 = vmatpush.bf16.msra.mxu1 %v9276_v61  ;;  %6836 = vmatpush.bf16.msra.mxu0 %v9296_v58  ;;  %v9292_v61 = vld [vmem:[#allocation11 + $0x288] sm:$0xff] }
 0x726   :  { %v5750_v30 = vpack.c.bf16 %v5739_v11, %v11965_v14  ;;  %v11653_v6 = vpop.f32.mrf.mxu3  ;;  %6827 = vmatpush.bf16.msra.mxu3 %v9284_v33  ;;  %6849 = vmatpush.bf16.msra.mxu2 %v9304_v49  ;;  %v5631_v10 = vadd.f32 %v5630_v56, %v5587_v13  ;;  %v5418_v11 = vadd.f32 %v11592_v12, %v5374_v53  ;;  %v9300_v33 = vld [vmem:[#allocation11 + $0x2c8] sm:$0xff] }
 0x727   :  { %v5588_v54 = vpop.f32.mrf.mxu0  ;;  %v9312_v58 = vld [vmem:[#allocation11 + $0x328] sm:$0xff]  ;;  %v5548_v27 = vadd.f32 %v11653_v6, %v5504_v8  ;;  %v9310_v6 = vld [vmem:[#allocation11 + $0x318] sm:$0xff] }
 0x728   :  { %v5770_v45 = vunpack.c.l.b16 %v5750_v30  ;;  %v5771_v36 = vunpack.c.h.b16 %v5750_v30  ;;  %v5589_v35 = vadd.f32 %v5588_v54, %v5545_v26  ;;  %v5505_v25 = vpop.f32.mrf.mxu1  ;;  %v5677_v31 = vmax.f32 %v5631_v10, 0.0  ;;  %v9320_v49 = vld [vmem:[#allocation11 + $0x368] sm:$0xff] }
 0x729   :  { %6815 = vmatpush.bf16.msra.mxu1 %v9275_v21  ;;  %6837 = vmatpush.bf16.msra.mxu0 %v9295_v15  ;;  %v5462_v39 = vadd.f32 %v11594_v2, %v5418_v11 }
 0x72a   :  { %v5772_v16 = vpack.c.b16 %v5770_v45, %v5770_v45  ;;  %v5773_v0 = vpack.c.b16 %v5771_v36, %v5771_v36  ;;  %6828 = vmatpush.bf16.msra.mxu3 %v9283_v46  ;;  %6850 = vmatpush.bf16.msra.mxu2 %v9303_v20  ;;  %v9299_v45 = vld [vmem:[#allocation11 + $0x2c0] sm:$0xff]  ;;  %v9318_v20 = vld [vmem:[#allocation11 + $0x358] sm:$0xff] }
 0x72b   :  { %v5506_v12 = vadd.f32 %v5505_v25, %v5462_v39  ;;  %v9311_v36 = vld [vmem:[#allocation11 + $0x320] sm:$0xff] }
 0x72c   :  { %6764 = vmatmul.bf16.vlgmr.msrb.gmra.mxu1 %v5772_v16  ;;  %6777 = vmatmul.bf16.vlgmr.msrb.gmra.mxu3 %v5773_v0 }
 0x72d   :  { %v5632_v55 = vpop.f32.mrf.mxu2  ;;  %6838 = vmatpush.bf16.msra.mxu0 %v9294_v57  ;;  %6860 = vmatpush.bf16.msrb.mxu1 %v9314_v32  ;;  %v9309_v57 = vld [vmem:[#allocation11 + $0x310] sm:$0xff] }
 0x72e   :  { %v5633_v4 = vadd.f32 %v5632_v55, %v5589_v35  ;;  %v5549_v24 = vpop.f32.mrf.mxu3  ;;  %6851 = vmatpush.bf16.msra.mxu2 %v9302_v19  ;;  %6873 = vmatpush.bf16.msrb.mxu3 %v9322_v23  ;;  %v9317_v19 = vld [vmem:[#allocation11 + $0x350] sm:$0xff]  ;;  %v11968_v23 = vld [vmem:[#allocation43_spill] sm:$0xff] }
 0x72f   :  { %v5591_v40 = vpop.f32.mrf.mxu0  ;;  %v5550_v21 = vadd.f32 %v5549_v24, %v5506_v12  ;;  %v9316_v24 = vld [vmem:[#allocation11 + $0x348] sm:$0xff] }
 0x730   :  { %v5681_v38 = vmax.f32 %v5633_v4, 0.0  ;;  %v5508_v14 = vpop.f32.mrf.mxu1  ;;  %v5592_v3 = vadd.f32 %v5591_v40, %v5548_v27 }
 0x731   :  { %6839 = vmatpush.bf16.msra.mxu0 %v9293_v34  ;;  %6861 = vmatpush.bf16.msrb.mxu1 %v9313_v9 }
 0x732   :  { %v5721_v1 = vmax.f32 %v5677_v31, %v5681_v38  ;;  %6852 = vmatpush.bf16.msra.mxu2 %v9301_v43  ;;  %6874 = vmatpush.bf16.msrb.mxu3 %v9321_v44  ;;  %v5509_v31 = vadd.f32 %v5508_v14, %v11600_v59  ;;  %v11969_v38 = vld [vmem:[#allocation45_spill] sm:$0xff] }
 0x733   :  { %v11970_v34 = vmax.f32 %v11954_v62, %v11969_v38 }
 0x734   :  { %v5741_v63 = vmax.f32 %v11966_v47, %v5721_v1  ;;  %v9307_v47 = vld [vmem:[#allocation11 + $0x300] sm:$0xff] }
 0x735   :  { %v5635_v56 = vpop.f32.mrf.mxu2  ;;  %6840 = vmatpush.bf16.msra.mxu0 %v9292_v61  ;;  %6862 = vmatpush.bf16.msrb.mxu1 %v9312_v58 }
 0x736   :  { %v5751_v7 = vpack.c.bf16 %v5741_v63, %v11967_v5  ;;  %6853 = vmatpush.bf16.msra.mxu2 %v9300_v33  ;;  %6875 = vmatpush.bf16.msrb.mxu3 %v9320_v49  ;;  %v5552_v18 = vpop.f32.mrf.mxu3  ;;  %v5636_v15 = vadd.f32 %v5635_v56, %v5592_v3  ;;  %v9315_v63 = vld [vmem:[#allocation11 + $0x340] sm:$0xff] }
 0x737   :  { %v5593_v30 = vpop.f32.mrf.mxu0  ;;  %v5553_v53 = vadd.f32 %v5552_v18, %v5509_v31 }
 0x738   :  { %v5777_v54 = vunpack.c.l.b16 %v5751_v7  ;;  %v5778_v2 = vunpack.c.h.b16 %v5751_v7  ;;  %v5594_v26 = vadd.f32 %v5593_v30, %v5550_v21  ;;  %v5685_v10 = vmax.f32 %v5636_v15, 0.0  ;;  %v5510_v32 = vpop.f32.mrf.mxu1  ;;  %v11971_v30 = vld [vmem:[#allocation44_spill] sm:$0xff] }
 0x739   :  { %6841 = vmatpush.bf16.msra.mxu0 %v9291_v29  ;;  %6863 = vmatpush.bf16.msrb.mxu1 %v9311_v36  ;;  %v5511_v44 = vadd.f32 %v5510_v32, %v11603_v17 }
 0x73a   :  { %v5779_v46 = vpack.c.b16 %v5777_v54, %v5777_v54  ;;  %v5780_v42 = vpack.c.b16 %v5778_v2, %v5778_v2  ;;  %6854 = vmatpush.bf16.msra.mxu2 %v9299_v45  ;;  %6876 = vmatpush.bf16.msrb.mxu3 %v9319_v48  ;;  %v11972_v45 = vmax.f32 %v11955_v22, %v11503_v52 }
 0x73c   :  { %6790 = vmatmul.bf16.vlgmr.msrb.gmra.mxu0 %v5779_v46  ;;  %6803 = vmatmul.bf16.vlgmr.msrb.gmra.mxu2 %v5780_v42 }
 0x73d   :  { %v5637_v16 = vpop.f32.mrf.mxu2  ;;  %6864 = vmatpush.bf16.msrb.mxu1 %v9310_v6 }
 0x73e   :  { %v5638_v0 = vadd.f32 %v5637_v16, %v5594_v26  ;;  %6877 = vmatpush.bf16.msrb.mxu3 %v9318_v20  ;;  %v5554_v55 = vpop.f32.mrf.mxu3 }
 0x73f   :  { %v5596_v13 = vpop.f32.mrf.mxu0  ;;  %v5555_v61 = vadd.f32 %v5554_v55, %v5511_v44 }
 0x740   :  { %v5689_v35 = vmax.f32 %v5638_v0, 0.0  ;;  %v5597_v39 = vadd.f32 %v5596_v13, %v5553_v53  ;;  %v5513_v59 = vpop.f32.mrf.mxu1 }
 0x741   :  { %6865 = vmatpush.bf16.msrb.mxu1 %v9309_v57  ;;  %v5514_v29 = vadd.f32 %v5513_v59, %v11605_v37 }
 0x742   :  { %v5725_v25 = vmax.f32 %v5685_v10, %v5689_v35  ;;  %6878 = vmatpush.bf16.msrb.mxu3 %v9317_v19  ;;  %v11973_v35 = vld [vmem:[#allocation40_spill] sm:$0xff] }
 0x744   :  { %v5743_v4 = vmax.f32 %v11968_v23, %v5725_v25 }
 0x745   :  { %v5640_v40 = vpop.f32.mrf.mxu2  ;;  %6866 = vmatpush.bf16.msrb.mxu1 %v9308_v60 }
 0x746   :  { %v5752_v43 = vpack.c.bf16 %v5743_v4, %v11970_v34  ;;  %6879 = vmatpush.bf16.msrb.mxu3 %v9316_v24  ;;  %v5641_v56 = vadd.f32 %v5640_v40, %v5597_v39  ;;  %v5557_v49 = vpop.f32.mrf.mxu3  ;;  %v9348_v4 = vld [vmem:[#allocation13] ss:$0 sm:$0xff] }
 0x747   :  { %v5598_v9 = vpop.f32.mrf.mxu0  ;;  %v5558_v18 = vadd.f32 %v5557_v49, %v5514_v29 }
 0x748   :  { %v5784_v1 = vunpack.c.l.b16 %v5752_v43  ;;  %v5785_v11 = vunpack.c.h.b16 %v5752_v43  ;;  %v5599_v62 = vadd.f32 %v5598_v9, %v5555_v61  ;;  %v5693_v17 = vmax.f32 %v5641_v56, 0.0  ;;  %v5515_v54 = vpop.f32.mrf.mxu1 }
 0x749   :  { %6867 = vmatpush.bf16.msrb.mxu1 %v9307_v47  ;;  %v5516_v48 = vadd.f32 %v5515_v54, %v11607_v41 }
 0x74a   :  { %v5786_v33 = vpack.c.b16 %v5784_v1, %v5784_v1  ;;  %v5787_v58 = vpack.c.b16 %v5785_v11, %v5785_v11  ;;  %6880 = vmatpush.bf16.msrb.mxu3 %v9315_v63 }
 0x74c   :  { %6816 = vmatmul.bf16.vlgmr.msra.gmra.mxu1 %v5786_v33  ;;  %6829 = vmatmul.bf16.vlgmr.msra.gmra.mxu3 %v5787_v58 }
 0x74d   :  { %v5642_v8 = vpop.f32.mrf.mxu2 }
 0x74e   :  { %v5643_v5 = vadd.f32 %v5642_v8, %v5599_v62  ;;  %v5559_v21 = vpop.f32.mrf.mxu3 }
 0x74f   :  { %v5601_v7 = vpop.f32.mrf.mxu0  ;;  %v5560_v15 = vadd.f32 %v5559_v21, %v5516_v48 }
 0x750   :  { %v5697_v12 = vmax.f32 %v5643_v5, 0.0  ;;  %v5602_v20 = vadd.f32 %v5601_v7, %v5558_v18 }
 0x752   :  { %v5729_v14 = vmax.f32 %v5693_v17, %v5697_v12 }
 0x754   :  { %v5745_v27 = vmax.f32 %v11971_v30, %v5729_v14 }
 0x755   :  { %v5645_v2 = vpop.f32.mrf.mxu2 }
 0x756   :  { %v5753_v36 = vpack.c.bf16 %v5745_v27, %v11972_v45  ;;  %v5646_v16 = vadd.f32 %v5645_v2, %v5602_v20 }
 0x757   :  { %v5603_v3 = vpop.f32.mrf.mxu0 }
 0x758   :  { %v5791_v46 = vunpack.c.l.b16 %v5753_v36  ;;  %v5792_v42 = vunpack.c.h.b16 %v5753_v36  ;;  %v5604_v0 = vadd.f32 %v5603_v3, %v5560_v15  ;;  %v5701_v10 = vmax.f32 %v5646_v16, 0.0 }
 0x75a   :  { %v5793_v26 = vpack.c.b16 %v5791_v46, %v5791_v46  ;;  %v5794_v6 = vpack.c.b16 %v5792_v42, %v5792_v42 }
 0x75c   :  { %6842 = vmatmul.bf16.vlgmr.msra.gmra.mxu0 %v5793_v26  ;;  %6855 = vmatmul.bf16.vlgmr.msra.gmra.mxu2 %v5794_v6 }
 0x75d   :  { %v5647_v37 = vpop.f32.mrf.mxu2 }
 0x75e   :  { %v5648_v13 = vadd.f32 %v5647_v37, %v5604_v0 }
 0x760   :  { %v5705_v52 = vmax.f32 %v5648_v13, 0.0 }
 0x762   :  { %v5733_v22 = vmax.f32 %v5701_v10, %v5705_v52 }
 0x764   :  { %v5747_v57 = vmax.f32 %v11973_v35, %v5733_v22 }
 0x766   :  { %v5754_v41 = vpack.c.bf16 %v5747_v57, %v5746_v28 }
 0x768   :  { %v5798_v19 = vunpack.c.l.b16 %v5754_v41  ;;  %v5799_v32 = vunpack.c.h.b16 %v5754_v41 }
 0x76a   :  { %v5800_v25 = vpack.c.b16 %v5798_v19, %v5798_v19  ;;  %v5801_v55 = vpack.c.b16 %v5799_v32, %v5799_v32 }
 0x76c   :  { %6868 = vmatmul.bf16.vlgmr.msrb.gmra.mxu1 %v5800_v25  ;;  %6881 = vmatmul.bf16.vlgmr.msrb.gmra.mxu3 %v5801_v55 }
 0x789   :  { %v6713_v23 = vpop.f32.mrf.mxu1 }
 0x78a   :  { %v6714_v60 = vadd.f32 %v9348_v4, %v6713_v23 }
 0x78f   :  { %v6726_v24 = vpop.f32.mrf.mxu3 }
 0x790   :  { %v6727_v40 = vadd.f32 %v6726_v24, %v6714_v60 }
 0x791   :  { %v6715_v31 = vpop.f32.mrf.mxu1 }
 0x797   :  { %v6728_v38 = vpop.f32.mrf.mxu3 }
 0x799   :  { %v6739_v34 = vpop.f32.mrf.mxu0 }
 0x79a   :  { %v6740_v43 = vadd.f32 %v6739_v34, %v6727_v40 }
 0x79f   :  { %v6752_v9 = vpop.f32.mrf.mxu2 }
 0x7a0   :  { %v6753_v62 = vadd.f32 %v6752_v9, %v6740_v43 }
 0x7a1   :  { %v6741_v53 = vpop.f32.mrf.mxu0 }
 0x7a7   :  { %v6754_v44 = vpop.f32.mrf.mxu2 }
 0x7a9   :  { %v6765_v51 = vpop.f32.mrf.mxu1 }
 0x7aa   :  { %v6766_v49 = vadd.f32 %v6765_v51, %v6753_v62 }
 0x7af   :  { %v6778_v50 = vpop.f32.mrf.mxu3 }
 0x7b0   :  { %v6779_v5 = vadd.f32 %v6778_v50, %v6766_v49 }
 0x7b1   :  { %v6767_v28 = vpop.f32.mrf.mxu1 }
 0x7b7   :  { %v6780_v1 = vpop.f32.mrf.mxu3 }
 0x7b9   :  { %v6791_v11 = vpop.f32.mrf.mxu0 }
 0x7ba   :  { %v6792_v17 = vadd.f32 %v6791_v11, %v6779_v5 }
 0x7bf   :  { %v6804_v47 = vpop.f32.mrf.mxu2 }
 0x7c0   :  { %v6805_v12 = vadd.f32 %v6804_v47, %v6792_v17 }
 0x7c1   :  { %v6793_v63 = vpop.f32.mrf.mxu0 }
 0x7c7   :  { %v6806_v61 = vpop.f32.mrf.mxu2 }
 0x7c9   :  { %v6817_v33 = vpop.f32.mrf.mxu1 }
 0x7ca   :  { %v6818_v14 = vadd.f32 %v6817_v33, %v6805_v12 }
 0x7cf   :  { %v6830_v58 = vpop.f32.mrf.mxu3 }
 0x7d0   :  { %v6831_v27 = vadd.f32 %v6830_v58, %v6818_v14 }
 0x7d1   :  { %v6819_v39 = vpop.f32.mrf.mxu1 }
 0x7d7   :  { %v6832_v59 = vpop.f32.mrf.mxu3 }
 0x7d9   :  { %v6843_v56 = vpop.f32.mrf.mxu0 }
 0x7da   :  { %v6844_v2 = vadd.f32 %v6843_v56, %v6831_v27 }
 0x7df   :  { %v6856_v8 = vpop.f32.mrf.mxu2 }
 0x7e0   :  { %v6857_v29 = vadd.f32 %v6856_v8, %v6844_v2 }
 0x7e1   :  { %v6845_v7 = vpop.f32.mrf.mxu0 }
 0x7e7   :  { %v6858_v30 = vpop.f32.mrf.mxu2 }
 0x7e9   :  { %v6869_v54 = vpop.f32.mrf.mxu1 }
 0x7ea   :  { %v6870_v45 = vadd.f32 %v6869_v54, %v6857_v29 }
 0x7ef   :  { %v6882_v36 = vpop.f32.mrf.mxu3 }
 0x7f0   :  { %v6883_v21 = vadd.f32 %v6882_v36, %v6870_v45 }
 0x7f1   :  { %v6871_v18 = vpop.f32.mrf.mxu1 }
 0x7f2   :  { %6886 = vst [vmem:[#allocation14] sm:$0xff] %v6883_v21 }
 0x7f3   :  { %6897 = dma.vmem_to_hbm [thread:$0]  %s6893_s13, 128, %s6895_s15, [#allocation4]  }
 0x7f7   :  { %v6884_v48 = vpop.f32.mrf.mxu3 }
 0x7f8   :  { %9555 = dma.done.wait [#allocation4], 128  }
 0x7f9   :  { %9556 = vsyncadd [#allocation4], 4294967168 }
 0x7fa   :  { %6902 = vsyncpa [#allocation3], 1 }
 0x7fb   :  { %6903 = vsyncpa [#allocation6], 1 }
 0x7fc   :  { %6904 = vsyncpa [#allocation9], 1 }
 0x7fd   :  { %6905 = vsyncpa [#allocation12], 1 }
 0x7fe   :  { %6906 = vsyncpa [#allocation4], 1 }

</bundles_post_ra>
